<compile_context>
chip_gen: v7x
topology: tpu7x:2x2x1
jax: 0.10.0
libtpu: 0.0.40
codegen_flags: <defaults>
</compile_context>

<pallas_src>
import functools
import jax
import jax.numpy as jnp
from jax import lax
from jax.experimental import pallas as pl
from jax.experimental.pallas import tpu as pltpu


_VMEM_LIMIT = 32 * 1024 * 1024  # sized for v7x (64 MiB physical / 32 MiB scoped)


def _round_up(x, m):
    return (x + m - 1) // m * m


# ----------------------------------------------------------------------------
# Pallas kernels
# ----------------------------------------------------------------------------
def _matmul_bn_silu_kernel(x_ref, w_ref, s_ref, b_ref, o_ref):
    # x: (tm, K) bf16 patch tile, w: (K, Np) bf16, s/b: (1, Np) f32 folded BN.
    acc = jnp.dot(x_ref[...], w_ref[...], preferred_element_type=jnp.float32)
    y = acc * s_ref[...] + b_ref[...]
    o_ref[...] = y * (1.0 / (1.0 + jnp.exp(-y)))          # SiLU, f32 epilogue


def _matmul_bn_silu_add_kernel(x_ref, w_ref, s_ref, b_ref, r_ref, o_ref):
    # Same as above with a fused residual add (bottleneck shortcut).
    acc = jnp.dot(x_ref[...], w_ref[...], preferred_element_type=jnp.float32)
    y = acc * s_ref[...] + b_ref[...]
    o_ref[...] = y * (1.0 / (1.0 + jnp.exp(-y))) + r_ref[...]


def _max_reduce_kernel(x_ref, o_ref):
    # x: (K, tf) stacked shifted windows -> running max over the window axis.
    o_ref[...] = jnp.max(x_ref[...], axis=0, keepdims=True)


# ----------------------------------------------------------------------------
# Kernel wrappers
# ----------------------------------------------------------------------------
def _fused_conv_matmul(patches, w2d, scale, bias, residual2d=None):
    """SiLU(BN(patches @ w2d)) [+ residual]; tiled/pipelined over M, lane-dense N."""
    M, K = patches.shape
    _, Np = w2d.shape                         # Np is a multiple of 128
    tm = min(512, _round_up(M, 8))
    Mp = _round_up(M, tm)
    if Mp != M:
        patches = jnp.pad(patches, ((0, Mp - M), (0, 0)))
    grid = (Mp // tm,)

    x_spec = pl.BlockSpec((tm, K), lambda i: (i, 0))
    w_spec = pl.BlockSpec((K, Np), lambda i: (0, 0))
    v_spec = pl.BlockSpec((1, Np), lambda i: (0, 0))
    o_spec = pl.BlockSpec((tm, Np), lambda i: (i, 0))

    nbytes = Mp * K * 2 + K * Np * 2 + 2 * Np * 4 + Mp * Np * 4
    kernel = _matmul_bn_silu_kernel
    in_specs = [x_spec, w_spec, v_spec, v_spec]
    args = [patches, w2d, scale, bias]
    if residual2d is not None:
        r = jnp.pad(residual2d,
                    ((0, Mp - residual2d.shape[0]), (0, Np - residual2d.shape[1])))
        kernel = _matmul_bn_silu_add_kernel
        in_specs = in_specs + [o_spec]
        args = args + [r]
        nbytes += Mp * Np * 4

    return pl.pallas_call(
        kernel,
        out_shape=jax.ShapeDtypeStruct((Mp, Np), jnp.float32),
        grid=grid,
        in_specs=in_specs,
        out_specs=o_spec,
        compiler_params=pltpu.CompilerParams(
            dimension_semantics=("parallel",),
            vmem_limit_bytes=_VMEM_LIMIT),
        cost_estimate=pl.CostEstimate(
            flops=2 * Mp * K * Np,
            transcendentals=Mp * Np,
            bytes_accessed=nbytes),
    )(*args)


def _max_pool_reduce(stacked):
    """Reduce-max over axis 0 of a (K, F) stack; lane-dense, tiled over F."""
    Kk, F = stacked.shape
    tf = min(16384, _round_up(F, 128))
    Fp = _round_up(F, tf)
    if Fp != F:
        stacked = jnp.pad(stacked, ((0, 0), (0, Fp - F)))
    out = pl.pallas_call(
        _max_reduce_kernel,
        out_shape=jax.ShapeDtypeStruct((1, Fp), jnp.float32),
        grid=(Fp // tf,),
        in_specs=[pl.BlockSpec((Kk, tf), lambda i: (0, i))],
        out_specs=pl.BlockSpec((1, tf), lambda i: (0, i)),
        compiler_params=pltpu.CompilerParams(
            dimension_semantics=("parallel",),
            vmem_limit_bytes=_VMEM_LIMIT),
        cost_estimate=pl.CostEstimate(
            flops=Kk * Fp, transcendentals=0,
            bytes_accessed=Kk * Fp * 4 + Fp * 4),
    )(stacked)
    return out[0, :F]


# ----------------------------------------------------------------------------
# Plain-JAX glue (im2col, pooling window extraction)
# ----------------------------------------------------------------------------
def _im2col(x, k, stride, pad):
    # x: (N, H, W, C) -> patches (N*OH*OW, C*k*k), flatten order (c, kh, kw).
    N, H, W, C = x.shape
    OH = (H + 2 * pad - k) // stride + 1
    OW = (W + 2 * pad - k) // stride + 1
    xp = jnp.pad(x, ((0, 0), (pad, pad), (pad, pad), (0, 0)))
    cols = []
    for kh in range(k):
        for kw in range(k):
            patch = lax.slice(
                xp,
                (0, kh, kw, 0),
                (N, kh + (OH - 1) * stride + 1, kw + (OW - 1) * stride + 1, C),
                (1, stride, stride, 1),
            )  # (N, OH, OW, C)
            cols.append(patch)
    pat = jnp.stack(cols, axis=3)                 # (N, OH, OW, k*k, C)
    pat = jnp.transpose(pat, (0, 1, 2, 4, 3))     # (N, OH, OW, C, k*k)
    return pat.reshape(N * OH * OW, C * k * k), (N, OH, OW)


def base_conv(prep, x, stride=1, residual=None):
    """BaseConv: Conv2d(k, stride, pad=(k-1)//2, bias=False) + BN(eps=1e-3) + SiLU."""
    k, cout = prep["k"], prep["cout"]
    pad = (k - 1) // 2
    cols, (N, OH, OW) = _im2col(x, k, stride, pad)
    M = N * OH * OW
    cols = cols.astype(jnp.bfloat16)              # bf16 MXU inputs, f32 accumulate
    r2d = None
    if residual is not None:
        r2d = residual.reshape(M, cout).astype(jnp.float32)
    y = _fused_conv_matmul(cols, prep["w2d"], prep["scale"], prep["bias"], r2d)
    return y[:M, :cout].reshape(N, OH, OW, cout)


def maxpool_same(x, ks):
    """nn.MaxPool2d(ks, stride=1, padding=ks//2), separable (rows then cols)."""
    N, H, W, C = x.shape
    pad = ks // 2
    # Pool along H.
    xp = jnp.pad(x, ((0, 0), (pad, pad), (0, 0), (0, 0)),
                 constant_values=-jnp.inf)
    rows = jnp.stack([lax.slice(xp, (0, kh, 0, 0), (N, kh + H, W, C))
                      for kh in range(ks)], axis=0)
    y = _max_pool_reduce(rows.reshape(ks, N * H * W * C)).reshape(N, H, W, C)
    # Pool along W.
    yp = jnp.pad(y, ((0, 0), (0, 0), (pad, pad), (0, 0)),
                 constant_values=-jnp.inf)
    cols = jnp.stack([lax.slice(yp, (0, 0, kw, 0), (N, H, kw + W, C))
                      for kw in range(ks)], axis=0)
    return _max_pool_reduce(cols.reshape(ks, N * H * W * C)).reshape(N, H, W, C)


# ----------------------------------------------------------------------------
# Module forward functions (mirror the PyTorch structure)
# ----------------------------------------------------------------------------
def focus_fwd(p, x):
    # resize = 2: gather 4 pixel phases, concat along channels, then BaseConv(k=3).
    tl = x[:, 0::2, 0::2, :]
    bl = x[:, 1::2, 0::2, :]
    tr = x[:, 0::2, 1::2, :]
    br = x[:, 1::2, 1::2, :]
    xc = jnp.concatenate([tl, bl, tr, br], axis=-1)
    return base_conv(p, xc, stride=1)


def bottleneck_fwd(p, x, shortcut):
    y = base_conv(p["conv1"], x)
    if shortcut and x.shape[-1] == p["conv2"]["cout"]:
        return base_conv(p["conv2"], y, residual=x)   # fused shortcut add
    return base_conv(p["conv2"], y)


def csp_fwd(p, x, shortcut):
    x1 = base_conv(p["conv1"], x)
    x2 = base_conv(p["conv2"], x)
    for bp in p["m"]:
        x1 = bottleneck_fwd(bp, x1, shortcut)
    xc = jnp.concatenate([x1, x2], axis=-1)
    return base_conv(p["conv3"], xc)


def spp_fwd(p, x):
    x = base_conv(p["conv1"], x)
    outs = [x] + [maxpool_same(x, ks) for ks in (5, 9, 13)]
    x = jnp.concatenate(outs, axis=-1)
    return base_conv(p["conv2"], x)


def cspdarknet_fwd(params, x_nchw, out_features=("dark3", "dark4", "dark5")):
    x = jnp.transpose(x_nchw, (0, 2, 3, 1))  # NCHW -> NHWC (internal layout)
    outputs = {}
    x = focus_fwd(params["stem"], x)
    outputs["stem"] = x
    x = base_conv(params["dark2"]["conv"], x, stride=2)
    x = csp_fwd(params["dark2"]["csp"], x, shortcut=True)
    outputs["dark2"] = x
    x = base_conv(params["dark3"]["conv"], x, stride=2)
    x = csp_fwd(params["dark3"]["csp"], x, shortcut=True)
    outputs["dark3"] = x
    x = base_conv(params["dark4"]["conv"], x, stride=2)
    x = csp_fwd(params["dark4"]["csp"], x, shortcut=True)
    outputs["dark4"] = x
    x = base_conv(params["dark5"]["conv"], x, stride=2)
    x = spp_fwd(params["dark5"]["spp"], x)
    x = csp_fwd(params["dark5"]["csp"], x, shortcut=False)
    outputs["dark5"] = x
    return {k: jnp.transpose(v, (0, 3, 1, 2))  # back to NCHW
            for k, v in outputs.items() if k in out_features}


# ----------------------------------------------------------------------------
# One-time parameter preparation: fold BN, reshape/pad/bf16-cast weights.
# ----------------------------------------------------------------------------
def _fold_base_conv(p):
    k = int(p["k"])
    w = p["w"]                                   # (cout, cin, k, k)
    cout, cin = int(w.shape[0]), int(w.shape[1])
    Kdim = cin * k * k
    n_pad = _round_up(cout, 128)                 # lane-dense output channels
    w2d = w.reshape(cout, Kdim).T                # (Kdim, cout)
    w2d = jnp.pad(w2d, ((0, 0), (0, n_pad - cout))).astype(jnp.bfloat16)
    inv_std = 1.0 / jnp.sqrt(p["var"] + 1e-3)
    scale = p["gamma"] * inv_std
    bias = p["beta"] - p["mean"] * p["gamma"] * inv_std
    # Padded lanes: scale=1, bias=0 -> SiLU(0)=0, so they stay exactly zero.
    scale = jnp.pad(scale, (0, n_pad - cout),
                    constant_values=1.0).reshape(1, n_pad).astype(jnp.float32)
    bias = jnp.pad(bias, (0, n_pad - cout)).reshape(1, n_pad).astype(jnp.float32)
    return {"w2d": w2d, "scale": scale, "bias": bias, "k": k, "cout": cout}


def prepare_params(raw):
    if isinstance(raw, dict):
        if "w" in raw:
            return _fold_base_conv(raw)
        return {name: prepare_params(v) for name, v in raw.items()}
    if isinstance(raw, (list, tuple)):
        return [prepare_params(v) for v in raw]
    return raw


# ----------------------------------------------------------------------------
# Deterministic parameter initialization (mirrors the module's __init__ shapes)
# ----------------------------------------------------------------------------
class _ParamGen:
    def __init__(self, key):
        self.key = key

    def normal(self, shape, scale=1.0):
        self.key, sub = jax.random.split(self.key)
        return scale * jax.random.normal(sub, shape, jnp.float32)


def init_base_conv(pg, cin, cout, k):
    return {
        "w": pg.normal((cout, cin, k, k), 0.05),
        "gamma": 1.0 + pg.normal((cout,), 0.01),
        "beta": pg.normal((cout,), 0.01),
        "mean": pg.normal((cout,), 0.01),
        "var": 1.0 + jnp.abs(pg.normal((cout,), 0.1)),
        "k": k,
    }


def init_bottleneck(pg, cin, cout, expansion=1.0):
    hidden = int(cout * expansion)
    return {
        "conv1": init_base_conv(pg, cin, hidden, 1),
        "conv2": init_base_conv(pg, hidden, cout, 3),
    }


def init_csp(pg, cin, cout, n, expansion=0.5):
    hidden = int(cout * expansion)
    return {
        "conv1": init_base_conv(pg, cin, hidden, 1),
        "conv2": init_base_conv(pg, cin, hidden, 1),
        "conv3": init_base_conv(pg, 2 * hidden, cout, 1),
        "m": [init_bottleneck(pg, hidden, hidden, 1.0) for _ in range(n)],
    }


def init_cspdarknet(key, dep_mul, wid_mul):
    pg = _ParamGen(key)
    bc = int(wid_mul * 64)                      # base_channels
    bd = max(round(dep_mul * 3), 1)             # base_depth
    return {
        "stem": init_base_conv(pg, 3 * 4, bc, 3),
        "dark2": {"conv": init_base_conv(pg, bc, bc * 2, 3),
                  "csp": init_csp(pg, bc * 2, bc * 2, bd)},
        "dark3": {"conv": init_base_conv(pg, bc * 2, bc * 4, 3),
                  "csp": init_csp(pg, bc * 4, bc * 4, bd * 3)},
        "dark4": {"conv": init_base_conv(pg, bc * 4, bc * 8, 3),
                  "csp": init_csp(pg, bc * 8, bc * 8, bd * 3)},
        "dark5": {"conv": init_base_conv(pg, bc * 8, bc * 16, 3),
                  "spp": {"conv1": init_base_conv(pg, bc * 16, bc * 8, 1),
                          "conv2": init_base_conv(pg, bc * 8 * 4, bc * 16, 1)},
                  "csp": init_csp(pg, bc * 16, bc * 16, bd)},
    }


# ----------------------------------------------------------------------------
if __name__ == "__main__":
    key = jax.random.PRNGKey(0)
    kp, kx = jax.random.split(key)

    # Small CSPDarknet: dep_mul=0.33 -> base_depth=1, wid_mul=0.125 -> base_channels=8
    raw_params = init_cspdarknet(kp, dep_mul=0.33, wid_mul=0.125)
    params = prepare_params(raw_params)   # BN folding + weight prep done once

    # Input in PyTorch NCHW layout: (batch=2, channels=3, H=64, W=64)
    x = jax.random.normal(kx, (2, 3, 64, 64), jnp.float32)

    fwd = jax.jit(functools.partial(cspdarknet_fwd, params,
                                    out_features=("dark3", "dark4", "dark5")))
    outs = fwd(x)
    jax.block_until_ready(outs)

    # Sanity: expected NCHW shapes for the selected feature maps.
    assert outs["dark3"].shape == (2, 32, 8, 8)
    assert outs["dark4"].shape == (2, 64, 4, 4)
    assert outs["dark5"].shape == (2, 128, 2, 2)

    print("KERNEL_OK")
</pallas_src>

<mosaic_0001>
module attributes {stable_mosaic.version = 11 : i64} {
  func.func @_matmul_bn_silu_kernel(%arg0: i32, %arg1: memref<512x108xbf16, #tpu.memory_space<vmem>>, %arg2: memref<108x128xbf16, #tpu.memory_space<vmem>>, %arg3: memref<1x128xf32, #tpu.memory_space<vmem>>, %arg4: memref<1x128xf32, #tpu.memory_space<vmem>>, %arg5: memref<512x128xf32, #tpu.memory_space<vmem>>) attributes {dimension_semantics = [#tpu.dimension_semantics<parallel>], iteration_bounds = array<i64: 4>, scalar_prefetch = 0 : i64, scratch_operands = 0 : i64, tpu.core_type = #tpu.core_type<tc>, window_params = [{transform_indices = @transform_0, window_bounds = array<i64: 512, 108>}, {pipeline_mode = #tpu.pipeline_mode<synchronous>, transform_indices = @transform_1, window_bounds = array<i64: 108, 128>}, {pipeline_mode = #tpu.pipeline_mode<synchronous>, transform_indices = @transform_2, window_bounds = array<i64: 1, 128>}, {pipeline_mode = #tpu.pipeline_mode<synchronous>, transform_indices = @transform_3, window_bounds = array<i64: 1, 128>}, {transform_indices = @transform_4, window_bounds = array<i64: 512, 128>}]} {
    %c0 = arith.constant 0 : index
    %c0_0 = arith.constant 0 : index
    %0 = vector.load %arg1[%c0, %c0_0] : memref<512x108xbf16, #tpu.memory_space<vmem>>, vector<512x108xbf16>
    %c0_1 = arith.constant 0 : index
    %c0_2 = arith.constant 0 : index
    %1 = vector.load %arg2[%c0_1, %c0_2] : memref<108x128xbf16, #tpu.memory_space<vmem>>, vector<108x128xbf16>
    %cst = arith.constant dense<0.000000e+00> : vector<512x128xf32>
    %2 = tpu.matmul %0, %1, %cst {dimension_numbers = #tpu.dot_dimension_numbers<[1], [0], [0], [1], [0, 0, 1, 1], [], []>} : vector<512x108xbf16>, vector<108x128xbf16>, vector<512x128xf32> -> vector<512x128xf32>
    %c0_3 = arith.constant 0 : index
    %c0_4 = arith.constant 0 : index
    %3 = vector.load %arg3[%c0_3, %c0_4] : memref<1x128xf32, #tpu.memory_space<vmem>>, vector<1x128xf32>
    %4 = vector.broadcast %3 : vector<1x128xf32> to vector<512x128xf32>
    %5 = arith.mulf %2, %4 : vector<512x128xf32>
    %c0_5 = arith.constant 0 : index
    %c0_6 = arith.constant 0 : index
    %6 = vector.load %arg4[%c0_5, %c0_6] : memref<1x128xf32, #tpu.memory_space<vmem>>, vector<1x128xf32>
    %7 = vector.broadcast %6 : vector<1x128xf32> to vector<512x128xf32>
    %8 = arith.addf %5, %7 : vector<512x128xf32>
    %cst_7 = arith.constant 0.000000e+00 : f32
    %9 = vector.broadcast %cst_7 : f32 to vector<512x128xf32>
    %10 = arith.subf %9, %8 : vector<512x128xf32>
    %11 = math.exp %10 : vector<512x128xf32>
    %cst_8 = arith.constant 1.000000e+00 : f32
    %12 = vector.broadcast %cst_8 : f32 to vector<512x128xf32>
    %13 = arith.addf %12, %11 : vector<512x128xf32>
    %cst_9 = arith.constant 1.000000e+00 : f32
    %14 = vector.broadcast %cst_9 : f32 to vector<512x128xf32>
    %15 = arith.divf %14, %13 : vector<512x128xf32>
    %16 = arith.mulf %8, %15 : vector<512x128xf32>
    %c0_10 = arith.constant 0 : index
    %c0_11 = arith.constant 0 : index
    %17 = vector.load %arg5[%c0_10, %c0_11] : memref<512x128xf32, #tpu.memory_space<vmem>>, vector<512x128xf32>
    tpu.vector_store %arg5[%c0_10, %c0_11], %16 {strides = array<i32>} : memref<512x128xf32, #tpu.memory_space<vmem>>, vector<512x128xf32>,
    return
  }
  func.func @transform_0(%arg0: i32) -> (i32, i32) {
    %c0_i32 = arith.constant 0 : i32
    %c0_i32_0 = arith.constant 0 : i32
    return %arg0, %c0_i32 : i32, i32
  }
  func.func @transform_1(%arg0: i32) -> (i32, i32) {
    %c0_i32 = arith.constant 0 : i32
    %c0_i32_0 = arith.constant 0 : i32
    %c0_i32_1 = arith.constant 0 : i32
    return %c0_i32, %c0_i32_0 : i32, i32
  }
  func.func @transform_2(%arg0: i32) -> (i32, i32) {
    %c0_i32 = arith.constant 0 : i32
    %c0_i32_0 = arith.constant 0 : i32
    %c0_i32_1 = arith.constant 0 : i32
    return %c0_i32, %c0_i32_0 : i32, i32
  }
  func.func @transform_3(%arg0: i32) -> (i32, i32) {
    %c0_i32 = arith.constant 0 : i32
    %c0_i32_0 = arith.constant 0 : i32
    %c0_i32_1 = arith.constant 0 : i32
    return %c0_i32, %c0_i32_0 : i32, i32
  }
  func.func @transform_4(%arg0: i32) -> (i32, i32) {
    %c0_i32 = arith.constant 0 : i32
    %c0_i32_0 = arith.constant 0 : i32
    return %arg0, %c0_i32 : i32, i32
  }
}

module attributes {stable_mosaic.version = 11 : i64} {
  func.func @_matmul_bn_silu_kernel(%arg0: i32, %arg1: memref<512x72xbf16, #tpu.memory_space<vmem>>, %arg2: memref<72x128xbf16, #tpu.memory_space<vmem>>, %arg3: memref<1x128xf32, #tpu.memory_space<vmem>>, %arg4: memref<1x128xf32, #tpu.memory_space<vmem>>, %arg5: memref<512x128xf32, #tpu.memory_space<vmem>>) attributes {dimension_semantics = [#tpu.dimension_semantics<parallel>], iteration_bounds = array<i64: 1>, scalar_prefetch = 0 : i64, scratch_operands = 0 : i64, tpu.core_type = #tpu.core_type<tc>, window_params = [{transform_indices = @transform_0, window_bounds = array<i64: 512, 72>}, {pipeline_mode = #tpu.pipeline_mode<synchronous>, transform_indices = @transform_1, window_bounds = array<i64: 72, 128>}, {pipeline_mode = #tpu.pipeline_mode<synchronous>, transform_indices = @transform_2, window_bounds = array<i64: 1, 128>}, {pipeline_mode = #tpu.pipeline_mode<synchronous>, transform_indices = @transform_3, window_bounds = array<i64: 1, 128>}, {transform_indices = @transform_4, window_bounds = array<i64: 512, 128>}]} {
    %c0 = arith.constant 0 : index
    %c0_0 = arith.constant 0 : index
    %0 = vector.load %arg1[%c0, %c0_0] : memref<512x72xbf16, #tpu.memory_space<vmem>>, vector<512x72xbf16>
    %c0_1 = arith.constant 0 : index
    %c0_2 = arith.constant 0 : index
    %1 = vector.load %arg2[%c0_1, %c0_2] : memref<72x128xbf16, #tpu.memory_space<vmem>>, vector<72x128xbf16>
    %cst = arith.constant dense<0.000000e+00> : vector<512x128xf32>
    %2 = tpu.matmul %0, %1, %cst {dimension_numbers = #tpu.dot_dimension_numbers<[1], [0], [0], [1], [0, 0, 1, 1], [], []>} : vector<512x72xbf16>, vector<72x128xbf16>, vector<512x128xf32> -> vector<512x128xf32>
    %c0_3 = arith.constant 0 : index
    %c0_4 = arith.constant 0 : index
    %3 = vector.load %arg3[%c0_3, %c0_4] : memref<1x128xf32, #tpu.memory_space<vmem>>, vector<1x128xf32>
    %4 = vector.broadcast %3 : vector<1x128xf32> to vector<512x128xf32>
    %5 = arith.mulf %2, %4 : vector<512x128xf32>
    %c0_5 = arith.constant 0 : index
    %c0_6 = arith.constant 0 : index
    %6 = vector.load %arg4[%c0_5, %c0_6] : memref<1x128xf32, #tpu.memory_space<vmem>>, vector<1x128xf32>
    %7 = vector.broadcast %6 : vector<1x128xf32> to vector<512x128xf32>
    %8 = arith.addf %5, %7 : vector<512x128xf32>
    %cst_7 = arith.constant 0.000000e+00 : f32
    %9 = vector.broadcast %cst_7 : f32 to vector<512x128xf32>
    %10 = arith.subf %9, %8 : vector<512x128xf32>
    %11 = math.exp %10 : vector<512x128xf32>
    %cst_8 = arith.constant 1.000000e+00 : f32
    %12 = vector.broadcast %cst_8 : f32 to vector<512x128xf32>
    %13 = arith.addf %12, %11 : vector<512x128xf32>
    %cst_9 = arith.constant 1.000000e+00 : f32
    %14 = vector.broadcast %cst_9 : f32 to vector<512x128xf32>
    %15 = arith.divf %14, %13 : vector<512x128xf32>
    %16 = arith.mulf %8, %15 : vector<512x128xf32>
    %c0_10 = arith.constant 0 : index
    %c0_11 = arith.constant 0 : index
    %17 = vector.load %arg5[%c0_10, %c0_11] : memref<512x128xf32, #tpu.memory_space<vmem>>, vector<512x128xf32>
    tpu.vector_store %arg5[%c0_10, %c0_11], %16 {strides = array<i32>} : memref<512x128xf32, #tpu.memory_space<vmem>>, vector<512x128xf32>,
    return
  }
  func.func @transform_0(%arg0: i32) -> (i32, i32) {
    %c0_i32 = arith.constant 0 : i32
    %c0_i32_0 = arith.constant 0 : i32
    return %arg0, %c0_i32 : i32, i32
  }
  func.func @transform_1(%arg0: i32) -> (i32, i32) {
    %c0_i32 = arith.constant 0 : i32
    %c0_i32_0 = arith.constant 0 : i32
    %c0_i32_1 = arith.constant 0 : i32
    return %c0_i32, %c0_i32_0 : i32, i32
  }
  func.func @transform_2(%arg0: i32) -> (i32, i32) {
    %c0_i32 = arith.constant 0 : i32
    %c0_i32_0 = arith.constant 0 : i32
    %c0_i32_1 = arith.constant 0 : i32
    return %c0_i32, %c0_i32_0 : i32, i32
  }
  func.func @transform_3(%arg0: i32) -> (i32, i32) {
    %c0_i32 = arith.constant 0 : i32
    %c0_i32_0 = arith.constant 0 : i32
    %c0_i32_1 = arith.constant 0 : i32
    return %c0_i32, %c0_i32_0 : i32, i32
  }
  func.func @transform_4(%arg0: i32) -> (i32, i32) {
    %c0_i32 = arith.constant 0 : i32
    %c0_i32_0 = arith.constant 0 : i32
    return %arg0, %c0_i32 : i32, i32
  }
}

module attributes {stable_mosaic.version = 11 : i64} {
  func.func @_matmul_bn_silu_kernel(%arg0: i32, %arg1: memref<512x16xbf16, #tpu.memory_space<vmem>>, %arg2: memref<16x128xbf16, #tpu.memory_space<vmem>>, %arg3: memref<1x128xf32, #tpu.memory_space<vmem>>, %arg4: memref<1x128xf32, #tpu.memory_space<vmem>>, %arg5: memref<512x128xf32, #tpu.memory_space<vmem>>) attributes {dimension_semantics = [#tpu.dimension_semantics<parallel>], iteration_bounds = array<i64: 1>, scalar_prefetch = 0 : i64, scratch_operands = 0 : i64, tpu.core_type = #tpu.core_type<tc>, window_params = [{transform_indices = @transform_0, window_bounds = array<i64: 512, 16>}, {pipeline_mode = #tpu.pipeline_mode<synchronous>, transform_indices = @transform_1, window_bounds = array<i64: 16, 128>}, {pipeline_mode = #tpu.pipeline_mode<synchronous>, transform_indices = @transform_2, window_bounds = array<i64: 1, 128>}, {pipeline_mode = #tpu.pipeline_mode<synchronous>, transform_indices = @transform_3, window_bounds = array<i64: 1, 128>}, {transform_indices = @transform_4, window_bounds = array<i64: 512, 128>}]} {
    %c0 = arith.constant 0 : index
    %c0_0 = arith.constant 0 : index
    %0 = vector.load %arg1[%c0, %c0_0] : memref<512x16xbf16, #tpu.memory_space<vmem>>, vector<512x16xbf16>
    %c0_1 = arith.constant 0 : index
    %c0_2 = arith.constant 0 : index
    %1 = vector.load %arg2[%c0_1, %c0_2] : memref<16x128xbf16, #tpu.memory_space<vmem>>, vector<16x128xbf16>
    %cst = arith.constant dense<0.000000e+00> : vector<512x128xf32>
    %2 = tpu.matmul %0, %1, %cst {dimension_numbers = #tpu.dot_dimension_numbers<[1], [0], [0], [1], [0, 0, 1, 1], [], []>} : vector<512x16xbf16>, vector<16x128xbf16>, vector<512x128xf32> -> vector<512x128xf32>
    %c0_3 = arith.constant 0 : index
    %c0_4 = arith.constant 0 : index
    %3 = vector.load %arg3[%c0_3, %c0_4] : memref<1x128xf32, #tpu.memory_space<vmem>>, vector<1x128xf32>
    %4 = vector.broadcast %3 : vector<1x128xf32> to vector<512x128xf32>
    %5 = arith.mulf %2, %4 : vector<512x128xf32>
    %c0_5 = arith.constant 0 : index
    %c0_6 = arith.constant 0 : index
    %6 = vector.load %arg4[%c0_5, %c0_6] : memref<1x128xf32, #tpu.memory_space<vmem>>, vector<1x128xf32>
    %7 = vector.broadcast %6 : vector<1x128xf32> to vector<512x128xf32>
    %8 = arith.addf %5, %7 : vector<512x128xf32>
    %cst_7 = arith.constant 0.000000e+00 : f32
    %9 = vector.broadcast %cst_7 : f32 to vector<512x128xf32>
    %10 = arith.subf %9, %8 : vector<512x128xf32>
    %11 = math.exp %10 : vector<512x128xf32>
    %cst_8 = arith.constant 1.000000e+00 : f32
    %12 = vector.broadcast %cst_8 : f32 to vector<512x128xf32>
    %13 = arith.addf %12, %11 : vector<512x128xf32>
    %cst_9 = arith.constant 1.000000e+00 : f32
    %14 = vector.broadcast %cst_9 : f32 to vector<512x128xf32>
    %15 = arith.divf %14, %13 : vector<512x128xf32>
    %16 = arith.mulf %8, %15 : vector<512x128xf32>
    %c0_10 = arith.constant 0 : index
    %c0_11 = arith.constant 0 : index
    %17 = vector.load %arg5[%c0_10, %c0_11] : memref<512x128xf32, #tpu.memory_space<vmem>>, vector<512x128xf32>
    tpu.vector_store %arg5[%c0_10, %c0_11], %16 {strides = array<i32>} : memref<512x128xf32, #tpu.memory_space<vmem>>, vector<512x128xf32>,
    return
  }
  func.func @transform_0(%arg0: i32) -> (i32, i32) {
    %c0_i32 = arith.constant 0 : i32
    %c0_i32_0 = arith.constant 0 : i32
    return %arg0, %c0_i32 : i32, i32
  }
  func.func @transform_1(%arg0: i32) -> (i32, i32) {
    %c0_i32 = arith.constant 0 : i32
    %c0_i32_0 = arith.constant 0 : i32
    %c0_i32_1 = arith.constant 0 : i32
    return %c0_i32, %c0_i32_0 : i32, i32
  }
  func.func @transform_2(%arg0: i32) -> (i32, i32) {
    %c0_i32 = arith.constant 0 : i32
    %c0_i32_0 = arith.constant 0 : i32
    %c0_i32_1 = arith.constant 0 : i32
    return %c0_i32, %c0_i32_0 : i32, i32
  }
  func.func @transform_3(%arg0: i32) -> (i32, i32) {
    %c0_i32 = arith.constant 0 : i32
    %c0_i32_0 = arith.constant 0 : i32
    %c0_i32_1 = arith.constant 0 : i32
    return %c0_i32, %c0_i32_0 : i32, i32
  }
  func.func @transform_4(%arg0: i32) -> (i32, i32) {
    %c0_i32 = arith.constant 0 : i32
    %c0_i32_0 = arith.constant 0 : i32
    return %arg0, %c0_i32 : i32, i32
  }
}

module attributes {stable_mosaic.version = 11 : i64} {
  func.func @_matmul_bn_silu_kernel(%arg0: i32, %arg1: memref<512x8xbf16, #tpu.memory_space<vmem>>, %arg2: memref<8x128xbf16, #tpu.memory_space<vmem>>, %arg3: memref<1x128xf32, #tpu.memory_space<vmem>>, %arg4: memref<1x128xf32, #tpu.memory_space<vmem>>, %arg5: memref<512x128xf32, #tpu.memory_space<vmem>>) attributes {dimension_semantics = [#tpu.dimension_semantics<parallel>], iteration_bounds = array<i64: 1>, scalar_prefetch = 0 : i64, scratch_operands = 0 : i64, tpu.core_type = #tpu.core_type<tc>, window_params = [{transform_indices = @transform_0, window_bounds = array<i64: 512, 8>}, {pipeline_mode = #tpu.pipeline_mode<synchronous>, transform_indices = @transform_1, window_bounds = array<i64: 8, 128>}, {pipeline_mode = #tpu.pipeline_mode<synchronous>, transform_indices = @transform_2, window_bounds = array<i64: 1, 128>}, {pipeline_mode = #tpu.pipeline_mode<synchronous>, transform_indices = @transform_3, window_bounds = array<i64: 1, 128>}, {transform_indices = @transform_4, window_bounds = array<i64: 512, 128>}]} {
    %c0 = arith.constant 0 : index
    %c0_0 = arith.constant 0 : index
    %0 = vector.load %arg1[%c0, %c0_0] : memref<512x8xbf16, #tpu.memory_space<vmem>>, vector<512x8xbf16>
    %c0_1 = arith.constant 0 : index
    %c0_2 = arith.constant 0 : index
    %1 = vector.load %arg2[%c0_1, %c0_2] : memref<8x128xbf16, #tpu.memory_space<vmem>>, vector<8x128xbf16>
    %cst = arith.constant dense<0.000000e+00> : vector<512x128xf32>
    %2 = tpu.matmul %0, %1, %cst {dimension_numbers = #tpu.dot_dimension_numbers<[1], [0], [0], [1], [0, 0, 1, 1], [], []>} : vector<512x8xbf16>, vector<8x128xbf16>, vector<512x128xf32> -> vector<512x128xf32>
    %c0_3 = arith.constant 0 : index
    %c0_4 = arith.constant 0 : index
    %3 = vector.load %arg3[%c0_3, %c0_4] : memref<1x128xf32, #tpu.memory_space<vmem>>, vector<1x128xf32>
    %4 = vector.broadcast %3 : vector<1x128xf32> to vector<512x128xf32>
    %5 = arith.mulf %2, %4 : vector<512x128xf32>
    %c0_5 = arith.constant 0 : index
    %c0_6 = arith.constant 0 : index
    %6 = vector.load %arg4[%c0_5, %c0_6] : memref<1x128xf32, #tpu.memory_space<vmem>>, vector<1x128xf32>
    %7 = vector.broadcast %6 : vector<1x128xf32> to vector<512x128xf32>
    %8 = arith.addf %5, %7 : vector<512x128xf32>
    %cst_7 = arith.constant 0.000000e+00 : f32
    %9 = vector.broadcast %cst_7 : f32 to vector<512x128xf32>
    %10 = arith.subf %9, %8 : vector<512x128xf32>
    %11 = math.exp %10 : vector<512x128xf32>
    %cst_8 = arith.constant 1.000000e+00 : f32
    %12 = vector.broadcast %cst_8 : f32 to vector<512x128xf32>
    %13 = arith.addf %12, %11 : vector<512x128xf32>
    %cst_9 = arith.constant 1.000000e+00 : f32
    %14 = vector.broadcast %cst_9 : f32 to vector<512x128xf32>
    %15 = arith.divf %14, %13 : vector<512x128xf32>
    %16 = arith.mulf %8, %15 : vector<512x128xf32>
    %c0_10 = arith.constant 0 : index
    %c0_11 = arith.constant 0 : index
    %17 = vector.load %arg5[%c0_10, %c0_11] : memref<512x128xf32, #tpu.memory_space<vmem>>, vector<512x128xf32>
    tpu.vector_store %arg5[%c0_10, %c0_11], %16 {strides = array<i32>} : memref<512x128xf32, #tpu.memory_space<vmem>>, vector<512x128xf32>,
    return
  }
  func.func @transform_0(%arg0: i32) -> (i32, i32) {
    %c0_i32 = arith.constant 0 : i32
    %c0_i32_0 = arith.constant 0 : i32
    return %arg0, %c0_i32 : i32, i32
  }
  func.func @transform_1(%arg0: i32) -> (i32, i32) {
    %c0_i32 = arith.constant 0 : i32
    %c0_i32_0 = arith.constant 0 : i32
    %c0_i32_1 = arith.constant 0 : i32
    return %c0_i32, %c0_i32_0 : i32, i32
  }
  func.func @transform_2(%arg0: i32) -> (i32, i32) {
    %c0_i32 = arith.constant 0 : i32
    %c0_i32_0 = arith.constant 0 : i32
    %c0_i32_1 = arith.constant 0 : i32
    return %c0_i32, %c0_i32_0 : i32, i32
  }
  func.func @transform_3(%arg0: i32) -> (i32, i32) {
    %c0_i32 = arith.constant 0 : i32
    %c0_i32_0 = arith.constant 0 : i32
    %c0_i32_1 = arith.constant 0 : i32
    return %c0_i32, %c0_i32_0 : i32, i32
  }
  func.func @transform_4(%arg0: i32) -> (i32, i32) {
    %c0_i32 = arith.constant 0 : i32
    %c0_i32_0 = arith.constant 0 : i32
    return %arg0, %c0_i32 : i32, i32
  }
}

module attributes {stable_mosaic.version = 11 : i64} {
  func.func @_matmul_bn_silu_add_kernel(%arg0: i32, %arg1: memref<512x72xbf16, #tpu.memory_space<vmem>>, %arg2: memref<72x128xbf16, #tpu.memory_space<vmem>>, %arg3: memref<1x128xf32, #tpu.memory_space<vmem>>, %arg4: memref<1x128xf32, #tpu.memory_space<vmem>>, %arg5: memref<512x128xf32, #tpu.memory_space<vmem>>, %arg6: memref<512x128xf32, #tpu.memory_space<vmem>>) attributes {dimension_semantics = [#tpu.dimension_semantics<parallel>], iteration_bounds = array<i64: 1>, scalar_prefetch = 0 : i64, scratch_operands = 0 : i64, tpu.core_type = #tpu.core_type<tc>, window_params = [{transform_indices = @transform_0, window_bounds = array<i64: 512, 72>}, {pipeline_mode = #tpu.pipeline_mode<synchronous>, transform_indices = @transform_1, window_bounds = array<i64: 72, 128>}, {pipeline_mode = #tpu.pipeline_mode<synchronous>, transform_indices = @transform_2, window_bounds = array<i64: 1, 128>}, {pipeline_mode = #tpu.pipeline_mode<synchronous>, transform_indices = @transform_3, window_bounds = array<i64: 1, 128>}, {transform_indices = @transform_4, window_bounds = array<i64: 512, 128>}, {transform_indices = @transform_5, window_bounds = array<i64: 512, 128>}]} {
    %c0 = arith.constant 0 : index
    %c0_0 = arith.constant 0 : index
    %0 = vector.load %arg1[%c0, %c0_0] : memref<512x72xbf16, #tpu.memory_space<vmem>>, vector<512x72xbf16>
    %c0_1 = arith.constant 0 : index
    %c0_2 = arith.constant 0 : index
    %1 = vector.load %arg2[%c0_1, %c0_2] : memref<72x128xbf16, #tpu.memory_space<vmem>>, vector<72x128xbf16>
    %cst = arith.constant dense<0.000000e+00> : vector<512x128xf32>
    %2 = tpu.matmul %0, %1, %cst {dimension_numbers = #tpu.dot_dimension_numbers<[1], [0], [0], [1], [0, 0, 1, 1], [], []>} : vector<512x72xbf16>, vector<72x128xbf16>, vector<512x128xf32> -> vector<512x128xf32>
    %c0_3 = arith.constant 0 : index
    %c0_4 = arith.constant 0 : index
    %3 = vector.load %arg3[%c0_3, %c0_4] : memref<1x128xf32, #tpu.memory_space<vmem>>, vector<1x128xf32>
    %4 = vector.broadcast %3 : vector<1x128xf32> to vector<512x128xf32>
    %5 = arith.mulf %2, %4 : vector<512x128xf32>
    %c0_5 = arith.constant 0 : index
    %c0_6 = arith.constant 0 : index
    %6 = vector.load %arg4[%c0_5, %c0_6] : memref<1x128xf32, #tpu.memory_space<vmem>>, vector<1x128xf32>
    %7 = vector.broadcast %6 : vector<1x128xf32> to vector<512x128xf32>
    %8 = arith.addf %5, %7 : vector<512x128xf32>
    %cst_7 = arith.constant 0.000000e+00 : f32
    %9 = vector.broadcast %cst_7 : f32 to vector<512x128xf32>
    %10 = arith.subf %9, %8 : vector<512x128xf32>
    %11 = math.exp %10 : vector<512x128xf32>
    %cst_8 = arith.constant 1.000000e+00 : f32
    %12 = vector.broadcast %cst_8 : f32 to vector<512x128xf32>
    %13 = arith.addf %12, %11 : vector<512x128xf32>
    %cst_9 = arith.constant 1.000000e+00 : f32
    %14 = vector.broadcast %cst_9 : f32 to vector<512x128xf32>
    %15 = arith.divf %14, %13 : vector<512x128xf32>
    %16 = arith.mulf %8, %15 : vector<512x128xf32>
    %c0_10 = arith.constant 0 : index
    %c0_11 = arith.constant 0 : index
    %17 = vector.load %arg5[%c0_10, %c0_11] : memref<512x128xf32, #tpu.memory_space<vmem>>, vector<512x128xf32>
    %18 = arith.addf %16, %17 : vector<512x128xf32>
    %c0_12 = arith.constant 0 : index
    %c0_13 = arith.constant 0 : index
    %19 = vector.load %arg6[%c0_12, %c0_13] : memref<512x128xf32, #tpu.memory_space<vmem>>, vector<512x128xf32>
    tpu.vector_store %arg6[%c0_12, %c0_13], %18 {strides = array<i32>} : memref<512x128xf32, #tpu.memory_space<vmem>>, vector<512x128xf32>,
    return
  }
  func.func @transform_0(%arg0: i32) -> (i32, i32) {
    %c0_i32 = arith.constant 0 : i32
    %c0_i32_0 = arith.constant 0 : i32
    return %arg0, %c0_i32 : i32, i32
  }
  func.func @transform_1(%arg0: i32) -> (i32, i32) {
    %c0_i32 = arith.constant 0 : i32
    %c0_i32_0 = arith.constant 0 : i32
    %c0_i32_1 = arith.constant 0 : i32
    return %c0_i32, %c0_i32_0 : i32, i32
  }
  func.func @transform_2(%arg0: i32) -> (i32, i32) {
    %c0_i32 = arith.constant 0 : i32
    %c0_i32_0 = arith.constant 0 : i32
    %c0_i32_1 = arith.constant 0 : i32
    return %c0_i32, %c0_i32_0 : i32, i32
  }
  func.func @transform_3(%arg0: i32) -> (i32, i32) {
    %c0_i32 = arith.constant 0 : i32
    %c0_i32_0 = arith.constant 0 : i32
    %c0_i32_1 = arith.constant 0 : i32
    return %c0_i32, %c0_i32_0 : i32, i32
  }
  func.func @transform_4(%arg0: i32) -> (i32, i32) {
    %c0_i32 = arith.constant 0 : i32
    %c0_i32_0 = arith.constant 0 : i32
    return %arg0, %c0_i32 : i32, i32
  }
  func.func @transform_5(%arg0: i32) -> (i32, i32) {
    %c0_i32 = arith.constant 0 : i32
    %c0_i32_0 = arith.constant 0 : i32
    return %arg0, %c0_i32 : i32, i32
  }
}

module attributes {stable_mosaic.version = 11 : i64} {
  func.func @_matmul_bn_silu_kernel(%arg0: i32, %arg1: memref<128x144xbf16, #tpu.memory_space<vmem>>, %arg2: memref<144x128xbf16, #tpu.memory_space<vmem>>, %arg3: memref<1x128xf32, #tpu.memory_space<vmem>>, %arg4: memref<1x128xf32, #tpu.memory_space<vmem>>, %arg5: memref<128x128xf32, #tpu.memory_space<vmem>>) attributes {dimension_semantics = [#tpu.dimension_semantics<parallel>], iteration_bounds = array<i64: 1>, scalar_prefetch = 0 : i64, scratch_operands = 0 : i64, tpu.core_type = #tpu.core_type<tc>, window_params = [{transform_indices = @transform_0, window_bounds = array<i64: 128, 144>}, {pipeline_mode = #tpu.pipeline_mode<synchronous>, transform_indices = @transform_1, window_bounds = array<i64: 144, 128>}, {pipeline_mode = #tpu.pipeline_mode<synchronous>, transform_indices = @transform_2, window_bounds = array<i64: 1, 128>}, {pipeline_mode = #tpu.pipeline_mode<synchronous>, transform_indices = @transform_3, window_bounds = array<i64: 1, 128>}, {transform_indices = @transform_4, window_bounds = array<i64: 128, 128>}]} {
    %c0 = arith.constant 0 : index
    %c0_0 = arith.constant 0 : index
    %0 = vector.load %arg1[%c0, %c0_0] : memref<128x144xbf16, #tpu.memory_space<vmem>>, vector<128x144xbf16>
    %c0_1 = arith.constant 0 : index
    %c0_2 = arith.constant 0 : index
    %1 = vector.load %arg2[%c0_1, %c0_2] : memref<144x128xbf16, #tpu.memory_space<vmem>>, vector<144x128xbf16>
    %cst = arith.constant dense<0.000000e+00> : vector<128x128xf32>
    %2 = tpu.matmul %0, %1, %cst {dimension_numbers = #tpu.dot_dimension_numbers<[1], [0], [0], [1], [0, 0, 1, 1], [], []>} : vector<128x144xbf16>, vector<144x128xbf16>, vector<128x128xf32> -> vector<128x128xf32>
    %c0_3 = arith.constant 0 : index
    %c0_4 = arith.constant 0 : index
    %3 = vector.load %arg3[%c0_3, %c0_4] : memref<1x128xf32, #tpu.memory_space<vmem>>, vector<1x128xf32>
    %4 = vector.broadcast %3 : vector<1x128xf32> to vector<128x128xf32>
    %5 = arith.mulf %2, %4 : vector<128x128xf32>
    %c0_5 = arith.constant 0 : index
    %c0_6 = arith.constant 0 : index
    %6 = vector.load %arg4[%c0_5, %c0_6] : memref<1x128xf32, #tpu.memory_space<vmem>>, vector<1x128xf32>
    %7 = vector.broadcast %6 : vector<1x128xf32> to vector<128x128xf32>
    %8 = arith.addf %5, %7 : vector<128x128xf32>
    %cst_7 = arith.constant 0.000000e+00 : f32
    %9 = vector.broadcast %cst_7 : f32 to vector<128x128xf32>
    %10 = arith.subf %9, %8 : vector<128x128xf32>
    %11 = math.exp %10 : vector<128x128xf32>
    %cst_8 = arith.constant 1.000000e+00 : f32
    %12 = vector.broadcast %cst_8 : f32 to vector<128x128xf32>
    %13 = arith.addf %12, %11 : vector<128x128xf32>
    %cst_9 = arith.constant 1.000000e+00 : f32
    %14 = vector.broadcast %cst_9 : f32 to vector<128x128xf32>
    %15 = arith.divf %14, %13 : vector<128x128xf32>
    %16 = arith.mulf %8, %15 : vector<128x128xf32>
    %c0_10 = arith.constant 0 : index
    %c0_11 = arith.constant 0 : index
    %17 = vector.load %arg5[%c0_10, %c0_11] : memref<128x128xf32, #tpu.memory_space<vmem>>, vector<128x128xf32>
    tpu.vector_store %arg5[%c0_10, %c0_11], %16 {strides = array<i32>} : memref<128x128xf32, #tpu.memory_space<vmem>>, vector<128x128xf32>,
    return
  }
  func.func @transform_0(%arg0: i32) -> (i32, i32) {
    %c0_i32 = arith.constant 0 : i32
    %c0_i32_0 = arith.constant 0 : i32
    return %arg0, %c0_i32 : i32, i32
  }
  func.func @transform_1(%arg0: i32) -> (i32, i32) {
    %c0_i32 = arith.constant 0 : i32
    %c0_i32_0 = arith.constant 0 : i32
    %c0_i32_1 = arith.constant 0 : i32
    return %c0_i32, %c0_i32_0 : i32, i32
  }
  func.func @transform_2(%arg0: i32) -> (i32, i32) {
    %c0_i32 = arith.constant 0 : i32
    %c0_i32_0 = arith.constant 0 : i32
    %c0_i32_1 = arith.constant 0 : i32
    return %c0_i32, %c0_i32_0 : i32, i32
  }
  func.func @transform_3(%arg0: i32) -> (i32, i32) {
    %c0_i32 = arith.constant 0 : i32
    %c0_i32_0 = arith.constant 0 : i32
    %c0_i32_1 = arith.constant 0 : i32
    return %c0_i32, %c0_i32_0 : i32, i32
  }
  func.func @transform_4(%arg0: i32) -> (i32, i32) {
    %c0_i32 = arith.constant 0 : i32
    %c0_i32_0 = arith.constant 0 : i32
    return %arg0, %c0_i32 : i32, i32
  }
}

module attributes {stable_mosaic.version = 11 : i64} {
  func.func @_matmul_bn_silu_kernel(%arg0: i32, %arg1: memref<128x32xbf16, #tpu.memory_space<vmem>>, %arg2: memref<32x128xbf16, #tpu.memory_space<vmem>>, %arg3: memref<1x128xf32, #tpu.memory_space<vmem>>, %arg4: memref<1x128xf32, #tpu.memory_space<vmem>>, %arg5: memref<128x128xf32, #tpu.memory_space<vmem>>) attributes {dimension_semantics = [#tpu.dimension_semantics<parallel>], iteration_bounds = array<i64: 1>, scalar_prefetch = 0 : i64, scratch_operands = 0 : i64, tpu.core_type = #tpu.core_type<tc>, window_params = [{transform_indices = @transform_0, window_bounds = array<i64: 128, 32>}, {pipeline_mode = #tpu.pipeline_mode<synchronous>, transform_indices = @transform_1, window_bounds = array<i64: 32, 128>}, {pipeline_mode = #tpu.pipeline_mode<synchronous>, transform_indices = @transform_2, window_bounds = array<i64: 1, 128>}, {pipeline_mode = #tpu.pipeline_mode<synchronous>, transform_indices = @transform_3, window_bounds = array<i64: 1, 128>}, {transform_indices = @transform_4, window_bounds = array<i64: 128, 128>}]} {
    %c0 = arith.constant 0 : index
    %c0_0 = arith.constant 0 : index
    %0 = vector.load %arg1[%c0, %c0_0] : memref<128x32xbf16, #tpu.memory_space<vmem>>, vector<128x32xbf16>
    %c0_1 = arith.constant 0 : index
    %c0_2 = arith.constant 0 : index
    %1 = vector.load %arg2[%c0_1, %c0_2] : memref<32x128xbf16, #tpu.memory_space<vmem>>, vector<32x128xbf16>
    %cst = arith.constant dense<0.000000e+00> : vector<128x128xf32>
    %2 = tpu.matmul %0, %1, %cst {dimension_numbers = #tpu.dot_dimension_numbers<[1], [0], [0], [1], [0, 0, 1, 1], [], []>} : vector<128x32xbf16>, vector<32x128xbf16>, vector<128x128xf32> -> vector<128x128xf32>
    %c0_3 = arith.constant 0 : index
    %c0_4 = arith.constant 0 : index
    %3 = vector.load %arg3[%c0_3, %c0_4] : memref<1x128xf32, #tpu.memory_space<vmem>>, vector<1x128xf32>
    %4 = vector.broadcast %3 : vector<1x128xf32> to vector<128x128xf32>
    %5 = arith.mulf %2, %4 : vector<128x128xf32>
    %c0_5 = arith.constant 0 : index
    %c0_6 = arith.constant 0 : index
    %6 = vector.load %arg4[%c0_5, %c0_6] : memref<1x128xf32, #tpu.memory_space<vmem>>, vector<1x128xf32>
    %7 = vector.broadcast %6 : vector<1x128xf32> to vector<128x128xf32>
    %8 = arith.addf %5, %7 : vector<128x128xf32>
    %cst_7 = arith.constant 0.000000e+00 : f32
    %9 = vector.broadcast %cst_7 : f32 to vector<128x128xf32>
    %10 = arith.subf %9, %8 : vector<128x128xf32>
    %11 = math.exp %10 : vector<128x128xf32>
    %cst_8 = arith.constant 1.000000e+00 : f32
    %12 = vector.broadcast %cst_8 : f32 to vector<128x128xf32>
    %13 = arith.addf %12, %11 : vector<128x128xf32>
    %cst_9 = arith.constant 1.000000e+00 : f32
    %14 = vector.broadcast %cst_9 : f32 to vector<128x128xf32>
    %15 = arith.divf %14, %13 : vector<128x128xf32>
    %16 = arith.mulf %8, %15 : vector<128x128xf32>
    %c0_10 = arith.constant 0 : index
    %c0_11 = arith.constant 0 : index
    %17 = vector.load %arg5[%c0_10, %c0_11] : memref<128x128xf32, #tpu.memory_space<vmem>>, vector<128x128xf32>
    tpu.vector_store %arg5[%c0_10, %c0_11], %16 {strides = array<i32>} : memref<128x128xf32, #tpu.memory_space<vmem>>, vector<128x128xf32>,
    return
  }
  func.func @transform_0(%arg0: i32) -> (i32, i32) {
    %c0_i32 = arith.constant 0 : i32
    %c0_i32_0 = arith.constant 0 : i32
    return %arg0, %c0_i32 : i32, i32
  }
  func.func @transform_1(%arg0: i32) -> (i32, i32) {
    %c0_i32 = arith.constant 0 : i32
    %c0_i32_0 = arith.constant 0 : i32
    %c0_i32_1 = arith.constant 0 : i32
    return %c0_i32, %c0_i32_0 : i32, i32
  }
  func.func @transform_2(%arg0: i32) -> (i32, i32) {
    %c0_i32 = arith.constant 0 : i32
    %c0_i32_0 = arith.constant 0 : i32
    %c0_i32_1 = arith.constant 0 : i32
    return %c0_i32, %c0_i32_0 : i32, i32
  }
  func.func @transform_3(%arg0: i32) -> (i32, i32) {
    %c0_i32 = arith.constant 0 : i32
    %c0_i32_0 = arith.constant 0 : i32
    %c0_i32_1 = arith.constant 0 : i32
    return %c0_i32, %c0_i32_0 : i32, i32
  }
  func.func @transform_4(%arg0: i32) -> (i32, i32) {
    %c0_i32 = arith.constant 0 : i32
    %c0_i32_0 = arith.constant 0 : i32
    return %arg0, %c0_i32 : i32, i32
  }
}

module attributes {stable_mosaic.version = 11 : i64} {
  func.func @_matmul_bn_silu_kernel(%arg0: i32, %arg1: memref<128x16xbf16, #tpu.memory_space<vmem>>, %arg2: memref<16x128xbf16, #tpu.memory_space<vmem>>, %arg3: memref<1x128xf32, #tpu.memory_space<vmem>>, %arg4: memref<1x128xf32, #tpu.memory_space<vmem>>, %arg5: memref<128x128xf32, #tpu.memory_space<vmem>>) attributes {dimension_semantics = [#tpu.dimension_semantics<parallel>], iteration_bounds = array<i64: 1>, scalar_prefetch = 0 : i64, scratch_operands = 0 : i64, tpu.core_type = #tpu.core_type<tc>, window_params = [{transform_indices = @transform_0, window_bounds = array<i64: 128, 16>}, {pipeline_mode = #tpu.pipeline_mode<synchronous>, transform_indices = @transform_1, window_bounds = array<i64: 16, 128>}, {pipeline_mode = #tpu.pipeline_mode<synchronous>, transform_indices = @transform_2, window_bounds = array<i64: 1, 128>}, {pipeline_mode = #tpu.pipeline_mode<synchronous>, transform_indices = @transform_3, window_bounds = array<i64: 1, 128>}, {transform_indices = @transform_4, window_bounds = array<i64: 128, 128>}]} {
    %c0 = arith.constant 0 : index
    %c0_0 = arith.constant 0 : index
    %0 = vector.load %arg1[%c0, %c0_0] : memref<128x16xbf16, #tpu.memory_space<vmem>>, vector<128x16xbf16>
    %c0_1 = arith.constant 0 : index
    %c0_2 = arith.constant 0 : index
    %1 = vector.load %arg2[%c0_1, %c0_2] : memref<16x128xbf16, #tpu.memory_space<vmem>>, vector<16x128xbf16>
    %cst = arith.constant dense<0.000000e+00> : vector<128x128xf32>
    %2 = tpu.matmul %0, %1, %cst {dimension_numbers = #tpu.dot_dimension_numbers<[1], [0], [0], [1], [0, 0, 1, 1], [], []>} : vector<128x16xbf16>, vector<16x128xbf16>, vector<128x128xf32> -> vector<128x128xf32>
    %c0_3 = arith.constant 0 : index
    %c0_4 = arith.constant 0 : index
    %3 = vector.load %arg3[%c0_3, %c0_4] : memref<1x128xf32, #tpu.memory_space<vmem>>, vector<1x128xf32>
    %4 = vector.broadcast %3 : vector<1x128xf32> to vector<128x128xf32>
    %5 = arith.mulf %2, %4 : vector<128x128xf32>
    %c0_5 = arith.constant 0 : index
    %c0_6 = arith.constant 0 : index
    %6 = vector.load %arg4[%c0_5, %c0_6] : memref<1x128xf32, #tpu.memory_space<vmem>>, vector<1x128xf32>
    %7 = vector.broadcast %6 : vector<1x128xf32> to vector<128x128xf32>
    %8 = arith.addf %5, %7 : vector<128x128xf32>
    %cst_7 = arith.constant 0.000000e+00 : f32
    %9 = vector.broadcast %cst_7 : f32 to vector<128x128xf32>
    %10 = arith.subf %9, %8 : vector<128x128xf32>
    %11 = math.exp %10 : vector<128x128xf32>
    %cst_8 = arith.constant 1.000000e+00 : f32
    %12 = vector.broadcast %cst_8 : f32 to vector<128x128xf32>
    %13 = arith.addf %12, %11 : vector<128x128xf32>
    %cst_9 = arith.constant 1.000000e+00 : f32
    %14 = vector.broadcast %cst_9 : f32 to vector<128x128xf32>
    %15 = arith.divf %14, %13 : vector<128x128xf32>
    %16 = arith.mulf %8, %15 : vector<128x128xf32>
    %c0_10 = arith.constant 0 : index
    %c0_11 = arith.constant 0 : index
    %17 = vector.load %arg5[%c0_10, %c0_11] : memref<128x128xf32, #tpu.memory_space<vmem>>, vector<128x128xf32>
    tpu.vector_store %arg5[%c0_10, %c0_11], %16 {strides = array<i32>} : memref<128x128xf32, #tpu.memory_space<vmem>>, vector<128x128xf32>,
    return
  }
  func.func @transform_0(%arg0: i32) -> (i32, i32) {
    %c0_i32 = arith.constant 0 : i32
    %c0_i32_0 = arith.constant 0 : i32
    return %arg0, %c0_i32 : i32, i32
  }
  func.func @transform_1(%arg0: i32) -> (i32, i32) {
    %c0_i32 = arith.constant 0 : i32
    %c0_i32_0 = arith.constant 0 : i32
    %c0_i32_1 = arith.constant 0 : i32
    return %c0_i32, %c0_i32_0 : i32, i32
  }
  func.func @transform_2(%arg0: i32) -> (i32, i32) {
    %c0_i32 = arith.constant 0 : i32
    %c0_i32_0 = arith.constant 0 : i32
    %c0_i32_1 = arith.constant 0 : i32
    return %c0_i32, %c0_i32_0 : i32, i32
  }
  func.func @transform_3(%arg0: i32) -> (i32, i32) {
    %c0_i32 = arith.constant 0 : i32
    %c0_i32_0 = arith.constant 0 : i32
    %c0_i32_1 = arith.constant 0 : i32
    return %c0_i32, %c0_i32_0 : i32, i32
  }
  func.func @transform_4(%arg0: i32) -> (i32, i32) {
    %c0_i32 = arith.constant 0 : i32
    %c0_i32_0 = arith.constant 0 : i32
    return %arg0, %c0_i32 : i32, i32
  }
}

module attributes {stable_mosaic.version = 11 : i64} {
  func.func @_matmul_bn_silu_add_kernel(%arg0: i32, %arg1: memref<128x144xbf16, #tpu.memory_space<vmem>>, %arg2: memref<144x128xbf16, #tpu.memory_space<vmem>>, %arg3: memref<1x128xf32, #tpu.memory_space<vmem>>, %arg4: memref<1x128xf32, #tpu.memory_space<vmem>>, %arg5: memref<128x128xf32, #tpu.memory_space<vmem>>, %arg6: memref<128x128xf32, #tpu.memory_space<vmem>>) attributes {dimension_semantics = [#tpu.dimension_semantics<parallel>], iteration_bounds = array<i64: 1>, scalar_prefetch = 0 : i64, scratch_operands = 0 : i64, tpu.core_type = #tpu.core_type<tc>, window_params = [{transform_indices = @transform_0, window_bounds = array<i64: 128, 144>}, {pipeline_mode = #tpu.pipeline_mode<synchronous>, transform_indices = @transform_1, window_bounds = array<i64: 144, 128>}, {pipeline_mode = #tpu.pipeline_mode<synchronous>, transform_indices = @transform_2, window_bounds = array<i64: 1, 128>}, {pipeline_mode = #tpu.pipeline_mode<synchronous>, transform_indices = @transform_3, window_bounds = array<i64: 1, 128>}, {transform_indices = @transform_4, window_bounds = array<i64: 128, 128>}, {transform_indices = @transform_5, window_bounds = array<i64: 128, 128>}]} {
    %c0 = arith.constant 0 : index
    %c0_0 = arith.constant 0 : index
    %0 = vector.load %arg1[%c0, %c0_0] : memref<128x144xbf16, #tpu.memory_space<vmem>>, vector<128x144xbf16>
    %c0_1 = arith.constant 0 : index
    %c0_2 = arith.constant 0 : index
    %1 = vector.load %arg2[%c0_1, %c0_2] : memref<144x128xbf16, #tpu.memory_space<vmem>>, vector<144x128xbf16>
    %cst = arith.constant dense<0.000000e+00> : vector<128x128xf32>
    %2 = tpu.matmul %0, %1, %cst {dimension_numbers = #tpu.dot_dimension_numbers<[1], [0], [0], [1], [0, 0, 1, 1], [], []>} : vector<128x144xbf16>, vector<144x128xbf16>, vector<128x128xf32> -> vector<128x128xf32>
    %c0_3 = arith.constant 0 : index
    %c0_4 = arith.constant 0 : index
    %3 = vector.load %arg3[%c0_3, %c0_4] : memref<1x128xf32, #tpu.memory_space<vmem>>, vector<1x128xf32>
    %4 = vector.broadcast %3 : vector<1x128xf32> to vector<128x128xf32>
    %5 = arith.mulf %2, %4 : vector<128x128xf32>
    %c0_5 = arith.constant 0 : index
    %c0_6 = arith.constant 0 : index
    %6 = vector.load %arg4[%c0_5, %c0_6] : memref<1x128xf32, #tpu.memory_space<vmem>>, vector<1x128xf32>
    %7 = vector.broadcast %6 : vector<1x128xf32> to vector<128x128xf32>
    %8 = arith.addf %5, %7 : vector<128x128xf32>
    %cst_7 = arith.constant 0.000000e+00 : f32
    %9 = vector.broadcast %cst_7 : f32 to vector<128x128xf32>
    %10 = arith.subf %9, %8 : vector<128x128xf32>
    %11 = math.exp %10 : vector<128x128xf32>
    %cst_8 = arith.constant 1.000000e+00 : f32
    %12 = vector.broadcast %cst_8 : f32 to vector<128x128xf32>
    %13 = arith.addf %12, %11 : vector<128x128xf32>
    %cst_9 = arith.constant 1.000000e+00 : f32
    %14 = vector.broadcast %cst_9 : f32 to vector<128x128xf32>
    %15 = arith.divf %14, %13 : vector<128x128xf32>
    %16 = arith.mulf %8, %15 : vector<128x128xf32>
    %c0_10 = arith.constant 0 : index
    %c0_11 = arith.constant 0 : index
    %17 = vector.load %arg5[%c0_10, %c0_11] : memref<128x128xf32, #tpu.memory_space<vmem>>, vector<128x128xf32>
    %18 = arith.addf %16, %17 : vector<128x128xf32>
    %c0_12 = arith.constant 0 : index
    %c0_13 = arith.constant 0 : index
    %19 = vector.load %arg6[%c0_12, %c0_13] : memref<128x128xf32, #tpu.memory_space<vmem>>, vector<128x128xf32>
    tpu.vector_store %arg6[%c0_12, %c0_13], %18 {strides = array<i32>} : memref<128x128xf32, #tpu.memory_space<vmem>>, vector<128x128xf32>,
    return
  }
  func.func @transform_0(%arg0: i32) -> (i32, i32) {
    %c0_i32 = arith.constant 0 : i32
    %c0_i32_0 = arith.constant 0 : i32
    return %arg0, %c0_i32 : i32, i32
  }
  func.func @transform_1(%arg0: i32) -> (i32, i32) {
    %c0_i32 = arith.constant 0 : i32
    %c0_i32_0 = arith.constant 0 : i32
    %c0_i32_1 = arith.constant 0 : i32
    return %c0_i32, %c0_i32_0 : i32, i32
  }
  func.func @transform_2(%arg0: i32) -> (i32, i32) {
    %c0_i32 = arith.constant 0 : i32
    %c0_i32_0 = arith.constant 0 : i32
    %c0_i32_1 = arith.constant 0 : i32
    return %c0_i32, %c0_i32_0 : i32, i32
  }
  func.func @transform_3(%arg0: i32) -> (i32, i32) {
    %c0_i32 = arith.constant 0 : i32
    %c0_i32_0 = arith.constant 0 : i32
    %c0_i32_1 = arith.constant 0 : i32
    return %c0_i32, %c0_i32_0 : i32, i32
  }
  func.func @transform_4(%arg0: i32) -> (i32, i32) {
    %c0_i32 = arith.constant 0 : i32
    %c0_i32_0 = arith.constant 0 : i32
    return %arg0, %c0_i32 : i32, i32
  }
  func.func @transform_5(%arg0: i32) -> (i32, i32) {
    %c0_i32 = arith.constant 0 : i32
    %c0_i32_0 = arith.constant 0 : i32
    return %arg0, %c0_i32 : i32, i32
  }
}

module attributes {stable_mosaic.version = 11 : i64} {
  func.func @_matmul_bn_silu_kernel(%arg0: i32, %arg1: memref<32x288xbf16, #tpu.memory_space<vmem>>, %arg2: memref<288x128xbf16, #tpu.memory_space<vmem>>, %arg3: memref<1x128xf32, #tpu.memory_space<vmem>>, %arg4: memref<1x128xf32, #tpu.memory_space<vmem>>, %arg5: memref<32x128xf32, #tpu.memory_space<vmem>>) attributes {dimension_semantics = [#tpu.dimension_semantics<parallel>], iteration_bounds = array<i64: 1>, scalar_prefetch = 0 : i64, scratch_operands = 0 : i64, tpu.core_type = #tpu.core_type<tc>, window_params = [{transform_indices = @transform_0, window_bounds = array<i64: 32, 288>}, {pipeline_mode = #tpu.pipeline_mode<synchronous>, transform_indices = @transform_1, window_bounds = array<i64: 288, 128>}, {pipeline_mode = #tpu.pipeline_mode<synchronous>, transform_indices = @transform_2, window_bounds = array<i64: 1, 128>}, {pipeline_mode = #tpu.pipeline_mode<synchronous>, transform_indices = @transform_3, window_bounds = array<i64: 1, 128>}, {transform_indices = @transform_4, window_bounds = array<i64: 32, 128>}]} {
    %c0 = arith.constant 0 : index
    %c0_0 = arith.constant 0 : index
    %0 = vector.load %arg1[%c0, %c0_0] : memref<32x288xbf16, #tpu.memory_space<vmem>>, vector<32x288xbf16>
    %c0_1 = arith.constant 0 : index
    %c0_2 = arith.constant 0 : index
    %1 = vector.load %arg2[%c0_1, %c0_2] : memref<288x128xbf16, #tpu.memory_space<vmem>>, vector<288x128xbf16>
    %cst = arith.constant dense<0.000000e+00> : vector<32x128xf32>
    %2 = tpu.matmul %0, %1, %cst {dimension_numbers = #tpu.dot_dimension_numbers<[1], [0], [0], [1], [0, 0, 1, 1], [], []>} : vector<32x288xbf16>, vector<288x128xbf16>, vector<32x128xf32> -> vector<32x128xf32>
    %c0_3 = arith.constant 0 : index
    %c0_4 = arith.constant 0 : index
    %3 = vector.load %arg3[%c0_3, %c0_4] : memref<1x128xf32, #tpu.memory_space<vmem>>, vector<1x128xf32>
    %4 = vector.broadcast %3 : vector<1x128xf32> to vector<32x128xf32>
    %5 = arith.mulf %2, %4 : vector<32x128xf32>
    %c0_5 = arith.constant 0 : index
    %c0_6 = arith.constant 0 : index
    %6 = vector.load %arg4[%c0_5, %c0_6] : memref<1x128xf32, #tpu.memory_space<vmem>>, vector<1x128xf32>
    %7 = vector.broadcast %6 : vector<1x128xf32> to vector<32x128xf32>
    %8 = arith.addf %5, %7 : vector<32x128xf32>
    %cst_7 = arith.constant 0.000000e+00 : f32
    %9 = vector.broadcast %cst_7 : f32 to vector<32x128xf32>
    %10 = arith.subf %9, %8 : vector<32x128xf32>
    %11 = math.exp %10 : vector<32x128xf32>
    %cst_8 = arith.constant 1.000000e+00 : f32
    %12 = vector.broadcast %cst_8 : f32 to vector<32x128xf32>
    %13 = arith.addf %12, %11 : vector<32x128xf32>
    %cst_9 = arith.constant 1.000000e+00 : f32
    %14 = vector.broadcast %cst_9 : f32 to vector<32x128xf32>
    %15 = arith.divf %14, %13 : vector<32x128xf32>
    %16 = arith.mulf %8, %15 : vector<32x128xf32>
    %c0_10 = arith.constant 0 : index
    %c0_11 = arith.constant 0 : index
    %17 = vector.load %arg5[%c0_10, %c0_11] : memref<32x128xf32, #tpu.memory_space<vmem>>, vector<32x128xf32>
    tpu.vector_store %arg5[%c0_10, %c0_11], %16 {strides = array<i32>} : memref<32x128xf32, #tpu.memory_space<vmem>>, vector<32x128xf32>,
    return
  }
  func.func @transform_0(%arg0: i32) -> (i32, i32) {
    %c0_i32 = arith.constant 0 : i32
    %c0_i32_0 = arith.constant 0 : i32
    return %arg0, %c0_i32 : i32, i32
  }
  func.func @transform_1(%arg0: i32) -> (i32, i32) {
    %c0_i32 = arith.constant 0 : i32
    %c0_i32_0 = arith.constant 0 : i32
    %c0_i32_1 = arith.constant 0 : i32
    return %c0_i32, %c0_i32_0 : i32, i32
  }
  func.func @transform_2(%arg0: i32) -> (i32, i32) {
    %c0_i32 = arith.constant 0 : i32
    %c0_i32_0 = arith.constant 0 : i32
    %c0_i32_1 = arith.constant 0 : i32
    return %c0_i32, %c0_i32_0 : i32, i32
  }
  func.func @transform_3(%arg0: i32) -> (i32, i32) {
    %c0_i32 = arith.constant 0 : i32
    %c0_i32_0 = arith.constant 0 : i32
    %c0_i32_1 = arith.constant 0 : i32
    return %c0_i32, %c0_i32_0 : i32, i32
  }
  func.func @transform_4(%arg0: i32) -> (i32, i32) {
    %c0_i32 = arith.constant 0 : i32
    %c0_i32_0 = arith.constant 0 : i32
    return %arg0, %c0_i32 : i32, i32
  }
}

module attributes {stable_mosaic.version = 11 : i64} {
  func.func @_matmul_bn_silu_kernel(%arg0: i32, %arg1: memref<32x64xbf16, #tpu.memory_space<vmem>>, %arg2: memref<64x128xbf16, #tpu.memory_space<vmem>>, %arg3: memref<1x128xf32, #tpu.memory_space<vmem>>, %arg4: memref<1x128xf32, #tpu.memory_space<vmem>>, %arg5: memref<32x128xf32, #tpu.memory_space<vmem>>) attributes {dimension_semantics = [#tpu.dimension_semantics<parallel>], iteration_bounds = array<i64: 1>, scalar_prefetch = 0 : i64, scratch_operands = 0 : i64, tpu.core_type = #tpu.core_type<tc>, window_params = [{transform_indices = @transform_0, window_bounds = array<i64: 32, 64>}, {pipeline_mode = #tpu.pipeline_mode<synchronous>, transform_indices = @transform_1, window_bounds = array<i64: 64, 128>}, {pipeline_mode = #tpu.pipeline_mode<synchronous>, transform_indices = @transform_2, window_bounds = array<i64: 1, 128>}, {pipeline_mode = #tpu.pipeline_mode<synchronous>, transform_indices = @transform_3, window_bounds = array<i64: 1, 128>}, {transform_indices = @transform_4, window_bounds = array<i64: 32, 128>}]} {
    %c0 = arith.constant 0 : index
    %c0_0 = arith.constant 0 : index
    %0 = vector.load %arg1[%c0, %c0_0] : memref<32x64xbf16, #tpu.memory_space<vmem>>, vector<32x64xbf16>
    %c0_1 = arith.constant 0 : index
    %c0_2 = arith.constant 0 : index
    %1 = vector.load %arg2[%c0_1, %c0_2] : memref<64x128xbf16, #tpu.memory_space<vmem>>, vector<64x128xbf16>
    %cst = arith.constant dense<0.000000e+00> : vector<32x128xf32>
    %2 = tpu.matmul %0, %1, %cst {dimension_numbers = #tpu.dot_dimension_numbers<[1], [0], [0], [1], [0, 0, 1, 1], [], []>} : vector<32x64xbf16>, vector<64x128xbf16>, vector<32x128xf32> -> vector<32x128xf32>
    %c0_3 = arith.constant 0 : index
    %c0_4 = arith.constant 0 : index
    %3 = vector.load %arg3[%c0_3, %c0_4] : memref<1x128xf32, #tpu.memory_space<vmem>>, vector<1x128xf32>
    %4 = vector.broadcast %3 : vector<1x128xf32> to vector<32x128xf32>
    %5 = arith.mulf %2, %4 : vector<32x128xf32>
    %c0_5 = arith.constant 0 : index
    %c0_6 = arith.constant 0 : index
    %6 = vector.load %arg4[%c0_5, %c0_6] : memref<1x128xf32, #tpu.memory_space<vmem>>, vector<1x128xf32>
    %7 = vector.broadcast %6 : vector<1x128xf32> to vector<32x128xf32>
    %8 = arith.addf %5, %7 : vector<32x128xf32>
    %cst_7 = arith.constant 0.000000e+00 : f32
    %9 = vector.broadcast %cst_7 : f32 to vector<32x128xf32>
    %10 = arith.subf %9, %8 : vector<32x128xf32>
    %11 = math.exp %10 : vector<32x128xf32>
    %cst_8 = arith.constant 1.000000e+00 : f32
    %12 = vector.broadcast %cst_8 : f32 to vector<32x128xf32>
    %13 = arith.addf %12, %11 : vector<32x128xf32>
    %cst_9 = arith.constant 1.000000e+00 : f32
    %14 = vector.broadcast %cst_9 : f32 to vector<32x128xf32>
    %15 = arith.divf %14, %13 : vector<32x128xf32>
    %16 = arith.mulf %8, %15 : vector<32x128xf32>
    %c0_10 = arith.constant 0 : index
    %c0_11 = arith.constant 0 : index
    %17 = vector.load %arg5[%c0_10, %c0_11] : memref<32x128xf32, #tpu.memory_space<vmem>>, vector<32x128xf32>
    tpu.vector_store %arg5[%c0_10, %c0_11], %16 {strides = array<i32>} : memref<32x128xf32, #tpu.memory_space<vmem>>, vector<32x128xf32>,
    return
  }
  func.func @transform_0(%arg0: i32) -> (i32, i32) {
    %c0_i32 = arith.constant 0 : i32
    %c0_i32_0 = arith.constant 0 : i32
    return %arg0, %c0_i32 : i32, i32
  }
  func.func @transform_1(%arg0: i32) -> (i32, i32) {
    %c0_i32 = arith.constant 0 : i32
    %c0_i32_0 = arith.constant 0 : i32
    %c0_i32_1 = arith.constant 0 : i32
    return %c0_i32, %c0_i32_0 : i32, i32
  }
  func.func @transform_2(%arg0: i32) -> (i32, i32) {
    %c0_i32 = arith.constant 0 : i32
    %c0_i32_0 = arith.constant 0 : i32
    %c0_i32_1 = arith.constant 0 : i32
    return %c0_i32, %c0_i32_0 : i32, i32
  }
  func.func @transform_3(%arg0: i32) -> (i32, i32) {
    %c0_i32 = arith.constant 0 : i32
    %c0_i32_0 = arith.constant 0 : i32
    %c0_i32_1 = arith.constant 0 : i32
    return %c0_i32, %c0_i32_0 : i32, i32
  }
  func.func @transform_4(%arg0: i32) -> (i32, i32) {
    %c0_i32 = arith.constant 0 : i32
    %c0_i32_0 = arith.constant 0 : i32
    return %arg0, %c0_i32 : i32, i32
  }
}

module attributes {stable_mosaic.version = 11 : i64} {
  func.func @_matmul_bn_silu_kernel(%arg0: i32, %arg1: memref<32x32xbf16, #tpu.memory_space<vmem>>, %arg2: memref<32x128xbf16, #tpu.memory_space<vmem>>, %arg3: memref<1x128xf32, #tpu.memory_space<vmem>>, %arg4: memref<1x128xf32, #tpu.memory_space<vmem>>, %arg5: memref<32x128xf32, #tpu.memory_space<vmem>>) attributes {dimension_semantics = [#tpu.dimension_semantics<parallel>], iteration_bounds = array<i64: 1>, scalar_prefetch = 0 : i64, scratch_operands = 0 : i64, tpu.core_type = #tpu.core_type<tc>, window_params = [{transform_indices = @transform_0, window_bounds = array<i64: 32, 32>}, {pipeline_mode = #tpu.pipeline_mode<synchronous>, transform_indices = @transform_1, window_bounds = array<i64: 32, 128>}, {pipeline_mode = #tpu.pipeline_mode<synchronous>, transform_indices = @transform_2, window_bounds = array<i64: 1, 128>}, {pipeline_mode = #tpu.pipeline_mode<synchronous>, transform_indices = @transform_3, window_bounds = array<i64: 1, 128>}, {transform_indices = @transform_4, window_bounds = array<i64: 32, 128>}]} {
    %c0 = arith.constant 0 : index
    %c0_0 = arith.constant 0 : index
    %0 = vector.load %arg1[%c0, %c0_0] : memref<32x32xbf16, #tpu.memory_space<vmem>>, vector<32x32xbf16>
    %c0_1 = arith.constant 0 : index
    %c0_2 = arith.constant 0 : index
    %1 = vector.load %arg2[%c0_1, %c0_2] : memref<32x128xbf16, #tpu.memory_space<vmem>>, vector<32x128xbf16>
    %cst = arith.constant dense<0.000000e+00> : vector<32x128xf32>
    %2 = tpu.matmul %0, %1, %cst {dimension_numbers = #tpu.dot_dimension_numbers<[1], [0], [0], [1], [0, 0, 1, 1], [], []>} : vector<32x32xbf16>, vector<32x128xbf16>, vector<32x128xf32> -> vector<32x128xf32>
    %c0_3 = arith.constant 0 : index
    %c0_4 = arith.constant 0 : index
    %3 = vector.load %arg3[%c0_3, %c0_4] : memref<1x128xf32, #tpu.memory_space<vmem>>, vector<1x128xf32>
    %4 = vector.broadcast %3 : vector<1x128xf32> to vector<32x128xf32>
    %5 = arith.mulf %2, %4 : vector<32x128xf32>
    %c0_5 = arith.constant 0 : index
    %c0_6 = arith.constant 0 : index
    %6 = vector.load %arg4[%c0_5, %c0_6] : memref<1x128xf32, #tpu.memory_space<vmem>>, vector<1x128xf32>
    %7 = vector.broadcast %6 : vector<1x128xf32> to vector<32x128xf32>
    %8 = arith.addf %5, %7 : vector<32x128xf32>
    %cst_7 = arith.constant 0.000000e+00 : f32
    %9 = vector.broadcast %cst_7 : f32 to vector<32x128xf32>
    %10 = arith.subf %9, %8 : vector<32x128xf32>
    %11 = math.exp %10 : vector<32x128xf32>
    %cst_8 = arith.constant 1.000000e+00 : f32
    %12 = vector.broadcast %cst_8 : f32 to vector<32x128xf32>
    %13 = arith.addf %12, %11 : vector<32x128xf32>
    %cst_9 = arith.constant 1.000000e+00 : f32
    %14 = vector.broadcast %cst_9 : f32 to vector<32x128xf32>
    %15 = arith.divf %14, %13 : vector<32x128xf32>
    %16 = arith.mulf %8, %15 : vector<32x128xf32>
    %c0_10 = arith.constant 0 : index
    %c0_11 = arith.constant 0 : index
    %17 = vector.load %arg5[%c0_10, %c0_11] : memref<32x128xf32, #tpu.memory_space<vmem>>, vector<32x128xf32>
    tpu.vector_store %arg5[%c0_10, %c0_11], %16 {strides = array<i32>} : memref<32x128xf32, #tpu.memory_space<vmem>>, vector<32x128xf32>,
    return
  }
  func.func @transform_0(%arg0: i32) -> (i32, i32) {
    %c0_i32 = arith.constant 0 : i32
    %c0_i32_0 = arith.constant 0 : i32
    return %arg0, %c0_i32 : i32, i32
  }
  func.func @transform_1(%arg0: i32) -> (i32, i32) {
    %c0_i32 = arith.constant 0 : i32
    %c0_i32_0 = arith.constant 0 : i32
    %c0_i32_1 = arith.constant 0 : i32
    return %c0_i32, %c0_i32_0 : i32, i32
  }
  func.func @transform_2(%arg0: i32) -> (i32, i32) {
    %c0_i32 = arith.constant 0 : i32
    %c0_i32_0 = arith.constant 0 : i32
    %c0_i32_1 = arith.constant 0 : i32
    return %c0_i32, %c0_i32_0 : i32, i32
  }
  func.func @transform_3(%arg0: i32) -> (i32, i32) {
    %c0_i32 = arith.constant 0 : i32
    %c0_i32_0 = arith.constant 0 : i32
    %c0_i32_1 = arith.constant 0 : i32
    return %c0_i32, %c0_i32_0 : i32, i32
  }
  func.func @transform_4(%arg0: i32) -> (i32, i32) {
    %c0_i32 = arith.constant 0 : i32
    %c0_i32_0 = arith.constant 0 : i32
    return %arg0, %c0_i32 : i32, i32
  }
}

module attributes {stable_mosaic.version = 11 : i64} {
  func.func @_matmul_bn_silu_add_kernel(%arg0: i32, %arg1: memref<32x288xbf16, #tpu.memory_space<vmem>>, %arg2: memref<288x128xbf16, #tpu.memory_space<vmem>>, %arg3: memref<1x128xf32, #tpu.memory_space<vmem>>, %arg4: memref<1x128xf32, #tpu.memory_space<vmem>>, %arg5: memref<32x128xf32, #tpu.memory_space<vmem>>, %arg6: memref<32x128xf32, #tpu.memory_space<vmem>>) attributes {dimension_semantics = [#tpu.dimension_semantics<parallel>], iteration_bounds = array<i64: 1>, scalar_prefetch = 0 : i64, scratch_operands = 0 : i64, tpu.core_type = #tpu.core_type<tc>, window_params = [{transform_indices = @transform_0, window_bounds = array<i64: 32, 288>}, {pipeline_mode = #tpu.pipeline_mode<synchronous>, transform_indices = @transform_1, window_bounds = array<i64: 288, 128>}, {pipeline_mode = #tpu.pipeline_mode<synchronous>, transform_indices = @transform_2, window_bounds = array<i64: 1, 128>}, {pipeline_mode = #tpu.pipeline_mode<synchronous>, transform_indices = @transform_3, window_bounds = array<i64: 1, 128>}, {transform_indices = @transform_4, window_bounds = array<i64: 32, 128>}, {transform_indices = @transform_5, window_bounds = array<i64: 32, 128>}]} {
    %c0 = arith.constant 0 : index
    %c0_0 = arith.constant 0 : index
    %0 = vector.load %arg1[%c0, %c0_0] : memref<32x288xbf16, #tpu.memory_space<vmem>>, vector<32x288xbf16>
    %c0_1 = arith.constant 0 : index
    %c0_2 = arith.constant 0 : index
    %1 = vector.load %arg2[%c0_1, %c0_2] : memref<288x128xbf16, #tpu.memory_space<vmem>>, vector<288x128xbf16>
    %cst = arith.constant dense<0.000000e+00> : vector<32x128xf32>
    %2 = tpu.matmul %0, %1, %cst {dimension_numbers = #tpu.dot_dimension_numbers<[1], [0], [0], [1], [0, 0, 1, 1], [], []>} : vector<32x288xbf16>, vector<288x128xbf16>, vector<32x128xf32> -> vector<32x128xf32>
    %c0_3 = arith.constant 0 : index
    %c0_4 = arith.constant 0 : index
    %3 = vector.load %arg3[%c0_3, %c0_4] : memref<1x128xf32, #tpu.memory_space<vmem>>, vector<1x128xf32>
    %4 = vector.broadcast %3 : vector<1x128xf32> to vector<32x128xf32>
    %5 = arith.mulf %2, %4 : vector<32x128xf32>
    %c0_5 = arith.constant 0 : index
    %c0_6 = arith.constant 0 : index
    %6 = vector.load %arg4[%c0_5, %c0_6] : memref<1x128xf32, #tpu.memory_space<vmem>>, vector<1x128xf32>
    %7 = vector.broadcast %6 : vector<1x128xf32> to vector<32x128xf32>
    %8 = arith.addf %5, %7 : vector<32x128xf32>
    %cst_7 = arith.constant 0.000000e+00 : f32
    %9 = vector.broadcast %cst_7 : f32 to vector<32x128xf32>
    %10 = arith.subf %9, %8 : vector<32x128xf32>
    %11 = math.exp %10 : vector<32x128xf32>
    %cst_8 = arith.constant 1.000000e+00 : f32
    %12 = vector.broadcast %cst_8 : f32 to vector<32x128xf32>
    %13 = arith.addf %12, %11 : vector<32x128xf32>
    %cst_9 = arith.constant 1.000000e+00 : f32
    %14 = vector.broadcast %cst_9 : f32 to vector<32x128xf32>
    %15 = arith.divf %14, %13 : vector<32x128xf32>
    %16 = arith.mulf %8, %15 : vector<32x128xf32>
    %c0_10 = arith.constant 0 : index
    %c0_11 = arith.constant 0 : index
    %17 = vector.load %arg5[%c0_10, %c0_11] : memref<32x128xf32, #tpu.memory_space<vmem>>, vector<32x128xf32>
    %18 = arith.addf %16, %17 : vector<32x128xf32>
    %c0_12 = arith.constant 0 : index
    %c0_13 = arith.constant 0 : index
    %19 = vector.load %arg6[%c0_12, %c0_13] : memref<32x128xf32, #tpu.memory_space<vmem>>, vector<32x128xf32>
    tpu.vector_store %arg6[%c0_12, %c0_13], %18 {strides = array<i32>} : memref<32x128xf32, #tpu.memory_space<vmem>>, vector<32x128xf32>,
    return
  }
  func.func @transform_0(%arg0: i32) -> (i32, i32) {
    %c0_i32 = arith.constant 0 : i32
    %c0_i32_0 = arith.constant 0 : i32
    return %arg0, %c0_i32 : i32, i32
  }
  func.func @transform_1(%arg0: i32) -> (i32, i32) {
    %c0_i32 = arith.constant 0 : i32
    %c0_i32_0 = arith.constant 0 : i32
    %c0_i32_1 = arith.constant 0 : i32
    return %c0_i32, %c0_i32_0 : i32, i32
  }
  func.func @transform_2(%arg0: i32) -> (i32, i32) {
    %c0_i32 = arith.constant 0 : i32
    %c0_i32_0 = arith.constant 0 : i32
    %c0_i32_1 = arith.constant 0 : i32
    return %c0_i32, %c0_i32_0 : i32, i32
  }
  func.func @transform_3(%arg0: i32) -> (i32, i32) {
    %c0_i32 = arith.constant 0 : i32
    %c0_i32_0 = arith.constant 0 : i32
    %c0_i32_1 = arith.constant 0 : i32
    return %c0_i32, %c0_i32_0 : i32, i32
  }
  func.func @transform_4(%arg0: i32) -> (i32, i32) {
    %c0_i32 = arith.constant 0 : i32
    %c0_i32_0 = arith.constant 0 : i32
    return %arg0, %c0_i32 : i32, i32
  }
  func.func @transform_5(%arg0: i32) -> (i32, i32) {
    %c0_i32 = arith.constant 0 : i32
    %c0_i32_0 = arith.constant 0 : i32
    return %arg0, %c0_i32 : i32, i32
  }
}

module attributes {stable_mosaic.version = 11 : i64} {
  func.func @_matmul_bn_silu_kernel(%arg0: i32, %arg1: memref<8x576xbf16, #tpu.memory_space<vmem>>, %arg2: memref<576x128xbf16, #tpu.memory_space<vmem>>, %arg3: memref<1x128xf32, #tpu.memory_space<vmem>>, %arg4: memref<1x128xf32, #tpu.memory_space<vmem>>, %arg5: memref<8x128xf32, #tpu.memory_space<vmem>>) attributes {dimension_semantics = [#tpu.dimension_semantics<parallel>], iteration_bounds = array<i64: 1>, scalar_prefetch = 0 : i64, scratch_operands = 0 : i64, tpu.core_type = #tpu.core_type<tc>, window_params = [{transform_indices = @transform_0, window_bounds = array<i64: 8, 576>}, {pipeline_mode = #tpu.pipeline_mode<synchronous>, transform_indices = @transform_1, window_bounds = array<i64: 576, 128>}, {pipeline_mode = #tpu.pipeline_mode<synchronous>, transform_indices = @transform_2, window_bounds = array<i64: 1, 128>}, {pipeline_mode = #tpu.pipeline_mode<synchronous>, transform_indices = @transform_3, window_bounds = array<i64: 1, 128>}, {transform_indices = @transform_4, window_bounds = array<i64: 8, 128>}]} {
    %c0 = arith.constant 0 : index
    %c0_0 = arith.constant 0 : index
    %0 = vector.load %arg1[%c0, %c0_0] : memref<8x576xbf16, #tpu.memory_space<vmem>>, vector<8x576xbf16>
    %c0_1 = arith.constant 0 : index
    %c0_2 = arith.constant 0 : index
    %1 = vector.load %arg2[%c0_1, %c0_2] : memref<576x128xbf16, #tpu.memory_space<vmem>>, vector<576x128xbf16>
    %cst = arith.constant dense<0.000000e+00> : vector<8x128xf32>
    %2 = tpu.matmul %0, %1, %cst {dimension_numbers = #tpu.dot_dimension_numbers<[1], [0], [0], [1], [0, 0, 1, 1], [], []>} : vector<8x576xbf16>, vector<576x128xbf16>, vector<8x128xf32> -> vector<8x128xf32>
    %c0_3 = arith.constant 0 : index
    %c0_4 = arith.constant 0 : index
    %3 = vector.load %arg3[%c0_3, %c0_4] : memref<1x128xf32, #tpu.memory_space<vmem>>, vector<1x128xf32>
    %4 = vector.broadcast %3 : vector<1x128xf32> to vector<8x128xf32>
    %5 = arith.mulf %2, %4 : vector<8x128xf32>
    %c0_5 = arith.constant 0 : index
    %c0_6 = arith.constant 0 : index
    %6 = vector.load %arg4[%c0_5, %c0_6] : memref<1x128xf32, #tpu.memory_space<vmem>>, vector<1x128xf32>
    %7 = vector.broadcast %6 : vector<1x128xf32> to vector<8x128xf32>
    %8 = arith.addf %5, %7 : vector<8x128xf32>
    %cst_7 = arith.constant 0.000000e+00 : f32
    %9 = vector.broadcast %cst_7 : f32 to vector<8x128xf32>
    %10 = arith.subf %9, %8 : vector<8x128xf32>
    %11 = math.exp %10 : vector<8x128xf32>
    %cst_8 = arith.constant 1.000000e+00 : f32
    %12 = vector.broadcast %cst_8 : f32 to vector<8x128xf32>
    %13 = arith.addf %12, %11 : vector<8x128xf32>
    %cst_9 = arith.constant 1.000000e+00 : f32
    %14 = vector.broadcast %cst_9 : f32 to vector<8x128xf32>
    %15 = arith.divf %14, %13 : vector<8x128xf32>
    %16 = arith.mulf %8, %15 : vector<8x128xf32>
    %c0_10 = arith.constant 0 : index
    %c0_11 = arith.constant 0 : index
    %17 = vector.load %arg5[%c0_10, %c0_11] : memref<8x128xf32, #tpu.memory_space<vmem>>, vector<8x128xf32>
    tpu.vector_store %arg5[%c0_10, %c0_11], %16 {strides = array<i32>} : memref<8x128xf32, #tpu.memory_space<vmem>>, vector<8x128xf32>,
    return
  }
  func.func @transform_0(%arg0: i32) -> (i32, i32) {
    %c0_i32 = arith.constant 0 : i32
    %c0_i32_0 = arith.constant 0 : i32
    return %arg0, %c0_i32 : i32, i32
  }
  func.func @transform_1(%arg0: i32) -> (i32, i32) {
    %c0_i32 = arith.constant 0 : i32
    %c0_i32_0 = arith.constant 0 : i32
    %c0_i32_1 = arith.constant 0 : i32
    return %c0_i32, %c0_i32_0 : i32, i32
  }
  func.func @transform_2(%arg0: i32) -> (i32, i32) {
    %c0_i32 = arith.constant 0 : i32
    %c0_i32_0 = arith.constant 0 : i32
    %c0_i32_1 = arith.constant 0 : i32
    return %c0_i32, %c0_i32_0 : i32, i32
  }
  func.func @transform_3(%arg0: i32) -> (i32, i32) {
    %c0_i32 = arith.constant 0 : i32
    %c0_i32_0 = arith.constant 0 : i32
    %c0_i32_1 = arith.constant 0 : i32
    return %c0_i32, %c0_i32_0 : i32, i32
  }
  func.func @transform_4(%arg0: i32) -> (i32, i32) {
    %c0_i32 = arith.constant 0 : i32
    %c0_i32_0 = arith.constant 0 : i32
    return %arg0, %c0_i32 : i32, i32
  }
}

module attributes {stable_mosaic.version = 11 : i64} {
  func.func @_matmul_bn_silu_kernel(%arg0: i32, %arg1: memref<8x128xbf16, #tpu.memory_space<vmem>>, %arg2: memref<128x128xbf16, #tpu.memory_space<vmem>>, %arg3: memref<1x128xf32, #tpu.memory_space<vmem>>, %arg4: memref<1x128xf32, #tpu.memory_space<vmem>>, %arg5: memref<8x128xf32, #tpu.memory_space<vmem>>) attributes {dimension_semantics = [#tpu.dimension_semantics<parallel>], iteration_bounds = array<i64: 1>, scalar_prefetch = 0 : i64, scratch_operands = 0 : i64, tpu.core_type = #tpu.core_type<tc>, window_params = [{transform_indices = @transform_0, window_bounds = array<i64: 8, 128>}, {pipeline_mode = #tpu.pipeline_mode<synchronous>, transform_indices = @transform_1, window_bounds = array<i64: 128, 128>}, {pipeline_mode = #tpu.pipeline_mode<synchronous>, transform_indices = @transform_2, window_bounds = array<i64: 1, 128>}, {pipeline_mode = #tpu.pipeline_mode<synchronous>, transform_indices = @transform_3, window_bounds = array<i64: 1, 128>}, {transform_indices = @transform_4, window_bounds = array<i64: 8, 128>}]} {
    %c0 = arith.constant 0 : index
    %c0_0 = arith.constant 0 : index
    %0 = vector.load %arg1[%c0, %c0_0] : memref<8x128xbf16, #tpu.memory_space<vmem>>, vector<8x128xbf16>
    %c0_1 = arith.constant 0 : index
    %c0_2 = arith.constant 0 : index
    %1 = vector.load %arg2[%c0_1, %c0_2] : memref<128x128xbf16, #tpu.memory_space<vmem>>, vector<128x128xbf16>
    %cst = arith.constant dense<0.000000e+00> : vector<8x128xf32>
    %2 = tpu.matmul %0, %1, %cst {dimension_numbers = #tpu.dot_dimension_numbers<[1], [0], [0], [1], [0, 0, 1, 1], [], []>} : vector<8x128xbf16>, vector<128x128xbf16>, vector<8x128xf32> -> vector<8x128xf32>
    %c0_3 = arith.constant 0 : index
    %c0_4 = arith.constant 0 : index
    %3 = vector.load %arg3[%c0_3, %c0_4] : memref<1x128xf32, #tpu.memory_space<vmem>>, vector<1x128xf32>
    %4 = vector.broadcast %3 : vector<1x128xf32> to vector<8x128xf32>
    %5 = arith.mulf %2, %4 : vector<8x128xf32>
    %c0_5 = arith.constant 0 : index
    %c0_6 = arith.constant 0 : index
    %6 = vector.load %arg4[%c0_5, %c0_6] : memref<1x128xf32, #tpu.memory_space<vmem>>, vector<1x128xf32>
    %7 = vector.broadcast %6 : vector<1x128xf32> to vector<8x128xf32>
    %8 = arith.addf %5, %7 : vector<8x128xf32>
    %cst_7 = arith.constant 0.000000e+00 : f32
    %9 = vector.broadcast %cst_7 : f32 to vector<8x128xf32>
    %10 = arith.subf %9, %8 : vector<8x128xf32>
    %11 = math.exp %10 : vector<8x128xf32>
    %cst_8 = arith.constant 1.000000e+00 : f32
    %12 = vector.broadcast %cst_8 : f32 to vector<8x128xf32>
    %13 = arith.addf %12, %11 : vector<8x128xf32>
    %cst_9 = arith.constant 1.000000e+00 : f32
    %14 = vector.broadcast %cst_9 : f32 to vector<8x128xf32>
    %15 = arith.divf %14, %13 : vector<8x128xf32>
    %16 = arith.mulf %8, %15 : vector<8x128xf32>
    %c0_10 = arith.constant 0 : index
    %c0_11 = arith.constant 0 : index
    %17 = vector.load %arg5[%c0_10, %c0_11] : memref<8x128xf32, #tpu.memory_space<vmem>>, vector<8x128xf32>
    tpu.vector_store %arg5[%c0_10, %c0_11], %16 {strides = array<i32>} : memref<8x128xf32, #tpu.memory_space<vmem>>, vector<8x128xf32>,
    return
  }
  func.func @transform_0(%arg0: i32) -> (i32, i32) {
    %c0_i32 = arith.constant 0 : i32
    %c0_i32_0 = arith.constant 0 : i32
    return %arg0, %c0_i32 : i32, i32
  }
  func.func @transform_1(%arg0: i32) -> (i32, i32) {
    %c0_i32 = arith.constant 0 : i32
    %c0_i32_0 = arith.constant 0 : i32
    %c0_i32_1 = arith.constant 0 : i32
    return %c0_i32, %c0_i32_0 : i32, i32
  }
  func.func @transform_2(%arg0: i32) -> (i32, i32) {
    %c0_i32 = arith.constant 0 : i32
    %c0_i32_0 = arith.constant 0 : i32
    %c0_i32_1 = arith.constant 0 : i32
    return %c0_i32, %c0_i32_0 : i32, i32
  }
  func.func @transform_3(%arg0: i32) -> (i32, i32) {
    %c0_i32 = arith.constant 0 : i32
    %c0_i32_0 = arith.constant 0 : i32
    %c0_i32_1 = arith.constant 0 : i32
    return %c0_i32, %c0_i32_0 : i32, i32
  }
  func.func @transform_4(%arg0: i32) -> (i32, i32) {
    %c0_i32 = arith.constant 0 : i32
    %c0_i32_0 = arith.constant 0 : i32
    return %arg0, %c0_i32 : i32, i32
  }
}

module attributes {stable_mosaic.version = 11 : i64} {
  func.func @_max_reduce_kernel(%arg0: i32, %arg1: memref<5x512xf32, #tpu.memory_space<vmem>>, %arg2: memref<1x512xf32, #tpu.memory_space<vmem>>) attributes {dimension_semantics = [#tpu.dimension_semantics<parallel>], iteration_bounds = array<i64: 1>, scalar_prefetch = 0 : i64, scratch_operands = 0 : i64, tpu.core_type = #tpu.core_type<tc>, window_params = [{transform_indices = @transform_0, window_bounds = array<i64: 5, 512>}, {transform_indices = @transform_1, window_bounds = array<i64: 1, 512>}]} {
    %c0 = arith.constant 0 : index
    %c0_0 = arith.constant 0 : index
    %0 = vector.load %arg1[%c0, %c0_0] : memref<5x512xf32, #tpu.memory_space<vmem>>, vector<5x512xf32>
    %cst = arith.constant dense<0xFF800000> : vector<512xf32>
    %1 = vector.multi_reduction <maximumf>, %0, %cst [0] : vector<5x512xf32> to vector<512xf32>
    %2 = vector.shape_cast %1 : vector<512xf32> to vector<1x512xf32>
    %c0_1 = arith.constant 0 : index
    %c0_2 = arith.constant 0 : index
    %3 = vector.load %arg2[%c0_1, %c0_2] : memref<1x512xf32, #tpu.memory_space<vmem>>, vector<1x512xf32>
    tpu.vector_store %arg2[%c0_1, %c0_2], %2 {strides = array<i32>} : memref<1x512xf32, #tpu.memory_space<vmem>>, vector<1x512xf32>,
    return
  }
  func.func @transform_0(%arg0: i32) -> (i32, i32) {
    %c0_i32 = arith.constant 0 : i32
    %c0_i32_0 = arith.constant 0 : i32
    return %c0_i32, %arg0 : i32, i32
  }
  func.func @transform_1(%arg0: i32) -> (i32, i32) {
    %c0_i32 = arith.constant 0 : i32
    %c0_i32_0 = arith.constant 0 : i32
    return %c0_i32, %arg0 : i32, i32
  }
}

module attributes {stable_mosaic.version = 11 : i64} {
  func.func @_max_reduce_kernel(%arg0: i32, %arg1: memref<9x512xf32, #tpu.memory_space<vmem>>, %arg2: memref<1x512xf32, #tpu.memory_space<vmem>>) attributes {dimension_semantics = [#tpu.dimension_semantics<parallel>], iteration_bounds = array<i64: 1>, scalar_prefetch = 0 : i64, scratch_operands = 0 : i64, tpu.core_type = #tpu.core_type<tc>, window_params = [{transform_indices = @transform_0, window_bounds = array<i64: 9, 512>}, {transform_indices = @transform_1, window_bounds = array<i64: 1, 512>}]} {
    %c0 = arith.constant 0 : index
    %c0_0 = arith.constant 0 : index
    %0 = vector.load %arg1[%c0, %c0_0] : memref<9x512xf32, #tpu.memory_space<vmem>>, vector<9x512xf32>
    %cst = arith.constant dense<0xFF800000> : vector<512xf32>
    %1 = vector.multi_reduction <maximumf>, %0, %cst [0] : vector<9x512xf32> to vector<512xf32>
    %2 = vector.shape_cast %1 : vector<512xf32> to vector<1x512xf32>
    %c0_1 = arith.constant 0 : index
    %c0_2 = arith.constant 0 : index
    %3 = vector.load %arg2[%c0_1, %c0_2] : memref<1x512xf32, #tpu.memory_space<vmem>>, vector<1x512xf32>
    tpu.vector_store %arg2[%c0_1, %c0_2], %2 {strides = array<i32>} : memref<1x512xf32, #tpu.memory_space<vmem>>, vector<1x512xf32>,
    return
  }
  func.func @transform_0(%arg0: i32) -> (i32, i32) {
    %c0_i32 = arith.constant 0 : i32
    %c0_i32_0 = arith.constant 0 : i32
    return %c0_i32, %arg0 : i32, i32
  }
  func.func @transform_1(%arg0: i32) -> (i32, i32) {
    %c0_i32 = arith.constant 0 : i32
    %c0_i32_0 = arith.constant 0 : i32
    return %c0_i32, %arg0 : i32, i32
  }
}

module attributes {stable_mosaic.version = 11 : i64} {
  func.func @_max_reduce_kernel(%arg0: i32, %arg1: memref<13x512xf32, #tpu.memory_space<vmem>>, %arg2: memref<1x512xf32, #tpu.memory_space<vmem>>) attributes {dimension_semantics = [#tpu.dimension_semantics<parallel>], iteration_bounds = array<i64: 1>, scalar_prefetch = 0 : i64, scratch_operands = 0 : i64, tpu.core_type = #tpu.core_type<tc>, window_params = [{transform_indices = @transform_0, window_bounds = array<i64: 13, 512>}, {transform_indices = @transform_1, window_bounds = array<i64: 1, 512>}]} {
    %c0 = arith.constant 0 : index
    %c0_0 = arith.constant 0 : index
    %0 = vector.load %arg1[%c0, %c0_0] : memref<13x512xf32, #tpu.memory_space<vmem>>, vector<13x512xf32>
    %cst = arith.constant dense<0xFF800000> : vector<512xf32>
    %1 = vector.multi_reduction <maximumf>, %0, %cst [0] : vector<13x512xf32> to vector<512xf32>
    %2 = vector.shape_cast %1 : vector<512xf32> to vector<1x512xf32>
    %c0_1 = arith.constant 0 : index
    %c0_2 = arith.constant 0 : index
    %3 = vector.load %arg2[%c0_1, %c0_2] : memref<1x512xf32, #tpu.memory_space<vmem>>, vector<1x512xf32>
    tpu.vector_store %arg2[%c0_1, %c0_2], %2 {strides = array<i32>} : memref<1x512xf32, #tpu.memory_space<vmem>>, vector<1x512xf32>,
    return
  }
  func.func @transform_0(%arg0: i32) -> (i32, i32) {
    %c0_i32 = arith.constant 0 : i32
    %c0_i32_0 = arith.constant 0 : i32
    return %c0_i32, %arg0 : i32, i32
  }
  func.func @transform_1(%arg0: i32) -> (i32, i32) {
    %c0_i32 = arith.constant 0 : i32
    %c0_i32_0 = arith.constant 0 : i32
    return %c0_i32, %arg0 : i32, i32
  }
}

module attributes {stable_mosaic.version = 11 : i64} {
  func.func @_matmul_bn_silu_kernel(%arg0: i32, %arg1: memref<8x256xbf16, #tpu.memory_space<vmem>>, %arg2: memref<256x128xbf16, #tpu.memory_space<vmem>>, %arg3: memref<1x128xf32, #tpu.memory_space<vmem>>, %arg4: memref<1x128xf32, #tpu.memory_space<vmem>>, %arg5: memref<8x128xf32, #tpu.memory_space<vmem>>) attributes {dimension_semantics = [#tpu.dimension_semantics<parallel>], iteration_bounds = array<i64: 1>, scalar_prefetch = 0 : i64, scratch_operands = 0 : i64, tpu.core_type = #tpu.core_type<tc>, window_params = [{transform_indices = @transform_0, window_bounds = array<i64: 8, 256>}, {pipeline_mode = #tpu.pipeline_mode<synchronous>, transform_indices = @transform_1, window_bounds = array<i64: 256, 128>}, {pipeline_mode = #tpu.pipeline_mode<synchronous>, transform_indices = @transform_2, window_bounds = array<i64: 1, 128>}, {pipeline_mode = #tpu.pipeline_mode<synchronous>, transform_indices = @transform_3, window_bounds = array<i64: 1, 128>}, {transform_indices = @transform_4, window_bounds = array<i64: 8, 128>}]} {
    %c0 = arith.constant 0 : index
    %c0_0 = arith.constant 0 : index
    %0 = vector.load %arg1[%c0, %c0_0] : memref<8x256xbf16, #tpu.memory_space<vmem>>, vector<8x256xbf16>
    %c0_1 = arith.constant 0 : index
    %c0_2 = arith.constant 0 : index
    %1 = vector.load %arg2[%c0_1, %c0_2] : memref<256x128xbf16, #tpu.memory_space<vmem>>, vector<256x128xbf16>
    %cst = arith.constant dense<0.000000e+00> : vector<8x128xf32>
    %2 = tpu.matmul %0, %1, %cst {dimension_numbers = #tpu.dot_dimension_numbers<[1], [0], [0], [1], [0, 0, 1, 1], [], []>} : vector<8x256xbf16>, vector<256x128xbf16>, vector<8x128xf32> -> vector<8x128xf32>
    %c0_3 = arith.constant 0 : index
    %c0_4 = arith.constant 0 : index
    %3 = vector.load %arg3[%c0_3, %c0_4] : memref<1x128xf32, #tpu.memory_space<vmem>>, vector<1x128xf32>
    %4 = vector.broadcast %3 : vector<1x128xf32> to vector<8x128xf32>
    %5 = arith.mulf %2, %4 : vector<8x128xf32>
    %c0_5 = arith.constant 0 : index
    %c0_6 = arith.constant 0 : index
    %6 = vector.load %arg4[%c0_5, %c0_6] : memref<1x128xf32, #tpu.memory_space<vmem>>, vector<1x128xf32>
    %7 = vector.broadcast %6 : vector<1x128xf32> to vector<8x128xf32>
    %8 = arith.addf %5, %7 : vector<8x128xf32>
    %cst_7 = arith.constant 0.000000e+00 : f32
    %9 = vector.broadcast %cst_7 : f32 to vector<8x128xf32>
    %10 = arith.subf %9, %8 : vector<8x128xf32>
    %11 = math.exp %10 : vector<8x128xf32>
    %cst_8 = arith.constant 1.000000e+00 : f32
    %12 = vector.broadcast %cst_8 : f32 to vector<8x128xf32>
    %13 = arith.addf %12, %11 : vector<8x128xf32>
    %cst_9 = arith.constant 1.000000e+00 : f32
    %14 = vector.broadcast %cst_9 : f32 to vector<8x128xf32>
    %15 = arith.divf %14, %13 : vector<8x128xf32>
    %16 = arith.mulf %8, %15 : vector<8x128xf32>
    %c0_10 = arith.constant 0 : index
    %c0_11 = arith.constant 0 : index
    %17 = vector.load %arg5[%c0_10, %c0_11] : memref<8x128xf32, #tpu.memory_space<vmem>>, vector<8x128xf32>
    tpu.vector_store %arg5[%c0_10, %c0_11], %16 {strides = array<i32>} : memref<8x128xf32, #tpu.memory_space<vmem>>, vector<8x128xf32>,
    return
  }
  func.func @transform_0(%arg0: i32) -> (i32, i32) {
    %c0_i32 = arith.constant 0 : i32
    %c0_i32_0 = arith.constant 0 : i32
    return %arg0, %c0_i32 : i32, i32
  }
  func.func @transform_1(%arg0: i32) -> (i32, i32) {
    %c0_i32 = arith.constant 0 : i32
    %c0_i32_0 = arith.constant 0 : i32
    %c0_i32_1 = arith.constant 0 : i32
    return %c0_i32, %c0_i32_0 : i32, i32
  }
  func.func @transform_2(%arg0: i32) -> (i32, i32) {
    %c0_i32 = arith.constant 0 : i32
    %c0_i32_0 = arith.constant 0 : i32
    %c0_i32_1 = arith.constant 0 : i32
    return %c0_i32, %c0_i32_0 : i32, i32
  }
  func.func @transform_3(%arg0: i32) -> (i32, i32) {
    %c0_i32 = arith.constant 0 : i32
    %c0_i32_0 = arith.constant 0 : i32
    %c0_i32_1 = arith.constant 0 : i32
    return %c0_i32, %c0_i32_0 : i32, i32
  }
  func.func @transform_4(%arg0: i32) -> (i32, i32) {
    %c0_i32 = arith.constant 0 : i32
    %c0_i32_0 = arith.constant 0 : i32
    return %arg0, %c0_i32 : i32, i32
  }
}

module attributes {stable_mosaic.version = 11 : i64} {
  func.func @_matmul_bn_silu_kernel(%arg0: i32, %arg1: memref<8x64xbf16, #tpu.memory_space<vmem>>, %arg2: memref<64x128xbf16, #tpu.memory_space<vmem>>, %arg3: memref<1x128xf32, #tpu.memory_space<vmem>>, %arg4: memref<1x128xf32, #tpu.memory_space<vmem>>, %arg5: memref<8x128xf32, #tpu.memory_space<vmem>>) attributes {dimension_semantics = [#tpu.dimension_semantics<parallel>], iteration_bounds = array<i64: 1>, scalar_prefetch = 0 : i64, scratch_operands = 0 : i64, tpu.core_type = #tpu.core_type<tc>, window_params = [{transform_indices = @transform_0, window_bounds = array<i64: 8, 64>}, {pipeline_mode = #tpu.pipeline_mode<synchronous>, transform_indices = @transform_1, window_bounds = array<i64: 64, 128>}, {pipeline_mode = #tpu.pipeline_mode<synchronous>, transform_indices = @transform_2, window_bounds = array<i64: 1, 128>}, {pipeline_mode = #tpu.pipeline_mode<synchronous>, transform_indices = @transform_3, window_bounds = array<i64: 1, 128>}, {transform_indices = @transform_4, window_bounds = array<i64: 8, 128>}]} {
    %c0 = arith.constant 0 : index
    %c0_0 = arith.constant 0 : index
    %0 = vector.load %arg1[%c0, %c0_0] : memref<8x64xbf16, #tpu.memory_space<vmem>>, vector<8x64xbf16>
    %c0_1 = arith.constant 0 : index
    %c0_2 = arith.constant 0 : index
    %1 = vector.load %arg2[%c0_1, %c0_2] : memref<64x128xbf16, #tpu.memory_space<vmem>>, vector<64x128xbf16>
    %cst = arith.constant dense<0.000000e+00> : vector<8x128xf32>
    %2 = tpu.matmul %0, %1, %cst {dimension_numbers = #tpu.dot_dimension_numbers<[1], [0], [0], [1], [0, 0, 1, 1], [], []>} : vector<8x64xbf16>, vector<64x128xbf16>, vector<8x128xf32> -> vector<8x128xf32>
    %c0_3 = arith.constant 0 : index
    %c0_4 = arith.constant 0 : index
    %3 = vector.load %arg3[%c0_3, %c0_4] : memref<1x128xf32, #tpu.memory_space<vmem>>, vector<1x128xf32>
    %4 = vector.broadcast %3 : vector<1x128xf32> to vector<8x128xf32>
    %5 = arith.mulf %2, %4 : vector<8x128xf32>
    %c0_5 = arith.constant 0 : index
    %c0_6 = arith.constant 0 : index
    %6 = vector.load %arg4[%c0_5, %c0_6] : memref<1x128xf32, #tpu.memory_space<vmem>>, vector<1x128xf32>
    %7 = vector.broadcast %6 : vector<1x128xf32> to vector<8x128xf32>
    %8 = arith.addf %5, %7 : vector<8x128xf32>
    %cst_7 = arith.constant 0.000000e+00 : f32
    %9 = vector.broadcast %cst_7 : f32 to vector<8x128xf32>
    %10 = arith.subf %9, %8 : vector<8x128xf32>
    %11 = math.exp %10 : vector<8x128xf32>
    %cst_8 = arith.constant 1.000000e+00 : f32
    %12 = vector.broadcast %cst_8 : f32 to vector<8x128xf32>
    %13 = arith.addf %12, %11 : vector<8x128xf32>
    %cst_9 = arith.constant 1.000000e+00 : f32
    %14 = vector.broadcast %cst_9 : f32 to vector<8x128xf32>
    %15 = arith.divf %14, %13 : vector<8x128xf32>
    %16 = arith.mulf %8, %15 : vector<8x128xf32>
    %c0_10 = arith.constant 0 : index
    %c0_11 = arith.constant 0 : index
    %17 = vector.load %arg5[%c0_10, %c0_11] : memref<8x128xf32, #tpu.memory_space<vmem>>, vector<8x128xf32>
    tpu.vector_store %arg5[%c0_10, %c0_11], %16 {strides = array<i32>} : memref<8x128xf32, #tpu.memory_space<vmem>>, vector<8x128xf32>,
    return
  }
  func.func @transform_0(%arg0: i32) -> (i32, i32) {
    %c0_i32 = arith.constant 0 : i32
    %c0_i32_0 = arith.constant 0 : i32
    return %arg0, %c0_i32 : i32, i32
  }
  func.func @transform_1(%arg0: i32) -> (i32, i32) {
    %c0_i32 = arith.constant 0 : i32
    %c0_i32_0 = arith.constant 0 : i32
    %c0_i32_1 = arith.constant 0 : i32
    return %c0_i32, %c0_i32_0 : i32, i32
  }
  func.func @transform_2(%arg0: i32) -> (i32, i32) {
    %c0_i32 = arith.constant 0 : i32
    %c0_i32_0 = arith.constant 0 : i32
    %c0_i32_1 = arith.constant 0 : i32
    return %c0_i32, %c0_i32_0 : i32, i32
  }
  func.func @transform_3(%arg0: i32) -> (i32, i32) {
    %c0_i32 = arith.constant 0 : i32
    %c0_i32_0 = arith.constant 0 : i32
    %c0_i32_1 = arith.constant 0 : i32
    return %c0_i32, %c0_i32_0 : i32, i32
  }
  func.func @transform_4(%arg0: i32) -> (i32, i32) {
    %c0_i32 = arith.constant 0 : i32
    %c0_i32_0 = arith.constant 0 : i32
    return %arg0, %c0_i32 : i32, i32
  }
}

module attributes {stable_mosaic.version = 11 : i64} {
  func.func @_matmul_bn_silu_kernel(%arg0: i32, %arg1: memref<8x128xbf16, #tpu.memory_space<vmem>>, %arg2: memref<128x128xbf16, #tpu.memory_space<vmem>>, %arg3: memref<1x128xf32, #tpu.memory_space<vmem>>, %arg4: memref<1x128xf32, #tpu.memory_space<vmem>>, %arg5: memref<8x128xf32, #tpu.memory_space<vmem>>) attributes {dimension_semantics = [#tpu.dimension_semantics<parallel>], iteration_bounds = array<i64: 1>, scalar_prefetch = 0 : i64, scratch_operands = 0 : i64, tpu.core_type = #tpu.core_type<tc>, window_params = [{transform_indices = @transform_0, window_bounds = array<i64: 8, 128>}, {pipeline_mode = #tpu.pipeline_mode<synchronous>, transform_indices = @transform_1, window_bounds = array<i64: 128, 128>}, {pipeline_mode = #tpu.pipeline_mode<synchronous>, transform_indices = @transform_2, window_bounds = array<i64: 1, 128>}, {pipeline_mode = #tpu.pipeline_mode<synchronous>, transform_indices = @transform_3, window_bounds = array<i64: 1, 128>}, {transform_indices = @transform_4, window_bounds = array<i64: 8, 128>}]} {
    %c0 = arith.constant 0 : index
    %c0_0 = arith.constant 0 : index
    %0 = vector.load %arg1[%c0, %c0_0] : memref<8x128xbf16, #tpu.memory_space<vmem>>, vector<8x128xbf16>
    %c0_1 = arith.constant 0 : index
    %c0_2 = arith.constant 0 : index
    %1 = vector.load %arg2[%c0_1, %c0_2] : memref<128x128xbf16, #tpu.memory_space<vmem>>, vector<128x128xbf16>
    %cst = arith.constant dense<0.000000e+00> : vector<8x128xf32>
    %2 = tpu.matmul %0, %1, %cst {dimension_numbers = #tpu.dot_dimension_numbers<[1], [0], [0], [1], [0, 0, 1, 1], [], []>} : vector<8x128xbf16>, vector<128x128xbf16>, vector<8x128xf32> -> vector<8x128xf32>
    %c0_3 = arith.constant 0 : index
    %c0_4 = arith.constant 0 : index
    %3 = vector.load %arg3[%c0_3, %c0_4] : memref<1x128xf32, #tpu.memory_space<vmem>>, vector<1x128xf32>
    %4 = vector.broadcast %3 : vector<1x128xf32> to vector<8x128xf32>
    %5 = arith.mulf %2, %4 : vector<8x128xf32>
    %c0_5 = arith.constant 0 : index
    %c0_6 = arith.constant 0 : index
    %6 = vector.load %arg4[%c0_5, %c0_6] : memref<1x128xf32, #tpu.memory_space<vmem>>, vector<1x128xf32>
    %7 = vector.broadcast %6 : vector<1x128xf32> to vector<8x128xf32>
    %8 = arith.addf %5, %7 : vector<8x128xf32>
    %cst_7 = arith.constant 0.000000e+00 : f32
    %9 = vector.broadcast %cst_7 : f32 to vector<8x128xf32>
    %10 = arith.subf %9, %8 : vector<8x128xf32>
    %11 = math.exp %10 : vector<8x128xf32>
    %cst_8 = arith.constant 1.000000e+00 : f32
    %12 = vector.broadcast %cst_8 : f32 to vector<8x128xf32>
    %13 = arith.addf %12, %11 : vector<8x128xf32>
    %cst_9 = arith.constant 1.000000e+00 : f32
    %14 = vector.broadcast %cst_9 : f32 to vector<8x128xf32>
    %15 = arith.divf %14, %13 : vector<8x128xf32>
    %16 = arith.mulf %8, %15 : vector<8x128xf32>
    %c0_10 = arith.constant 0 : index
    %c0_11 = arith.constant 0 : index
    %17 = vector.load %arg5[%c0_10, %c0_11] : memref<8x128xf32, #tpu.memory_space<vmem>>, vector<8x128xf32>
    tpu.vector_store %arg5[%c0_10, %c0_11], %16 {strides = array<i32>} : memref<8x128xf32, #tpu.memory_space<vmem>>, vector<8x128xf32>,
    return
  }
  func.func @transform_0(%arg0: i32) -> (i32, i32) {
    %c0_i32 = arith.constant 0 : i32
    %c0_i32_0 = arith.constant 0 : i32
    return %arg0, %c0_i32 : i32, i32
  }
  func.func @transform_1(%arg0: i32) -> (i32, i32) {
    %c0_i32 = arith.constant 0 : i32
    %c0_i32_0 = arith.constant 0 : i32
    %c0_i32_1 = arith.constant 0 : i32
    return %c0_i32, %c0_i32_0 : i32, i32
  }
  func.func @transform_2(%arg0: i32) -> (i32, i32) {
    %c0_i32 = arith.constant 0 : i32
    %c0_i32_0 = arith.constant 0 : i32
    %c0_i32_1 = arith.constant 0 : i32
    return %c0_i32, %c0_i32_0 : i32, i32
  }
  func.func @transform_3(%arg0: i32) -> (i32, i32) {
    %c0_i32 = arith.constant 0 : i32
    %c0_i32_0 = arith.constant 0 : i32
    %c0_i32_1 = arith.constant 0 : i32
    return %c0_i32, %c0_i32_0 : i32, i32
  }
  func.func @transform_4(%arg0: i32) -> (i32, i32) {
    %c0_i32 = arith.constant 0 : i32
    %c0_i32_0 = arith.constant 0 : i32
    return %arg0, %c0_i32 : i32, i32
  }
}

</mosaic_0001>

<bundles_post_ra>
// kernel: cspdarknet_fwd.41
= control target key start
LH: loop header
LB: loop body
LE: loop exit
PB: predicated region body
PF: predicated region fallthrough
CT: control target
= control target key end

     0   :  { %s2136_s15 = smov 0   ;;  %s2885_s0 = inlined_call_operand.vmem [shape: bf16[2048,108], index: 0, kind: input, shape index: {}]   ;;  %s2886_s1 = inlined_call_operand.vmem [shape: bf16[108,128], index: 1, kind: input, shape index: {}]   ;;  %s2887_s2 = inlined_call_operand.vmem [shape: f32[1,128], index: 2, kind: input, shape index: {}]   ;;  %s2888_s3 = inlined_call_operand.vmem [shape: f32[1,128], index: 3, kind: input, shape index: {}]   ;;  %s2889_s4 = inlined_call_operand.vmem [shape: f32[2048,128], index: 4, kind: output, shape index: {}]  }
   0x1 LB: > { %s1581_s16 = sadd.s32 4294967295, %s2109_s15   ;;  %p1585_p0 = scmp.ge.s32.totalorder %s2109_s15, 1  ;;  %s2109_s15 = sphi %s2136_s15, %s14_s15  }
   0x2   : > { %p163_p1 = scmp.lt.s32.totalorder %s2109_s15, 5 }
   0x4   : > { %p164_p2 = pnand %p1585_p0, %p163_p1 }
   0x6   : > { %167 = sbr.rel (%p164_p2) target bundleno = 408 (0x198), region = 36 }
   0xd   : > { %v1806_v0 = vld [vmem:[%s2886_s1] sm:$0xff]   ;;  %v1807_v1 = vld [vmem:[%s2886_s1 + $0x8] sm:$0xff]   ;;  %s1586_s21 = sshll.u32 %s1581_s16, 6  ;;  %v1808_v2 = vld [vmem:[%s2886_s1 + $0x10] sm:$0xff]   ;;  %vm481_vm0 = vcmask 883712   ;;  %vm578_vm1 = vcmask 1045504  }
   0xe   : > { %1704 = vmatprep.subr.bf16.mxu0 %v1806_v0  ;;  %1782 = vmatprep.subr.bf16.mxu1 %v1806_v0  ;;  %p190_p3 = scmp.lt.s32.totalorder %s1586_s21, 255  ;;  %v1809_v3 = vld [vmem:[%s2886_s1 + $0x18] sm:$0xff]   ;;  %v1810_v6 = vld [vmem:[%s2886_s1 + $0x20] sm:$0xff]   ;;  %v1811_v7 = vld [vmem:[%s2886_s1 + $0x28] sm:$0xff]  }
   0xf   : > { %1705 = vmatpush3.bf16.msra.mxu0 %v1806_v0  ;;  %1789 = vmatpush3.bf16.msra.mxu1 %v1806_v0  ;;  %v1812_v8 = vld [vmem:[%s2886_s1 + $0x30] sm:$0x3f]   ;;  %v2240_v40 = vld [vmem:[%s2887_s2] ss:$0 sm:$0xff] }
  0x10   : > { %1706 = vmatprep.subr.bf16.mxu0 %v1807_v1  ;;  %1783 = vmatprep.subr.bf16.mxu1 %v1807_v1  ;;  %s2907_s21 = smov (!%p190_p3, %s1586_s21), 255  ;;  %v580_v9 = vsel %vm578_vm1, %v1812_v8, 0  ;;  %v2245_v42 = vld [vmem:[%s2888_s3] ss:$0 sm:$0xff] }
  0x11   : > { %s1587_s24 = sshll.u32 %s2907_s21, 2  ;;  %s1589_s14 = sshll.u32 %s2907_s21, 3 }
  0x12   : > { %s2162_s29 = scalar_lea.vmem %s2885_s0, %s1587_s24  ;;  %s2397_s18 = scalar_lea.vmem %s2889_s4, %s1589_s14 }
  0x13   : > { %1707 = vmatpush3.bf16.msra.mxu0 %v1807_v1  ;;  %1790 = vmatpush3.bf16.msra.mxu1 %v1807_v1  ;;  %v1813_v4 = vld [vmem:[%s2162_s29] sm:$0xff]   ;;  %v1815_v10 = vld [vmem:[%s2162_s29 + $0x8] sm:$0xff]   ;;  %v1817_v12 = vld [vmem:[%s2162_s29 + $0x10] sm:$0xff]  }
  0x14   : > { %1708 = vmatprep.subr.bf16.mxu0 %v1808_v2  ;;  %1784 = vmatprep.subr.bf16.mxu1 %v1808_v2  ;;  %v1814_v5 = vld [vmem:[%s2162_s29 + $0x80] sm:$0xff]   ;;  %v1816_v11 = vld [vmem:[%s2162_s29 + $0x88] sm:$0xff]   ;;  %v1818_v13 = vld [vmem:[%s2162_s29 + $0x90] sm:$0xff]  }
  0x15   : > { %1718 = vmatprep.mubr.msk.bf16.mxu0 %vm481_vm0, %v1813_v4  ;;  %1750 = vmatprep.mubr.msk.bf16.mxu1 %vm481_vm0, %v1814_v5  ;;  %v1819_v14 = vld [vmem:[%s2162_s29 + $0x18] sm:$0xff]   ;;  %v1821_v16 = vld [vmem:[%s2162_s29 + $0x20] sm:$0xff]   ;;  %v1823_v18 = vld [vmem:[%s2162_s29 + $0x28] sm:$0xff]  }
  0x16   : > { %v1820_v15 = vld [vmem:[%s2162_s29 + $0x98] sm:$0xff]   ;;  %v1822_v17 = vld [vmem:[%s2162_s29 + $0xa0] sm:$0xff]   ;;  %v1824_v19 = vld [vmem:[%s2162_s29 + $0xa8] sm:$0xff]  }
  0x17   : > { %1709 = vmatpush3.bf16.msra.mxu0 %v1808_v2  ;;  %1791 = vmatpush3.bf16.msra.mxu1 %v1808_v2  ;;  %v1825_v20 = vld [vmem:[%s2162_s29 + $0x30] sm:$0xff]   ;;  %v1827_v22 = vld [vmem:[%s2162_s29 + $0x38] sm:$0xff]   ;;  %v1829_v24 = vld [vmem:[%s2162_s29 + $0x40] sm:$0xff]  }
  0x18   : > { %1710 = vmatprep.subr.bf16.mxu0 %v1809_v3  ;;  %1785 = vmatprep.subr.bf16.mxu1 %v1809_v3  ;;  %v1826_v21 = vld [vmem:[%s2162_s29 + $0xb0] sm:$0xff]   ;;  %v1828_v23 = vld [vmem:[%s2162_s29 + $0xb8] sm:$0xff]   ;;  %v1830_v25 = vld [vmem:[%s2162_s29 + $0xc0] sm:$0xff]  }
  0x19   : > { %v1831_v26 = vld [vmem:[%s2162_s29 + $0x48] sm:$0xff]   ;;  %v1833_v28 = vld [vmem:[%s2162_s29 + $0x50] sm:$0xff]   ;;  %v1835_v30 = vld [vmem:[%s2162_s29 + $0x58] sm:$0xff]  }
  0x1a   : > { %v1832_v27 = vld [vmem:[%s2162_s29 + $0xc8] sm:$0xff]   ;;  %v1834_v29 = vld [vmem:[%s2162_s29 + $0xd0] sm:$0xff]   ;;  %v1836_v31 = vld [vmem:[%s2162_s29 + $0xd8] sm:$0xff]  }
  0x1b   : > { %1711 = vmatpush3.bf16.msra.mxu0 %v1809_v3  ;;  %1792 = vmatpush3.bf16.msra.mxu1 %v1809_v3  ;;  %v1837_v32 = vld [vmem:[%s2162_s29 + $0x60] sm:$0xff]   ;;  %v1839_v34 = vld [vmem:[%s2162_s29 + $0x68] sm:$0xff]   ;;  %v1841_v36 = vld [vmem:[%s2162_s29 + $0x70] sm:$0xff]  }
  0x1c   : > { %1712 = vmatprep.subr.bf16.mxu0 %v1810_v6  ;;  %1786 = vmatprep.subr.bf16.mxu1 %v1810_v6  ;;  %v1838_v33 = vld [vmem:[%s2162_s29 + $0xe0] sm:$0xff]   ;;  %v1840_v35 = vld [vmem:[%s2162_s29 + $0xe8] sm:$0xff]   ;;  %v1842_v37 = vld [vmem:[%s2162_s29 + $0xf0] sm:$0xff]  }
  0x1d   : > { %v1843_v38 = vld [vmem:[%s2162_s29 + $0x78] sm:$0xff]  }
  0x1e   : > { %v1844_v39 = vld [vmem:[%s2162_s29 + $0xf8] sm:$0xff]  }
  0x1f   : > { %1713 = vmatpush3.bf16.msra.mxu0 %v1810_v6  ;;  %1793 = vmatpush3.bf16.msra.mxu1 %v1810_v6 }
  0x20   : > { %1714 = vmatprep.subr.bf16.mxu0 %v1811_v7  ;;  %1787 = vmatprep.subr.bf16.mxu1 %v1811_v7 }
  0x23   : > { %1715 = vmatpush3.bf16.msra.mxu0 %v1811_v7  ;;  %1794 = vmatpush3.bf16.msra.mxu1 %v1811_v7 }
  0x24   : > { %1796 = vmatprep.subr.msk.bf16.mxu0 %vm578_vm1, %v1812_v8  ;;  %1797 = vmatprep.subr.msk.bf16.mxu1 %vm578_vm1, %v1812_v8 }
  0x27   : > { %1717 = vmatpush3.bf16.msra.mxu0 %v580_v9  ;;  %1795 = vmatpush3.bf16.msra.mxu1 %v580_v9 }
  0x2a   : > { %1719 = vmatmul.mubr.msk.bf16.vlgmr.msra.gmra.mrb[0].mxu0 %vm481_vm0, %v1815_v10  ;;  %1751 = vmatmul.mubr.msk.bf16.vlgmr.msra.gmra.mrb[0].mxu1 %vm481_vm0, %v1816_v11 }
  0x2b   : > { %1722 = vmatprep.mubr.msk.bf16.mxu0 %vm481_vm0, %v1817_v12  ;;  %1754 = vmatprep.mubr.msk.bf16.mxu1 %vm481_vm0, %v1818_v13 }
  0x32   : > { %1723 = vmatmul.mubr.msk.bf16.gmra.mrb[4].mxu0 %vm481_vm0, %v1819_v14  ;;  %1755 = vmatmul.mubr.msk.bf16.gmra.mrb[4].mxu1 %vm481_vm0, %v1820_v15 }
  0x33   : > { %1726 = vmatprep.mubr.msk.bf16.mxu0 %vm481_vm0, %v1821_v16  ;;  %1758 = vmatprep.mubr.msk.bf16.mxu1 %vm481_vm0, %v1822_v17 }
  0x3a   : > { %1727 = vmatmul.mubr.msk.bf16.gmra.mrb[8].mxu0 %vm481_vm0, %v1823_v18  ;;  %1759 = vmatmul.mubr.msk.bf16.gmra.mrb[8].mxu1 %vm481_vm0, %v1824_v19 }
  0x3b   : > { %1730 = vmatprep.mubr.msk.bf16.mxu0 %vm481_vm0, %v1825_v20  ;;  %1762 = vmatprep.mubr.msk.bf16.mxu1 %vm481_vm0, %v1826_v21 }
  0x42   : > { %1731 = vmatmul.mubr.msk.bf16.gmra.mrb[12].mxu0 %vm481_vm0, %v1827_v22  ;;  %1763 = vmatmul.mubr.msk.bf16.gmra.mrb[12].mxu1 %vm481_vm0, %v1828_v23 }
  0x43   : > { %1734 = vmatprep.mubr.msk.bf16.mxu0 %vm481_vm0, %v1829_v24  ;;  %1766 = vmatprep.mubr.msk.bf16.mxu1 %vm481_vm0, %v1830_v25 }
  0x4a   : > { %1735 = vmatmul.mubr.msk.bf16.gmra.mrb[16].mxu0 %vm481_vm0, %v1831_v26  ;;  %1767 = vmatmul.mubr.msk.bf16.gmra.mrb[16].mxu1 %vm481_vm0, %v1832_v27 }
  0x4b   : > { %1738 = vmatprep.mubr.msk.bf16.mxu0 %vm481_vm0, %v1833_v28  ;;  %1770 = vmatprep.mubr.msk.bf16.mxu1 %vm481_vm0, %v1834_v29 }
  0x52   : > { %1739 = vmatmul.mubr.msk.bf16.gmra.mrb[20].mxu0 %vm481_vm0, %v1835_v30  ;;  %1771 = vmatmul.mubr.msk.bf16.gmra.mrb[20].mxu1 %vm481_vm0, %v1836_v31 }
  0x53   : > { %1742 = vmatprep.mubr.msk.bf16.mxu0 %vm481_vm0, %v1837_v32  ;;  %1774 = vmatprep.mubr.msk.bf16.mxu1 %vm481_vm0, %v1838_v33 }
  0x5a   : > { %1743 = vmatmul.mubr.msk.bf16.gmra.mrb[24].mxu0 %vm481_vm0, %v1839_v34  ;;  %1775 = vmatmul.mubr.msk.bf16.gmra.mrb[24].mxu1 %vm481_vm0, %v1840_v35 }
  0x5b   : > { %1746 = vmatprep.mubr.msk.bf16.mxu0 %vm481_vm0, %v1841_v36  ;;  %1778 = vmatprep.mubr.msk.bf16.mxu1 %vm481_vm0, %v1842_v37 }
  0x62   : > { %1747 = vmatmul.mubr.msk.bf16.gmra.mrb[28].mxu0 %vm481_vm0, %v1843_v38  ;;  %1779 = vmatmul.mubr.msk.bf16.gmra.mrb[28].mxu1 %vm481_vm0, %v1844_v39 }
  0xfd   : > { %v1720_v41 = vpop.f32.mrb[0].mxu0  ;;  %v1752_v43 = vpop.f32.mrb[0].mxu1 }
  0xfe   : > { %v880_v44 = vmul.f32 %v1720_v41, %v2240_v40  ;;  %v912_v45 = vmul.f32 %v1752_v43, %v2240_v40  ;;  %v616_v46 = vpop.f32.mrb[1].mxu0  ;;  %v744_v47 = vpop.f32.mrb[1].mxu1 }
  0xff   : > { %v878_v48 = vmul.f32 %v2240_v40, %v616_v46  ;;  %v910_v49 = vmul.f32 %v2240_v40, %v744_v47  ;;  %v1721_v50 = vpop.f32.mrb[2].mxu0  ;;  %v1753_v51 = vpop.f32.mrb[2].mxu1 }
 0x100   : > { %v2252_v52 = vadd.f32 %v2245_v42, %v880_v44  ;;  %v2255_v53 = vadd.f32 %v2245_v42, %v912_v45  ;;  %v881_v54 = vmul.f32 %v1721_v50, %v2240_v40  ;;  %v913_v55 = vmul.f32 %v1753_v51, %v2240_v40  ;;  %v619_v56 = vpop.f32.mrb[3].mxu0  ;;  %v747_v57 = vpop.f32.mrb[3].mxu1 }
 0x101   : > { %v2260_v58 = vadd.f32 %v2245_v42, %v878_v48  ;;  %v2263_v59 = vadd.f32 %v2245_v42, %v910_v49  ;;  %v879_v60 = vmul.f32 %v2240_v40, %v619_v56  ;;  %v911_v61 = vmul.f32 %v2240_v40, %v747_v57 }
 0x102   : > { %v1015_v62 = vsub.f32 0.0, %v2252_v52  ;;  %v1047_v63 = vsub.f32 0.0, %v2255_v53  ;;  %v2270_v0 = vadd.f32 %v2245_v42, %v881_v54  ;;  %v2273_v1 = vadd.f32 %v2245_v42, %v913_v55 }
 0x103   : > { %v1013_v2 = vsub.f32 0.0, %v2260_v58  ;;  %v1045_v3 = vsub.f32 0.0, %v2263_v59  ;;  %v2278_v4 = vadd.f32 %v2245_v42, %v879_v60  ;;  %v2281_v5 = vadd.f32 %v2245_v42, %v911_v61 }
 0x104   : > { %v1081_v6 = vmul.f32 1.442695, %v1015_v62  ;;  %v1145_v7 = vmul.f32 1.442695, %v1047_v63  ;;  %v1016_v8 = vsub.f32 0.0, %v2270_v0  ;;  %v1048_v9 = vsub.f32 0.0, %v2273_v1 }
 0x105   : > { %v1077_v10 = vmul.f32 1.442695, %v1013_v2  ;;  %v1141_v11 = vmul.f32 1.442695, %v1045_v3  ;;  %v1014_v12 = vsub.f32 0.0, %v2278_v4  ;;  %v1046_v13 = vsub.f32 0.0, %v2281_v5 }
 0x106   : > { %1845 = vpow2.f32 %v1081_v6  ;;  %v1083_v14 = vmul.f32 1.442695, %v1016_v8  ;;  %v1147_v15 = vmul.f32 1.442695, %v1048_v9  ;;  %v1724_v16 = vpop.f32.mrb[4].mxu0  ;;  %v1756_v17 = vpop.f32.mrb[4].mxu1 }
 0x107   : > { %1847 = vpow2.f32 %v1145_v7  ;;  %v1079_v18 = vmul.f32 1.442695, %v1014_v12  ;;  %v1143_v19 = vmul.f32 1.442695, %v1046_v13  ;;  %v884_v20 = vmul.f32 %v1724_v16, %v2240_v40  ;;  %v632_v21 = vpop.f32.mrb[5].mxu0  ;;  %v760_v22 = vpop.f32.mrb[5].mxu1 }
 0x108   : > { %1849 = vpow2.f32 %v1077_v10  ;;  %v916_v23 = vmul.f32 %v1756_v17, %v2240_v40  ;;  %v882_v24 = vmul.f32 %v2240_v40, %v632_v21  ;;  %v914_v25 = vmul.f32 %v2240_v40, %v760_v22  ;;  %v1725_v26 = vpop.f32.mrb[6].mxu0  ;;  %v1757_v27 = vpop.f32.mrb[6].mxu1 }
 0x109   : > { %1851 = vpow2.f32 %v1141_v11  ;;  %v2292_v28 = vadd.f32 %v2245_v42, %v884_v20  ;;  %v885_v29 = vmul.f32 %v1725_v26, %v2240_v40  ;;  %v917_v30 = vmul.f32 %v1757_v27, %v2240_v40  ;;  %v635_v31 = vpop.f32.mrb[7].mxu0  ;;  %v763_v32 = vpop.f32.mrb[7].mxu1 }
 0x10a   : > { %1853 = vpow2.f32 %v1083_v14  ;;  %v2297_v33 = vadd.f32 %v2245_v42, %v916_v23  ;;  %v2300_v34 = vadd.f32 %v2245_v42, %v882_v24  ;;  %v2303_v35 = vadd.f32 %v2245_v42, %v914_v25 }
 0x10b   : > { %1855 = vpow2.f32 %v1147_v15  ;;  %v1019_v36 = vsub.f32 0.0, %v2292_v28  ;;  %v2307_v37 = vadd.f32 %v2245_v42, %v885_v29  ;;  %v2310_v38 = vadd.f32 %v2245_v42, %v917_v30 }
 0x10c   : > { %1857 = vpow2.f32 %v1079_v18  ;;  %v1051_v39 = vsub.f32 0.0, %v2297_v33  ;;  %v1017_v41 = vsub.f32 0.0, %v2300_v34  ;;  %v1049_v43 = vsub.f32 0.0, %v2303_v35 }
 0x10d   : > { %1859 = vpow2.f32 %v1143_v19  ;;  %v1089_v44 = vmul.f32 1.442695, %v1019_v36  ;;  %v1020_v45 = vsub.f32 0.0, %v2307_v37  ;;  %v1052_v46 = vsub.f32 0.0, %v2310_v38  ;;  %v1728_v47 = vpop.f32.mrb[8].mxu0  ;;  %v1760_v48 = vpop.f32.mrb[8].mxu1 }
 0x10e   : > { %v1153_v49 = vmul.f32 1.442695, %v1051_v39  ;;  %v1085_v50 = vmul.f32 1.442695, %v1017_v41  ;;  %v1149_v51 = vmul.f32 1.442695, %v1049_v43  ;;  %v883_v54 = vmul.f32 %v2240_v40, %v635_v31 }
 0x10f   : > { %1861 = vpow2.f32 %v1089_v44  ;;  %v2318_v55 = vmul.f32 1.442695, %v1020_v45  ;;  %v2320_v56 = vmul.f32 1.442695, %v1052_v46  ;;  %v915_v57 = vmul.f32 %v2240_v40, %v763_v32  ;;  %v648_v60 = vpop.f32.mrb[9].mxu0  ;;  %v776_v61 = vpop.f32.mrb[9].mxu1 }
 0x110   : > { %v1846_v62 = vpop.eup %1845  ;;  %1863 = vpow2.f32 %v1153_v49  ;;  %v2324_v63 = vadd.f32 %v2245_v42, %v883_v54  ;;  %v888_v2 = vmul.f32 %v1728_v47, %v2240_v40  ;;  %v920_v3 = vmul.f32 %v1760_v48, %v2240_v40  ;;  %v1729_v6 = vpop.f32.mrb[10].mxu0 }
 0x111   : > { %v1761_v7 = vpop.f32.mrb[10].mxu1  ;;  %v1848_v8 = vpop.eup %1847  ;;  %v1207_v9 = vadd.f32 1.0, %v1846_v62  ;;  %1865 = vpow2.f32 %v1085_v50  ;;  %v2329_v10 = vadd.f32 %v2245_v42, %v915_v57  ;;  %v886_v11 = vmul.f32 %v2240_v40, %v648_v60 }
 0x112   : > { %v651_v12 = vpop.f32.mrb[11].mxu0  ;;  %v2332_v13 = vpop.f32.mrb[11].mxu1  ;;  %v1239_v15 = vadd.f32 1.0, %v1848_v8  ;;  %1867 = vpow2.f32 %v1149_v51  ;;  %v1018_v16 = vsub.f32 0.0, %v2324_v63  ;;  %v2336_v17 = vadd.f32 %v2245_v42, %v888_v2 }
 0x113   : > { %v1850_v14 = vpop.eup %1849  ;;  %1869 = vrcp.f32 %v1207_v9  ;;  %v1050_v20 = vsub.f32 0.0, %v2329_v10  ;;  %v2340_v21 = vadd.f32 %v2245_v42, %v920_v3  ;;  %v2355_v43 = vadd.f32 %v2245_v42, %v886_v11 }
 0x114   : > { %v1852_v18 = vpop.eup %1851  ;;  %v1205_v19 = vadd.f32 1.0, %v1850_v14  ;;  %1871 = vrcp.f32 %v1239_v15  ;;  %v2342_v24 = vmul.f32 1.442695, %v1018_v16  ;;  %v1023_v25 = vsub.f32 0.0, %v2336_v17 }
 0x115   : > { %v1854_v22 = vpop.eup %1853  ;;  %v1237_v23 = vadd.f32 1.0, %v1852_v18  ;;  %v2345_v29 = vmul.f32 1.442695, %v1050_v20  ;;  %v1055_v30 = vsub.f32 0.0, %v2340_v21  ;;  %v2348_v31 = vpop.f32.mrb[12].mxu0  ;;  %v918_v49 = vmul.f32 %v2240_v40, %v776_v61 }
 0x116   : > { %v1856_v26 = vpop.eup %1855  ;;  %1873 = vrcp.f32 %v1205_v19  ;;  %v1208_v27 = vadd.f32 1.0, %v1854_v22  ;;  %v2350_v32 = vpop.f32.mrb[12].mxu1  ;;  %v2352_v41 = vmul.f32 1.442695, %v1023_v25  ;;  %v1021_v57 = vsub.f32 0.0, %v2355_v43 }
 0x117   : > { %v1858_v36 = vpop.eup %1857  ;;  %1875 = vrcp.f32 %v1237_v23  ;;  %v1240_v39 = vadd.f32 1.0, %v1856_v26  ;;  %v2357_v44 = vpop.f32.mrb[13].mxu0  ;;  %v2361_v48 = vmul.f32 1.442695, %v1055_v30  ;;  %v889_v60 = vmul.f32 %v1729_v6, %v2240_v40 }
 0x118   : > { %v2359_v45 = vpop.f32.mrb[13].mxu1  ;;  %v1860_v46 = vpop.eup %1859  ;;  %1877 = vrcp.f32 %v1208_v27  ;;  %v1206_v47 = vadd.f32 1.0, %v1858_v36  ;;  %v2375_v8 = vadd.f32 %v2245_v42, %v918_v49  ;;  %v921_v61 = vmul.f32 %v1761_v7, %v2240_v40 }
 0x119   : > { %v2364_v50 = vpop.f32.mrb[14].mxu0  ;;  %v2366_v51 = vpop.f32.mrb[14].mxu1  ;;  %1879 = vrcp.f32 %v1240_v39  ;;  %v1238_v54 = vadd.f32 1.0, %v1860_v46  ;;  %v887_v9 = vmul.f32 %v2240_v40, %v651_v12  ;;  %v2380_v15 = vmul.f32 1.442695, %v1021_v57 }
 0x11a   : > { %v2370_v62 = vpop.f32.mrb[15].mxu0  ;;  %v2372_v2 = vpop.f32.mrb[15].mxu1  ;;  %1881 = vrcp.f32 %v1206_v47  ;;  %v2383_v6 = vadd.f32 %v2245_v42, %v889_v60  ;;  %v1053_v19 = vsub.f32 0.0, %v2375_v8  ;;  %v2388_v20 = vadd.f32 %v2245_v42, %v921_v61 }
 0x11b   : > { %v1862_v3 = vpop.eup %1861  ;;  %1883 = vrcp.f32 %v1238_v54  ;;  %v2392_v23 = vadd.f32 %v2245_v42, %v887_v9  ;;  %v919_v9 = vmul.f32 %v2240_v40, %v2332_v13 }
 0x11c   : > { %v1864_v11 = vpop.eup %1863  ;;  %v1211_v14 = vadd.f32 1.0, %v1862_v3  ;;  %1885 = vpow2.f32 %v2318_v55  ;;  %v1024_v22 = vsub.f32 0.0, %v2383_v6  ;;  %v1157_v26 = vmul.f32 1.442695, %v1053_v19 }
 0x11d   : > { %v1866_v16 = vpop.eup %1865  ;;  %v1243_v18 = vadd.f32 1.0, %v1864_v11  ;;  %v1056_v27 = vsub.f32 0.0, %v2388_v20  ;;  %v2400_v30 = vpop.f32.mrb[16].mxu0  ;;  %v1022_v49 = vsub.f32 0.0, %v2392_v23 }
 0x11e   : > { %v1868_v7 = vpop.eup %1867  ;;  %1887 = vrcp.f32 %v1211_v14  ;;  %v1209_v12 = vadd.f32 1.0, %v1866_v16  ;;  %v2402_v36 = vpop.f32.mrb[16].mxu1  ;;  %v1099_v47 = vmul.f32 1.442695, %v1024_v22 }
 0x11f   : > { %v1870_v25 = vpop.eup %1869  ;;  %1889 = vrcp.f32 %v1243_v18  ;;  %v1241_v55 = vadd.f32 1.0, %v1868_v7  ;;  %v2406_v54 = vpop.f32.mrb[17].mxu0  ;;  %v2411_v61 = vmul.f32 1.442695, %v1056_v27  ;;  %v2422_v18 = vmul.f32 1.442695, %v1022_v49 }
 0x120   : > { %v1872_v39 = vpop.eup %1871  ;;  %v1399_v46 = vmul.f32 %v1870_v25, %v2252_v52  ;;  %1891 = vrcp.f32 %v1209_v12  ;;  %v2408_v57 = vpop.f32.mrb[17].mxu1 }
 0x121   : > { %v1874_v60 = vpop.eup %1873  ;;  %v1431_v3 = vmul.f32 %v1872_v39, %v2255_v53  ;;  %1893 = vrcp.f32 %v1241_v55  ;;  %v2415_v11 = vpop.f32.mrb[18].mxu0  ;;  %v892_v53 = vmul.f32 %v2348_v31, %v2240_v40 }
 0x122   : > { %v2417_v52 = vpop.f32.mrb[18].mxu1  ;;  %v1876_v14 = vpop.eup %1875  ;;  %1463 = vst [vmem:[%s2397_s18 + $0x10] sm:$0xff] %v1399_v46  ;;  %v1397_v16 = vmul.f32 %v1874_v60, %v2260_v58  ;;  %1895 = vpow2.f32 %v2320_v56  ;;  %v2434_v58 = vadd.f32 %v2245_v42, %v919_v9  ;;  %v924_v56 = vmul.f32 %v2350_v32, %v2240_v40 }
 0x123   : > { %v2426_v19 = vpop.f32.mrb[19].mxu0  ;;  %v2428_v13 = vpop.f32.mrb[19].mxu1  ;;  %1495 = vst [vmem:[%s2397_s18 + $0x110] sm:$0xff] %v1431_v3  ;;  %v1429_v12 = vmul.f32 %v1876_v14, %v2263_v59  ;;  %1897 = vpow2.f32 %v2342_v24  ;;  %v2442_v25 = vadd.f32 %v2245_v42, %v892_v53  ;;  %v890_v59 = vmul.f32 %v2240_v40, %v2357_v44 }
 0x124   : > { %v1878_v7 = vpop.eup %1877  ;;  %1461 = vst [vmem:[%s2397_s18] sm:$0xff] %v1397_v16  ;;  %1899 = vpow2.f32 %v2345_v29  ;;  %v1054_v32 = vsub.f32 0.0, %v2434_v58  ;;  %v2451_v27 = vadd.f32 %v2245_v42, %v924_v56 }
 0x125   : > { %v1880_v22 = vpop.eup %1879  ;;  %v1400_v31 = vmul.f32 %v1878_v7, %v2270_v0  ;;  %1493 = vst [vmem:[%s2397_s18 + $0x100] sm:$0xff] %v1429_v12  ;;  %1901 = vpow2.f32 %v2352_v41  ;;  %v1027_v44 = vsub.f32 0.0, %v2442_v25  ;;  %v2458_v39 = vadd.f32 %v2245_v42, %v890_v59  ;;  %v2464_v60 = vpop.f32.mrb[20].mxu0 }
 0x126   : > { %v1882_v24 = vpop.eup %1881  ;;  %v1432_v55 = vmul.f32 %v1880_v22, %v2273_v1  ;;  %1903 = vpow2.f32 %v2361_v48  ;;  %v1159_v46 = vmul.f32 1.442695, %v1054_v32  ;;  %v1059_v49 = vsub.f32 0.0, %v2451_v27  ;;  %v2470_v16 = vpop.f32.mrb[21].mxu0 }
 0x127   : > { %v1884_v0 = vpop.eup %1883  ;;  %1464 = vst [vmem:[%s2397_s18 + $0x18] sm:$0xff] %v1400_v31  ;;  %v1398_v29 = vmul.f32 %v1882_v24, %v2278_v4  ;;  %1905 = vpow2.f32 %v2380_v15  ;;  %v2466_v4 = vpop.f32.mrb[20].mxu1  ;;  %v1105_v9 = vmul.f32 1.442695, %v1027_v44  ;;  %v1025_v14 = vsub.f32 0.0, %v2458_v39 }
 0x128   : > { %v1886_v1 = vpop.eup %1885  ;;  %1496 = vst [vmem:[%s2397_s18 + $0x118] sm:$0xff] %v1432_v55  ;;  %v1430_v41 = vmul.f32 %v1884_v0, %v2281_v5  ;;  %1907 = vpow2.f32 %v1157_v26  ;;  %v2472_v53 = vpop.f32.mrb[21].mxu1  ;;  %v2476_v7 = vmul.f32 1.442695, %v1059_v49  ;;  %v922_v12 = vmul.f32 %v2240_v40, %v2359_v45 }
 0x129   : > { %v1888_v48 = vpop.eup %1887  ;;  %1462 = vst [vmem:[%s2397_s18 + $0x8] sm:$0xff] %v1398_v29  ;;  %v1212_v3 = vadd.f32 1.0, %v1886_v1  ;;  %1909 = vpow2.f32 %v1099_v47  ;;  %v2480_v56 = vpop.f32.mrb[22].mxu0  ;;  %v2485_v59 = vmul.f32 1.442695, %v1025_v14  ;;  %v925_v32 = vmul.f32 %v2366_v51, %v2240_v40 }
 0x12a   : > { %v1890_v5 = vpop.eup %1889  ;;  %1494 = vst [vmem:[%s2397_s18 + $0x108] sm:$0xff] %v1430_v41  ;;  %v1403_v15 = vmul.f32 %v1888_v48, %v2292_v28  ;;  %v2482_v26 = vpop.f32.mrb[22].mxu1  ;;  %v893_v28 = vmul.f32 %v2364_v50, %v2240_v40 }
 0x12b   : > { %v1892_v22 = vpop.eup %1891  ;;  %v1435_v31 = vmul.f32 %v1890_v5, %v2297_v33  ;;  %1911 = vrcp.f32 %v1212_v3  ;;  %v2489_v47 = vpop.f32.mrb[23].mxu0  ;;  %v2497_v33 = vadd.f32 %v2245_v42, %v922_v12  ;;  %v2512_v51 = vadd.f32 %v2245_v42, %v925_v32 }
 0x12c   : > { %v2491_v24 = vpop.f32.mrb[23].mxu1  ;;  %v1894_v45 = vpop.eup %1893  ;;  %1467 = vst [vmem:[%s2397_s18 + $0x30] sm:$0xff] %v1403_v15  ;;  %v1401_v55 = vmul.f32 %v1892_v22, %v2300_v34  ;;  %1913 = vpow2.f32 %v2411_v61  ;;  %v2505_v29 = vadd.f32 %v2245_v42, %v893_v28  ;;  %v891_v34 = vmul.f32 %v2240_v40, %v2370_v62 }
 0x12d   : > { %v1896_v0 = vpop.eup %1895  ;;  %1499 = vst [vmem:[%s2397_s18 + $0x130] sm:$0xff] %v1435_v31  ;;  %v1433_v50 = vmul.f32 %v1894_v45, %v2303_v35  ;;  %1915 = vpow2.f32 %v2422_v18  ;;  %v1057_v1 = vsub.f32 0.0, %v2497_v33  ;;  %v2522_v14 = vpop.f32.mrb[24].mxu0 }
 0x12e   : > { %v1898_v61 = vpop.eup %1897  ;;  %1465 = vst [vmem:[%s2397_s18 + $0x20] sm:$0xff] %v1401_v55  ;;  %v1244_v44 = vadd.f32 1.0, %v1896_v0  ;;  %1917 = vpow2.f32 %v1159_v46  ;;  %v1028_v18 = vsub.f32 0.0, %v2505_v29  ;;  %v2517_v49 = vadd.f32 %v2245_v42, %v891_v34  ;;  %v2524_v5 = vpop.f32.mrb[24].mxu1 }
 0x12f   : > { %v1900_v41 = vpop.eup %1899  ;;  %1497 = vst [vmem:[%s2397_s18 + $0x120] sm:$0xff] %v1433_v50  ;;  %v1210_v35 = vadd.f32 1.0, %v1898_v61  ;;  %1919 = vpow2.f32 %v1105_v9  ;;  %v2519_v3 = vmul.f32 1.442695, %v1057_v1  ;;  %v1060_v46 = vsub.f32 0.0, %v2512_v51  ;;  %v2529_v31 = vpop.f32.mrb[25].mxu0 }
 0x130   : > { %v1902_v48 = vpop.eup %1901  ;;  %1921 = vrcp.f32 %v1244_v44  ;;  %v1242_v62 = vadd.f32 1.0, %v1900_v41  ;;  %v2526_v9 = vmul.f32 1.442695, %v1028_v18  ;;  %v1026_v22 = vsub.f32 0.0, %v2517_v49  ;;  %v2531_v28 = vpop.f32.mrb[25].mxu1 }
 0x131   : > { %v1904_v15 = vpop.eup %1903  ;;  %1923 = vrcp.f32 %v1210_v35  ;;  %v1215_v12 = vadd.f32 1.0, %v1902_v48  ;;  %v2533_v32 = vmul.f32 1.442695, %v1060_v46  ;;  %v923_v0 = vmul.f32 %v2240_v40, %v2372_v2  ;;  %v2537_v50 = vpop.f32.mrb[26].mxu0 }
 0x132   : > { %v1906_v45 = vpop.eup %1905  ;;  %1925 = vrcp.f32 %v1242_v62  ;;  %v1247_v55 = vadd.f32 1.0, %v1904_v15  ;;  %2890 = vst [vmem:[#allocation2_spill] sm:$0xff] %v2537_v50  ;;  %v2539_v34 = vpop.f32.mrb[26].mxu1  ;;  %v2541_v1 = vmul.f32 1.442695, %v1026_v22  ;;  %v896_v41 = vmul.f32 %v2400_v30, %v2240_v40 }
 0x133   : > { %2891 = vst [vmem:[#allocation3_spill] sm:$0xff] %v2539_v34  ;;  %v1908_v61 = vpop.eup %1907  ;;  %1927 = vrcp.f32 %v1215_v12  ;;  %v1213_v44 = vadd.f32 1.0, %v1906_v45  ;;  %v2545_v35 = vpop.f32.mrb[27].mxu0  ;;  %v2550_v2 = vadd.f32 %v2245_v42, %v923_v0  ;;  %v928_v46 = vmul.f32 %v2402_v36, %v2240_v40 }
 0x134   : > { %2892 = vst [vmem:[#allocation4_spill] sm:$0xff] %v2545_v35  ;;  %v2547_v18 = vpop.f32.mrb[27].mxu1  ;;  %v1910_v48 = vpop.eup %1909  ;;  %1929 = vrcp.f32 %v1247_v55  ;;  %v1245_v62 = vadd.f32 1.0, %v1908_v61  ;;  %v2555_v22 = vadd.f32 %v2245_v42, %v896_v41  ;;  %v894_v30 = vmul.f32 %v2240_v40, %v2406_v54 }
 0x135   : > { %2893 = vst [vmem:[#allocation5_spill] sm:$0xff] %v2547_v18  ;;  %v1912_v15 = vpop.eup %1911  ;;  %1931 = vrcp.f32 %v1213_v44  ;;  %v1216_v12 = vadd.f32 1.0, %v1910_v48  ;;  %v1058_v0 = vsub.f32 0.0, %v2550_v2  ;;  %v2562_v61 = vadd.f32 %v2245_v42, %v928_v46  ;;  %v2573_v46 = vpop.f32.mrb[28].mxu1 }
 0x136   : > { %v1914_v45 = vpop.eup %1913  ;;  %v1404_v55 = vmul.f32 %v1912_v15, %v2307_v37  ;;  %1933 = vrcp.f32 %v1245_v62  ;;  %v1031_v44 = vsub.f32 0.0, %v2555_v22  ;;  %v2566_v41 = vadd.f32 %v2245_v42, %v894_v30  ;;  %v2571_v15 = vpop.f32.mrb[28].mxu0  ;;  %2894 = vst [vmem:[#allocation6_spill] sm:$0xff] %v2573_v46 }
 0x137   : > { %v1916_v36 = vpop.eup %1915  ;;  %1935 = vrcp.f32 %v1216_v12  ;;  %v1248_v18 = vadd.f32 1.0, %v1914_v45  ;;  %v1167_v37 = vmul.f32 1.442695, %v1058_v0  ;;  %v1063_v62 = vsub.f32 0.0, %v2562_v61  ;;  %v2575_v34 = vpop.f32.mrb[29].mxu0 }
 0x138   : > { %v1918_v48 = vpop.eup %1917  ;;  %1468 = vst [vmem:[%s2397_s18 + $0x38] sm:$0xff] %v1404_v55  ;;  %v1214_v54 = vadd.f32 1.0, %v1916_v36  ;;  %1937 = vpow2.f32 %v2476_v7  ;;  %v1113_v45 = vmul.f32 1.442695, %v1031_v44  ;;  %2895 = vst [vmem:[#allocation7_spill] sm:$0xff] %v2575_v34  ;;  %v2577_v30 = vpop.f32.mrb[29].mxu1  ;;  %v926_v0 = vmul.f32 %v2240_v40, %v2408_v57 }
 0x139   : > { %v1920_v35 = vpop.eup %1919  ;;  %1939 = vrcp.f32 %v1248_v18  ;;  %v1246_v12 = vadd.f32 1.0, %v1918_v48  ;;  %2896 = vst [vmem:[#allocation8_spill] sm:$0xff] %v2577_v30  ;;  %v1029_v7 = vsub.f32 0.0, %v2566_v41  ;;  %v2582_v36 = vpop.f32.mrb[30].mxu0  ;;  %v1177_v48 = vmul.f32 1.442695, %v1063_v62 }
 0x13a   : > { %v1922_v50 = vpop.eup %1921  ;;  %1941 = vrcp.f32 %v1214_v54  ;;  %v1219_v55 = vadd.f32 1.0, %v1920_v35  ;;  %v2584_v46 = vpop.f32.mrb[30].mxu1  ;;  %v897_v54 = vmul.f32 %v2415_v11, %v2240_v40 }
 0x13b   : > { %2897 = vst [vmem:[#allocation9_spill] sm:$0xff] %v2584_v46  ;;  %v1924_v18 = vpop.eup %1923  ;;  %v1436_v44 = vmul.f32 %v1922_v50, %v2310_v38  ;;  %1943 = vrcp.f32 %v1246_v12  ;;  %v2589_v35 = vpop.f32.mrb[31].mxu0  ;;  %v2595_v46 = vadd.f32 %v2245_v42, %v926_v0  ;;  %v929_v38 = vmul.f32 %v2417_v52, %v2240_v40 }
 0x13c   : > { %v2591_v30 = vpop.f32.mrb[31].mxu1  ;;  %v1926_v34 = vpop.eup %1925  ;;  %v1402_v57 = vmul.f32 %v1924_v18, %v2324_v63  ;;  %1945 = vrcp.f32 %v1219_v55  ;;  %v2603_v11 = vadd.f32 %v2245_v42, %v897_v54  ;;  %v895_v63 = vmul.f32 %v2240_v40, %v2426_v19 }
 0x13d   : > { %v1928_v50 = vpop.eup %1927  ;;  %1500 = vst [vmem:[%s2397_s18 + $0x138] sm:$0xff] %v1436_v44  ;;  %v1434_v62 = vmul.f32 %v1926_v34, %v2329_v10  ;;  %1947 = vpow2.f32 %v2485_v59  ;;  %v1061_v52 = vsub.f32 0.0, %v2595_v46  ;;  %v2612_v10 = vadd.f32 %v2245_v42, %v929_v38 }
 0x13e   : > { %v1930_v12 = vpop.eup %1929  ;;  %1466 = vst [vmem:[%s2397_s18 + $0x28] sm:$0xff] %v1402_v57  ;;  %v1407_v55 = vmul.f32 %v1928_v50, %v2336_v17  ;;  %1949 = vpow2.f32 %v2519_v3  ;;  %v1032_v19 = vsub.f32 0.0, %v2603_v11  ;;  %v2619_v0 = vadd.f32 %v2245_v42, %v895_v63 }
 0x13f   : > { %v1932_v59 = vpop.eup %1931  ;;  %1498 = vst [vmem:[%s2397_s18 + $0x128] sm:$0xff] %v1434_v62  ;;  %v1439_v34 = vmul.f32 %v1930_v12, %v2340_v21  ;;  %1951 = vpow2.f32 %v2526_v9  ;;  %v1109_v18 = vmul.f32 1.442695, %v1029_v7  ;;  %v1064_v44 = vsub.f32 0.0, %v2612_v10 }
 0x140   : > { %v1934_v17 = vpop.eup %1933  ;;  %1471 = vst [vmem:[%s2397_s18 + $0x50] sm:$0xff] %v1407_v55  ;;  %v1405_v3 = vmul.f32 %v1932_v59, %v2355_v43  ;;  %1953 = vpow2.f32 %v2533_v32  ;;  %v1173_v9 = vmul.f32 1.442695, %v1061_v52  ;;  %v1115_v57 = vmul.f32 1.442695, %v1032_v19 }
 0x141   : > { %v1936_v54 = vpop.eup %1935  ;;  %1503 = vst [vmem:[%s2397_s18 + $0x150] sm:$0xff] %v1439_v34  ;;  %v1437_v21 = vmul.f32 %v1934_v17, %v2375_v8  ;;  %1955 = vpow2.f32 %v2541_v1  ;;  %v1030_v43 = vsub.f32 0.0, %v2619_v0  ;;  %v927_v32 = vmul.f32 %v2240_v40, %v2428_v13 }
 0x142   : > { %v1938_v38 = vpop.eup %1937  ;;  %1469 = vst [vmem:[%s2397_s18 + $0x40] sm:$0xff] %v1405_v3  ;;  %v1408_v50 = vmul.f32 %v1936_v54, %v2383_v6  ;;  %1957 = vpow2.f32 %v1167_v37  ;;  %v1179_v8 = vmul.f32 1.442695, %v1064_v44  ;;  %v900_v1 = vmul.f32 %v2464_v60, %v2240_v40 }
 0x143   : > { %v1940_v7 = vpop.eup %1939  ;;  %1501 = vst [vmem:[%s2397_s18 + $0x140] sm:$0xff] %v1437_v21  ;;  %v1251_v62 = vadd.f32 1.0, %v1938_v38  ;;  %1959 = vpow2.f32 %v1113_v45  ;;  %v2639_v6 = vadd.f32 %v2245_v42, %v927_v32  ;;  %v932_v13 = vmul.f32 %v2466_v4, %v2240_v40 }
 0x144   : > { %v1942_v63 = vpop.eup %1941  ;;  %1472 = vst [vmem:[%s2397_s18 + $0x58] sm:$0xff] %v1408_v50  ;;  %v1440_v12 = vmul.f32 %v1940_v7, %v2388_v20  ;;  %1961 = vpow2.f32 %v1177_v48  ;;  %v2645_v45 = vadd.f32 %v2245_v42, %v900_v1  ;;  %v898_v60 = vmul.f32 %v2240_v40, %v2470_v16 }
 0x145   : > { %v1944_v37 = vpop.eup %1943  ;;  %v1406_v55 = vmul.f32 %v1942_v63, %v2392_v23  ;;  %1963 = vrcp.f32 %v1251_v62  ;;  %v1062_v52 = vsub.f32 0.0, %v2639_v6  ;;  %v2653_v4 = vadd.f32 %v2245_v42, %v932_v13 }
 0x146   : > { %v1946_v20 = vpop.eup %1945  ;;  %1504 = vst [vmem:[%s2397_s18 + $0x158] sm:$0xff] %v1440_v12  ;;  %v1438_v48 = vmul.f32 %v1944_v37, %v2434_v58  ;;  %1965 = vpow2.f32 %v1109_v18  ;;  %v2658_v34 = vadd.f32 %v2245_v42, %v898_v60  ;;  %v1111_v17 = vmul.f32 1.442695, %v1030_v43 }
 0x147   : > { %v1948_v23 = vpop.eup %1947  ;;  %1470 = vst [vmem:[%s2397_s18 + $0x48] sm:$0xff] %v1406_v55  ;;  %v1411_v59 = vmul.f32 %v1946_v20, %v2442_v25  ;;  %1967 = vpow2.f32 %v1173_v9  ;;  %v2662_v18 = vmul.f32 1.442695, %v1062_v52  ;;  %v1035_v44 = vsub.f32 0.0, %v2645_v45 }
 0x148   : > { %v1950_v16 = vpop.eup %1949  ;;  %1502 = vst [vmem:[%s2397_s18 + $0x148] sm:$0xff] %v1438_v48  ;;  %v1217_v19 = vadd.f32 1.0, %v1948_v23  ;;  %1969 = vpow2.f32 %v1115_v57  ;;  %v1067_v21 = vsub.f32 0.0, %v2653_v4  ;;  %v930_v9 = vmul.f32 %v2240_v40, %v2472_v53 }
 0x149   : > { %v1952_v58 = vpop.eup %1951  ;;  %1475 = vst [vmem:[%s2397_s18 + $0x70] sm:$0xff] %v1411_v59  ;;  %v1249_v3 = vadd.f32 1.0, %v1950_v16  ;;  %1971 = vpow2.f32 %v1179_v8  ;;  %v1033_v50 = vsub.f32 0.0, %v2658_v34  ;;  %v901_v43 = vmul.f32 %v2480_v56, %v2240_v40 }
 0x14a   : > { %v1954_v54 = vpop.eup %1953  ;;  %1973 = vrcp.f32 %v1217_v19  ;;  %v1220_v25 = vadd.f32 1.0, %v1952_v58  ;;  %v2672_v62 = vadd.f32 %v2245_v42, %v930_v9  ;;  %v933_v8 = vmul.f32 %v2482_v26, %v2240_v40 }
 0x14b   : > { %v1956_v38 = vpop.eup %1955  ;;  %1975 = vrcp.f32 %v1249_v3  ;;  %v1252_v57 = vadd.f32 1.0, %v1954_v54  ;;  %v2677_v63 = vadd.f32 %v2245_v42, %v901_v43  ;;  %v899_v12 = vmul.f32 %v2240_v40, %v2489_v47 }
 0x14c   : > { %v1958_v32 = vpop.eup %1957  ;;  %1977 = vrcp.f32 %v1220_v25  ;;  %v1218_v7 = vadd.f32 1.0, %v1956_v38  ;;  %v1065_v37 = vsub.f32 0.0, %v2672_v62  ;;  %v2683_v55 = vadd.f32 %v2245_v42, %v933_v8 }
 0x14d   : > { %v1960_v1 = vpop.eup %1959  ;;  %1979 = vrcp.f32 %v1252_v57  ;;  %v1250_v53 = vadd.f32 1.0, %v1958_v32  ;;  %v1121_v20 = vmul.f32 1.442695, %v1035_v44  ;;  %v2686_v48 = vadd.f32 %v2245_v42, %v899_v12 }
 0x14e   : > { %v1962_v13 = vpop.eup %1961  ;;  %1981 = vrcp.f32 %v1218_v7  ;;  %v1223_v56 = vadd.f32 1.0, %v1960_v1  ;;  %v1185_v47 = vmul.f32 1.442695, %v1067_v21  ;;  %v1117_v59 = vmul.f32 1.442695, %v1033_v50 }
 0x14f   : > { %v1964_v60 = vpop.eup %1963  ;;  %1983 = vrcp.f32 %v1250_v53  ;;  %v1255_v26 = vadd.f32 1.0, %v1962_v13  ;;  %v1181_v58 = vmul.f32 1.442695, %v1065_v37  ;;  %v1036_v3 = vsub.f32 0.0, %v2677_v63 }
 0x150   : > { %v1966_v52 = vpop.eup %1965  ;;  %v1443_v23 = vmul.f32 %v1964_v60, %v2451_v27  ;;  %1985 = vrcp.f32 %v1223_v56  ;;  %v1068_v44 = vsub.f32 0.0, %v2683_v55  ;;  %v931_v9 = vmul.f32 %v2240_v40, %v2491_v24 }
 0x151   : > { %v1968_v16 = vpop.eup %1967  ;;  %1987 = vrcp.f32 %v1255_v26  ;;  %v1221_v19 = vadd.f32 1.0, %v1966_v52  ;;  %v1034_v21 = vsub.f32 0.0, %v2686_v48  ;;  %v904_v57 = vmul.f32 %v2522_v14, %v2240_v40 }
 0x152   : > { %v1970_v54 = vpop.eup %1969  ;;  %1507 = vst [vmem:[%s2397_s18 + $0x170] sm:$0xff] %v1443_v23  ;;  %v1253_v25 = vadd.f32 1.0, %v1968_v16  ;;  %1989 = vpow2.f32 %v1111_v17  ;;  %v2698_v32 = vadd.f32 %v2245_v42, %v931_v9  ;;  %v936_v17 = vmul.f32 %v2524_v5, %v2240_v40 }
 0x153   : > { %v1972_v38 = vpop.eup %1971  ;;  %1991 = vrcp.f32 %v1221_v19  ;;  %v1224_v27 = vadd.f32 1.0, %v1970_v54  ;;  %v2704_v8 = vadd.f32 %v2245_v42, %v904_v57  ;;  %v902_v14 = vmul.f32 %v2240_v40, %v2529_v31 }
 0x154   : > { %v1974_v50 = vpop.eup %1973  ;;  %1993 = vrcp.f32 %v1253_v25  ;;  %v1256_v43 = vadd.f32 1.0, %v1972_v38  ;;  %v1066_v12 = vsub.f32 0.0, %v2698_v32  ;;  %v2711_v5 = vadd.f32 %v2245_v42, %v936_v17 }
 0x155   : > { %v1976_v7 = vpop.eup %1975  ;;  %v1409_v24 = vmul.f32 %v1974_v50, %v2458_v39  ;;  %1995 = vrcp.f32 %v1224_v27  ;;  %v1123_v56 = vmul.f32 1.442695, %v1036_v3  ;;  %v2717_v40 = vadd.f32 %v2245_v42, %v902_v14  ;;  %v2900_v27 = vld [vmem:[#allocation4_spill] sm:$0xff] }
 0x156   : > { %v1978_v1 = vpop.eup %1977  ;;  %v1441_v53 = vmul.f32 %v1976_v7, %v2497_v33  ;;  %1997 = vrcp.f32 %v1256_v43  ;;  %v1187_v37 = vmul.f32 1.442695, %v1068_v44  ;;  %v1039_v60 = vsub.f32 0.0, %v2704_v8  ;;  %v2899_v44 = vld [vmem:[#allocation3_spill] sm:$0xff] }
 0x157   : > { %v1980_v13 = vpop.eup %1979  ;;  %1473 = vst [vmem:[%s2397_s18 + $0x60] sm:$0xff] %v1409_v24  ;;  %v1412_v39 = vmul.f32 %v1978_v1, %v2505_v29  ;;  %1999 = vpow2.f32 %v2662_v18  ;;  %v1119_v18 = vmul.f32 1.442695, %v1034_v21  ;;  %v1183_v52 = vmul.f32 1.442695, %v1066_v12 }
 0x158   : > { %v1982_v31 = vpop.eup %1981  ;;  %1505 = vst [vmem:[%s2397_s18 + $0x160] sm:$0xff] %v1441_v53  ;;  %v1444_v33 = vmul.f32 %v1980_v13, %v2512_v51  ;;  %2001 = vpow2.f32 %v1121_v20  ;;  %v1071_v51 = vsub.f32 0.0, %v2711_v5  ;;  %v2730_v20 = vld [vmem:[%s2887_s2] ss:$0 sm:$0xff]  ;;  %v1037_v19 = vsub.f32 0.0, %v2717_v40 }
 0x159   : > { %v1984_v26 = vpop.eup %1983  ;;  %1476 = vst [vmem:[%s2397_s18 + $0x78] sm:$0xff] %v1412_v39  ;;  %v1410_v29 = vmul.f32 %v1982_v31, %v2517_v49  ;;  %2003 = vpow2.f32 %v1185_v47  ;;  %v934_v49 = vmul.f32 %v2730_v20, %v2531_v28  ;;  %v1129_v25 = vmul.f32 1.442695, %v1039_v60 }
 0x15a   : > { %v1986_v23 = vpop.eup %1985  ;;  %1508 = vst [vmem:[%s2397_s18 + $0x178] sm:$0xff] %v1444_v33  ;;  %v1442_v42 = vmul.f32 %v1984_v26, %v2550_v2  ;;  %2005 = vpow2.f32 %v1117_v59  ;;  %v2898_v2 = vld [vmem:[#allocation2_spill] sm:$0xff]  ;;  %v937_v28 = vmul.f32 %v2730_v20, %v2899_v44  ;;  %v1193_v50 = vmul.f32 1.442695, %v1071_v51  ;;  %v2901_v33 = vld [vmem:[#allocation5_spill] sm:$0xff] }
 0x15b   : > { %v1988_v47 = vpop.eup %1987  ;;  %1474 = vst [vmem:[%s2397_s18 + $0x68] sm:$0xff] %v1410_v29  ;;  %v1415_v16 = vmul.f32 %v1986_v23, %v2555_v22  ;;  %2007 = vpow2.f32 %v1181_v58  ;;  %v905_v59 = vmul.f32 %v2730_v20, %v2898_v2  ;;  %v2747_v22 = vld [vmem:[%s2888_s3] ss:$0 sm:$0xff]  ;;  %v1125_v24 = vmul.f32 1.442695, %v1037_v19 }
 0x15c   : > { %v1990_v3 = vpop.eup %1989  ;;  %1506 = vst [vmem:[%s2397_s18 + $0x168] sm:$0xff] %v1442_v42  ;;  %v1447_v54 = vmul.f32 %v1988_v47, %v2562_v61  ;;  %2009 = vpow2.f32 %v1123_v56  ;;  %v2750_v58 = vadd.f32 %v2747_v22, %v934_v49  ;;  %v903_v61 = vmul.f32 %v2730_v20, %v2900_v27  ;;  %v2902_v23 = vld [vmem:[#allocation6_spill] sm:$0xff] }
 0x15d   : > { %v1992_v9 = vpop.eup %1991  ;;  %1479 = vst [vmem:[%s2397_s18 + $0x90] sm:$0xff] %v1415_v16  ;;  %v1222_v38 = vadd.f32 1.0, %v1990_v3  ;;  %2011 = vpow2.f32 %v1187_v37  ;;  %v2757_v43 = vadd.f32 %v2747_v22, %v905_v59  ;;  %v2761_v14 = vadd.f32 %v2747_v22, %v937_v28  ;;  %v2903_v16 = vld [vmem:[#allocation7_spill] sm:$0xff] }
 0x15e   : > { %v1994_v21 = vpop.eup %1993  ;;  %1511 = vst [vmem:[%s2397_s18 + $0x190] sm:$0xff] %v1447_v54  ;;  %v1413_v57 = vmul.f32 %v1992_v9, %v2566_v41  ;;  %2013 = vpow2.f32 %v1119_v18  ;;  %v2766_v41 = vadd.f32 %v2747_v22, %v903_v61  ;;  %v940_v42 = vmul.f32 %v2730_v20, %v2902_v23 }
 0x15f   : > { %v1996_v17 = vpop.eup %1995  ;;  %v1445_v7 = vmul.f32 %v1994_v21, %v2595_v46  ;;  %2015 = vrcp.f32 %v1222_v38  ;;  %v1069_v46 = vsub.f32 0.0, %v2750_v58  ;;  %v1040_v31 = vsub.f32 0.0, %v2757_v43 }
 0x160   : > { %v1998_v1 = vpop.eup %1997  ;;  %1477 = vst [vmem:[%s2397_s18 + $0x80] sm:$0xff] %v1413_v57  ;;  %v1416_v53 = vmul.f32 %v1996_v17, %v2603_v11  ;;  %2017 = vpow2.f32 %v1183_v52  ;;  %v935_v11 = vmul.f32 %v2730_v20, %v2901_v33  ;;  %v1072_v26 = vsub.f32 0.0, %v2761_v14 }
 0x161   : > { %v2000_v12 = vpop.eup %1999  ;;  %1509 = vst [vmem:[%s2397_s18 + $0x180] sm:$0xff] %v1445_v7  ;;  %v1448_v13 = vmul.f32 %v1998_v1, %v2612_v10  ;;  %2019 = vpow2.f32 %v1129_v25  ;;  %v908_v10 = vmul.f32 %v2730_v20, %v2571_v15  ;;  %v1038_v52 = vsub.f32 0.0, %v2766_v41 }
 0x162   : > { %v2002_v39 = vpop.eup %2001  ;;  %1480 = vst [vmem:[%s2397_s18 + $0x98] sm:$0xff] %v1416_v53  ;;  %v1254_v56 = vadd.f32 1.0, %v2000_v12  ;;  %2021 = vpow2.f32 %v1193_v50  ;;  %v2783_v47 = vadd.f32 %v2747_v22, %v935_v11  ;;  %v906_v19 = vmul.f32 %v2730_v20, %v2903_v16  ;;  %v2904_v53 = vld [vmem:[#allocation8_spill] sm:$0xff]  ;;  %v2905_v11 = vld [vmem:[#allocation9_spill] sm:$0xff] }
 0x163   : > { %v2004_v37 = vpop.eup %2003  ;;  %1512 = vst [vmem:[%s2397_s18 + $0x198] sm:$0xff] %v1448_v13  ;;  %v1227_v60 = vadd.f32 1.0, %v2002_v39  ;;  %2023 = vpow2.f32 %v1125_v24  ;;  %v1189_v59 = vmul.f32 1.442695, %v1069_v46  ;;  %v2788_v3 = vadd.f32 %v2747_v22, %v908_v10 }
 0x164   : > { %v2006_v29 = vpop.eup %2005  ;;  %2025 = vrcp.f32 %v1254_v56  ;;  %v1259_v18 = vadd.f32 1.0, %v2004_v37  ;;  %v1131_v44 = vmul.f32 1.442695, %v1040_v31  ;;  %v2791_v28 = vadd.f32 %v2747_v22, %v940_v42 }
 0x165   : > { %v2008_v51 = vpop.eup %2007  ;;  %2027 = vrcp.f32 %v1227_v60  ;;  %v1225_v49 = vadd.f32 1.0, %v2006_v29  ;;  %v1195_v27 = vmul.f32 1.442695, %v1072_v26  ;;  %v1127_v61 = vmul.f32 1.442695, %v1038_v52 }
 0x166   : > { %v2010_v2 = vpop.eup %2009  ;;  %2029 = vrcp.f32 %v1259_v18  ;;  %v1257_v15 = vadd.f32 1.0, %v2008_v51  ;;  %v1070_v50 = vsub.f32 0.0, %v2783_v47  ;;  %v2795_v17 = vadd.f32 %v2747_v22, %v906_v19 }
 0x167   : > { %v2012_v54 = vpop.eup %2011  ;;  %2031 = vrcp.f32 %v1225_v49  ;;  %v1228_v25 = vadd.f32 1.0, %v2010_v2  ;;  %v1043_v1 = vsub.f32 0.0, %v2788_v3  ;;  %v938_v12 = vmul.f32 %v2730_v20, %v2904_v53 }
 0x168   : > { %v2014_v9 = vpop.eup %2013  ;;  %2033 = vrcp.f32 %v1257_v15  ;;  %v1260_v38 = vadd.f32 1.0, %v2012_v54  ;;  %v1075_v39 = vsub.f32 0.0, %v2791_v28  ;;  %v909_v56 = vmul.f32 %v2730_v20, %v2582_v36 }
 0x169   : > { %v2016_v21 = vpop.eup %2015  ;;  %2035 = vrcp.f32 %v1228_v25  ;;  %v1226_v57 = vadd.f32 1.0, %v2014_v9  ;;  %v941_v37 = vmul.f32 %v2730_v20, %v2905_v11  ;;  %v1041_v10 = vsub.f32 0.0, %v2795_v17 }
 0x16a   : > { %v2018_v7 = vpop.eup %2017  ;;  %v1414_v24 = vmul.f32 %v2016_v21, %v2619_v0  ;;  %2037 = vrcp.f32 %v1260_v38  ;;  %v2806_v0 = vadd.f32 %v2747_v22, %v938_v12  ;;  %v907_v29 = vmul.f32 %v2730_v20, %v2589_v35 }
 0x16b   : > { %v2020_v13 = vpop.eup %2019  ;;  %2039 = vrcp.f32 %v1226_v57  ;;  %v1258_v46 = vadd.f32 1.0, %v2018_v7  ;;  %v1191_v52 = vmul.f32 1.442695, %v1070_v50  ;;  %v2814_v23 = vadd.f32 %v2747_v22, %v909_v56 }
 0x16c   : > { %v2022_v31 = vpop.eup %2021  ;;  %1478 = vst [vmem:[%s2397_s18 + $0x88] sm:$0xff] %v1414_v24  ;;  %v1231_v33 = vadd.f32 1.0, %v2020_v13  ;;  %2041 = vpow2.f32 %v1189_v59  ;;  %v1073_v49 = vsub.f32 0.0, %v2806_v0  ;;  %v2819_v16 = vadd.f32 %v2747_v22, %v941_v37 }
 0x16d   : > { %v2024_v60 = vpop.eup %2023  ;;  %2043 = vrcp.f32 %v1258_v46  ;;  %v1263_v26 = vadd.f32 1.0, %v2022_v31  ;;  %v1137_v2 = vmul.f32 1.442695, %v1043_v1  ;;  %v2823_v15 = vadd.f32 %v2747_v22, %v907_v29 }
 0x16e   : > { %v2026_v18 = vpop.eup %2025  ;;  %2045 = vrcp.f32 %v1231_v33  ;;  %v1229_v36 = vadd.f32 1.0, %v2024_v60  ;;  %v1201_v54 = vmul.f32 1.442695, %v1075_v39  ;;  %v1133_v25 = vmul.f32 1.442695, %v1041_v10 }
 0x16f   : > { %v2028_v42 = vpop.eup %2027  ;;  %v1446_v51 = vmul.f32 %v2026_v18, %v2639_v6  ;;  %2047 = vrcp.f32 %v1263_v26  ;;  %v939_v21 = vmul.f32 %v2730_v20, %v2591_v30  ;;  %v1076_v50 = vsub.f32 0.0, %v2819_v16 }
 0x170   : > { %v2030_v19 = vpop.eup %2029  ;;  %v1419_v35 = vmul.f32 %v2028_v42, %v2645_v45  ;;  %2049 = vrcp.f32 %v1229_v36  ;;  %v1044_v45 = vsub.f32 0.0, %v2814_v23 }
 0x171   : > { %v2032_v59 = vpop.eup %2031  ;;  %1510 = vst [vmem:[%s2397_s18 + $0x188] sm:$0xff] %v1446_v51  ;;  %v1451_v6 = vmul.f32 %v2030_v19, %v2653_v4  ;;  %2051 = vpow2.f32 %v1131_v44  ;;  %v1197_v44 = vmul.f32 1.442695, %v1073_v49  ;;  %v2839_v24 = vadd.f32 %v2747_v22, %v939_v21 }
 0x172   : > { %v2034_v9 = vpop.eup %2033  ;;  %1483 = vst [vmem:[%s2397_s18 + $0xb0] sm:$0xff] %v1419_v35  ;;  %v1417_v38 = vmul.f32 %v2032_v59, %v2658_v34  ;;  %2053 = vpow2.f32 %v1195_v27  ;;  %v1042_v27 = vsub.f32 0.0, %v2823_v15  ;;  %v1139_v1 = vmul.f32 1.442695, %v1044_v45 }
 0x173   : > { %v2036_v57 = vpop.eup %2035  ;;  %1515 = vst [vmem:[%s2397_s18 + $0x1b0] sm:$0xff] %v1451_v6  ;;  %v1449_v4 = vmul.f32 %v2034_v9, %v2672_v62  ;;  %2055 = vpow2.f32 %v1127_v61  ;;  %v1203_v22 = vmul.f32 1.442695, %v1076_v50 }
 0x174   : > { %v2038_v7 = vpop.eup %2037  ;;  %1481 = vst [vmem:[%s2397_s18 + $0xa0] sm:$0xff] %v1417_v38  ;;  %v1420_v34 = vmul.f32 %v2036_v57, %v2677_v63  ;;  %2057 = vpow2.f32 %v1191_v52  ;;  %v1074_v63 = vsub.f32 0.0, %v2839_v24  ;;  %v1135_v46 = vmul.f32 1.442695, %v1042_v27 }
 0x175   : > { %v2040_v30 = vpop.eup %2039  ;;  %1513 = vst [vmem:[%s2397_s18 + $0x1a0] sm:$0xff] %v1449_v4  ;;  %v1452_v62 = vmul.f32 %v2038_v7, %v2683_v55  ;;  %2059 = vpow2.f32 %v1137_v2 }
 0x176   : > { %v2042_v20 = vpop.eup %2041  ;;  %1484 = vst [vmem:[%s2397_s18 + $0xb8] sm:$0xff] %v1420_v34  ;;  %v1418_v61 = vmul.f32 %v2040_v30, %v2686_v48  ;;  %2061 = vpow2.f32 %v1201_v54  ;;  %v1199_v56 = vmul.f32 1.442695, %v1074_v63 }
 0x177   : > { %v2044_v53 = vpop.eup %2043  ;;  %1516 = vst [vmem:[%s2397_s18 + $0x1b8] sm:$0xff] %v1452_v62  ;;  %v1261_v12 = vadd.f32 1.0, %v2042_v20  ;;  %2063 = vpow2.f32 %v1133_v25 }
 0x178   : > { %v2046_v13 = vpop.eup %2045  ;;  %1482 = vst [vmem:[%s2397_s18 + $0xa8] sm:$0xff] %v1418_v61  ;;  %v1450_v55 = vmul.f32 %v2044_v53, %v2698_v32  ;;  %2065 = vpow2.f32 %v1197_v44 }
 0x179   : > { %v2048_v39 = vpop.eup %2047  ;;  %v1423_v48 = vmul.f32 %v2046_v13, %v2704_v8  ;;  %2067 = vrcp.f32 %v1261_v12 }
 0x17a   : > { %v2050_v31 = vpop.eup %2049  ;;  %1514 = vst [vmem:[%s2397_s18 + $0x1a8] sm:$0xff] %v1450_v55  ;;  %v1455_v33 = vmul.f32 %v2048_v39, %v2711_v5  ;;  %2069 = vpow2.f32 %v1139_v1 }
 0x17b   : > { %v2052_v11 = vpop.eup %2051  ;;  %1487 = vst [vmem:[%s2397_s18 + $0xd0] sm:$0xff] %v1423_v48  ;;  %v1421_v37 = vmul.f32 %v2050_v31, %v2717_v40  ;;  %2071 = vpow2.f32 %v1203_v22 }
 0x17c   : > { %v2054_v32 = vpop.eup %2053  ;;  %1519 = vst [vmem:[%s2397_s18 + $0x1d0] sm:$0xff] %v1455_v33  ;;  %v1232_v60 = vadd.f32 1.0, %v2052_v11  ;;  %2073 = vpow2.f32 %v1135_v46 }
 0x17d   : > { %v2056_v26 = vpop.eup %2055  ;;  %1485 = vst [vmem:[%s2397_s18 + $0xc0] sm:$0xff] %v1421_v37  ;;  %v1264_v8 = vadd.f32 1.0, %v2054_v32  ;;  %2075 = vpow2.f32 %v1199_v56 }
 0x17e   : > { %v2058_v10 = vpop.eup %2057  ;;  %2077 = vrcp.f32 %v1232_v60  ;;  %v1230_v29 = vadd.f32 1.0, %v2056_v26 }
 0x17f   : > { %v2060_v18 = vpop.eup %2059  ;;  %2079 = vrcp.f32 %v1264_v8  ;;  %v1262_v5 = vadd.f32 1.0, %v2058_v10 }
 0x180   : > { %v2062_v36 = vpop.eup %2061  ;;  %2081 = vrcp.f32 %v1230_v29  ;;  %v1235_v52 = vadd.f32 1.0, %v2060_v18 }
 0x181   : > { %v2064_v42 = vpop.eup %2063  ;;  %2083 = vrcp.f32 %v1262_v5  ;;  %v1267_v40 = vadd.f32 1.0, %v2062_v36 }
 0x182   : > { %v2066_v51 = vpop.eup %2065  ;;  %2085 = vrcp.f32 %v1235_v52  ;;  %v1233_v49 = vadd.f32 1.0, %v2064_v42 }
 0x183   : > { %v2068_v19 = vpop.eup %2067  ;;  %2087 = vrcp.f32 %v1267_v40  ;;  %v1265_v35 = vadd.f32 1.0, %v2066_v51 }
 0x184   : > { %v2070_v2 = vpop.eup %2069  ;;  %v1453_v59 = vmul.f32 %v2068_v19, %v2750_v58  ;;  %2089 = vrcp.f32 %v1233_v49 }
 0x185   : > { %v2072_v6 = vpop.eup %2071  ;;  %2091 = vrcp.f32 %v1265_v35  ;;  %v1236_v54 = vadd.f32 1.0, %v2070_v2 }
 0x186   : > { %v2074_v25 = vpop.eup %2073  ;;  %1517 = vst [vmem:[%s2397_s18 + $0x1c0] sm:$0xff] %v1453_v59  ;;  %v1268_v9 = vadd.f32 1.0, %v2072_v6 }
 0x187   : > { %v2076_v38 = vpop.eup %2075  ;;  %2093 = vrcp.f32 %v1236_v54  ;;  %v1234_v45 = vadd.f32 1.0, %v2074_v25 }
 0x188   : > { %v2078_v21 = vpop.eup %2077  ;;  %2095 = vrcp.f32 %v1268_v9  ;;  %v1266_v57 = vadd.f32 1.0, %v2076_v38 }
 0x189   : > { %v2080_v4 = vpop.eup %2079  ;;  %v1424_v58 = vmul.f32 %v2078_v21, %v2757_v43  ;;  %2097 = vrcp.f32 %v1234_v45 }
 0x18a   : > { %v2082_v44 = vpop.eup %2081  ;;  %v1456_v50 = vmul.f32 %v2080_v4, %v2761_v14  ;;  %2099 = vrcp.f32 %v1266_v57 }
 0x18b   : > { %v2084_v7 = vpop.eup %2083  ;;  %1488 = vst [vmem:[%s2397_s18 + $0xd8] sm:$0xff] %v1424_v58  ;;  %v1422_v34 = vmul.f32 %v2082_v44, %v2766_v41 }
 0x18c   : > { %v2086_v27 = vpop.eup %2085  ;;  %1520 = vst [vmem:[%s2397_s18 + $0x1d8] sm:$0xff] %v1456_v50  ;;  %v1454_v30 = vmul.f32 %v2084_v7, %v2783_v47 }
 0x18d   : > { %v2088_v62 = vpop.eup %2087  ;;  %1486 = vst [vmem:[%s2397_s18 + $0xc8] sm:$0xff] %v1422_v34  ;;  %v1427_v43 = vmul.f32 %v2086_v27, %v2788_v3 }
 0x18e   : > { %v2090_v20 = vpop.eup %2089  ;;  %1518 = vst [vmem:[%s2397_s18 + $0x1c8] sm:$0xff] %v1454_v30  ;;  %v1459_v14 = vmul.f32 %v2088_v62, %v2791_v28 }
 0x18f   : > { %v2092_v61 = vpop.eup %2091  ;;  %1491 = vst [vmem:[%s2397_s18 + $0xf0] sm:$0xff] %v1427_v43  ;;  %v1425_v41 = vmul.f32 %v2090_v20, %v2795_v17 }
 0x190   : > { %1523 = vst [vmem:[%s2397_s18 + $0x1f0] sm:$0xff] %v1459_v14  ;;  %v1457_v1 = vmul.f32 %v2092_v61, %v2806_v0 }
 0x191   : > { %v2094_v47 = vpop.eup %2093  ;;  %1489 = vst [vmem:[%s2397_s18 + $0xe0] sm:$0xff] %v1425_v41 }
 0x192   : > { %v2096_v63 = vpop.eup %2095  ;;  %1521 = vst [vmem:[%s2397_s18 + $0x1e0] sm:$0xff] %v1457_v1  ;;  %v1428_v3 = vmul.f32 %v2094_v47, %v2814_v23 }
 0x193   : > { %v2098_v53 = vpop.eup %2097  ;;  %v1460_v12 = vmul.f32 %v2096_v63, %v2819_v16 }
 0x194   : > { %v2100_v28 = vpop.eup %2099  ;;  %1492 = vst [vmem:[%s2397_s18 + $0xf8] sm:$0xff] %v1428_v3  ;;  %v1426_v22 = vmul.f32 %v2098_v53, %v2823_v15 }
 0x195   : > { %1524 = vst [vmem:[%s2397_s18 + $0x1f8] sm:$0xff] %v1460_v12  ;;  %v1458_v17 = vmul.f32 %v2100_v28, %v2839_v24 }
 0x196   : > { %1490 = vst [vmem:[%s2397_s18 + $0xe8] sm:$0xff] %v1426_v22 }
 0x197   : > { %1522 = vst [vmem:[%s2397_s18 + $0x1e8] sm:$0xff] %v1458_v17 }
 0x198 PF: > { %s14_s15 = sadd.s32 1, %s2109_s15  }
 0x199   : > { %p11_p4 = scmp.ge.s32.totalorder %s14_s15, 6  }
 0x19b   :  { %13 = sbr.rel (!%p11_p4) target bundleno = 1 (0x1), region = 66 }

// kernel: cspdarknet_fwd.43
= control target key start
LH: loop header
LB: loop body
LE: loop exit
PB: predicated region body
PF: predicated region fallthrough
CT: control target
= control target key end

     0   :  { %vm250_vm0 = vcmask 130048   ;;  %s2676_s1 = inlined_call_operand.vmem [shape: bf16[16,128], index: 1, kind: input, shape index: {}]   ;;  %s2677_s0 = inlined_call_operand.vmem [shape: bf16[512,16], index: 0, kind: input, shape index: {}]   ;;  %s2678_s2 = inlined_call_operand.vmem [shape: f32[1,128], index: 2, kind: input, shape index: {}]   ;;  %s2679_s3 = inlined_call_operand.vmem [shape: f32[1,128], index: 3, kind: input, shape index: {}]   ;;  %s2680_s4 = inlined_call_operand.vmem [shape: f32[512,128], index: 4, kind: output, shape index: {}]  }
   0x1   :  { %v1462_v0 = vld [vmem:[%s2676_s1] sm:$0xff]   ;;  %v1465_v3 = vld [vmem:[%s2677_s0 + $0x8] sm:$0xff]   ;;  %v1467_v5 = vld [vmem:[%s2677_s0 + $0x10] sm:$0xff]  }
   0x2   :  { %v1463_v1 = vld [vmem:[%s2677_s0] sm:$0xff]   ;;  %1394 = vmatprep.subr.bf16.mxu0 %v1462_v0  ;;  %1460 = vmatprep.subr.bf16.mxu1 %v1462_v0  ;;  %v1466_v4 = vld [vmem:[%s2677_s0 + $0x88] sm:$0xff]   ;;  %v1468_v6 = vld [vmem:[%s2677_s0 + $0x90] sm:$0xff]  }
   0x3   :  { %v1464_v2 = vld [vmem:[%s2677_s0 + $0x80] sm:$0xff]   ;;  %1395 = vmatpush3.bf16.msra.mxu0 %v1462_v0  ;;  %1461 = vmatpush3.bf16.msra.mxu1 %v1462_v0  ;;  %v1469_v7 = vld [vmem:[%s2677_s0 + $0x18] sm:$0xff]   ;;  %v1473_v11 = vld [vmem:[%s2677_s0 + $0x28] sm:$0xff]  }
   0x4   :  { %1396 = vmatprep.mubr.msk.bf16.mxu0 %vm250_vm0, %v1463_v1  ;;  %1428 = vmatprep.mubr.msk.bf16.mxu1 %vm250_vm0, %v1464_v2  ;;  %v1470_v8 = vld [vmem:[%s2677_s0 + $0x98] sm:$0xff]   ;;  %v1471_v9 = vld [vmem:[%s2677_s0 + $0x20] sm:$0xff]   ;;  %v1474_v12 = vld [vmem:[%s2677_s0 + $0xa8] sm:$0xff]  }
   0x5   :  { %v1472_v10 = vld [vmem:[%s2677_s0 + $0xa0] sm:$0xff]   ;;  %v1475_v13 = vld [vmem:[%s2677_s0 + $0x30] sm:$0xff]   ;;  %v1477_v15 = vld [vmem:[%s2677_s0 + $0x38] sm:$0xff]  }
   0x6   :  { %1397 = vmatmul.mubr.msk.bf16.vlgmr.msra.gmra.mrb[0].mxu0 %vm250_vm0, %v1465_v3  ;;  %1429 = vmatmul.mubr.msk.bf16.vlgmr.msra.gmra.mrb[0].mxu1 %vm250_vm0, %v1466_v4  ;;  %v1476_v14 = vld [vmem:[%s2677_s0 + $0xb0] sm:$0xff]   ;;  %v1478_v16 = vld [vmem:[%s2677_s0 + $0xb8] sm:$0xff]   ;;  %v1479_v17 = vld [vmem:[%s2677_s0 + $0x40] sm:$0xff]  }
   0x7   :  { %1400 = vmatprep.mubr.msk.bf16.mxu0 %vm250_vm0, %v1467_v5  ;;  %1432 = vmatprep.mubr.msk.bf16.mxu1 %vm250_vm0, %v1468_v6  ;;  %v1480_v18 = vld [vmem:[%s2677_s0 + $0xc0] sm:$0xff]   ;;  %v1481_v19 = vld [vmem:[%s2677_s0 + $0x48] sm:$0xff]   ;;  %v1483_v21 = vld [vmem:[%s2677_s0 + $0x50] sm:$0xff]  }
   0x8   :  { %v1482_v20 = vld [vmem:[%s2677_s0 + $0xc8] sm:$0xff]   ;;  %v1484_v22 = vld [vmem:[%s2677_s0 + $0xd0] sm:$0xff]   ;;  %v1485_v23 = vld [vmem:[%s2677_s0 + $0x58] sm:$0xff]  }
   0x9   :  { %v1486_v24 = vld [vmem:[%s2677_s0 + $0xd8] sm:$0xff]   ;;  %v1487_v25 = vld [vmem:[%s2677_s0 + $0x60] sm:$0xff]   ;;  %v1489_v27 = vld [vmem:[%s2677_s0 + $0x68] sm:$0xff]  }
   0xa   :  { %v1488_v26 = vld [vmem:[%s2677_s0 + $0xe0] sm:$0xff]   ;;  %v1490_v28 = vld [vmem:[%s2677_s0 + $0xe8] sm:$0xff]   ;;  %v1491_v29 = vld [vmem:[%s2677_s0 + $0x70] sm:$0xff]  }
   0xb   :  { %v1492_v30 = vld [vmem:[%s2677_s0 + $0xf0] sm:$0xff]   ;;  %v1493_v31 = vld [vmem:[%s2677_s0 + $0x78] sm:$0xff]   ;;  %v1912_v33 = vld [vmem:[%s2678_s2] ss:$0 sm:$0xff] }
   0xc   :  { %v1494_v32 = vld [vmem:[%s2677_s0 + $0xf8] sm:$0xff]   ;;  %v1917_v35 = vld [vmem:[%s2679_s3] ss:$0 sm:$0xff] }
   0xe   :  { %1401 = vmatmul.mubr.msk.bf16.gmra.mrb[4].mxu0 %vm250_vm0, %v1469_v7  ;;  %1433 = vmatmul.mubr.msk.bf16.gmra.mrb[4].mxu1 %vm250_vm0, %v1470_v8 }
   0xf   :  { %1404 = vmatprep.mubr.msk.bf16.mxu0 %vm250_vm0, %v1471_v9  ;;  %1436 = vmatprep.mubr.msk.bf16.mxu1 %vm250_vm0, %v1472_v10 }
  0x16   :  { %1405 = vmatmul.mubr.msk.bf16.gmra.mrb[8].mxu0 %vm250_vm0, %v1473_v11  ;;  %1437 = vmatmul.mubr.msk.bf16.gmra.mrb[8].mxu1 %vm250_vm0, %v1474_v12 }
  0x17   :  { %1408 = vmatprep.mubr.msk.bf16.mxu0 %vm250_vm0, %v1475_v13  ;;  %1440 = vmatprep.mubr.msk.bf16.mxu1 %vm250_vm0, %v1476_v14 }
  0x1e   :  { %1409 = vmatmul.mubr.msk.bf16.gmra.mrb[12].mxu0 %vm250_vm0, %v1477_v15  ;;  %1441 = vmatmul.mubr.msk.bf16.gmra.mrb[12].mxu1 %vm250_vm0, %v1478_v16 }
  0x1f   :  { %1412 = vmatprep.mubr.msk.bf16.mxu0 %vm250_vm0, %v1479_v17  ;;  %1444 = vmatprep.mubr.msk.bf16.mxu1 %vm250_vm0, %v1480_v18 }
  0x26   :  { %1413 = vmatmul.mubr.msk.bf16.gmra.mrb[16].mxu0 %vm250_vm0, %v1481_v19  ;;  %1445 = vmatmul.mubr.msk.bf16.gmra.mrb[16].mxu1 %vm250_vm0, %v1482_v20 }
  0x27   :  { %1416 = vmatprep.mubr.msk.bf16.mxu0 %vm250_vm0, %v1483_v21  ;;  %1448 = vmatprep.mubr.msk.bf16.mxu1 %vm250_vm0, %v1484_v22 }
  0x2e   :  { %1417 = vmatmul.mubr.msk.bf16.gmra.mrb[20].mxu0 %vm250_vm0, %v1485_v23  ;;  %1449 = vmatmul.mubr.msk.bf16.gmra.mrb[20].mxu1 %vm250_vm0, %v1486_v24 }
  0x2f   :  { %1420 = vmatprep.mubr.msk.bf16.mxu0 %vm250_vm0, %v1487_v25  ;;  %1452 = vmatprep.mubr.msk.bf16.mxu1 %vm250_vm0, %v1488_v26 }
  0x36   :  { %1421 = vmatmul.mubr.msk.bf16.gmra.mrb[24].mxu0 %vm250_vm0, %v1489_v27  ;;  %1453 = vmatmul.mubr.msk.bf16.gmra.mrb[24].mxu1 %vm250_vm0, %v1490_v28 }
  0x37   :  { %1424 = vmatprep.mubr.msk.bf16.mxu0 %vm250_vm0, %v1491_v29  ;;  %1456 = vmatprep.mubr.msk.bf16.mxu1 %vm250_vm0, %v1492_v30 }
  0x3e   :  { %1425 = vmatmul.mubr.msk.bf16.gmra.mrb[28].mxu0 %vm250_vm0, %v1493_v31  ;;  %1457 = vmatmul.mubr.msk.bf16.gmra.mrb[28].mxu1 %vm250_vm0, %v1494_v32 }
  0xd9   :  { %v1398_v34 = vpop.f32.mrb[0].mxu0  ;;  %v1430_v36 = vpop.f32.mrb[0].mxu1 }
  0xda   :  { %v645_v37 = vmul.f32 %v1398_v34, %v1912_v33  ;;  %v677_v38 = vmul.f32 %v1430_v36, %v1912_v33  ;;  %v381_v39 = vpop.f32.mrb[1].mxu0  ;;  %v509_v40 = vpop.f32.mrb[1].mxu1 }
  0xdb   :  { %v643_v41 = vmul.f32 %v1912_v33, %v381_v39  ;;  %v675_v42 = vmul.f32 %v1912_v33, %v509_v40  ;;  %v1399_v43 = vpop.f32.mrb[2].mxu0  ;;  %v1431_v44 = vpop.f32.mrb[2].mxu1 }
  0xdc   :  { %v1924_v45 = vadd.f32 %v1917_v35, %v645_v37  ;;  %v1927_v46 = vadd.f32 %v1917_v35, %v677_v38  ;;  %v646_v47 = vmul.f32 %v1399_v43, %v1912_v33  ;;  %v678_v48 = vmul.f32 %v1431_v44, %v1912_v33  ;;  %v384_v49 = vpop.f32.mrb[3].mxu0  ;;  %v512_v50 = vpop.f32.mrb[3].mxu1 }
  0xdd   :  { %v1932_v51 = vadd.f32 %v1917_v35, %v643_v41  ;;  %v1935_v52 = vadd.f32 %v1917_v35, %v675_v42  ;;  %v644_v53 = vmul.f32 %v1912_v33, %v384_v49  ;;  %v676_v54 = vmul.f32 %v1912_v33, %v512_v50 }
  0xde   :  { %v780_v55 = vsub.f32 0.0, %v1924_v45  ;;  %v812_v56 = vsub.f32 0.0, %v1927_v46  ;;  %v1942_v57 = vadd.f32 %v1917_v35, %v646_v47  ;;  %v1945_v58 = vadd.f32 %v1917_v35, %v678_v48 }
  0xdf   :  { %v778_v59 = vsub.f32 0.0, %v1932_v51  ;;  %v810_v60 = vsub.f32 0.0, %v1935_v52  ;;  %v1950_v61 = vadd.f32 %v1917_v35, %v644_v53  ;;  %v1953_v62 = vadd.f32 %v1917_v35, %v676_v54 }
  0xe0   :  { %v846_v63 = vmul.f32 1.442695, %v780_v55  ;;  %v910_v0 = vmul.f32 1.442695, %v812_v56  ;;  %v781_v1 = vsub.f32 0.0, %v1942_v57  ;;  %v813_v2 = vsub.f32 0.0, %v1945_v58 }
  0xe1   :  { %v842_v3 = vmul.f32 1.442695, %v778_v59  ;;  %v906_v4 = vmul.f32 1.442695, %v810_v60  ;;  %v779_v5 = vsub.f32 0.0, %v1950_v61  ;;  %v811_v6 = vsub.f32 0.0, %v1953_v62 }
  0xe2   :  { %1495 = vpow2.f32 %v846_v63  ;;  %v848_v7 = vmul.f32 1.442695, %v781_v1  ;;  %v912_v8 = vmul.f32 1.442695, %v813_v2  ;;  %v1402_v9 = vpop.f32.mrb[4].mxu0  ;;  %v1434_v10 = vpop.f32.mrb[4].mxu1 }
  0xe3   :  { %1497 = vpow2.f32 %v910_v0  ;;  %v844_v11 = vmul.f32 1.442695, %v779_v5  ;;  %v908_v12 = vmul.f32 1.442695, %v811_v6  ;;  %v649_v13 = vmul.f32 %v1402_v9, %v1912_v33  ;;  %v397_v14 = vpop.f32.mrb[5].mxu0  ;;  %v525_v15 = vpop.f32.mrb[5].mxu1 }
  0xe4   :  { %1499 = vpow2.f32 %v842_v3  ;;  %v681_v16 = vmul.f32 %v1434_v10, %v1912_v33  ;;  %v647_v17 = vmul.f32 %v1912_v33, %v397_v14  ;;  %v679_v18 = vmul.f32 %v1912_v33, %v525_v15  ;;  %v1403_v19 = vpop.f32.mrb[6].mxu0  ;;  %v1435_v20 = vpop.f32.mrb[6].mxu1 }
  0xe5   :  { %1501 = vpow2.f32 %v906_v4  ;;  %v1964_v21 = vadd.f32 %v1917_v35, %v649_v13  ;;  %v650_v22 = vmul.f32 %v1403_v19, %v1912_v33  ;;  %v682_v23 = vmul.f32 %v1435_v20, %v1912_v33  ;;  %v400_v24 = vpop.f32.mrb[7].mxu0  ;;  %v528_v25 = vpop.f32.mrb[7].mxu1 }
  0xe6   :  { %1503 = vpow2.f32 %v848_v7  ;;  %v1969_v26 = vadd.f32 %v1917_v35, %v681_v16  ;;  %v1972_v27 = vadd.f32 %v1917_v35, %v647_v17  ;;  %v1975_v28 = vadd.f32 %v1917_v35, %v679_v18 }
  0xe7   :  { %1505 = vpow2.f32 %v912_v8  ;;  %v784_v29 = vsub.f32 0.0, %v1964_v21  ;;  %v1979_v30 = vadd.f32 %v1917_v35, %v650_v22  ;;  %v1982_v31 = vadd.f32 %v1917_v35, %v682_v23 }
  0xe8   :  { %1507 = vpow2.f32 %v844_v11  ;;  %v816_v32 = vsub.f32 0.0, %v1969_v26  ;;  %v782_v34 = vsub.f32 0.0, %v1972_v27  ;;  %v814_v36 = vsub.f32 0.0, %v1975_v28 }
  0xe9   :  { %1509 = vpow2.f32 %v908_v12  ;;  %v854_v37 = vmul.f32 1.442695, %v784_v29  ;;  %v785_v38 = vsub.f32 0.0, %v1979_v30  ;;  %v817_v39 = vsub.f32 0.0, %v1982_v31  ;;  %v1406_v40 = vpop.f32.mrb[8].mxu0  ;;  %v1438_v41 = vpop.f32.mrb[8].mxu1 }
  0xea   :  { %v918_v42 = vmul.f32 1.442695, %v816_v32  ;;  %v850_v43 = vmul.f32 1.442695, %v782_v34  ;;  %v914_v44 = vmul.f32 1.442695, %v814_v36  ;;  %v648_v47 = vmul.f32 %v1912_v33, %v400_v24 }
  0xeb   :  { %1511 = vpow2.f32 %v854_v37  ;;  %v1990_v48 = vmul.f32 1.442695, %v785_v38  ;;  %v1992_v49 = vmul.f32 1.442695, %v817_v39  ;;  %v680_v50 = vmul.f32 %v1912_v33, %v528_v25  ;;  %v413_v53 = vpop.f32.mrb[9].mxu0  ;;  %v541_v54 = vpop.f32.mrb[9].mxu1 }
  0xec   :  { %v1496_v55 = vpop.eup %1495  ;;  %1513 = vpow2.f32 %v918_v42  ;;  %v1996_v56 = vadd.f32 %v1917_v35, %v648_v47  ;;  %v653_v59 = vmul.f32 %v1406_v40, %v1912_v33  ;;  %v685_v60 = vmul.f32 %v1438_v41, %v1912_v33  ;;  %v1407_v63 = vpop.f32.mrb[10].mxu0 }
  0xed   :  { %v1439_v0 = vpop.f32.mrb[10].mxu1  ;;  %v1498_v1 = vpop.eup %1497  ;;  %v972_v2 = vadd.f32 1.0, %v1496_v55  ;;  %1515 = vpow2.f32 %v850_v43  ;;  %v2001_v3 = vadd.f32 %v1917_v35, %v680_v50  ;;  %v651_v4 = vmul.f32 %v1912_v33, %v413_v53 }
  0xee   :  { %v416_v5 = vpop.f32.mrb[11].mxu0  ;;  %v2004_v6 = vpop.f32.mrb[11].mxu1  ;;  %v1004_v8 = vadd.f32 1.0, %v1498_v1  ;;  %1517 = vpow2.f32 %v914_v44  ;;  %v783_v9 = vsub.f32 0.0, %v1996_v56  ;;  %v2008_v10 = vadd.f32 %v1917_v35, %v653_v59 }
  0xef   :  { %v1500_v7 = vpop.eup %1499  ;;  %1519 = vrcp.f32 %v972_v2  ;;  %v815_v13 = vsub.f32 0.0, %v2001_v3  ;;  %v2012_v14 = vadd.f32 %v1917_v35, %v685_v60  ;;  %v2027_v36 = vadd.f32 %v1917_v35, %v651_v4 }
  0xf0   :  { %v1502_v11 = vpop.eup %1501  ;;  %v970_v12 = vadd.f32 1.0, %v1500_v7  ;;  %1521 = vrcp.f32 %v1004_v8  ;;  %v2014_v17 = vmul.f32 1.442695, %v783_v9  ;;  %v788_v18 = vsub.f32 0.0, %v2008_v10 }
  0xf1   :  { %v1504_v15 = vpop.eup %1503  ;;  %v1002_v16 = vadd.f32 1.0, %v1502_v11  ;;  %v2017_v22 = vmul.f32 1.442695, %v815_v13  ;;  %v820_v23 = vsub.f32 0.0, %v2012_v14  ;;  %v2020_v24 = vpop.f32.mrb[12].mxu0  ;;  %v683_v42 = vmul.f32 %v1912_v33, %v541_v54 }
  0xf2   :  { %v1506_v19 = vpop.eup %1505  ;;  %1523 = vrcp.f32 %v970_v12  ;;  %v973_v20 = vadd.f32 1.0, %v1504_v15  ;;  %v2022_v25 = vpop.f32.mrb[12].mxu1  ;;  %v2024_v34 = vmul.f32 1.442695, %v788_v18  ;;  %v786_v50 = vsub.f32 0.0, %v2027_v36 }
  0xf3   :  { %v1508_v29 = vpop.eup %1507  ;;  %1525 = vrcp.f32 %v1002_v16  ;;  %v1005_v32 = vadd.f32 1.0, %v1506_v19  ;;  %v2029_v37 = vpop.f32.mrb[13].mxu0  ;;  %v2033_v41 = vmul.f32 1.442695, %v820_v23  ;;  %v654_v53 = vmul.f32 %v1407_v63, %v1912_v33 }
  0xf4   :  { %v2031_v38 = vpop.f32.mrb[13].mxu1  ;;  %v1510_v39 = vpop.eup %1509  ;;  %1527 = vrcp.f32 %v973_v20  ;;  %v971_v40 = vadd.f32 1.0, %v1508_v29  ;;  %v2047_v1 = vadd.f32 %v1917_v35, %v683_v42  ;;  %v686_v54 = vmul.f32 %v1439_v0, %v1912_v33 }
  0xf5   :  { %v2036_v43 = vpop.f32.mrb[14].mxu0  ;;  %v2038_v44 = vpop.f32.mrb[14].mxu1  ;;  %1529 = vrcp.f32 %v1005_v32  ;;  %v1003_v47 = vadd.f32 1.0, %v1510_v39  ;;  %v652_v2 = vmul.f32 %v1912_v33, %v416_v5  ;;  %v2051_v8 = vmul.f32 1.442695, %v786_v50 }
  0xf6   :  { %v2042_v55 = vpop.f32.mrb[15].mxu0  ;;  %v2044_v59 = vpop.f32.mrb[15].mxu1  ;;  %1531 = vrcp.f32 %v971_v40  ;;  %v2054_v63 = vadd.f32 %v1917_v35, %v654_v53  ;;  %v818_v12 = vsub.f32 0.0, %v2047_v1  ;;  %v2059_v13 = vadd.f32 %v1917_v35, %v686_v54 }
  0xf7   :  { %v1512_v60 = vpop.eup %1511  ;;  %1533 = vrcp.f32 %v1003_v47  ;;  %v2063_v16 = vadd.f32 %v1917_v35, %v652_v2  ;;  %v684_v2 = vmul.f32 %v1912_v33, %v2004_v6 }
  0xf8   :  { %v1514_v4 = vpop.eup %1513  ;;  %v976_v7 = vadd.f32 1.0, %v1512_v60  ;;  %1535 = vpow2.f32 %v1990_v48  ;;  %v789_v15 = vsub.f32 0.0, %v2054_v63  ;;  %v922_v20 = vmul.f32 1.442695, %v818_v12 }
  0xf9   :  { %v1516_v9 = vpop.eup %1515  ;;  %v1008_v11 = vadd.f32 1.0, %v1514_v4  ;;  %v821_v23 = vsub.f32 0.0, %v2059_v13  ;;  %v2066_v48 = vpop.f32.mrb[16].mxu0  ;;  %v787_v42 = vsub.f32 0.0, %v2063_v16 }
  0xfa   :  { %v1518_v0 = vpop.eup %1517  ;;  %1537 = vrcp.f32 %v976_v7  ;;  %v974_v5 = vadd.f32 1.0, %v1516_v9  ;;  %v2068_v29 = vpop.f32.mrb[16].mxu1  ;;  %v864_v40 = vmul.f32 1.442695, %v789_v15 }
  0xfb   :  { %v1520_v18 = vpop.eup %1519  ;;  %1539 = vrcp.f32 %v1008_v11  ;;  %v1006_v19 = vadd.f32 1.0, %v1518_v0  ;;  %v2072_v47 = vpop.f32.mrb[17].mxu0  ;;  %v2077_v54 = vmul.f32 1.442695, %v821_v23  ;;  %v657_v11 = vmul.f32 %v2020_v24, %v1912_v33 }
  0xfc   :  { %v1522_v32 = vpop.eup %1521  ;;  %v1164_v39 = vmul.f32 %v1520_v18, %v1924_v45  ;;  %1541 = vrcp.f32 %v974_v5  ;;  %v2074_v50 = vpop.f32.mrb[17].mxu1 }
  0xfd   :  { %v1524_v53 = vpop.eup %1523  ;;  %v1196_v60 = vmul.f32 %v1522_v32, %v1927_v46  ;;  %1543 = vrcp.f32 %v1006_v19  ;;  %v2081_v4 = vpop.f32.mrb[18].mxu0  ;;  %v2090_v46 = vmul.f32 1.442695, %v787_v42  ;;  %v2114_v18 = vadd.f32 %v1917_v35, %v657_v11 }
  0xfe   :  { %v2083_v45 = vpop.f32.mrb[18].mxu1  ;;  %v1526_v7 = vpop.eup %1525  ;;  %1228 = vst [vmem:[%s2680_s4 + $0x10] sm:$0xff] %v1164_v39  ;;  %v1162_v9 = vmul.f32 %v1524_v53, %v1932_v51  ;;  %1545 = vpow2.f32 %v1992_v49  ;;  %v2104_v51 = vadd.f32 %v1917_v35, %v684_v2  ;;  %v689_v49 = vmul.f32 %v2022_v25, %v1912_v33 }
  0xff   :  { %v2094_v12 = vpop.f32.mrb[19].mxu0  ;;  %v2096_v6 = vpop.f32.mrb[19].mxu1  ;;  %1260 = vst [vmem:[%s2680_s4 + $0x110] sm:$0xff] %v1196_v60  ;;  %v1194_v5 = vmul.f32 %v1526_v7, %v1935_v52  ;;  %1547 = vpow2.f32 %v2014_v17  ;;  %v655_v52 = vmul.f32 %v1912_v33, %v2029_v37  ;;  %v792_v23 = vsub.f32 0.0, %v2114_v18 }
 0x100   :  { %v1528_v0 = vpop.eup %1527  ;;  %1226 = vst [vmem:[%s2680_s4] sm:$0xff] %v1162_v9  ;;  %1549 = vpow2.f32 %v2017_v22  ;;  %v819_v19 = vsub.f32 0.0, %v2104_v51 }
 0x101   :  { %v1530_v24 = vpop.eup %1529  ;;  %v1165_v15 = vmul.f32 %v1528_v0, %v1942_v57  ;;  %1258 = vst [vmem:[%s2680_s4 + $0x100] sm:$0xff] %v1194_v5  ;;  %1551 = vpow2.f32 %v2024_v34  ;;  %v2125_v57 = vadd.f32 %v1917_v35, %v689_v49  ;;  %v870_v2 = vmul.f32 1.442695, %v792_v23 }
 0x102   :  { %v1532_v17 = vpop.eup %1531  ;;  %v1197_v25 = vmul.f32 %v1530_v24, %v1945_v58  ;;  %1553 = vpow2.f32 %v2033_v41  ;;  %v2134_v58 = vadd.f32 %v1917_v35, %v655_v52  ;;  %v924_v39 = vmul.f32 1.442695, %v819_v19  ;;  %v2144_v41 = vpop.f32.mrb[20].mxu1 }
 0x103   :  { %v1534_v22 = vpop.eup %1533  ;;  %1229 = vst [vmem:[%s2680_s4 + $0x18] sm:$0xff] %v1165_v15  ;;  %v1163_v37 = vmul.f32 %v1532_v17, %v1950_v61  ;;  %1555 = vpow2.f32 %v2051_v8  ;;  %v824_v42 = vsub.f32 0.0, %v2125_v57  ;;  %v2142_v61 = vpop.f32.mrb[20].mxu0  ;;  %v658_v17 = vmul.f32 %v2036_v43, %v1912_v33 }
 0x104   :  { %v1536_v34 = vpop.eup %1535  ;;  %1261 = vst [vmem:[%s2680_s4 + $0x118] sm:$0xff] %v1197_v25  ;;  %v1195_v32 = vmul.f32 %v1534_v22, %v1953_v62  ;;  %1557 = vpow2.f32 %v922_v20  ;;  %v790_v7 = vsub.f32 0.0, %v2134_v58  ;;  %v2150_v62 = vpop.f32.mrb[21].mxu0  ;;  %v687_v20 = vmul.f32 %v1912_v33, %v2031_v38 }
 0x105   :  { %v1538_v53 = vpop.eup %1537  ;;  %1227 = vst [vmem:[%s2680_s4 + $0x8] sm:$0xff] %v1163_v37  ;;  %v977_v60 = vadd.f32 1.0, %v1536_v34  ;;  %v2152_v8 = vpop.f32.mrb[21].mxu1  ;;  %1559 = vpow2.f32 %v864_v40  ;;  %v2158_v0 = vmul.f32 1.442695, %v824_v42  ;;  %v690_v19 = vmul.f32 %v2038_v44, %v1912_v33 }
 0x106   :  { %v1540_v9 = vpop.eup %1539  ;;  %1259 = vst [vmem:[%s2680_s4 + $0x108] sm:$0xff] %v1195_v32  ;;  %v1168_v11 = vmul.f32 %v1538_v53, %v1964_v21  ;;  %v2162_v5 = vpop.f32.mrb[22].mxu0  ;;  %v2167_v52 = vmul.f32 1.442695, %v790_v7  ;;  %v2191_v37 = vadd.f32 %v1917_v35, %v658_v17 }
 0x107   :  { %v2164_v49 = vpop.f32.mrb[22].mxu1  ;;  %v1542_v24 = vpop.eup %1541  ;;  %v1200_v15 = vmul.f32 %v1540_v9, %v1969_v26  ;;  %1561 = vrcp.f32 %v977_v60  ;;  %v2181_v26 = vadd.f32 %v1917_v35, %v687_v20  ;;  %v2200_v34 = vadd.f32 %v1917_v35, %v690_v19 }
 0x108   :  { %v2171_v21 = vpop.f32.mrb[23].mxu0  ;;  %v2173_v40 = vpop.f32.mrb[23].mxu1  ;;  %1232 = vst [vmem:[%s2680_s4 + $0x30] sm:$0xff] %v1168_v11  ;;  %v1166_v38 = vmul.f32 %v1542_v24, %v1972_v27  ;;  %1563 = vpow2.f32 %v2077_v54  ;;  %v656_v27 = vmul.f32 %v1912_v33, %v2042_v55  ;;  %v793_v55 = vsub.f32 0.0, %v2191_v37 }
 0x109   :  { %v1544_v25 = vpop.eup %1543  ;;  %1264 = vst [vmem:[%s2680_s4 + $0x130] sm:$0xff] %v1200_v15  ;;  %1565 = vpow2.f32 %v2090_v46  ;;  %v822_v23 = vsub.f32 0.0, %v2181_v26  ;;  %v825_v60 = vsub.f32 0.0, %v2200_v34  ;;  %v2212_v7 = vpop.f32.mrb[24].mxu0 }
 0x10a   :  { %v1546_v43 = vpop.eup %1545  ;;  %v1198_v22 = vmul.f32 %v1544_v25, %v1975_v28  ;;  %1230 = vst [vmem:[%s2680_s4 + $0x20] sm:$0xff] %v1166_v38  ;;  %1567 = vpow2.f32 %v924_v39  ;;  %v2207_v32 = vadd.f32 %v1917_v35, %v656_v27  ;;  %v2214_v9 = vpop.f32.mrb[24].mxu1 }
 0x10b   :  { %v1548_v54 = vpop.eup %1547  ;;  %v1009_v44 = vadd.f32 1.0, %v1546_v43  ;;  %1569 = vpow2.f32 %v870_v2  ;;  %v2209_v53 = vmul.f32 1.442695, %v822_v23  ;;  %v2216_v2 = vmul.f32 1.442695, %v793_v55  ;;  %v2219_v15 = vpop.f32.mrb[25].mxu0 }
 0x10c   :  { %v1550_v28 = vpop.eup %1549  ;;  %1262 = vst [vmem:[%s2680_s4 + $0x120] sm:$0xff] %v1198_v22  ;;  %v975_v46 = vadd.f32 1.0, %v1548_v54  ;;  %v791_v24 = vsub.f32 0.0, %v2207_v32  ;;  %v2221_v17 = vpop.f32.mrb[25].mxu1  ;;  %v2223_v19 = vmul.f32 1.442695, %v825_v60  ;;  %v688_v43 = vmul.f32 %v1912_v33, %v2044_v59 }
 0x10d   :  { %v1552_v42 = vpop.eup %1551  ;;  %1571 = vrcp.f32 %v1009_v44  ;;  %v1007_v39 = vadd.f32 1.0, %v1550_v28  ;;  %v2227_v22 = vpop.f32.mrb[26].mxu0  ;;  %v661_v28 = vmul.f32 %v2066_v48, %v1912_v33  ;;  %v693_v60 = vmul.f32 %v2068_v29, %v1912_v33 }
 0x10e   :  { %v1554_v11 = vpop.eup %1553  ;;  %1573 = vrcp.f32 %v975_v46  ;;  %v980_v20 = vadd.f32 1.0, %v1552_v42  ;;  %2681 = vst [vmem:[#allocation2_spill] sm:$0xff] %v2227_v22  ;;  %v2229_v27 = vpop.f32.mrb[26].mxu1  ;;  %v2231_v23 = vmul.f32 1.442695, %v791_v24  ;;  %v2240_v59 = vadd.f32 %v1917_v35, %v688_v43 }
 0x10f   :  { %v1556_v25 = vpop.eup %1555  ;;  %1575 = vrcp.f32 %v1007_v39  ;;  %v1012_v38 = vadd.f32 1.0, %v1554_v11  ;;  %2682 = vst [vmem:[#allocation3_spill] sm:$0xff] %v2229_v27  ;;  %v2235_v46 = vpop.f32.mrb[27].mxu0  ;;  %v2245_v24 = vadd.f32 %v1917_v35, %v661_v28  ;;  %v659_v48 = vmul.f32 %v1912_v33, %v2072_v47 }
 0x110   :  { %v1558_v54 = vpop.eup %1557  ;;  %1577 = vrcp.f32 %v980_v20  ;;  %v978_v44 = vadd.f32 1.0, %v1556_v25  ;;  %2683 = vst [vmem:[#allocation4_spill] sm:$0xff] %v2235_v46  ;;  %v2237_v55 = vpop.f32.mrb[27].mxu1  ;;  %v2252_v43 = vadd.f32 %v1917_v35, %v693_v60 }
 0x111   :  { %2684 = vst [vmem:[#allocation5_spill] sm:$0xff] %v2237_v55  ;;  %v1560_v42 = vpop.eup %1559  ;;  %1579 = vrcp.f32 %v1012_v38  ;;  %v1010_v39 = vadd.f32 1.0, %v1558_v54  ;;  %v823_v38 = vsub.f32 0.0, %v2240_v59  ;;  %v2256_v28 = vadd.f32 %v1917_v35, %v659_v48  ;;  %v2263_v60 = vpop.f32.mrb[28].mxu0 }
 0x112   :  { %v1562_v11 = vpop.eup %1561  ;;  %1581 = vrcp.f32 %v978_v44  ;;  %v981_v20 = vadd.f32 1.0, %v1560_v42  ;;  %v796_v44 = vsub.f32 0.0, %v2245_v24  ;;  %2685 = vst [vmem:[#allocation6_spill] sm:$0xff] %v2263_v60  ;;  %v2267_v46 = vpop.f32.mrb[29].mxu0 }
 0x113   :  { %v1564_v25 = vpop.eup %1563  ;;  %v1169_v55 = vmul.f32 %v1562_v11, %v1979_v30  ;;  %1583 = vrcp.f32 %v1010_v39  ;;  %v932_v47 = vmul.f32 1.442695, %v823_v38  ;;  %v828_v39 = vsub.f32 0.0, %v2252_v43  ;;  %v2265_v11 = vpop.f32.mrb[28].mxu1  ;;  %2687 = vst [vmem:[#allocation8_spill] sm:$0xff] %v2267_v46 }
 0x114   :  { %v1566_v54 = vpop.eup %1565  ;;  %1585 = vrcp.f32 %v981_v20  ;;  %v1013_v29 = vadd.f32 1.0, %v1564_v25  ;;  %2686 = vst [vmem:[#allocation7_spill] sm:$0xff] %v2265_v11  ;;  %v878_v48 = vmul.f32 1.442695, %v796_v44  ;;  %v2269_v27 = vpop.f32.mrb[29].mxu1  ;;  %v691_v38 = vmul.f32 %v1912_v33, %v2074_v50 }
 0x115   :  { %v1568_v42 = vpop.eup %1567  ;;  %1233 = vst [vmem:[%s2680_s4 + $0x38] sm:$0xff] %v1169_v55  ;;  %v979_v30 = vadd.f32 1.0, %v1566_v54  ;;  %1587 = vpow2.f32 %v2158_v0  ;;  %2688 = vst [vmem:[#allocation9_spill] sm:$0xff] %v2269_v27  ;;  %v794_v0 = vsub.f32 0.0, %v2256_v28  ;;  %v2274_v54 = vpop.f32.mrb[30].mxu0 }
 0x116   :  { %v1570_v20 = vpop.eup %1569  ;;  %1589 = vrcp.f32 %v1013_v29  ;;  %v1011_v25 = vadd.f32 1.0, %v1568_v42  ;;  %v2276_v60 = vpop.f32.mrb[30].mxu1  ;;  %v942_v44 = vmul.f32 1.442695, %v828_v39  ;;  %v662_v42 = vmul.f32 %v2081_v4, %v1912_v33 }
 0x117   :  { %v1572_v22 = vpop.eup %1571  ;;  %1591 = vrcp.f32 %v979_v30  ;;  %v984_v55 = vadd.f32 1.0, %v1570_v20  ;;  %2689 = vst [vmem:[#allocation10_spill] sm:$0xff] %v2276_v60  ;;  %v2281_v27 = vpop.f32.mrb[31].mxu0  ;;  %v2287_v50 = vadd.f32 %v1917_v35, %v691_v38  ;;  %v694_v60 = vmul.f32 %v2083_v45, %v1912_v33 }
 0x118   :  { %v1574_v11 = vpop.eup %1573  ;;  %v1201_v29 = vmul.f32 %v1572_v22, %v1982_v31  ;;  %1593 = vrcp.f32 %v1011_v25  ;;  %v2283_v30 = vpop.f32.mrb[31].mxu1  ;;  %v2297_v22 = vadd.f32 %v1917_v35, %v662_v42  ;;  %v874_v25 = vmul.f32 1.442695, %v794_v0 }
 0x119   :  { %v1576_v20 = vpop.eup %1575  ;;  %v1167_v46 = vmul.f32 %v1574_v11, %v1996_v56  ;;  %1595 = vrcp.f32 %v984_v55  ;;  %v660_v56 = vmul.f32 %v1912_v33, %v2094_v12  ;;  %v826_v11 = vsub.f32 0.0, %v2287_v50 }
 0x11a   :  { %v1578_v31 = vpop.eup %1577  ;;  %1265 = vst [vmem:[%s2680_s4 + $0x138] sm:$0xff] %v1201_v29  ;;  %v1199_v4 = vmul.f32 %v1576_v20, %v2001_v3  ;;  %1597 = vpow2.f32 %v2167_v52  ;;  %v2308_v3 = vadd.f32 %v1917_v35, %v694_v60  ;;  %v692_v0 = vmul.f32 %v1912_v33, %v2096_v6 }
 0x11b   :  { %v1580_v39 = vpop.eup %1579  ;;  %1231 = vst [vmem:[%s2680_s4 + $0x28] sm:$0xff] %v1167_v46  ;;  %v1172_v45 = vmul.f32 %v1578_v31, %v2008_v10  ;;  %1599 = vpow2.f32 %v2209_v53  ;;  %v797_v46 = vsub.f32 0.0, %v2297_v22  ;;  %v2317_v10 = vadd.f32 %v1917_v35, %v660_v56 }
 0x11c   :  { %v1582_v52 = vpop.eup %1581  ;;  %1263 = vst [vmem:[%s2680_s4 + $0x128] sm:$0xff] %v1199_v4  ;;  %v1204_v12 = vmul.f32 %v1580_v39, %v2012_v14  ;;  %1601 = vpow2.f32 %v2216_v2  ;;  %v829_v55 = vsub.f32 0.0, %v2308_v3  ;;  %v938_v38 = vmul.f32 1.442695, %v826_v11 }
 0x11d   :  { %v1584_v53 = vpop.eup %1583  ;;  %1236 = vst [vmem:[%s2680_s4 + $0x50] sm:$0xff] %v1172_v45  ;;  %v1170_v60 = vmul.f32 %v1582_v52, %v2027_v36  ;;  %1603 = vpow2.f32 %v2223_v19  ;;  %v880_v29 = vmul.f32 1.442695, %v797_v46  ;;  %v795_v19 = vsub.f32 0.0, %v2317_v10 }
 0x11e   :  { %v1586_v14 = vpop.eup %1585  ;;  %1268 = vst [vmem:[%s2680_s4 + $0x150] sm:$0xff] %v1204_v12  ;;  %v1202_v2 = vmul.f32 %v1584_v53, %v2047_v1  ;;  %1605 = vpow2.f32 %v2231_v23  ;;  %v944_v23 = vmul.f32 1.442695, %v829_v55  ;;  %v665_v31 = vmul.f32 %v2142_v61, %v1912_v33 }
 0x11f   :  { %v1588_v42 = vpop.eup %1587  ;;  %1234 = vst [vmem:[%s2680_s4 + $0x40] sm:$0xff] %v1170_v60  ;;  %v1173_v36 = vmul.f32 %v1586_v14, %v2054_v63  ;;  %1607 = vpow2.f32 %v932_v47  ;;  %v2347_v6 = vadd.f32 %v1917_v35, %v692_v0  ;;  %v697_v47 = vmul.f32 %v2144_v41, %v1912_v33 }
 0x120   :  { %v1590_v20 = vpop.eup %1589  ;;  %1266 = vst [vmem:[%s2680_s4 + $0x140] sm:$0xff] %v1202_v2  ;;  %v1016_v1 = vadd.f32 1.0, %v1588_v42  ;;  %1609 = vpow2.f32 %v878_v48  ;;  %v2353_v61 = vadd.f32 %v1917_v35, %v665_v31  ;;  %v663_v39 = vmul.f32 %v1912_v33, %v2150_v62 }
 0x121   :  { %v1592_v4 = vpop.eup %1591  ;;  %1237 = vst [vmem:[%s2680_s4 + $0x58] sm:$0xff] %v1173_v36  ;;  %v1205_v63 = vmul.f32 %v1590_v20, %v2059_v13  ;;  %1611 = vpow2.f32 %v942_v44  ;;  %v827_v41 = vsub.f32 0.0, %v2347_v6  ;;  %v2363_v44 = vadd.f32 %v1917_v35, %v697_v47 }
 0x122   :  { %v1594_v56 = vpop.eup %1593  ;;  %v1171_v48 = vmul.f32 %v1592_v4, %v2063_v16  ;;  %1613 = vrcp.f32 %v1016_v1  ;;  %v2370_v11 = vadd.f32 %v1917_v35, %v663_v39  ;;  %v876_v12 = vmul.f32 1.442695, %v795_v19 }
 0x123   :  { %v1596_v45 = vpop.eup %1595  ;;  %1269 = vst [vmem:[%s2680_s4 + $0x158] sm:$0xff] %v1205_v63  ;;  %v1203_v13 = vmul.f32 %v1594_v56, %v2104_v51  ;;  %1615 = vpow2.f32 %v874_v25  ;;  %v800_v60 = vsub.f32 0.0, %v2353_v61  ;;  %v832_v14 = vsub.f32 0.0, %v2363_v44 }
 0x124   :  { %v1598_v16 = vpop.eup %1597  ;;  %1235 = vst [vmem:[%s2680_s4 + $0x48] sm:$0xff] %v1171_v48  ;;  %v1176_v62 = vmul.f32 %v1596_v45, %v2114_v18  ;;  %1617 = vpow2.f32 %v938_v38  ;;  %v2378_v18 = vmul.f32 1.442695, %v827_v41  ;;  %v695_v2 = vmul.f32 %v1912_v33, %v2152_v8 }
 0x125   :  { %v1600_v52 = vpop.eup %1599  ;;  %1267 = vst [vmem:[%s2680_s4 + $0x148] sm:$0xff] %v1203_v13  ;;  %v982_v51 = vadd.f32 1.0, %v1598_v16  ;;  %1619 = vpow2.f32 %v880_v29  ;;  %v798_v42 = vsub.f32 0.0, %v2370_v11  ;;  %v666_v36 = vmul.f32 %v2162_v5, %v1912_v33 }
 0x126   :  { %v1602_v46 = vpop.eup %1601  ;;  %1240 = vst [vmem:[%s2680_s4 + $0x70] sm:$0xff] %v1176_v62  ;;  %v1014_v53 = vadd.f32 1.0, %v1600_v52  ;;  %1621 = vpow2.f32 %v944_v23  ;;  %v2388_v20 = vadd.f32 %v1917_v35, %v695_v2  ;;  %v698_v1 = vmul.f32 %v2164_v49, %v1912_v33 }
 0x127   :  { %v1604_v25 = vpop.eup %1603  ;;  %1623 = vrcp.f32 %v982_v51  ;;  %v985_v55 = vadd.f32 1.0, %v1602_v46  ;;  %v2393_v31 = vadd.f32 %v1917_v35, %v666_v36  ;;  %v664_v4 = vmul.f32 %v1912_v33, %v2171_v21 }
 0x128   :  { %v1606_v38 = vpop.eup %1605  ;;  %1625 = vrcp.f32 %v1014_v53  ;;  %v1017_v29 = vadd.f32 1.0, %v1604_v25  ;;  %v830_v47 = vsub.f32 0.0, %v2388_v20  ;;  %v2399_v56 = vadd.f32 %v1917_v35, %v698_v1 }
 0x129   :  { %v1608_v19 = vpop.eup %1607  ;;  %1627 = vrcp.f32 %v985_v55  ;;  %v983_v0 = vadd.f32 1.0, %v1606_v38  ;;  %v886_v39 = vmul.f32 1.442695, %v800_v60  ;;  %v2402_v45 = vadd.f32 %v1917_v35, %v664_v4 }
 0x12a   :  { %v1610_v23 = vpop.eup %1609  ;;  %1629 = vrcp.f32 %v1017_v29  ;;  %v1015_v8 = vadd.f32 1.0, %v1608_v19  ;;  %v950_v21 = vmul.f32 1.442695, %v832_v14  ;;  %v882_v16 = vmul.f32 1.442695, %v798_v42 }
 0x12b   :  { %v1612_v63 = vpop.eup %1611  ;;  %1631 = vrcp.f32 %v983_v0  ;;  %v988_v5 = vadd.f32 1.0, %v1610_v23  ;;  %v946_v51 = vmul.f32 1.442695, %v830_v47  ;;  %v801_v46 = vsub.f32 0.0, %v2393_v31 }
 0x12c   :  { %v1614_v48 = vpop.eup %1613  ;;  %1633 = vrcp.f32 %v1015_v8  ;;  %v1020_v49 = vadd.f32 1.0, %v1612_v63  ;;  %v833_v25 = vsub.f32 0.0, %v2399_v56  ;;  %v799_v2 = vsub.f32 0.0, %v2402_v45 }
 0x12d   :  { %v1616_v13 = vpop.eup %1615  ;;  %v1208_v41 = vmul.f32 %v1614_v48, %v2125_v57  ;;  %1635 = vrcp.f32 %v988_v5  ;;  %v696_v57 = vmul.f32 %v1912_v33, %v2173_v40  ;;  %v669_v38 = vmul.f32 %v2212_v7, %v1912_v33 }
 0x12e   :  { %v1618_v62 = vpop.eup %1617  ;;  %1637 = vrcp.f32 %v1020_v49  ;;  %v986_v52 = vadd.f32 1.0, %v1616_v13  ;;  %v667_v1 = vmul.f32 %v1912_v33, %v2219_v15  ;;  %v888_v63 = vmul.f32 1.442695, %v801_v46  ;;  %v2456_v13 = vld [vmem:[%s2678_s2] ss:$0 sm:$0xff] }
 0x12f   :  { %v1620_v53 = vpop.eup %1619  ;;  %1272 = vst [vmem:[%s2680_s4 + $0x170] sm:$0xff] %v1208_v41  ;;  %v1018_v60 = vadd.f32 1.0, %v1618_v62  ;;  %1639 = vpow2.f32 %v876_v12  ;;  %v2416_v36 = vadd.f32 %v1917_v35, %v696_v57  ;;  %v701_v12 = vmul.f32 %v2214_v9, %v1912_v33 }
 0x130   :  { %v1622_v55 = vpop.eup %1621  ;;  %1641 = vrcp.f32 %v986_v52  ;;  %v989_v14 = vadd.f32 1.0, %v1620_v53  ;;  %v2422_v0 = vadd.f32 %v1917_v35, %v669_v38  ;;  %v2437_v33 = vadd.f32 %v1917_v35, %v667_v1  ;;  %v2691_v53 = vld [vmem:[#allocation3_spill] sm:$0xff] }
 0x131   :  { %v1624_v29 = vpop.eup %1623  ;;  %1643 = vrcp.f32 %v1018_v60  ;;  %v1021_v42 = vadd.f32 1.0, %v1622_v55  ;;  %v831_v8 = vsub.f32 0.0, %v2416_v36  ;;  %v2429_v4 = vadd.f32 %v1917_v35, %v701_v12 }
 0x132   :  { %v1626_v19 = vpop.eup %1625  ;;  %v1174_v40 = vmul.f32 %v1624_v29, %v2134_v58  ;;  %1645 = vrcp.f32 %v989_v14  ;;  %v952_v5 = vmul.f32 1.442695, %v833_v25  ;;  %v804_v47 = vsub.f32 0.0, %v2422_v0 }
 0x133   :  { %v1628_v7 = vpop.eup %1627  ;;  %v1206_v23 = vmul.f32 %v1626_v19, %v2181_v26  ;;  %1647 = vrcp.f32 %v1021_v42  ;;  %v884_v35 = vmul.f32 1.442695, %v799_v2  ;;  %v702_v60 = vmul.f32 %v2456_v13, %v2691_v53 }
 0x134   :  { %v1630_v9 = vpop.eup %1629  ;;  %1238 = vst [vmem:[%s2680_s4 + $0x60] sm:$0xff] %v1174_v40  ;;  %v1177_v58 = vmul.f32 %v1628_v7, %v2191_v37  ;;  %1649 = vpow2.f32 %v2378_v18  ;;  %v948_v18 = vmul.f32 1.442695, %v831_v8  ;;  %v894_v46 = vmul.f32 1.442695, %v804_v47  ;;  %v2694_v47 = vld [vmem:[#allocation6_spill] sm:$0xff] }
 0x135   :  { %v1632_v26 = vpop.eup %1631  ;;  %1270 = vst [vmem:[%s2680_s4 + $0x160] sm:$0xff] %v1206_v23  ;;  %v1209_v15 = vmul.f32 %v1630_v9, %v2200_v34  ;;  %1651 = vpow2.f32 %v886_v39  ;;  %v836_v39 = vsub.f32 0.0, %v2429_v4 }
 0x136   :  { %v1634_v48 = vpop.eup %1633  ;;  %1241 = vst [vmem:[%s2680_s4 + $0x78] sm:$0xff] %v1177_v58  ;;  %v1175_v37 = vmul.f32 %v1632_v26, %v2207_v32  ;;  %1653 = vpow2.f32 %v950_v21  ;;  %v699_v32 = vmul.f32 %v2456_v13, %v2221_v17 }
 0x137   :  { %v1636_v49 = vpop.eup %1635  ;;  %1273 = vst [vmem:[%s2680_s4 + $0x178] sm:$0xff] %v1209_v15  ;;  %v1207_v34 = vmul.f32 %v1634_v48, %v2240_v59  ;;  %1655 = vpow2.f32 %v882_v16  ;;  %v802_v59 = vsub.f32 0.0, %v2437_v33  ;;  %v2690_v16 = vld [vmem:[#allocation2_spill] sm:$0xff]  ;;  %v958_v38 = vmul.f32 1.442695, %v836_v39 }
 0x138   :  { %v1638_v41 = vpop.eup %1637  ;;  %1239 = vst [vmem:[%s2680_s4 + $0x68] sm:$0xff] %v1175_v37  ;;  %v1180_v21 = vmul.f32 %v1636_v49, %v2245_v24  ;;  %1657 = vpow2.f32 %v946_v51  ;;  %v670_v62 = vmul.f32 %v2456_v13, %v2690_v16  ;;  %v2479_v51 = vld [vmem:[%s2679_s3] ss:$0 sm:$0xff]  ;;  %v673_v48 = vmul.f32 %v2456_v13, %v2694_v47  ;;  %v2695_v49 = vld [vmem:[#allocation7_spill] sm:$0xff] }
 0x139   :  { %v1640_v52 = vpop.eup %1639  ;;  %1271 = vst [vmem:[%s2680_s4 + $0x168] sm:$0xff] %v1207_v34  ;;  %v1212_v17 = vmul.f32 %v1638_v41, %v2252_v43  ;;  %1659 = vpow2.f32 %v888_v63  ;;  %v2482_v57 = vadd.f32 %v2479_v51, %v699_v32  ;;  %v2692_v43 = vld [vmem:[#allocation4_spill] sm:$0xff]  ;;  %v890_v19 = vmul.f32 1.442695, %v802_v59  ;;  %v2693_v63 = vld [vmem:[#allocation5_spill] sm:$0xff] }
 0x13a   :  { %v1642_v25 = vpop.eup %1641  ;;  %1244 = vst [vmem:[%s2680_s4 + $0x90] sm:$0xff] %v1180_v21  ;;  %v987_v24 = vadd.f32 1.0, %v1640_v52  ;;  %1661 = vpow2.f32 %v952_v5  ;;  %v668_v55 = vmul.f32 %v2456_v13, %v2692_v43  ;;  %v2491_v29 = vadd.f32 %v2479_v51, %v670_v62  ;;  %v2696_v21 = vld [vmem:[#allocation8_spill] sm:$0xff] }
 0x13b   :  { %v1644_v14 = vpop.eup %1643  ;;  %1276 = vst [vmem:[%s2680_s4 + $0x190] sm:$0xff] %v1212_v17  ;;  %v1178_v2 = vmul.f32 %v1642_v25, %v2256_v28  ;;  %1663 = vpow2.f32 %v884_v35  ;;  %v2495_v40 = vadd.f32 %v2479_v51, %v702_v60  ;;  %v834_v8 = vsub.f32 0.0, %v2482_v57 }
 0x13c   :  { %v1646_v42 = vpop.eup %1645  ;;  %v1210_v12 = vmul.f32 %v1644_v14, %v2287_v50  ;;  %1665 = vrcp.f32 %v987_v24  ;;  %v2502_v7 = vadd.f32 %v2479_v51, %v668_v55  ;;  %v805_v58 = vsub.f32 0.0, %v2491_v29 }
 0x13d   :  { %v1648_v1 = vpop.eup %1647  ;;  %1242 = vst [vmem:[%s2680_s4 + $0x80] sm:$0xff] %v1178_v2  ;;  %v1181_v28 = vmul.f32 %v1646_v42, %v2297_v22  ;;  %1667 = vpow2.f32 %v948_v18  ;;  %v700_v26 = vmul.f32 %v2456_v13, %v2693_v63  ;;  %v837_v5 = vsub.f32 0.0, %v2495_v40 }
 0x13e   :  { %v1650_v23 = vpop.eup %1649  ;;  %1274 = vst [vmem:[%s2680_s4 + $0x180] sm:$0xff] %v1210_v12  ;;  %v1213_v50 = vmul.f32 %v1648_v1, %v2308_v3  ;;  %1669 = vpow2.f32 %v894_v46  ;;  %v803_v18 = vsub.f32 0.0, %v2502_v7  ;;  %v705_v34 = vmul.f32 %v2456_v13, %v2695_v49 }
 0x13f   :  { %v1652_v9 = vpop.eup %1651  ;;  %1245 = vst [vmem:[%s2680_s4 + $0x98] sm:$0xff] %v1181_v28  ;;  %v1019_v22 = vadd.f32 1.0, %v1650_v23  ;;  %1671 = vpow2.f32 %v958_v38  ;;  %v2525_v41 = vadd.f32 %v2479_v51, %v700_v26  ;;  %v671_v59 = vmul.f32 %v2456_v13, %v2696_v21  ;;  %v2697_v23 = vld [vmem:[#allocation9_spill] sm:$0xff] }
 0x140   :  { %v1654_v15 = vpop.eup %1653  ;;  %1277 = vst [vmem:[%s2680_s4 + $0x198] sm:$0xff] %v1213_v50  ;;  %v992_v3 = vadd.f32 1.0, %v1652_v9  ;;  %1673 = vpow2.f32 %v890_v19  ;;  %v954_v52 = vmul.f32 1.442695, %v834_v8  ;;  %v2530_v17 = vadd.f32 %v2479_v51, %v673_v48 }
 0x141   :  { %v1656_v37 = vpop.eup %1655  ;;  %1675 = vrcp.f32 %v1019_v22  ;;  %v1024_v35 = vadd.f32 1.0, %v1654_v15  ;;  %v896_v60 = vmul.f32 1.442695, %v805_v58  ;;  %v2533_v25 = vadd.f32 %v2479_v51, %v705_v34  ;;  %v2698_v15 = vld [vmem:[#allocation10_spill] sm:$0xff] }
 0x142   :  { %v1658_v39 = vpop.eup %1657  ;;  %1677 = vrcp.f32 %v992_v3  ;;  %v990_v32 = vadd.f32 1.0, %v1656_v37  ;;  %v960_v55 = vmul.f32 1.442695, %v837_v5  ;;  %v892_v14 = vmul.f32 1.442695, %v803_v18 }
 0x143   :  { %v1660_v16 = vpop.eup %1659  ;;  %1679 = vrcp.f32 %v1024_v35  ;;  %v1022_v62 = vadd.f32 1.0, %v1658_v39  ;;  %v835_v42 = vsub.f32 0.0, %v2525_v41  ;;  %v2537_v12 = vadd.f32 %v2479_v51, %v671_v59 }
 0x144   :  { %v1662_v46 = vpop.eup %1661  ;;  %1681 = vrcp.f32 %v990_v32  ;;  %v993_v53 = vadd.f32 1.0, %v1660_v16  ;;  %v808_v28 = vsub.f32 0.0, %v2530_v17  ;;  %v703_v50 = vmul.f32 %v2456_v13, %v2697_v23 }
 0x145   :  { %v1664_v24 = vpop.eup %1663  ;;  %1683 = vrcp.f32 %v1022_v62  ;;  %v1025_v43 = vadd.f32 1.0, %v1662_v46  ;;  %v840_v22 = vsub.f32 0.0, %v2533_v25  ;;  %v674_v58 = vmul.f32 %v2456_v13, %v2274_v54 }
 0x146   :  { %v1666_v2 = vpop.eup %1665  ;;  %1685 = vrcp.f32 %v993_v53  ;;  %v991_v38 = vadd.f32 1.0, %v1664_v24  ;;  %v2550_v26 = vadd.f32 %v2479_v51, %v703_v50  ;;  %v706_v3 = vmul.f32 %v2456_v13, %v2698_v15 }
 0x147   :  { %v1668_v19 = vpop.eup %1667  ;;  %v1179_v1 = vmul.f32 %v1666_v2, %v2317_v10  ;;  %1687 = vrcp.f32 %v1025_v43  ;;  %v806_v48 = vsub.f32 0.0, %v2537_v12  ;;  %v672_v54 = vmul.f32 %v2456_v13, %v2281_v27 }
 0x148   :  { %v1670_v8 = vpop.eup %1669  ;;  %1689 = vrcp.f32 %v991_v38  ;;  %v1023_v9 = vadd.f32 1.0, %v1668_v19  ;;  %v956_v18 = vmul.f32 1.442695, %v835_v42  ;;  %v2558_v49 = vadd.f32 %v2479_v51, %v674_v58 }
 0x149   :  { %v1672_v63 = vpop.eup %1671  ;;  %1243 = vst [vmem:[%s2680_s4 + $0x88] sm:$0xff] %v1179_v1  ;;  %v996_v10 = vadd.f32 1.0, %v1670_v8  ;;  %1691 = vpow2.f32 %v954_v52  ;;  %v838_v32 = vsub.f32 0.0, %v2550_v26  ;;  %v2563_v21 = vadd.f32 %v2479_v51, %v706_v3 }
 0x14a   :  { %v1674_v5 = vpop.eup %1673  ;;  %1693 = vrcp.f32 %v1023_v9  ;;  %v1028_v47 = vadd.f32 1.0, %v1672_v63  ;;  %v902_v27 = vmul.f32 1.442695, %v808_v28  ;;  %v2567_v62 = vadd.f32 %v2479_v51, %v672_v54 }
 0x14b   :  { %v1676_v37 = vpop.eup %1675  ;;  %1695 = vrcp.f32 %v996_v10  ;;  %v994_v35 = vadd.f32 1.0, %v1674_v5  ;;  %v966_v46 = vmul.f32 1.442695, %v840_v22  ;;  %v898_v53 = vmul.f32 1.442695, %v806_v48 }
 0x14c   :  { %v1678_v34 = vpop.eup %1677  ;;  %v1211_v39 = vmul.f32 %v1676_v37, %v2347_v6  ;;  %1697 = vrcp.f32 %v1028_v47  ;;  %v809_v43 = vsub.f32 0.0, %v2558_v49  ;;  %v704_v2 = vmul.f32 %v2456_v13, %v2283_v30 }
 0x14d   :  { %v1680_v59 = vpop.eup %1679  ;;  %v1184_v16 = vmul.f32 %v1678_v34, %v2353_v61  ;;  %1699 = vrcp.f32 %v994_v35  ;;  %v841_v42 = vsub.f32 0.0, %v2563_v21  ;;  %v807_v30 = vsub.f32 0.0, %v2567_v62 }
 0x14e   :  { %v1682_v52 = vpop.eup %1681  ;;  %1275 = vst [vmem:[%s2680_s4 + $0x188] sm:$0xff] %v1211_v39  ;;  %v1216_v6 = vmul.f32 %v1680_v59, %v2363_v44  ;;  %1701 = vpow2.f32 %v896_v60  ;;  %v962_v60 = vmul.f32 1.442695, %v838_v32  ;;  %v2591_v13 = vadd.f32 %v2479_v51, %v704_v2 }
 0x14f   :  { %v1684_v24 = vpop.eup %1683  ;;  %1248 = vst [vmem:[%s2680_s4 + $0xb0] sm:$0xff] %v1184_v16  ;;  %v1182_v61 = vmul.f32 %v1682_v52, %v2370_v11  ;;  %1703 = vpow2.f32 %v960_v55  ;;  %v904_v1 = vmul.f32 1.442695, %v809_v43 }
 0x150   :  { %v1686_v38 = vpop.eup %1685  ;;  %1280 = vst [vmem:[%s2680_s4 + $0x1b0] sm:$0xff] %v1216_v6  ;;  %v1214_v44 = vmul.f32 %v1684_v24, %v2388_v20  ;;  %1705 = vpow2.f32 %v892_v14  ;;  %v839_v51 = vsub.f32 0.0, %v2591_v13 }
 0x151   :  { %v1688_v19 = vpop.eup %1687  ;;  %1246 = vst [vmem:[%s2680_s4 + $0xa0] sm:$0xff] %v1182_v61  ;;  %v1185_v11 = vmul.f32 %v1686_v38, %v2393_v31  ;;  %1707 = vpow2.f32 %v956_v18 }
 0x152   :  { %v1690_v55 = vpop.eup %1689  ;;  %1278 = vst [vmem:[%s2680_s4 + $0x1a0] sm:$0xff] %v1214_v44  ;;  %v1217_v20 = vmul.f32 %v1688_v19, %v2399_v56  ;;  %1709 = vpow2.f32 %v902_v27  ;;  %v968_v56 = vmul.f32 1.442695, %v841_v42  ;;  %v964_v58 = vmul.f32 1.442695, %v839_v51 }
 0x153   :  { %v1692_v14 = vpop.eup %1691  ;;  %1249 = vst [vmem:[%s2680_s4 + $0xb8] sm:$0xff] %v1185_v11  ;;  %v1183_v31 = vmul.f32 %v1690_v55, %v2402_v45  ;;  %1711 = vpow2.f32 %v966_v46  ;;  %v900_v45 = vmul.f32 1.442695, %v807_v30 }
 0x154   :  { %v1694_v28 = vpop.eup %1693  ;;  %1281 = vst [vmem:[%s2680_s4 + $0x1b8] sm:$0xff] %v1217_v20  ;;  %v1026_v23 = vadd.f32 1.0, %v1692_v14  ;;  %1713 = vpow2.f32 %v898_v53 }
 0x155   :  { %v1696_v50 = vpop.eup %1695  ;;  %1247 = vst [vmem:[%s2680_s4 + $0xa8] sm:$0xff] %v1183_v31  ;;  %v1215_v8 = vmul.f32 %v1694_v28, %v2416_v36  ;;  %1715 = vpow2.f32 %v962_v60 }
 0x156   :  { %v1698_v9 = vpop.eup %1697  ;;  %v1188_v22 = vmul.f32 %v1696_v50, %v2422_v0  ;;  %1717 = vrcp.f32 %v1026_v23 }
 0x157   :  { %v1700_v63 = vpop.eup %1699  ;;  %1279 = vst [vmem:[%s2680_s4 + $0x1a8] sm:$0xff] %v1215_v8  ;;  %v1220_v10 = vmul.f32 %v1698_v9, %v2429_v4  ;;  %1719 = vpow2.f32 %v904_v1 }
 0x158   :  { %v1702_v15 = vpop.eup %1701  ;;  %1252 = vst [vmem:[%s2680_s4 + $0xd0] sm:$0xff] %v1188_v22  ;;  %v1186_v36 = vmul.f32 %v1700_v63, %v2437_v33  ;;  %1721 = vpow2.f32 %v968_v56 }
 0x159   :  { %v1704_v3 = vpop.eup %1703  ;;  %1284 = vst [vmem:[%s2680_s4 + $0x1d0] sm:$0xff] %v1220_v10  ;;  %v997_v0 = vadd.f32 1.0, %v1702_v15  ;;  %1723 = vpow2.f32 %v900_v45 }
 0x15a   :  { %v1706_v5 = vpop.eup %1705  ;;  %1250 = vst [vmem:[%s2680_s4 + $0xc0] sm:$0xff] %v1186_v36  ;;  %v1029_v4 = vadd.f32 1.0, %v1704_v3  ;;  %1725 = vpow2.f32 %v964_v58 }
 0x15b   :  { %v1708_v47 = vpop.eup %1707  ;;  %1727 = vrcp.f32 %v997_v0  ;;  %v995_v48 = vadd.f32 1.0, %v1706_v5 }
 0x15c   :  { %v1710_v54 = vpop.eup %1709  ;;  %1729 = vrcp.f32 %v1029_v4  ;;  %v1027_v33 = vadd.f32 1.0, %v1708_v47 }
 0x15d   :  { %v1712_v37 = vpop.eup %1711  ;;  %1731 = vrcp.f32 %v995_v48  ;;  %v1000_v35 = vadd.f32 1.0, %v1710_v54 }
 0x15e   :  { %v1714_v18 = vpop.eup %1713  ;;  %1733 = vrcp.f32 %v1027_v33  ;;  %v1032_v34 = vadd.f32 1.0, %v1712_v37 }
 0x15f   :  { %v1716_v39 = vpop.eup %1715  ;;  %1735 = vrcp.f32 %v1000_v35  ;;  %v998_v32 = vadd.f32 1.0, %v1714_v18 }
 0x160   :  { %v1718_v59 = vpop.eup %1717  ;;  %1737 = vrcp.f32 %v1032_v34  ;;  %v1030_v16 = vadd.f32 1.0, %v1716_v39 }
 0x161   :  { %v1720_v27 = vpop.eup %1719  ;;  %v1218_v52 = vmul.f32 %v1718_v59, %v2482_v57  ;;  %1739 = vrcp.f32 %v998_v32 }
 0x162   :  { %v1722_v6 = vpop.eup %1721  ;;  %1741 = vrcp.f32 %v1030_v16  ;;  %v1001_v46 = vadd.f32 1.0, %v1720_v27 }
 0x163   :  { %v1724_v53 = vpop.eup %1723  ;;  %1282 = vst [vmem:[%s2680_s4 + $0x1c0] sm:$0xff] %v1218_v52  ;;  %v1033_v24 = vadd.f32 1.0, %v1722_v6 }
 0x164   :  { %v1726_v61 = vpop.eup %1725  ;;  %1743 = vrcp.f32 %v1001_v46  ;;  %v999_v43 = vadd.f32 1.0, %v1724_v53 }
 0x165   :  { %v1728_v2 = vpop.eup %1727  ;;  %1745 = vrcp.f32 %v1033_v24  ;;  %v1031_v38 = vadd.f32 1.0, %v1726_v61 }
 0x166   :  { %v1730_v44 = vpop.eup %1729  ;;  %v1189_v60 = vmul.f32 %v1728_v2, %v2491_v29  ;;  %1747 = vrcp.f32 %v999_v43 }
 0x167   :  { %v1732_v57 = vpop.eup %1731  ;;  %v1221_v42 = vmul.f32 %v1730_v44, %v2495_v40  ;;  %1749 = vrcp.f32 %v1031_v38 }
 0x168   :  { %v1734_v19 = vpop.eup %1733  ;;  %1253 = vst [vmem:[%s2680_s4 + $0xd8] sm:$0xff] %v1189_v60  ;;  %v1187_v11 = vmul.f32 %v1732_v57, %v2502_v7 }
 0x169   :  { %v1736_v30 = vpop.eup %1735  ;;  %1285 = vst [vmem:[%s2680_s4 + $0x1d8] sm:$0xff] %v1221_v42  ;;  %v1219_v55 = vmul.f32 %v1734_v19, %v2525_v41 }
 0x16a   :  { %v1738_v29 = vpop.eup %1737  ;;  %1251 = vst [vmem:[%s2680_s4 + $0xc8] sm:$0xff] %v1187_v11  ;;  %v1192_v40 = vmul.f32 %v1736_v30, %v2530_v17 }
 0x16b   :  { %v1740_v20 = vpop.eup %1739  ;;  %1283 = vst [vmem:[%s2680_s4 + $0x1c8] sm:$0xff] %v1219_v55  ;;  %v1224_v7 = vmul.f32 %v1738_v29, %v2533_v25 }
 0x16c   :  { %v1742_v14 = vpop.eup %1741  ;;  %1256 = vst [vmem:[%s2680_s4 + $0xf0] sm:$0xff] %v1192_v40  ;;  %v1190_v41 = vmul.f32 %v1740_v20, %v2537_v12 }
 0x16d   :  { %1288 = vst [vmem:[%s2680_s4 + $0x1f0] sm:$0xff] %v1224_v7  ;;  %v1222_v17 = vmul.f32 %v1742_v14, %v2550_v26 }
 0x16e   :  { %v1744_v31 = vpop.eup %1743  ;;  %1254 = vst [vmem:[%s2680_s4 + $0xe0] sm:$0xff] %v1190_v41 }
 0x16f   :  { %v1746_v1 = vpop.eup %1745  ;;  %1286 = vst [vmem:[%s2680_s4 + $0x1e0] sm:$0xff] %v1222_v17  ;;  %v1193_v25 = vmul.f32 %v1744_v31, %v2558_v49 }
 0x170   :  { %v1748_v51 = vpop.eup %1747  ;;  %v1225_v12 = vmul.f32 %v1746_v1, %v2563_v21 }
 0x171   :  { %v1750_v28 = vpop.eup %1749  ;;  %1257 = vst [vmem:[%s2680_s4 + $0xf8] sm:$0xff] %v1193_v25  ;;  %v1191_v26 = vmul.f32 %v1748_v51, %v2567_v62 }
 0x172   :  { %1289 = vst [vmem:[%s2680_s4 + $0x1f8] sm:$0xff] %v1225_v12  ;;  %v1223_v23 = vmul.f32 %v1750_v28, %v2591_v13 }
 0x173   :  { %1255 = vst [vmem:[%s2680_s4 + $0xe8] sm:$0xff] %v1191_v26 }
 0x174   :  { %1287 = vst [vmem:[%s2680_s4 + $0x1e8] sm:$0xff] %v1223_v23 }

// kernel: cspdarknet_fwd.42
= control target key start
LH: loop header
LB: loop body
LE: loop exit
PB: predicated region body
PF: predicated region fallthrough
CT: control target
= control target key end

     0   :  { %vm278_vm0 = vcmask 588800   ;;  %vm375_vm1 = vcmask 1043456   ;;  %s2750_s1 = inlined_call_operand.vmem [shape: bf16[72,128], index: 1, kind: input, shape index: {}]   ;;  %s2751_s0 = inlined_call_operand.vmem [shape: bf16[512,72], index: 0, kind: input, shape index: {}]   ;;  %s2752_s2 = inlined_call_operand.vmem [shape: f32[1,128], index: 2, kind: input, shape index: {}]   ;;  %s2753_s3 = inlined_call_operand.vmem [shape: f32[1,128], index: 3, kind: input, shape index: {}]   ;;  %s2754_s4 = inlined_call_operand.vmem [shape: f32[512,128], index: 4, kind: output, shape index: {}]  }
   0x1   :  { %v1520_v0 = vld [vmem:[%s2750_s1] sm:$0xff]   ;;  %v1521_v1 = vld [vmem:[%s2750_s1 + $0x8] sm:$0xff]   ;;  %v1522_v2 = vld [vmem:[%s2750_s1 + $0x10] sm:$0xff]  }
   0x2   :  { %1434 = vmatprep.subr.bf16.mxu0 %v1520_v0  ;;  %1508 = vmatprep.subr.bf16.mxu1 %v1520_v0  ;;  %v1525_v3 = vld [vmem:[%s2751_s0] sm:$0xff]   ;;  %v1523_v5 = vld [vmem:[%s2750_s1 + $0x18] sm:$0xff]   ;;  %v1527_v8 = vld [vmem:[%s2751_s0 + $0x8] sm:$0xff]  }
   0x3   :  { %1435 = vmatpush3.bf16.msra.mxu0 %v1520_v0  ;;  %1513 = vmatpush3.bf16.msra.mxu1 %v1520_v0  ;;  %v1526_v4 = vld [vmem:[%s2751_s0 + $0x80] sm:$0xff]   ;;  %v1528_v9 = vld [vmem:[%s2751_s0 + $0x88] sm:$0xff]   ;;  %v1529_v10 = vld [vmem:[%s2751_s0 + $0x10] sm:$0xff]  }
   0x4   :  { %1436 = vmatprep.subr.bf16.mxu0 %v1521_v1  ;;  %1509 = vmatprep.subr.bf16.mxu1 %v1521_v1  ;;  %v1524_v6 = vld [vmem:[%s2750_s1 + $0x20] ss:$0 sps:$4 sm:$0xff]   ;;  %v1530_v11 = vld [vmem:[%s2751_s0 + $0x90] sm:$0xff]   ;;  %v1531_v12 = vld [vmem:[%s2751_s0 + $0x18] sm:$0xff]  }
   0x5   :  { %1444 = vmatprep.mubr.msk.bf16.mxu0 %vm278_vm0, %v1525_v3  ;;  %1476 = vmatprep.mubr.msk.bf16.mxu1 %vm278_vm0, %v1526_v4  ;;  %v377_v7 = vsel %vm375_vm1, %v1524_v6, 0  ;;  %v1532_v13 = vld [vmem:[%s2751_s0 + $0x98] sm:$0xff]   ;;  %v1533_v14 = vld [vmem:[%s2751_s0 + $0x20] sm:$0xff]   ;;  %v1535_v16 = vld [vmem:[%s2751_s0 + $0x28] sm:$0xff]  }
   0x6   :  { %v1534_v15 = vld [vmem:[%s2751_s0 + $0xa0] sm:$0xff]   ;;  %v1536_v17 = vld [vmem:[%s2751_s0 + $0xa8] sm:$0xff]   ;;  %v1537_v18 = vld [vmem:[%s2751_s0 + $0x30] sm:$0xff]  }
   0x7   :  { %1437 = vmatpush3.bf16.msra.mxu0 %v1521_v1  ;;  %1514 = vmatpush3.bf16.msra.mxu1 %v1521_v1  ;;  %v1538_v19 = vld [vmem:[%s2751_s0 + $0xb0] sm:$0xff]   ;;  %v1539_v20 = vld [vmem:[%s2751_s0 + $0x38] sm:$0xff]   ;;  %v1541_v22 = vld [vmem:[%s2751_s0 + $0x40] sm:$0xff]  }
   0x8   :  { %1438 = vmatprep.subr.bf16.mxu0 %v1522_v2  ;;  %1510 = vmatprep.subr.bf16.mxu1 %v1522_v2  ;;  %v1540_v21 = vld [vmem:[%s2751_s0 + $0xb8] sm:$0xff]   ;;  %v1542_v23 = vld [vmem:[%s2751_s0 + $0xc0] sm:$0xff]   ;;  %v1543_v24 = vld [vmem:[%s2751_s0 + $0x48] sm:$0xff]  }
   0x9   :  { %v1544_v25 = vld [vmem:[%s2751_s0 + $0xc8] sm:$0xff]   ;;  %v1545_v26 = vld [vmem:[%s2751_s0 + $0x50] sm:$0xff]   ;;  %v1547_v28 = vld [vmem:[%s2751_s0 + $0x58] sm:$0xff]  }
   0xa   :  { %v1546_v27 = vld [vmem:[%s2751_s0 + $0xd0] sm:$0xff]   ;;  %v1548_v29 = vld [vmem:[%s2751_s0 + $0xd8] sm:$0xff]   ;;  %v1549_v30 = vld [vmem:[%s2751_s0 + $0x60] sm:$0xff]  }
   0xb   :  { %1439 = vmatpush3.bf16.msra.mxu0 %v1522_v2  ;;  %1515 = vmatpush3.bf16.msra.mxu1 %v1522_v2  ;;  %v1550_v31 = vld [vmem:[%s2751_s0 + $0xe0] sm:$0xff]   ;;  %v1551_v32 = vld [vmem:[%s2751_s0 + $0x68] sm:$0xff]   ;;  %v1553_v34 = vld [vmem:[%s2751_s0 + $0x70] sm:$0xff]  }
   0xc   :  { %1440 = vmatprep.subr.bf16.mxu0 %v1523_v5  ;;  %1511 = vmatprep.subr.bf16.mxu1 %v1523_v5  ;;  %v1552_v33 = vld [vmem:[%s2751_s0 + $0xe8] sm:$0xff]   ;;  %v1554_v35 = vld [vmem:[%s2751_s0 + $0xf0] sm:$0xff]   ;;  %v1555_v36 = vld [vmem:[%s2751_s0 + $0x78] sm:$0xff]  }
   0xd   :  { %v1556_v37 = vld [vmem:[%s2751_s0 + $0xf8] sm:$0xff]   ;;  %v1986_v38 = vld [vmem:[%s2752_s2] ss:$0 sm:$0xff] }
   0xe   :  { %v1991_v40 = vld [vmem:[%s2753_s3] ss:$0 sm:$0xff] }
   0xf   :  { %1441 = vmatpush3.bf16.msra.mxu0 %v1523_v5  ;;  %1516 = vmatpush3.bf16.msra.mxu1 %v1523_v5 }
  0x10   :  { %1518 = vmatprep.subr.msk.bf16.mxu0 %vm375_vm1, %v1524_v6  ;;  %1519 = vmatprep.subr.msk.bf16.mxu1 %vm375_vm1, %v1524_v6 }
  0x13   :  { %1443 = vmatpush3.bf16.msra.mxu0 %v377_v7  ;;  %1517 = vmatpush3.bf16.msra.mxu1 %v377_v7 }
  0x16   :  { %1445 = vmatmul.mubr.msk.bf16.vlgmr.msra.gmra.mrb[0].mxu0 %vm278_vm0, %v1527_v8  ;;  %1477 = vmatmul.mubr.msk.bf16.vlgmr.msra.gmra.mrb[0].mxu1 %vm278_vm0, %v1528_v9 }
  0x17   :  { %1448 = vmatprep.mubr.msk.bf16.mxu0 %vm278_vm0, %v1529_v10  ;;  %1480 = vmatprep.mubr.msk.bf16.mxu1 %vm278_vm0, %v1530_v11 }
  0x1e   :  { %1449 = vmatmul.mubr.msk.bf16.gmra.mrb[4].mxu0 %vm278_vm0, %v1531_v12  ;;  %1481 = vmatmul.mubr.msk.bf16.gmra.mrb[4].mxu1 %vm278_vm0, %v1532_v13 }
  0x1f   :  { %1452 = vmatprep.mubr.msk.bf16.mxu0 %vm278_vm0, %v1533_v14  ;;  %1484 = vmatprep.mubr.msk.bf16.mxu1 %vm278_vm0, %v1534_v15 }
  0x26   :  { %1453 = vmatmul.mubr.msk.bf16.gmra.mrb[8].mxu0 %vm278_vm0, %v1535_v16  ;;  %1485 = vmatmul.mubr.msk.bf16.gmra.mrb[8].mxu1 %vm278_vm0, %v1536_v17 }
  0x27   :  { %1456 = vmatprep.mubr.msk.bf16.mxu0 %vm278_vm0, %v1537_v18  ;;  %1488 = vmatprep.mubr.msk.bf16.mxu1 %vm278_vm0, %v1538_v19 }
  0x2e   :  { %1457 = vmatmul.mubr.msk.bf16.gmra.mrb[12].mxu0 %vm278_vm0, %v1539_v20  ;;  %1489 = vmatmul.mubr.msk.bf16.gmra.mrb[12].mxu1 %vm278_vm0, %v1540_v21 }
  0x2f   :  { %1460 = vmatprep.mubr.msk.bf16.mxu0 %vm278_vm0, %v1541_v22  ;;  %1492 = vmatprep.mubr.msk.bf16.mxu1 %vm278_vm0, %v1542_v23 }
  0x36   :  { %1461 = vmatmul.mubr.msk.bf16.gmra.mrb[16].mxu0 %vm278_vm0, %v1543_v24  ;;  %1493 = vmatmul.mubr.msk.bf16.gmra.mrb[16].mxu1 %vm278_vm0, %v1544_v25 }
  0x37   :  { %1464 = vmatprep.mubr.msk.bf16.mxu0 %vm278_vm0, %v1545_v26  ;;  %1496 = vmatprep.mubr.msk.bf16.mxu1 %vm278_vm0, %v1546_v27 }
  0x3e   :  { %1465 = vmatmul.mubr.msk.bf16.gmra.mrb[20].mxu0 %vm278_vm0, %v1547_v28  ;;  %1497 = vmatmul.mubr.msk.bf16.gmra.mrb[20].mxu1 %vm278_vm0, %v1548_v29 }
  0x3f   :  { %1468 = vmatprep.mubr.msk.bf16.mxu0 %vm278_vm0, %v1549_v30  ;;  %1500 = vmatprep.mubr.msk.bf16.mxu1 %vm278_vm0, %v1550_v31 }
  0x46   :  { %1469 = vmatmul.mubr.msk.bf16.gmra.mrb[24].mxu0 %vm278_vm0, %v1551_v32  ;;  %1501 = vmatmul.mubr.msk.bf16.gmra.mrb[24].mxu1 %vm278_vm0, %v1552_v33 }
  0x47   :  { %1472 = vmatprep.mubr.msk.bf16.mxu0 %vm278_vm0, %v1553_v34  ;;  %1504 = vmatprep.mubr.msk.bf16.mxu1 %vm278_vm0, %v1554_v35 }
  0x4e   :  { %1473 = vmatmul.mubr.msk.bf16.gmra.mrb[28].mxu0 %vm278_vm0, %v1555_v36  ;;  %1505 = vmatmul.mubr.msk.bf16.gmra.mrb[28].mxu1 %vm278_vm0, %v1556_v37 }
  0xe9   :  { %v1446_v39 = vpop.f32.mrb[0].mxu0  ;;  %v1478_v41 = vpop.f32.mrb[0].mxu1 }
  0xea   :  { %v677_v42 = vmul.f32 %v1446_v39, %v1986_v38  ;;  %v709_v43 = vmul.f32 %v1478_v41, %v1986_v38  ;;  %v413_v44 = vpop.f32.mrb[1].mxu0  ;;  %v541_v45 = vpop.f32.mrb[1].mxu1 }
  0xeb   :  { %v675_v46 = vmul.f32 %v1986_v38, %v413_v44  ;;  %v707_v47 = vmul.f32 %v1986_v38, %v541_v45  ;;  %v1447_v48 = vpop.f32.mrb[2].mxu0  ;;  %v1479_v49 = vpop.f32.mrb[2].mxu1 }
  0xec   :  { %v1998_v50 = vadd.f32 %v1991_v40, %v677_v42  ;;  %v2001_v51 = vadd.f32 %v1991_v40, %v709_v43  ;;  %v678_v52 = vmul.f32 %v1447_v48, %v1986_v38  ;;  %v710_v53 = vmul.f32 %v1479_v49, %v1986_v38  ;;  %v416_v54 = vpop.f32.mrb[3].mxu0  ;;  %v544_v55 = vpop.f32.mrb[3].mxu1 }
  0xed   :  { %v2006_v56 = vadd.f32 %v1991_v40, %v675_v46  ;;  %v2009_v57 = vadd.f32 %v1991_v40, %v707_v47  ;;  %v676_v58 = vmul.f32 %v1986_v38, %v416_v54  ;;  %v708_v59 = vmul.f32 %v1986_v38, %v544_v55 }
  0xee   :  { %v812_v60 = vsub.f32 0.0, %v1998_v50  ;;  %v844_v61 = vsub.f32 0.0, %v2001_v51  ;;  %v2016_v62 = vadd.f32 %v1991_v40, %v678_v52  ;;  %v2019_v63 = vadd.f32 %v1991_v40, %v710_v53 }
  0xef   :  { %v810_v0 = vsub.f32 0.0, %v2006_v56  ;;  %v842_v1 = vsub.f32 0.0, %v2009_v57  ;;  %v2024_v2 = vadd.f32 %v1991_v40, %v676_v58  ;;  %v2027_v3 = vadd.f32 %v1991_v40, %v708_v59 }
  0xf0   :  { %v878_v4 = vmul.f32 1.442695, %v812_v60  ;;  %v942_v5 = vmul.f32 1.442695, %v844_v61  ;;  %v813_v6 = vsub.f32 0.0, %v2016_v62  ;;  %v845_v7 = vsub.f32 0.0, %v2019_v63 }
  0xf1   :  { %v874_v8 = vmul.f32 1.442695, %v810_v0  ;;  %v938_v9 = vmul.f32 1.442695, %v842_v1  ;;  %v811_v10 = vsub.f32 0.0, %v2024_v2  ;;  %v843_v11 = vsub.f32 0.0, %v2027_v3 }
  0xf2   :  { %1557 = vpow2.f32 %v878_v4  ;;  %v880_v12 = vmul.f32 1.442695, %v813_v6  ;;  %v944_v13 = vmul.f32 1.442695, %v845_v7  ;;  %v1450_v14 = vpop.f32.mrb[4].mxu0  ;;  %v1482_v15 = vpop.f32.mrb[4].mxu1 }
  0xf3   :  { %1559 = vpow2.f32 %v942_v5  ;;  %v876_v16 = vmul.f32 1.442695, %v811_v10  ;;  %v940_v17 = vmul.f32 1.442695, %v843_v11  ;;  %v681_v18 = vmul.f32 %v1450_v14, %v1986_v38  ;;  %v429_v19 = vpop.f32.mrb[5].mxu0  ;;  %v557_v20 = vpop.f32.mrb[5].mxu1 }
  0xf4   :  { %1561 = vpow2.f32 %v874_v8  ;;  %v713_v21 = vmul.f32 %v1482_v15, %v1986_v38  ;;  %v679_v22 = vmul.f32 %v1986_v38, %v429_v19  ;;  %v711_v23 = vmul.f32 %v1986_v38, %v557_v20  ;;  %v1451_v24 = vpop.f32.mrb[6].mxu0  ;;  %v1483_v25 = vpop.f32.mrb[6].mxu1 }
  0xf5   :  { %1563 = vpow2.f32 %v938_v9  ;;  %v2038_v26 = vadd.f32 %v1991_v40, %v681_v18  ;;  %v682_v27 = vmul.f32 %v1451_v24, %v1986_v38  ;;  %v714_v28 = vmul.f32 %v1483_v25, %v1986_v38  ;;  %v432_v29 = vpop.f32.mrb[7].mxu0  ;;  %v560_v30 = vpop.f32.mrb[7].mxu1 }
  0xf6   :  { %1565 = vpow2.f32 %v880_v12  ;;  %v2043_v31 = vadd.f32 %v1991_v40, %v713_v21  ;;  %v2046_v32 = vadd.f32 %v1991_v40, %v679_v22  ;;  %v2049_v33 = vadd.f32 %v1991_v40, %v711_v23 }
  0xf7   :  { %1567 = vpow2.f32 %v944_v13  ;;  %v816_v34 = vsub.f32 0.0, %v2038_v26  ;;  %v2053_v35 = vadd.f32 %v1991_v40, %v682_v27  ;;  %v2056_v36 = vadd.f32 %v1991_v40, %v714_v28 }
  0xf8   :  { %1569 = vpow2.f32 %v876_v16  ;;  %v848_v37 = vsub.f32 0.0, %v2043_v31  ;;  %v814_v39 = vsub.f32 0.0, %v2046_v32  ;;  %v846_v41 = vsub.f32 0.0, %v2049_v33 }
  0xf9   :  { %1571 = vpow2.f32 %v940_v17  ;;  %v886_v42 = vmul.f32 1.442695, %v816_v34  ;;  %v817_v43 = vsub.f32 0.0, %v2053_v35  ;;  %v849_v44 = vsub.f32 0.0, %v2056_v36  ;;  %v1454_v45 = vpop.f32.mrb[8].mxu0  ;;  %v1486_v46 = vpop.f32.mrb[8].mxu1 }
  0xfa   :  { %v950_v47 = vmul.f32 1.442695, %v848_v37  ;;  %v882_v48 = vmul.f32 1.442695, %v814_v39  ;;  %v946_v49 = vmul.f32 1.442695, %v846_v41  ;;  %v680_v52 = vmul.f32 %v1986_v38, %v432_v29 }
  0xfb   :  { %1573 = vpow2.f32 %v886_v42  ;;  %v2064_v53 = vmul.f32 1.442695, %v817_v43  ;;  %v2066_v54 = vmul.f32 1.442695, %v849_v44  ;;  %v712_v55 = vmul.f32 %v1986_v38, %v560_v30  ;;  %v445_v58 = vpop.f32.mrb[9].mxu0  ;;  %v573_v59 = vpop.f32.mrb[9].mxu1 }
  0xfc   :  { %v1558_v60 = vpop.eup %1557  ;;  %1575 = vpow2.f32 %v950_v47  ;;  %v2070_v61 = vadd.f32 %v1991_v40, %v680_v52  ;;  %v685_v0 = vmul.f32 %v1454_v45, %v1986_v38  ;;  %v717_v1 = vmul.f32 %v1486_v46, %v1986_v38  ;;  %v1455_v4 = vpop.f32.mrb[10].mxu0 }
  0xfd   :  { %v1487_v5 = vpop.f32.mrb[10].mxu1  ;;  %v1560_v6 = vpop.eup %1559  ;;  %v1004_v7 = vadd.f32 1.0, %v1558_v60  ;;  %1577 = vpow2.f32 %v882_v48  ;;  %v2075_v8 = vadd.f32 %v1991_v40, %v712_v55  ;;  %v683_v9 = vmul.f32 %v1986_v38, %v445_v58 }
  0xfe   :  { %v448_v10 = vpop.f32.mrb[11].mxu0  ;;  %v2078_v11 = vpop.f32.mrb[11].mxu1  ;;  %v1036_v13 = vadd.f32 1.0, %v1560_v6  ;;  %1579 = vpow2.f32 %v946_v49  ;;  %v815_v14 = vsub.f32 0.0, %v2070_v61  ;;  %v2082_v15 = vadd.f32 %v1991_v40, %v685_v0 }
  0xff   :  { %v1562_v12 = vpop.eup %1561  ;;  %1581 = vrcp.f32 %v1004_v7  ;;  %v847_v18 = vsub.f32 0.0, %v2075_v8  ;;  %v2086_v19 = vadd.f32 %v1991_v40, %v717_v1  ;;  %v2101_v41 = vadd.f32 %v1991_v40, %v683_v9 }
 0x100   :  { %v1564_v16 = vpop.eup %1563  ;;  %v1002_v17 = vadd.f32 1.0, %v1562_v12  ;;  %1583 = vrcp.f32 %v1036_v13  ;;  %v2088_v22 = vmul.f32 1.442695, %v815_v14  ;;  %v820_v23 = vsub.f32 0.0, %v2082_v15 }
 0x101   :  { %v1566_v20 = vpop.eup %1565  ;;  %v1034_v21 = vadd.f32 1.0, %v1564_v16  ;;  %v2091_v27 = vmul.f32 1.442695, %v847_v18  ;;  %v852_v28 = vsub.f32 0.0, %v2086_v19  ;;  %v2094_v29 = vpop.f32.mrb[12].mxu0  ;;  %v715_v47 = vmul.f32 %v1986_v38, %v573_v59 }
 0x102   :  { %v1568_v24 = vpop.eup %1567  ;;  %1585 = vrcp.f32 %v1002_v17  ;;  %v1005_v25 = vadd.f32 1.0, %v1566_v20  ;;  %v2096_v30 = vpop.f32.mrb[12].mxu1  ;;  %v2098_v39 = vmul.f32 1.442695, %v820_v23  ;;  %v818_v55 = vsub.f32 0.0, %v2101_v41 }
 0x103   :  { %v1570_v34 = vpop.eup %1569  ;;  %1587 = vrcp.f32 %v1034_v21  ;;  %v1037_v37 = vadd.f32 1.0, %v1568_v24  ;;  %v2103_v42 = vpop.f32.mrb[13].mxu0  ;;  %v2107_v46 = vmul.f32 1.442695, %v852_v28  ;;  %v686_v58 = vmul.f32 %v1455_v4, %v1986_v38 }
 0x104   :  { %v2105_v43 = vpop.f32.mrb[13].mxu1  ;;  %v1572_v44 = vpop.eup %1571  ;;  %1589 = vrcp.f32 %v1005_v25  ;;  %v1003_v45 = vadd.f32 1.0, %v1570_v34  ;;  %v2121_v6 = vadd.f32 %v1991_v40, %v715_v47  ;;  %v718_v59 = vmul.f32 %v1487_v5, %v1986_v38 }
 0x105   :  { %v2110_v48 = vpop.f32.mrb[14].mxu0  ;;  %v2112_v49 = vpop.f32.mrb[14].mxu1  ;;  %1591 = vrcp.f32 %v1037_v37  ;;  %v1035_v52 = vadd.f32 1.0, %v1572_v44  ;;  %v684_v7 = vmul.f32 %v1986_v38, %v448_v10  ;;  %v2125_v13 = vmul.f32 1.442695, %v818_v55 }
 0x106   :  { %v2116_v60 = vpop.f32.mrb[15].mxu0  ;;  %v2118_v0 = vpop.f32.mrb[15].mxu1  ;;  %1593 = vrcp.f32 %v1003_v45  ;;  %v2128_v4 = vadd.f32 %v1991_v40, %v686_v58  ;;  %v850_v17 = vsub.f32 0.0, %v2121_v6  ;;  %v2133_v18 = vadd.f32 %v1991_v40, %v718_v59 }
 0x107   :  { %v1574_v1 = vpop.eup %1573  ;;  %1595 = vrcp.f32 %v1035_v52  ;;  %v2137_v21 = vadd.f32 %v1991_v40, %v684_v7  ;;  %v716_v7 = vmul.f32 %v1986_v38, %v2078_v11 }
 0x108   :  { %v1576_v9 = vpop.eup %1575  ;;  %v1008_v12 = vadd.f32 1.0, %v1574_v1  ;;  %1597 = vpow2.f32 %v2064_v53  ;;  %v821_v20 = vsub.f32 0.0, %v2128_v4  ;;  %v954_v25 = vmul.f32 1.442695, %v850_v17 }
 0x109   :  { %v1578_v14 = vpop.eup %1577  ;;  %v1040_v16 = vadd.f32 1.0, %v1576_v9  ;;  %v853_v28 = vsub.f32 0.0, %v2133_v18  ;;  %v2140_v53 = vpop.f32.mrb[16].mxu0  ;;  %v819_v47 = vsub.f32 0.0, %v2137_v21 }
 0x10a   :  { %v1580_v5 = vpop.eup %1579  ;;  %1599 = vrcp.f32 %v1008_v12  ;;  %v1006_v10 = vadd.f32 1.0, %v1578_v14  ;;  %v2142_v34 = vpop.f32.mrb[16].mxu1  ;;  %v896_v45 = vmul.f32 1.442695, %v821_v20 }
 0x10b   :  { %v1582_v23 = vpop.eup %1581  ;;  %1601 = vrcp.f32 %v1040_v16  ;;  %v1038_v24 = vadd.f32 1.0, %v1580_v5  ;;  %v2146_v52 = vpop.f32.mrb[17].mxu0  ;;  %v2151_v59 = vmul.f32 1.442695, %v853_v28  ;;  %v689_v16 = vmul.f32 %v2094_v29, %v1986_v38 }
 0x10c   :  { %v1584_v37 = vpop.eup %1583  ;;  %v1196_v44 = vmul.f32 %v1582_v23, %v1998_v50  ;;  %1603 = vrcp.f32 %v1006_v10  ;;  %v2148_v55 = vpop.f32.mrb[17].mxu1 }
 0x10d   :  { %v1586_v58 = vpop.eup %1585  ;;  %v1228_v1 = vmul.f32 %v1584_v37, %v2001_v51  ;;  %1605 = vrcp.f32 %v1038_v24  ;;  %v2155_v9 = vpop.f32.mrb[18].mxu0  ;;  %v2164_v51 = vmul.f32 1.442695, %v819_v47  ;;  %v2188_v23 = vadd.f32 %v1991_v40, %v689_v16 }
 0x10e   :  { %v2157_v50 = vpop.f32.mrb[18].mxu1  ;;  %v1588_v12 = vpop.eup %1587  ;;  %1260 = vst [vmem:[%s2754_s4 + $0x10] sm:$0xff] %v1196_v44  ;;  %v1194_v14 = vmul.f32 %v1586_v58, %v2006_v56  ;;  %1607 = vpow2.f32 %v2066_v54  ;;  %v2178_v56 = vadd.f32 %v1991_v40, %v716_v7  ;;  %v721_v54 = vmul.f32 %v2096_v30, %v1986_v38 }
 0x10f   :  { %v2168_v17 = vpop.f32.mrb[19].mxu0  ;;  %v2170_v11 = vpop.f32.mrb[19].mxu1  ;;  %1292 = vst [vmem:[%s2754_s4 + $0x110] sm:$0xff] %v1228_v1  ;;  %v1226_v10 = vmul.f32 %v1588_v12, %v2009_v57  ;;  %1609 = vpow2.f32 %v2088_v22  ;;  %v687_v57 = vmul.f32 %v1986_v38, %v2103_v42  ;;  %v824_v28 = vsub.f32 0.0, %v2188_v23 }
 0x110   :  { %v1590_v5 = vpop.eup %1589  ;;  %1258 = vst [vmem:[%s2754_s4] sm:$0xff] %v1194_v14  ;;  %1611 = vpow2.f32 %v2091_v27  ;;  %v851_v24 = vsub.f32 0.0, %v2178_v56 }
 0x111   :  { %v1592_v29 = vpop.eup %1591  ;;  %v1197_v20 = vmul.f32 %v1590_v5, %v2016_v62  ;;  %1290 = vst [vmem:[%s2754_s4 + $0x100] sm:$0xff] %v1226_v10  ;;  %1613 = vpow2.f32 %v2098_v39  ;;  %v2199_v62 = vadd.f32 %v1991_v40, %v721_v54  ;;  %v902_v7 = vmul.f32 1.442695, %v824_v28 }
 0x112   :  { %v1594_v22 = vpop.eup %1593  ;;  %v1229_v30 = vmul.f32 %v1592_v29, %v2019_v63  ;;  %1615 = vpow2.f32 %v2107_v46  ;;  %v2208_v63 = vadd.f32 %v1991_v40, %v687_v57  ;;  %v956_v44 = vmul.f32 1.442695, %v851_v24  ;;  %v2218_v46 = vpop.f32.mrb[20].mxu1 }
 0x113   :  { %v1596_v27 = vpop.eup %1595  ;;  %1261 = vst [vmem:[%s2754_s4 + $0x18] sm:$0xff] %v1197_v20  ;;  %v1195_v42 = vmul.f32 %v1594_v22, %v2024_v2  ;;  %1617 = vpow2.f32 %v2125_v13  ;;  %v856_v47 = vsub.f32 0.0, %v2199_v62  ;;  %v2216_v2 = vpop.f32.mrb[20].mxu0  ;;  %v690_v22 = vmul.f32 %v2110_v48, %v1986_v38 }
 0x114   :  { %v1598_v39 = vpop.eup %1597  ;;  %1293 = vst [vmem:[%s2754_s4 + $0x118] sm:$0xff] %v1229_v30  ;;  %v1227_v37 = vmul.f32 %v1596_v27, %v2027_v3  ;;  %1619 = vpow2.f32 %v954_v25  ;;  %v822_v12 = vsub.f32 0.0, %v2208_v63  ;;  %v2224_v3 = vpop.f32.mrb[21].mxu0  ;;  %v719_v25 = vmul.f32 %v1986_v38, %v2105_v43 }
 0x115   :  { %v1600_v58 = vpop.eup %1599  ;;  %1259 = vst [vmem:[%s2754_s4 + $0x8] sm:$0xff] %v1195_v42  ;;  %v1009_v1 = vadd.f32 1.0, %v1598_v39  ;;  %v2226_v13 = vpop.f32.mrb[21].mxu1  ;;  %1621 = vpow2.f32 %v896_v45  ;;  %v2232_v5 = vmul.f32 1.442695, %v856_v47  ;;  %v722_v24 = vmul.f32 %v2112_v49, %v1986_v38 }
 0x116   :  { %v1602_v14 = vpop.eup %1601  ;;  %1291 = vst [vmem:[%s2754_s4 + $0x108] sm:$0xff] %v1227_v37  ;;  %v1200_v16 = vmul.f32 %v1600_v58, %v2038_v26  ;;  %v2236_v10 = vpop.f32.mrb[22].mxu0  ;;  %v2241_v57 = vmul.f32 1.442695, %v822_v12  ;;  %v2265_v42 = vadd.f32 %v1991_v40, %v690_v22 }
 0x117   :  { %v2238_v54 = vpop.f32.mrb[22].mxu1  ;;  %v1604_v29 = vpop.eup %1603  ;;  %v1232_v20 = vmul.f32 %v1602_v14, %v2043_v31  ;;  %1623 = vrcp.f32 %v1009_v1  ;;  %v2255_v31 = vadd.f32 %v1991_v40, %v719_v25  ;;  %v2274_v39 = vadd.f32 %v1991_v40, %v722_v24 }
 0x118   :  { %v2245_v26 = vpop.f32.mrb[23].mxu0  ;;  %v2247_v45 = vpop.f32.mrb[23].mxu1  ;;  %1264 = vst [vmem:[%s2754_s4 + $0x30] sm:$0xff] %v1200_v16  ;;  %v1198_v43 = vmul.f32 %v1604_v29, %v2046_v32  ;;  %1625 = vpow2.f32 %v2151_v59  ;;  %v688_v32 = vmul.f32 %v1986_v38, %v2116_v60  ;;  %v825_v60 = vsub.f32 0.0, %v2265_v42 }
 0x119   :  { %v1606_v30 = vpop.eup %1605  ;;  %1296 = vst [vmem:[%s2754_s4 + $0x130] sm:$0xff] %v1232_v20  ;;  %1627 = vpow2.f32 %v2164_v51  ;;  %v854_v28 = vsub.f32 0.0, %v2255_v31  ;;  %v857_v1 = vsub.f32 0.0, %v2274_v39  ;;  %v2286_v12 = vpop.f32.mrb[24].mxu0 }
 0x11a   :  { %v1608_v48 = vpop.eup %1607  ;;  %v1230_v27 = vmul.f32 %v1606_v30, %v2049_v33  ;;  %1262 = vst [vmem:[%s2754_s4 + $0x20] sm:$0xff] %v1198_v43  ;;  %1629 = vpow2.f32 %v956_v44  ;;  %v2281_v37 = vadd.f32 %v1991_v40, %v688_v32  ;;  %v2288_v14 = vpop.f32.mrb[24].mxu1 }
 0x11b   :  { %v1610_v59 = vpop.eup %1609  ;;  %v1041_v49 = vadd.f32 1.0, %v1608_v48  ;;  %1631 = vpow2.f32 %v902_v7  ;;  %v2283_v58 = vmul.f32 1.442695, %v854_v28  ;;  %v2290_v7 = vmul.f32 1.442695, %v825_v60  ;;  %v2293_v20 = vpop.f32.mrb[25].mxu0 }
 0x11c   :  { %v1612_v33 = vpop.eup %1611  ;;  %1294 = vst [vmem:[%s2754_s4 + $0x120] sm:$0xff] %v1230_v27  ;;  %v1007_v51 = vadd.f32 1.0, %v1610_v59  ;;  %v823_v29 = vsub.f32 0.0, %v2281_v37  ;;  %v2295_v22 = vpop.f32.mrb[25].mxu1  ;;  %v2297_v24 = vmul.f32 1.442695, %v857_v1  ;;  %v720_v48 = vmul.f32 %v1986_v38, %v2118_v0 }
 0x11d   :  { %v1614_v47 = vpop.eup %1613  ;;  %1633 = vrcp.f32 %v1041_v49  ;;  %v1039_v44 = vadd.f32 1.0, %v1612_v33  ;;  %v2301_v27 = vpop.f32.mrb[26].mxu0  ;;  %v693_v33 = vmul.f32 %v2140_v53, %v1986_v38  ;;  %v725_v1 = vmul.f32 %v2142_v34, %v1986_v38 }
 0x11e   :  { %v1616_v16 = vpop.eup %1615  ;;  %1635 = vrcp.f32 %v1007_v51  ;;  %v1012_v25 = vadd.f32 1.0, %v1614_v47  ;;  %2755 = vst [vmem:[#allocation2_spill] sm:$0xff] %v2301_v27  ;;  %v2303_v32 = vpop.f32.mrb[26].mxu1  ;;  %v2305_v28 = vmul.f32 1.442695, %v823_v29  ;;  %v2314_v0 = vadd.f32 %v1991_v40, %v720_v48 }
 0x11f   :  { %v1618_v30 = vpop.eup %1617  ;;  %1637 = vrcp.f32 %v1039_v44  ;;  %v1044_v43 = vadd.f32 1.0, %v1616_v16  ;;  %2756 = vst [vmem:[#allocation3_spill] sm:$0xff] %v2303_v32  ;;  %v2309_v51 = vpop.f32.mrb[27].mxu0  ;;  %v2319_v29 = vadd.f32 %v1991_v40, %v693_v33  ;;  %v691_v53 = vmul.f32 %v1986_v38, %v2146_v52 }
 0x120   :  { %v1620_v59 = vpop.eup %1619  ;;  %1639 = vrcp.f32 %v1012_v25  ;;  %v1010_v49 = vadd.f32 1.0, %v1618_v30  ;;  %2757 = vst [vmem:[#allocation4_spill] sm:$0xff] %v2309_v51  ;;  %v2311_v60 = vpop.f32.mrb[27].mxu1  ;;  %v2326_v48 = vadd.f32 %v1991_v40, %v725_v1 }
 0x121   :  { %2758 = vst [vmem:[#allocation5_spill] sm:$0xff] %v2311_v60  ;;  %v1622_v47 = vpop.eup %1621  ;;  %1641 = vrcp.f32 %v1044_v43  ;;  %v1042_v44 = vadd.f32 1.0, %v1620_v59  ;;  %v855_v43 = vsub.f32 0.0, %v2314_v0  ;;  %v2330_v33 = vadd.f32 %v1991_v40, %v691_v53  ;;  %v2337_v1 = vpop.f32.mrb[28].mxu0 }
 0x122   :  { %v1624_v16 = vpop.eup %1623  ;;  %1643 = vrcp.f32 %v1010_v49  ;;  %v1013_v25 = vadd.f32 1.0, %v1622_v47  ;;  %v828_v49 = vsub.f32 0.0, %v2319_v29  ;;  %2759 = vst [vmem:[#allocation6_spill] sm:$0xff] %v2337_v1  ;;  %v2341_v51 = vpop.f32.mrb[29].mxu0 }
 0x123   :  { %v1626_v30 = vpop.eup %1625  ;;  %v1201_v60 = vmul.f32 %v1624_v16, %v2053_v35  ;;  %1645 = vrcp.f32 %v1042_v44  ;;  %v964_v52 = vmul.f32 1.442695, %v855_v43  ;;  %v860_v44 = vsub.f32 0.0, %v2326_v48  ;;  %v2339_v16 = vpop.f32.mrb[28].mxu1  ;;  %2761 = vst [vmem:[#allocation8_spill] sm:$0xff] %v2341_v51 }
 0x124   :  { %v1628_v59 = vpop.eup %1627  ;;  %1647 = vrcp.f32 %v1013_v25  ;;  %v1045_v34 = vadd.f32 1.0, %v1626_v30  ;;  %2760 = vst [vmem:[#allocation7_spill] sm:$0xff] %v2339_v16  ;;  %v910_v53 = vmul.f32 1.442695, %v828_v49  ;;  %v2343_v32 = vpop.f32.mrb[29].mxu1  ;;  %v723_v43 = vmul.f32 %v1986_v38, %v2148_v55 }
 0x125   :  { %v1630_v47 = vpop.eup %1629  ;;  %1265 = vst [vmem:[%s2754_s4 + $0x38] sm:$0xff] %v1201_v60  ;;  %v1011_v35 = vadd.f32 1.0, %v1628_v59  ;;  %1649 = vpow2.f32 %v2232_v5  ;;  %2762 = vst [vmem:[#allocation9_spill] sm:$0xff] %v2343_v32  ;;  %v826_v5 = vsub.f32 0.0, %v2330_v33  ;;  %v2348_v59 = vpop.f32.mrb[30].mxu0 }
 0x126   :  { %v1632_v25 = vpop.eup %1631  ;;  %1651 = vrcp.f32 %v1045_v34  ;;  %v1043_v30 = vadd.f32 1.0, %v1630_v47  ;;  %v2350_v1 = vpop.f32.mrb[30].mxu1  ;;  %v974_v49 = vmul.f32 1.442695, %v860_v44  ;;  %v694_v47 = vmul.f32 %v2155_v9, %v1986_v38 }
 0x127   :  { %v1634_v27 = vpop.eup %1633  ;;  %1653 = vrcp.f32 %v1011_v35  ;;  %v1016_v60 = vadd.f32 1.0, %v1632_v25  ;;  %2763 = vst [vmem:[#allocation10_spill] sm:$0xff] %v2350_v1  ;;  %v2355_v32 = vpop.f32.mrb[31].mxu0  ;;  %v2361_v55 = vadd.f32 %v1991_v40, %v723_v43  ;;  %v726_v1 = vmul.f32 %v2157_v50, %v1986_v38 }
 0x128   :  { %v1636_v16 = vpop.eup %1635  ;;  %v1233_v34 = vmul.f32 %v1634_v27, %v2056_v36  ;;  %1655 = vrcp.f32 %v1043_v30  ;;  %v2357_v35 = vpop.f32.mrb[31].mxu1  ;;  %v2371_v27 = vadd.f32 %v1991_v40, %v694_v47  ;;  %v906_v30 = vmul.f32 1.442695, %v826_v5 }
 0x129   :  { %v1638_v25 = vpop.eup %1637  ;;  %v1199_v51 = vmul.f32 %v1636_v16, %v2070_v61  ;;  %1657 = vrcp.f32 %v1016_v60  ;;  %v692_v61 = vmul.f32 %v1986_v38, %v2168_v17  ;;  %v858_v16 = vsub.f32 0.0, %v2361_v55 }
 0x12a   :  { %v1640_v36 = vpop.eup %1639  ;;  %1297 = vst [vmem:[%s2754_s4 + $0x138] sm:$0xff] %v1233_v34  ;;  %v1231_v9 = vmul.f32 %v1638_v25, %v2075_v8  ;;  %1659 = vpow2.f32 %v2241_v57  ;;  %v2382_v8 = vadd.f32 %v1991_v40, %v726_v1  ;;  %v724_v5 = vmul.f32 %v1986_v38, %v2170_v11 }
 0x12b   :  { %v1642_v44 = vpop.eup %1641  ;;  %1263 = vst [vmem:[%s2754_s4 + $0x28] sm:$0xff] %v1199_v51  ;;  %v1204_v50 = vmul.f32 %v1640_v36, %v2082_v15  ;;  %1661 = vpow2.f32 %v2283_v58  ;;  %v829_v51 = vsub.f32 0.0, %v2371_v27  ;;  %v2391_v15 = vadd.f32 %v1991_v40, %v692_v61 }
 0x12c   :  { %v1644_v57 = vpop.eup %1643  ;;  %1295 = vst [vmem:[%s2754_s4 + $0x128] sm:$0xff] %v1231_v9  ;;  %v1236_v17 = vmul.f32 %v1642_v44, %v2086_v19  ;;  %1663 = vpow2.f32 %v2290_v7  ;;  %v861_v60 = vsub.f32 0.0, %v2382_v8  ;;  %v970_v43 = vmul.f32 1.442695, %v858_v16 }
 0x12d   :  { %v1646_v58 = vpop.eup %1645  ;;  %1268 = vst [vmem:[%s2754_s4 + $0x50] sm:$0xff] %v1204_v50  ;;  %v1202_v1 = vmul.f32 %v1644_v57, %v2101_v41  ;;  %1665 = vpow2.f32 %v2297_v24  ;;  %v912_v34 = vmul.f32 1.442695, %v829_v51  ;;  %v827_v24 = vsub.f32 0.0, %v2391_v15 }
 0x12e   :  { %v1648_v19 = vpop.eup %1647  ;;  %1300 = vst [vmem:[%s2754_s4 + $0x150] sm:$0xff] %v1236_v17  ;;  %v1234_v7 = vmul.f32 %v1646_v58, %v2121_v6  ;;  %1667 = vpow2.f32 %v2305_v28  ;;  %v976_v28 = vmul.f32 1.442695, %v861_v60  ;;  %v697_v36 = vmul.f32 %v2216_v2, %v1986_v38 }
 0x12f   :  { %v1650_v47 = vpop.eup %1649  ;;  %1266 = vst [vmem:[%s2754_s4 + $0x40] sm:$0xff] %v1202_v1  ;;  %v1205_v41 = vmul.f32 %v1648_v19, %v2128_v4  ;;  %1669 = vpow2.f32 %v964_v52  ;;  %v2421_v11 = vadd.f32 %v1991_v40, %v724_v5  ;;  %v729_v52 = vmul.f32 %v2218_v46, %v1986_v38 }
 0x130   :  { %v1652_v25 = vpop.eup %1651  ;;  %1298 = vst [vmem:[%s2754_s4 + $0x140] sm:$0xff] %v1234_v7  ;;  %v1048_v6 = vadd.f32 1.0, %v1650_v47  ;;  %1671 = vpow2.f32 %v910_v53  ;;  %v2427_v2 = vadd.f32 %v1991_v40, %v697_v36  ;;  %v695_v44 = vmul.f32 %v1986_v38, %v2224_v3 }
 0x131   :  { %v1654_v9 = vpop.eup %1653  ;;  %1269 = vst [vmem:[%s2754_s4 + $0x58] sm:$0xff] %v1205_v41  ;;  %v1237_v4 = vmul.f32 %v1652_v25, %v2133_v18  ;;  %1673 = vpow2.f32 %v974_v49  ;;  %v859_v46 = vsub.f32 0.0, %v2421_v11  ;;  %v2437_v49 = vadd.f32 %v1991_v40, %v729_v52 }
 0x132   :  { %v1656_v61 = vpop.eup %1655  ;;  %v1203_v53 = vmul.f32 %v1654_v9, %v2137_v21  ;;  %1675 = vrcp.f32 %v1048_v6  ;;  %v2444_v16 = vadd.f32 %v1991_v40, %v695_v44  ;;  %v908_v17 = vmul.f32 1.442695, %v827_v24 }
 0x133   :  { %v1658_v50 = vpop.eup %1657  ;;  %1301 = vst [vmem:[%s2754_s4 + $0x158] sm:$0xff] %v1237_v4  ;;  %v1235_v18 = vmul.f32 %v1656_v61, %v2178_v56  ;;  %1677 = vpow2.f32 %v906_v30  ;;  %v832_v1 = vsub.f32 0.0, %v2427_v2  ;;  %v864_v19 = vsub.f32 0.0, %v2437_v49 }
 0x134   :  { %v1660_v21 = vpop.eup %1659  ;;  %1267 = vst [vmem:[%s2754_s4 + $0x48] sm:$0xff] %v1203_v53  ;;  %v1208_v3 = vmul.f32 %v1658_v50, %v2188_v23  ;;  %1679 = vpow2.f32 %v970_v43  ;;  %v2452_v23 = vmul.f32 1.442695, %v859_v46  ;;  %v727_v7 = vmul.f32 %v1986_v38, %v2226_v13 }
 0x135   :  { %v1662_v57 = vpop.eup %1661  ;;  %1299 = vst [vmem:[%s2754_s4 + $0x148] sm:$0xff] %v1235_v18  ;;  %v1014_v56 = vadd.f32 1.0, %v1660_v21  ;;  %1681 = vpow2.f32 %v912_v34  ;;  %v830_v47 = vsub.f32 0.0, %v2444_v16  ;;  %v698_v41 = vmul.f32 %v2236_v10, %v1986_v38 }
 0x136   :  { %v1664_v51 = vpop.eup %1663  ;;  %1272 = vst [vmem:[%s2754_s4 + $0x70] sm:$0xff] %v1208_v3  ;;  %v1046_v58 = vadd.f32 1.0, %v1662_v57  ;;  %1683 = vpow2.f32 %v976_v28  ;;  %v2462_v25 = vadd.f32 %v1991_v40, %v727_v7  ;;  %v730_v6 = vmul.f32 %v2238_v54, %v1986_v38 }
 0x137   :  { %v1666_v30 = vpop.eup %1665  ;;  %1685 = vrcp.f32 %v1014_v56  ;;  %v1017_v60 = vadd.f32 1.0, %v1664_v51  ;;  %v2467_v36 = vadd.f32 %v1991_v40, %v698_v41  ;;  %v696_v9 = vmul.f32 %v1986_v38, %v2245_v26 }
 0x138   :  { %v1668_v43 = vpop.eup %1667  ;;  %1687 = vrcp.f32 %v1046_v58  ;;  %v1049_v34 = vadd.f32 1.0, %v1666_v30  ;;  %v862_v52 = vsub.f32 0.0, %v2462_v25  ;;  %v2473_v61 = vadd.f32 %v1991_v40, %v730_v6 }
 0x139   :  { %v1670_v24 = vpop.eup %1669  ;;  %1689 = vrcp.f32 %v1017_v60  ;;  %v1015_v5 = vadd.f32 1.0, %v1668_v43  ;;  %v918_v44 = vmul.f32 1.442695, %v832_v1  ;;  %v2476_v50 = vadd.f32 %v1991_v40, %v696_v9 }
 0x13a   :  { %v1672_v28 = vpop.eup %1671  ;;  %1691 = vrcp.f32 %v1049_v34  ;;  %v1047_v13 = vadd.f32 1.0, %v1670_v24  ;;  %v982_v26 = vmul.f32 1.442695, %v864_v19  ;;  %v914_v21 = vmul.f32 1.442695, %v830_v47 }
 0x13b   :  { %v1674_v4 = vpop.eup %1673  ;;  %1693 = vrcp.f32 %v1015_v5  ;;  %v1020_v10 = vadd.f32 1.0, %v1672_v28  ;;  %v978_v56 = vmul.f32 1.442695, %v862_v52  ;;  %v833_v51 = vsub.f32 0.0, %v2467_v36 }
 0x13c   :  { %v1676_v53 = vpop.eup %1675  ;;  %1695 = vrcp.f32 %v1047_v13  ;;  %v1052_v54 = vadd.f32 1.0, %v1674_v4  ;;  %v865_v30 = vsub.f32 0.0, %v2473_v61  ;;  %v831_v7 = vsub.f32 0.0, %v2476_v50 }
 0x13d   :  { %v1678_v18 = vpop.eup %1677  ;;  %v1240_v46 = vmul.f32 %v1676_v53, %v2199_v62  ;;  %1697 = vrcp.f32 %v1020_v10  ;;  %v728_v62 = vmul.f32 %v1986_v38, %v2247_v45  ;;  %v701_v43 = vmul.f32 %v2286_v12, %v1986_v38 }
 0x13e   :  { %v1680_v3 = vpop.eup %1679  ;;  %1699 = vrcp.f32 %v1052_v54  ;;  %v1018_v57 = vadd.f32 1.0, %v1678_v18  ;;  %v699_v6 = vmul.f32 %v1986_v38, %v2293_v20  ;;  %v920_v4 = vmul.f32 1.442695, %v833_v51  ;;  %v2530_v18 = vld [vmem:[%s2752_s2] ss:$0 sm:$0xff] }
 0x13f   :  { %v1682_v58 = vpop.eup %1681  ;;  %1304 = vst [vmem:[%s2754_s4 + $0x170] sm:$0xff] %v1240_v46  ;;  %v1050_v1 = vadd.f32 1.0, %v1680_v3  ;;  %1701 = vpow2.f32 %v908_v17  ;;  %v2490_v41 = vadd.f32 %v1991_v40, %v728_v62  ;;  %v733_v17 = vmul.f32 %v2288_v14, %v1986_v38 }
 0x140   :  { %v1684_v60 = vpop.eup %1683  ;;  %1703 = vrcp.f32 %v1018_v57  ;;  %v1021_v19 = vadd.f32 1.0, %v1682_v58  ;;  %v2496_v5 = vadd.f32 %v1991_v40, %v701_v43  ;;  %v2511_v38 = vadd.f32 %v1991_v40, %v699_v6  ;;  %v2765_v58 = vld [vmem:[#allocation3_spill] sm:$0xff] }
 0x141   :  { %v1686_v34 = vpop.eup %1685  ;;  %1705 = vrcp.f32 %v1050_v1  ;;  %v1053_v47 = vadd.f32 1.0, %v1684_v60  ;;  %v863_v13 = vsub.f32 0.0, %v2490_v41  ;;  %v2503_v9 = vadd.f32 %v1991_v40, %v733_v17 }
 0x142   :  { %v1688_v24 = vpop.eup %1687  ;;  %v1206_v45 = vmul.f32 %v1686_v34, %v2208_v63  ;;  %1707 = vrcp.f32 %v1021_v19  ;;  %v984_v10 = vmul.f32 1.442695, %v865_v30  ;;  %v836_v52 = vsub.f32 0.0, %v2496_v5 }
 0x143   :  { %v1690_v12 = vpop.eup %1689  ;;  %v1238_v28 = vmul.f32 %v1688_v24, %v2255_v31  ;;  %1709 = vrcp.f32 %v1053_v47  ;;  %v916_v40 = vmul.f32 1.442695, %v831_v7  ;;  %v734_v1 = vmul.f32 %v2530_v18, %v2765_v58 }
 0x144   :  { %v1692_v14 = vpop.eup %1691  ;;  %1270 = vst [vmem:[%s2754_s4 + $0x60] sm:$0xff] %v1206_v45  ;;  %v1209_v63 = vmul.f32 %v1690_v12, %v2265_v42  ;;  %1711 = vpow2.f32 %v2452_v23  ;;  %v980_v23 = vmul.f32 1.442695, %v863_v13  ;;  %v926_v51 = vmul.f32 1.442695, %v836_v52  ;;  %v2768_v52 = vld [vmem:[#allocation6_spill] sm:$0xff] }
 0x145   :  { %v1694_v31 = vpop.eup %1693  ;;  %1302 = vst [vmem:[%s2754_s4 + $0x160] sm:$0xff] %v1238_v28  ;;  %v1241_v20 = vmul.f32 %v1692_v14, %v2274_v39  ;;  %1713 = vpow2.f32 %v918_v44  ;;  %v868_v44 = vsub.f32 0.0, %v2503_v9 }
 0x146   :  { %v1696_v53 = vpop.eup %1695  ;;  %1273 = vst [vmem:[%s2754_s4 + $0x78] sm:$0xff] %v1209_v63  ;;  %v1207_v42 = vmul.f32 %v1694_v31, %v2281_v37  ;;  %1715 = vpow2.f32 %v982_v26  ;;  %v731_v37 = vmul.f32 %v2530_v18, %v2295_v22 }
 0x147   :  { %v1698_v54 = vpop.eup %1697  ;;  %1305 = vst [vmem:[%s2754_s4 + $0x178] sm:$0xff] %v1241_v20  ;;  %v1239_v39 = vmul.f32 %v1696_v53, %v2314_v0  ;;  %1717 = vpow2.f32 %v914_v21  ;;  %v834_v0 = vsub.f32 0.0, %v2511_v38  ;;  %v2764_v21 = vld [vmem:[#allocation2_spill] sm:$0xff]  ;;  %v990_v43 = vmul.f32 1.442695, %v868_v44 }
 0x148   :  { %v1700_v46 = vpop.eup %1699  ;;  %1271 = vst [vmem:[%s2754_s4 + $0x68] sm:$0xff] %v1207_v42  ;;  %v1212_v26 = vmul.f32 %v1698_v54, %v2319_v29  ;;  %1719 = vpow2.f32 %v978_v56  ;;  %v702_v3 = vmul.f32 %v2530_v18, %v2764_v21  ;;  %v2553_v56 = vld [vmem:[%s2753_s3] ss:$0 sm:$0xff]  ;;  %v705_v53 = vmul.f32 %v2530_v18, %v2768_v52  ;;  %v2769_v54 = vld [vmem:[#allocation7_spill] sm:$0xff] }
 0x149   :  { %v1702_v57 = vpop.eup %1701  ;;  %1303 = vst [vmem:[%s2754_s4 + $0x168] sm:$0xff] %v1239_v39  ;;  %v1244_v22 = vmul.f32 %v1700_v46, %v2326_v48  ;;  %1721 = vpow2.f32 %v920_v4  ;;  %v2556_v62 = vadd.f32 %v2553_v56, %v731_v37  ;;  %v2766_v48 = vld [vmem:[#allocation4_spill] sm:$0xff]  ;;  %v922_v24 = vmul.f32 1.442695, %v834_v0  ;;  %v2767_v4 = vld [vmem:[#allocation5_spill] sm:$0xff] }
 0x14a   :  { %v1704_v30 = vpop.eup %1703  ;;  %1276 = vst [vmem:[%s2754_s4 + $0x90] sm:$0xff] %v1212_v26  ;;  %v1019_v29 = vadd.f32 1.0, %v1702_v57  ;;  %1723 = vpow2.f32 %v984_v10  ;;  %v700_v60 = vmul.f32 %v2530_v18, %v2766_v48  ;;  %v2565_v34 = vadd.f32 %v2553_v56, %v702_v3  ;;  %v2770_v26 = vld [vmem:[#allocation8_spill] sm:$0xff] }
 0x14b   :  { %v1706_v19 = vpop.eup %1705  ;;  %1308 = vst [vmem:[%s2754_s4 + $0x190] sm:$0xff] %v1244_v22  ;;  %v1210_v7 = vmul.f32 %v1704_v30, %v2330_v33  ;;  %1725 = vpow2.f32 %v916_v40  ;;  %v2569_v45 = vadd.f32 %v2553_v56, %v734_v1  ;;  %v866_v13 = vsub.f32 0.0, %v2556_v62 }
 0x14c   :  { %v1708_v47 = vpop.eup %1707  ;;  %v1242_v17 = vmul.f32 %v1706_v19, %v2361_v55  ;;  %1727 = vrcp.f32 %v1019_v29  ;;  %v2576_v12 = vadd.f32 %v2553_v56, %v700_v60  ;;  %v837_v63 = vsub.f32 0.0, %v2565_v34 }
 0x14d   :  { %v1710_v6 = vpop.eup %1709  ;;  %1274 = vst [vmem:[%s2754_s4 + $0x80] sm:$0xff] %v1210_v7  ;;  %v1213_v33 = vmul.f32 %v1708_v47, %v2371_v27  ;;  %1729 = vpow2.f32 %v980_v23  ;;  %v732_v31 = vmul.f32 %v2530_v18, %v2767_v4  ;;  %v869_v10 = vsub.f32 0.0, %v2569_v45 }
 0x14e   :  { %v1712_v28 = vpop.eup %1711  ;;  %1306 = vst [vmem:[%s2754_s4 + $0x180] sm:$0xff] %v1242_v17  ;;  %v1245_v55 = vmul.f32 %v1710_v6, %v2382_v8  ;;  %1731 = vpow2.f32 %v926_v51  ;;  %v835_v23 = vsub.f32 0.0, %v2576_v12  ;;  %v737_v39 = vmul.f32 %v2530_v18, %v2769_v54 }
 0x14f   :  { %v1714_v14 = vpop.eup %1713  ;;  %1277 = vst [vmem:[%s2754_s4 + $0x98] sm:$0xff] %v1213_v33  ;;  %v1051_v27 = vadd.f32 1.0, %v1712_v28  ;;  %1733 = vpow2.f32 %v990_v43  ;;  %v2599_v46 = vadd.f32 %v2553_v56, %v732_v31  ;;  %v703_v0 = vmul.f32 %v2530_v18, %v2770_v26  ;;  %v2771_v28 = vld [vmem:[#allocation9_spill] sm:$0xff] }
 0x150   :  { %v1716_v20 = vpop.eup %1715  ;;  %1309 = vst [vmem:[%s2754_s4 + $0x198] sm:$0xff] %v1245_v55  ;;  %v1024_v8 = vadd.f32 1.0, %v1714_v14  ;;  %1735 = vpow2.f32 %v922_v24  ;;  %v986_v57 = vmul.f32 1.442695, %v866_v13  ;;  %v2604_v22 = vadd.f32 %v2553_v56, %v705_v53 }
 0x151   :  { %v1718_v42 = vpop.eup %1717  ;;  %1737 = vrcp.f32 %v1051_v27  ;;  %v1056_v40 = vadd.f32 1.0, %v1716_v20  ;;  %v928_v1 = vmul.f32 1.442695, %v837_v63  ;;  %v2607_v30 = vadd.f32 %v2553_v56, %v737_v39  ;;  %v2772_v20 = vld [vmem:[#allocation10_spill] sm:$0xff] }
 0x152   :  { %v1720_v44 = vpop.eup %1719  ;;  %1739 = vrcp.f32 %v1024_v8  ;;  %v1022_v37 = vadd.f32 1.0, %v1718_v42  ;;  %v992_v60 = vmul.f32 1.442695, %v869_v10  ;;  %v924_v19 = vmul.f32 1.442695, %v835_v23 }
 0x153   :  { %v1722_v21 = vpop.eup %1721  ;;  %1741 = vrcp.f32 %v1056_v40  ;;  %v1054_v3 = vadd.f32 1.0, %v1720_v44  ;;  %v867_v47 = vsub.f32 0.0, %v2599_v46  ;;  %v2611_v17 = vadd.f32 %v2553_v56, %v703_v0 }
 0x154   :  { %v1724_v51 = vpop.eup %1723  ;;  %1743 = vrcp.f32 %v1022_v37  ;;  %v1025_v58 = vadd.f32 1.0, %v1722_v21  ;;  %v840_v33 = vsub.f32 0.0, %v2604_v22  ;;  %v735_v55 = vmul.f32 %v2530_v18, %v2771_v28 }
 0x155   :  { %v1726_v29 = vpop.eup %1725  ;;  %1745 = vrcp.f32 %v1054_v3  ;;  %v1057_v48 = vadd.f32 1.0, %v1724_v51  ;;  %v872_v27 = vsub.f32 0.0, %v2607_v30  ;;  %v706_v63 = vmul.f32 %v2530_v18, %v2348_v59 }
 0x156   :  { %v1728_v7 = vpop.eup %1727  ;;  %1747 = vrcp.f32 %v1025_v58  ;;  %v1023_v43 = vadd.f32 1.0, %v1726_v29  ;;  %v2624_v31 = vadd.f32 %v2553_v56, %v735_v55  ;;  %v738_v8 = vmul.f32 %v2530_v18, %v2772_v20 }
 0x157   :  { %v1730_v24 = vpop.eup %1729  ;;  %v1211_v6 = vmul.f32 %v1728_v7, %v2391_v15  ;;  %1749 = vrcp.f32 %v1057_v48  ;;  %v838_v53 = vsub.f32 0.0, %v2611_v17  ;;  %v704_v59 = vmul.f32 %v2530_v18, %v2355_v32 }
 0x158   :  { %v1732_v13 = vpop.eup %1731  ;;  %1751 = vrcp.f32 %v1023_v43  ;;  %v1055_v14 = vadd.f32 1.0, %v1730_v24  ;;  %v988_v23 = vmul.f32 1.442695, %v867_v47  ;;  %v2632_v54 = vadd.f32 %v2553_v56, %v706_v63 }
 0x159   :  { %v1734_v4 = vpop.eup %1733  ;;  %1275 = vst [vmem:[%s2754_s4 + $0x88] sm:$0xff] %v1211_v6  ;;  %v1028_v15 = vadd.f32 1.0, %v1732_v13  ;;  %1753 = vpow2.f32 %v986_v57  ;;  %v870_v37 = vsub.f32 0.0, %v2624_v31  ;;  %v2637_v26 = vadd.f32 %v2553_v56, %v738_v8 }
 0x15a   :  { %v1736_v10 = vpop.eup %1735  ;;  %1755 = vrcp.f32 %v1055_v14  ;;  %v1060_v52 = vadd.f32 1.0, %v1734_v4  ;;  %v934_v32 = vmul.f32 1.442695, %v840_v33  ;;  %v2641_v3 = vadd.f32 %v2553_v56, %v704_v59 }
 0x15b   :  { %v1738_v42 = vpop.eup %1737  ;;  %1757 = vrcp.f32 %v1028_v15  ;;  %v1026_v40 = vadd.f32 1.0, %v1736_v10  ;;  %v998_v51 = vmul.f32 1.442695, %v872_v27  ;;  %v930_v58 = vmul.f32 1.442695, %v838_v53 }
 0x15c   :  { %v1740_v39 = vpop.eup %1739  ;;  %v1243_v44 = vmul.f32 %v1738_v42, %v2421_v11  ;;  %1759 = vrcp.f32 %v1060_v52  ;;  %v841_v48 = vsub.f32 0.0, %v2632_v54  ;;  %v736_v7 = vmul.f32 %v2530_v18, %v2357_v35 }
 0x15d   :  { %v1742_v0 = vpop.eup %1741  ;;  %v1216_v21 = vmul.f32 %v1740_v39, %v2427_v2  ;;  %1761 = vrcp.f32 %v1026_v40  ;;  %v873_v47 = vsub.f32 0.0, %v2637_v26  ;;  %v839_v35 = vsub.f32 0.0, %v2641_v3 }
 0x15e   :  { %v1744_v57 = vpop.eup %1743  ;;  %1307 = vst [vmem:[%s2754_s4 + $0x188] sm:$0xff] %v1243_v44  ;;  %v1248_v11 = vmul.f32 %v1742_v0, %v2437_v49  ;;  %1763 = vpow2.f32 %v928_v1  ;;  %v994_v1 = vmul.f32 1.442695, %v870_v37  ;;  %v2665_v18 = vadd.f32 %v2553_v56, %v736_v7 }
 0x15f   :  { %v1746_v29 = vpop.eup %1745  ;;  %1280 = vst [vmem:[%s2754_s4 + $0xb0] sm:$0xff] %v1216_v21  ;;  %v1214_v2 = vmul.f32 %v1744_v57, %v2444_v16  ;;  %1765 = vpow2.f32 %v992_v60  ;;  %v936_v6 = vmul.f32 1.442695, %v841_v48 }
 0x160   :  { %v1748_v43 = vpop.eup %1747  ;;  %1312 = vst [vmem:[%s2754_s4 + $0x1b0] sm:$0xff] %v1248_v11  ;;  %v1246_v49 = vmul.f32 %v1746_v29, %v2462_v25  ;;  %1767 = vpow2.f32 %v924_v19  ;;  %v871_v56 = vsub.f32 0.0, %v2665_v18 }
 0x161   :  { %v1750_v24 = vpop.eup %1749  ;;  %1278 = vst [vmem:[%s2754_s4 + $0xa0] sm:$0xff] %v1214_v2  ;;  %v1217_v16 = vmul.f32 %v1748_v43, %v2467_v36  ;;  %1769 = vpow2.f32 %v988_v23 }
 0x162   :  { %v1752_v60 = vpop.eup %1751  ;;  %1310 = vst [vmem:[%s2754_s4 + $0x1a0] sm:$0xff] %v1246_v49  ;;  %v1249_v25 = vmul.f32 %v1750_v24, %v2473_v61  ;;  %1771 = vpow2.f32 %v934_v32  ;;  %v1000_v61 = vmul.f32 1.442695, %v873_v47  ;;  %v996_v63 = vmul.f32 1.442695, %v871_v56 }
 0x163   :  { %v1754_v19 = vpop.eup %1753  ;;  %1281 = vst [vmem:[%s2754_s4 + $0xb8] sm:$0xff] %v1217_v16  ;;  %v1215_v36 = vmul.f32 %v1752_v60, %v2476_v50  ;;  %1773 = vpow2.f32 %v998_v51  ;;  %v932_v50 = vmul.f32 1.442695, %v839_v35 }
 0x164   :  { %v1756_v33 = vpop.eup %1755  ;;  %1313 = vst [vmem:[%s2754_s4 + $0x1b8] sm:$0xff] %v1249_v25  ;;  %v1058_v28 = vadd.f32 1.0, %v1754_v19  ;;  %1775 = vpow2.f32 %v930_v58 }
 0x165   :  { %v1758_v55 = vpop.eup %1757  ;;  %1279 = vst [vmem:[%s2754_s4 + $0xa8] sm:$0xff] %v1215_v36  ;;  %v1247_v13 = vmul.f32 %v1756_v33, %v2490_v41  ;;  %1777 = vpow2.f32 %v994_v1 }
 0x166   :  { %v1760_v14 = vpop.eup %1759  ;;  %v1220_v27 = vmul.f32 %v1758_v55, %v2496_v5  ;;  %1779 = vrcp.f32 %v1058_v28 }
 0x167   :  { %v1762_v4 = vpop.eup %1761  ;;  %1311 = vst [vmem:[%s2754_s4 + $0x1a8] sm:$0xff] %v1247_v13  ;;  %v1252_v15 = vmul.f32 %v1760_v14, %v2503_v9  ;;  %1781 = vpow2.f32 %v936_v6 }
 0x168   :  { %v1764_v20 = vpop.eup %1763  ;;  %1284 = vst [vmem:[%s2754_s4 + $0xd0] sm:$0xff] %v1220_v27  ;;  %v1218_v41 = vmul.f32 %v1762_v4, %v2511_v38  ;;  %1783 = vpow2.f32 %v1000_v61 }
 0x169   :  { %v1766_v8 = vpop.eup %1765  ;;  %1316 = vst [vmem:[%s2754_s4 + $0x1d0] sm:$0xff] %v1252_v15  ;;  %v1029_v5 = vadd.f32 1.0, %v1764_v20  ;;  %1785 = vpow2.f32 %v932_v50 }
 0x16a   :  { %v1768_v10 = vpop.eup %1767  ;;  %1282 = vst [vmem:[%s2754_s4 + $0xc0] sm:$0xff] %v1218_v41  ;;  %v1061_v9 = vadd.f32 1.0, %v1766_v8  ;;  %1787 = vpow2.f32 %v996_v63 }
 0x16b   :  { %v1770_v52 = vpop.eup %1769  ;;  %1789 = vrcp.f32 %v1029_v5  ;;  %v1027_v53 = vadd.f32 1.0, %v1768_v10 }
 0x16c   :  { %v1772_v59 = vpop.eup %1771  ;;  %1791 = vrcp.f32 %v1061_v9  ;;  %v1059_v38 = vadd.f32 1.0, %v1770_v52 }
 0x16d   :  { %v1774_v42 = vpop.eup %1773  ;;  %1793 = vrcp.f32 %v1027_v53  ;;  %v1032_v40 = vadd.f32 1.0, %v1772_v59 }
 0x16e   :  { %v1776_v23 = vpop.eup %1775  ;;  %1795 = vrcp.f32 %v1059_v38  ;;  %v1064_v39 = vadd.f32 1.0, %v1774_v42 }
 0x16f   :  { %v1778_v44 = vpop.eup %1777  ;;  %1797 = vrcp.f32 %v1032_v40  ;;  %v1030_v37 = vadd.f32 1.0, %v1776_v23 }
 0x170   :  { %v1780_v0 = vpop.eup %1779  ;;  %1799 = vrcp.f32 %v1064_v39  ;;  %v1062_v21 = vadd.f32 1.0, %v1778_v44 }
 0x171   :  { %v1782_v32 = vpop.eup %1781  ;;  %v1250_v57 = vmul.f32 %v1780_v0, %v2556_v62  ;;  %1801 = vrcp.f32 %v1030_v37 }
 0x172   :  { %v1784_v11 = vpop.eup %1783  ;;  %1803 = vrcp.f32 %v1062_v21  ;;  %v1033_v51 = vadd.f32 1.0, %v1782_v32 }
 0x173   :  { %v1786_v58 = vpop.eup %1785  ;;  %1314 = vst [vmem:[%s2754_s4 + $0x1c0] sm:$0xff] %v1250_v57  ;;  %v1065_v29 = vadd.f32 1.0, %v1784_v11 }
 0x174   :  { %v1788_v2 = vpop.eup %1787  ;;  %1805 = vrcp.f32 %v1033_v51  ;;  %v1031_v48 = vadd.f32 1.0, %v1786_v58 }
 0x175   :  { %v1790_v7 = vpop.eup %1789  ;;  %1807 = vrcp.f32 %v1065_v29  ;;  %v1063_v43 = vadd.f32 1.0, %v1788_v2 }
 0x176   :  { %v1792_v49 = vpop.eup %1791  ;;  %v1221_v1 = vmul.f32 %v1790_v7, %v2565_v34  ;;  %1809 = vrcp.f32 %v1031_v48 }
 0x177   :  { %v1794_v62 = vpop.eup %1793  ;;  %v1253_v47 = vmul.f32 %v1792_v49, %v2569_v45  ;;  %1811 = vrcp.f32 %v1063_v43 }
 0x178   :  { %v1796_v24 = vpop.eup %1795  ;;  %1285 = vst [vmem:[%s2754_s4 + $0xd8] sm:$0xff] %v1221_v1  ;;  %v1219_v16 = vmul.f32 %v1794_v62, %v2576_v12 }
 0x179   :  { %v1798_v35 = vpop.eup %1797  ;;  %1317 = vst [vmem:[%s2754_s4 + $0x1d8] sm:$0xff] %v1253_v47  ;;  %v1251_v60 = vmul.f32 %v1796_v24, %v2599_v46 }
 0x17a   :  { %v1800_v34 = vpop.eup %1799  ;;  %1283 = vst [vmem:[%s2754_s4 + $0xc8] sm:$0xff] %v1219_v16  ;;  %v1224_v45 = vmul.f32 %v1798_v35, %v2604_v22 }
 0x17b   :  { %v1802_v25 = vpop.eup %1801  ;;  %1315 = vst [vmem:[%s2754_s4 + $0x1c8] sm:$0xff] %v1251_v60  ;;  %v1256_v12 = vmul.f32 %v1800_v34, %v2607_v30 }
 0x17c   :  { %v1804_v19 = vpop.eup %1803  ;;  %1288 = vst [vmem:[%s2754_s4 + $0xf0] sm:$0xff] %v1224_v45  ;;  %v1222_v46 = vmul.f32 %v1802_v25, %v2611_v17 }
 0x17d   :  { %1320 = vst [vmem:[%s2754_s4 + $0x1f0] sm:$0xff] %v1256_v12  ;;  %v1254_v22 = vmul.f32 %v1804_v19, %v2624_v31 }
 0x17e   :  { %v1806_v36 = vpop.eup %1805  ;;  %1286 = vst [vmem:[%s2754_s4 + $0xe0] sm:$0xff] %v1222_v46 }
 0x17f   :  { %v1808_v6 = vpop.eup %1807  ;;  %1318 = vst [vmem:[%s2754_s4 + $0x1e0] sm:$0xff] %v1254_v22  ;;  %v1225_v30 = vmul.f32 %v1806_v36, %v2632_v54 }
 0x180   :  { %v1810_v56 = vpop.eup %1809  ;;  %v1257_v17 = vmul.f32 %v1808_v6, %v2637_v26 }
 0x181   :  { %v1812_v33 = vpop.eup %1811  ;;  %1289 = vst [vmem:[%s2754_s4 + $0xf8] sm:$0xff] %v1225_v30  ;;  %v1223_v31 = vmul.f32 %v1810_v56, %v2641_v3 }
 0x182   :  { %1321 = vst [vmem:[%s2754_s4 + $0x1f8] sm:$0xff] %v1257_v17  ;;  %v1255_v28 = vmul.f32 %v1812_v33, %v2665_v18 }
 0x183   :  { %1287 = vst [vmem:[%s2754_s4 + $0xe8] sm:$0xff] %v1223_v31 }
 0x184   :  { %1319 = vst [vmem:[%s2754_s4 + $0x1e8] sm:$0xff] %v1255_v28 }

// kernel: cspdarknet_fwd.45
= control target key start
LH: loop header
LB: loop body
LE: loop exit
PB: predicated region body
PF: predicated region fallthrough
CT: control target
= control target key end

     0   :  { %vm340_vm0 = vcmask 1043456   ;;  %vm243_vm1 = vcmask 64512   ;;  %s2658_s1 = inlined_call_operand.vmem [shape: bf16[8,128], index: 1, kind: input, shape index: {}]   ;;  %s2659_s0 = inlined_call_operand.vmem [shape: bf16[512,8], index: 0, kind: input, shape index: {}]   ;;  %s2660_s2 = inlined_call_operand.vmem [shape: f32[1,128], index: 2, kind: input, shape index: {}]   ;;  %s2661_s3 = inlined_call_operand.vmem [shape: f32[1,128], index: 3, kind: input, shape index: {}]   ;;  %s2662_s4 = inlined_call_operand.vmem [shape: f32[512,128], index: 4, kind: output, shape index: {}]  }
   0x1   :  { %v82_v0 = vld [vmem:[%s2658_s1] sm:$0xf]  ;;  %v1462_v4 = vld [vmem:[%s2659_s0 + $0x8] sm:$0xff]   ;;  %v1464_v6 = vld [vmem:[%s2659_s0 + $0x10] sm:$0xff]  }
   0x2   :  { %1458 = vmatprep.subr.msk.bf16.mxu0 %vm340_vm0, %v82_v0  ;;  %1459 = vmatprep.subr.msk.bf16.mxu1 %vm340_vm0, %v82_v0  ;;  %v342_v1 = vsel %vm340_vm0, %v82_v0, 0  ;;  %v1460_v2 = vld [vmem:[%s2659_s0] sm:$0xff]   ;;  %v1463_v5 = vld [vmem:[%s2659_s0 + $0x88] sm:$0xff]   ;;  %v1465_v7 = vld [vmem:[%s2659_s0 + $0x90] sm:$0xff]  }
   0x3   :  { %1391 = vmatpush3.bf16.msra.mxu0 %v342_v1  ;;  %1457 = vmatpush3.bf16.msra.mxu1 %v342_v1  ;;  %v1461_v3 = vld [vmem:[%s2659_s0 + $0x80] sm:$0xff]   ;;  %v1466_v8 = vld [vmem:[%s2659_s0 + $0x18] sm:$0xff]   ;;  %v1470_v12 = vld [vmem:[%s2659_s0 + $0x28] sm:$0xff]  }
   0x4   :  { %1392 = vmatprep.mubr.msk.bf16.mxu0 %vm243_vm1, %v1460_v2  ;;  %1424 = vmatprep.mubr.msk.bf16.mxu1 %vm243_vm1, %v1461_v3  ;;  %v1467_v9 = vld [vmem:[%s2659_s0 + $0x98] sm:$0xff]   ;;  %v1468_v10 = vld [vmem:[%s2659_s0 + $0x20] sm:$0xff]   ;;  %v1471_v13 = vld [vmem:[%s2659_s0 + $0xa8] sm:$0xff]  }
   0x5   :  { %v1469_v11 = vld [vmem:[%s2659_s0 + $0xa0] sm:$0xff]   ;;  %v1472_v14 = vld [vmem:[%s2659_s0 + $0x30] sm:$0xff]   ;;  %v1474_v16 = vld [vmem:[%s2659_s0 + $0x38] sm:$0xff]  }
   0x6   :  { %1393 = vmatmul.mubr.msk.bf16.vlgmr.msra.gmra.mrb[0].mxu0 %vm243_vm1, %v1462_v4  ;;  %1425 = vmatmul.mubr.msk.bf16.vlgmr.msra.gmra.mrb[0].mxu1 %vm243_vm1, %v1463_v5  ;;  %v1473_v15 = vld [vmem:[%s2659_s0 + $0xb0] sm:$0xff]   ;;  %v1475_v17 = vld [vmem:[%s2659_s0 + $0xb8] sm:$0xff]   ;;  %v1476_v18 = vld [vmem:[%s2659_s0 + $0x40] sm:$0xff]  }
   0x7   :  { %1396 = vmatprep.mubr.msk.bf16.mxu0 %vm243_vm1, %v1464_v6  ;;  %1428 = vmatprep.mubr.msk.bf16.mxu1 %vm243_vm1, %v1465_v7  ;;  %v1477_v19 = vld [vmem:[%s2659_s0 + $0xc0] sm:$0xff]   ;;  %v1478_v20 = vld [vmem:[%s2659_s0 + $0x48] sm:$0xff]   ;;  %v1480_v22 = vld [vmem:[%s2659_s0 + $0x50] sm:$0xff]  }
   0x8   :  { %v1479_v21 = vld [vmem:[%s2659_s0 + $0xc8] sm:$0xff]   ;;  %v1481_v23 = vld [vmem:[%s2659_s0 + $0xd0] sm:$0xff]   ;;  %v1482_v24 = vld [vmem:[%s2659_s0 + $0x58] sm:$0xff]  }
   0x9   :  { %v1483_v25 = vld [vmem:[%s2659_s0 + $0xd8] sm:$0xff]   ;;  %v1484_v26 = vld [vmem:[%s2659_s0 + $0x60] sm:$0xff]   ;;  %v1486_v28 = vld [vmem:[%s2659_s0 + $0x68] sm:$0xff]  }
   0xa   :  { %v1485_v27 = vld [vmem:[%s2659_s0 + $0xe0] sm:$0xff]   ;;  %v1487_v29 = vld [vmem:[%s2659_s0 + $0xe8] sm:$0xff]   ;;  %v1488_v30 = vld [vmem:[%s2659_s0 + $0x70] sm:$0xff]  }
   0xb   :  { %v1489_v31 = vld [vmem:[%s2659_s0 + $0xf0] sm:$0xff]   ;;  %v1490_v32 = vld [vmem:[%s2659_s0 + $0x78] sm:$0xff]   ;;  %v1909_v34 = vld [vmem:[%s2660_s2] ss:$0 sm:$0xff] }
   0xc   :  { %v1491_v33 = vld [vmem:[%s2659_s0 + $0xf8] sm:$0xff]   ;;  %v1914_v36 = vld [vmem:[%s2661_s3] ss:$0 sm:$0xff] }
   0xe   :  { %1397 = vmatmul.mubr.msk.bf16.gmra.mrb[4].mxu0 %vm243_vm1, %v1466_v8  ;;  %1429 = vmatmul.mubr.msk.bf16.gmra.mrb[4].mxu1 %vm243_vm1, %v1467_v9 }
   0xf   :  { %1400 = vmatprep.mubr.msk.bf16.mxu0 %vm243_vm1, %v1468_v10  ;;  %1432 = vmatprep.mubr.msk.bf16.mxu1 %vm243_vm1, %v1469_v11 }
  0x16   :  { %1401 = vmatmul.mubr.msk.bf16.gmra.mrb[8].mxu0 %vm243_vm1, %v1470_v12  ;;  %1433 = vmatmul.mubr.msk.bf16.gmra.mrb[8].mxu1 %vm243_vm1, %v1471_v13 }
  0x17   :  { %1404 = vmatprep.mubr.msk.bf16.mxu0 %vm243_vm1, %v1472_v14  ;;  %1436 = vmatprep.mubr.msk.bf16.mxu1 %vm243_vm1, %v1473_v15 }
  0x1e   :  { %1405 = vmatmul.mubr.msk.bf16.gmra.mrb[12].mxu0 %vm243_vm1, %v1474_v16  ;;  %1437 = vmatmul.mubr.msk.bf16.gmra.mrb[12].mxu1 %vm243_vm1, %v1475_v17 }
  0x1f   :  { %1408 = vmatprep.mubr.msk.bf16.mxu0 %vm243_vm1, %v1476_v18  ;;  %1440 = vmatprep.mubr.msk.bf16.mxu1 %vm243_vm1, %v1477_v19 }
  0x26   :  { %1409 = vmatmul.mubr.msk.bf16.gmra.mrb[16].mxu0 %vm243_vm1, %v1478_v20  ;;  %1441 = vmatmul.mubr.msk.bf16.gmra.mrb[16].mxu1 %vm243_vm1, %v1479_v21 }
  0x27   :  { %1412 = vmatprep.mubr.msk.bf16.mxu0 %vm243_vm1, %v1480_v22  ;;  %1444 = vmatprep.mubr.msk.bf16.mxu1 %vm243_vm1, %v1481_v23 }
  0x2e   :  { %1413 = vmatmul.mubr.msk.bf16.gmra.mrb[20].mxu0 %vm243_vm1, %v1482_v24  ;;  %1445 = vmatmul.mubr.msk.bf16.gmra.mrb[20].mxu1 %vm243_vm1, %v1483_v25 }
  0x2f   :  { %1416 = vmatprep.mubr.msk.bf16.mxu0 %vm243_vm1, %v1484_v26  ;;  %1448 = vmatprep.mubr.msk.bf16.mxu1 %vm243_vm1, %v1485_v27 }
  0x36   :  { %1417 = vmatmul.mubr.msk.bf16.gmra.mrb[24].mxu0 %vm243_vm1, %v1486_v28  ;;  %1449 = vmatmul.mubr.msk.bf16.gmra.mrb[24].mxu1 %vm243_vm1, %v1487_v29 }
  0x37   :  { %1420 = vmatprep.mubr.msk.bf16.mxu0 %vm243_vm1, %v1488_v30  ;;  %1452 = vmatprep.mubr.msk.bf16.mxu1 %vm243_vm1, %v1489_v31 }
  0x3e   :  { %1421 = vmatmul.mubr.msk.bf16.gmra.mrb[28].mxu0 %vm243_vm1, %v1490_v32  ;;  %1453 = vmatmul.mubr.msk.bf16.gmra.mrb[28].mxu1 %vm243_vm1, %v1491_v33 }
  0xd9   :  { %v1394_v35 = vpop.f32.mrb[0].mxu0  ;;  %v1426_v38 = vpop.f32.mrb[0].mxu1 }
  0xda   :  { %v642_v37 = vmul.f32 %v1394_v35, %v1909_v34  ;;  %v378_v39 = vpop.f32.mrb[1].mxu0  ;;  %v674_v40 = vmul.f32 %v1426_v38, %v1909_v34  ;;  %v506_v42 = vpop.f32.mrb[1].mxu1 }
  0xdb   :  { %v640_v41 = vmul.f32 %v1909_v34, %v378_v39  ;;  %v1395_v43 = vpop.f32.mrb[2].mxu0  ;;  %v672_v45 = vmul.f32 %v1909_v34, %v506_v42  ;;  %v1427_v47 = vpop.f32.mrb[2].mxu1 }
  0xdc   :  { %v1920_v44 = vadd.f32 %v1914_v36, %v642_v37  ;;  %v643_v46 = vmul.f32 %v1395_v43, %v1909_v34  ;;  %v381_v48 = vpop.f32.mrb[3].mxu0  ;;  %v1925_v49 = vadd.f32 %v1914_v36, %v674_v40  ;;  %v675_v51 = vmul.f32 %v1427_v47, %v1909_v34  ;;  %v509_v53 = vpop.f32.mrb[3].mxu1 }
  0xdd   :  { %v1928_v50 = vadd.f32 %v1914_v36, %v640_v41  ;;  %v641_v52 = vmul.f32 %v1909_v34, %v381_v48  ;;  %v1934_v55 = vadd.f32 %v1914_v36, %v672_v45  ;;  %v673_v57 = vmul.f32 %v1909_v34, %v509_v53 }
  0xde   :  { %v777_v54 = vsub.f32 0.0, %v1920_v44  ;;  %v1937_v56 = vadd.f32 %v1914_v36, %v643_v46  ;;  %v809_v58 = vsub.f32 0.0, %v1925_v49  ;;  %v1943_v60 = vadd.f32 %v1914_v36, %v675_v51 }
  0xdf   :  { %v775_v59 = vsub.f32 0.0, %v1928_v50  ;;  %v1946_v61 = vadd.f32 %v1914_v36, %v641_v52  ;;  %v807_v63 = vsub.f32 0.0, %v1934_v55  ;;  %v1951_v1 = vadd.f32 %v1914_v36, %v673_v57 }
  0xe0   :  { %v843_v62 = vmul.f32 1.442695, %v777_v54  ;;  %v778_v0 = vsub.f32 0.0, %v1937_v56  ;;  %v907_v2 = vmul.f32 1.442695, %v809_v58  ;;  %v810_v4 = vsub.f32 0.0, %v1943_v60 }
  0xe1   :  { %v839_v3 = vmul.f32 1.442695, %v775_v59  ;;  %v776_v5 = vsub.f32 0.0, %v1946_v61  ;;  %v903_v6 = vmul.f32 1.442695, %v807_v63  ;;  %v808_v8 = vsub.f32 0.0, %v1951_v1 }
  0xe2   :  { %1492 = vpow2.f32 %v843_v62  ;;  %v845_v7 = vmul.f32 1.442695, %v778_v0  ;;  %v1398_v9 = vpop.f32.mrb[4].mxu0  ;;  %v909_v10 = vmul.f32 1.442695, %v810_v4  ;;  %v1430_v13 = vpop.f32.mrb[4].mxu1 }
  0xe3   :  { %1494 = vpow2.f32 %v907_v2  ;;  %v841_v11 = vmul.f32 1.442695, %v776_v5  ;;  %v646_v12 = vmul.f32 %v1398_v9, %v1909_v34  ;;  %v394_v14 = vpop.f32.mrb[5].mxu0  ;;  %v905_v15 = vmul.f32 1.442695, %v808_v8  ;;  %v522_v18 = vpop.f32.mrb[5].mxu1 }
  0xe4   :  { %1496 = vpow2.f32 %v839_v3  ;;  %v678_v16 = vmul.f32 %v1430_v13, %v1909_v34  ;;  %v644_v17 = vmul.f32 %v1909_v34, %v394_v14  ;;  %v1399_v19 = vpop.f32.mrb[6].mxu0  ;;  %v676_v21 = vmul.f32 %v1909_v34, %v522_v18  ;;  %v1431_v23 = vpop.f32.mrb[6].mxu1 }
  0xe5   :  { %1498 = vpow2.f32 %v903_v6  ;;  %v1960_v20 = vadd.f32 %v1914_v36, %v646_v12  ;;  %v647_v22 = vmul.f32 %v1399_v19, %v1909_v34  ;;  %v397_v24 = vpop.f32.mrb[7].mxu0  ;;  %v679_v27 = vmul.f32 %v1431_v23, %v1909_v34  ;;  %v525_v28 = vpop.f32.mrb[7].mxu1 }
  0xe6   :  { %1500 = vpow2.f32 %v845_v7  ;;  %v1965_v25 = vadd.f32 %v1914_v36, %v678_v16  ;;  %v1968_v26 = vadd.f32 %v1914_v36, %v644_v17  ;;  %v1973_v30 = vadd.f32 %v1914_v36, %v676_v21 }
  0xe7   :  { %1502 = vpow2.f32 %v909_v10  ;;  %v781_v29 = vsub.f32 0.0, %v1960_v20  ;;  %v1976_v31 = vadd.f32 %v1914_v36, %v647_v22  ;;  %v1981_v35 = vadd.f32 %v1914_v36, %v679_v27 }
  0xe8   :  { %1504 = vpow2.f32 %v841_v11  ;;  %v813_v32 = vsub.f32 0.0, %v1965_v25  ;;  %v779_v33 = vsub.f32 0.0, %v1968_v26  ;;  %v811_v38 = vsub.f32 0.0, %v1973_v30 }
  0xe9   :  { %1506 = vpow2.f32 %v905_v15  ;;  %v851_v37 = vmul.f32 1.442695, %v781_v29  ;;  %v782_v39 = vsub.f32 0.0, %v1976_v31  ;;  %v1402_v40 = vpop.f32.mrb[8].mxu0  ;;  %v645_v43 = vmul.f32 %v1909_v34, %v397_v24  ;;  %v1434_v45 = vpop.f32.mrb[8].mxu1 }
  0xea   :  { %v915_v41 = vmul.f32 1.442695, %v813_v32  ;;  %v847_v42 = vmul.f32 1.442695, %v779_v33  ;;  %v911_v46 = vmul.f32 1.442695, %v811_v38  ;;  %v677_v48 = vmul.f32 %v1909_v34, %v525_v28 }
  0xeb   :  { %1508 = vpow2.f32 %v851_v37  ;;  %v814_v47 = vsub.f32 0.0, %v1981_v35  ;;  %v410_v51 = vpop.f32.mrb[9].mxu0  ;;  %v538_v52 = vpop.f32.mrb[9].mxu1  ;;  %v1988_v54 = vmul.f32 1.442695, %v782_v39  ;;  %v1991_v57 = vadd.f32 %v1914_v36, %v645_v43 }
  0xec   :  { %v1493_v53 = vpop.eup %1492  ;;  %1510 = vpow2.f32 %v915_v41  ;;  %v650_v58 = vmul.f32 %v1402_v40, %v1909_v34  ;;  %v1403_v59 = vpop.f32.mrb[10].mxu0  ;;  %v1995_v2 = vadd.f32 %v1914_v36, %v677_v48  ;;  %v682_v3 = vmul.f32 %v1434_v45, %v1909_v34 }
  0xed   :  { %v1435_v62 = vpop.f32.mrb[10].mxu1  ;;  %v1495_v63 = vpop.eup %1494  ;;  %v969_v0 = vadd.f32 1.0, %v1493_v53  ;;  %1512 = vpow2.f32 %v847_v42  ;;  %v780_v8 = vsub.f32 0.0, %v1991_v57  ;;  %v2008_v16 = vmul.f32 1.442695, %v814_v47 }
  0xee   :  { %v413_v4 = vpop.f32.mrb[11].mxu0  ;;  %v1998_v5 = vpop.f32.mrb[11].mxu1  ;;  %v1001_v7 = vadd.f32 1.0, %v1495_v63  ;;  %1514 = vpow2.f32 %v911_v46  ;;  %v2002_v9 = vadd.f32 %v1914_v36, %v650_v58  ;;  %v812_v12 = vsub.f32 0.0, %v1995_v2 }
  0xef   :  { %v1497_v6 = vpop.eup %1496  ;;  %1516 = vrcp.f32 %v969_v0  ;;  %v2006_v13 = vadd.f32 %v1914_v36, %v682_v3  ;;  %v2011_v21 = vmul.f32 1.442695, %v780_v8  ;;  %v648_v29 = vmul.f32 %v1909_v34, %v410_v51 }
  0xf0   :  { %v1499_v10 = vpop.eup %1498  ;;  %v967_v11 = vadd.f32 1.0, %v1497_v6  ;;  %1518 = vrcp.f32 %v1001_v7  ;;  %v785_v17 = vsub.f32 0.0, %v2002_v9  ;;  %v2013_v22 = vmul.f32 1.442695, %v812_v12 }
  0xf1   :  { %v1501_v14 = vpop.eup %1500  ;;  %v999_v15 = vadd.f32 1.0, %v1499_v10  ;;  %v2015_v23 = vpop.f32.mrb[12].mxu0  ;;  %v817_v28 = vsub.f32 0.0, %v2006_v13  ;;  %v680_v40 = vmul.f32 %v1909_v34, %v538_v52  ;;  %v2031_v45 = vadd.f32 %v1914_v36, %v648_v29 }
  0xf2   :  { %v1503_v18 = vpop.eup %1502  ;;  %1520 = vrcp.f32 %v967_v11  ;;  %v970_v19 = vadd.f32 1.0, %v1501_v14  ;;  %v2019_v32 = vpop.f32.mrb[12].mxu1  ;;  %v2023_v39 = vmul.f32 1.442695, %v785_v17  ;;  %v651_v46 = vmul.f32 %v1403_v59, %v1909_v34 }
  0xf3   :  { %v1505_v24 = vpop.eup %1504  ;;  %1522 = vrcp.f32 %v999_v15  ;;  %v1002_v27 = vadd.f32 1.0, %v1503_v18  ;;  %v2021_v33 = vpop.f32.mrb[13].mxu0  ;;  %v2039_v53 = vadd.f32 %v1914_v36, %v680_v40  ;;  %v683_v52 = vmul.f32 %v1435_v62, %v1909_v34 }
  0xf4   :  { %v1507_v37 = vpop.eup %1506  ;;  %1524 = vrcp.f32 %v970_v19  ;;  %v968_v38 = vadd.f32 1.0, %v1505_v24  ;;  %v2026_v41 = vpop.f32.mrb[13].mxu1  ;;  %v649_v58 = vmul.f32 %v1909_v34, %v413_v4  ;;  %v783_v59 = vsub.f32 0.0, %v2031_v45 }
  0xf5   :  { %v2028_v42 = vpop.f32.mrb[14].mxu0  ;;  %1526 = vrcp.f32 %v1002_v27  ;;  %v1000_v43 = vadd.f32 1.0, %v1507_v37  ;;  %v2034_v47 = vpop.f32.mrb[14].mxu1  ;;  %v2047_v6 = vadd.f32 %v1914_v36, %v651_v46  ;;  %v815_v10 = vsub.f32 0.0, %v2039_v53 }
  0xf6   :  { %v2036_v48 = vpop.f32.mrb[15].mxu0  ;;  %v1509_v51 = vpop.eup %1508  ;;  %1528 = vrcp.f32 %v968_v38  ;;  %v2052_v62 = vadd.f32 %v1914_v36, %v683_v52  ;;  %v923_v12 = vmul.f32 1.442695, %v817_v28  ;;  %v855_v18 = vmul.f32 1.442695, %v783_v59 }
  0xf7   :  { %v2043_v63 = vpop.f32.mrb[15].mxu1  ;;  %v1511_v0 = vpop.eup %1510  ;;  %1530 = vrcp.f32 %v1000_v43  ;;  %v973_v3 = vadd.f32 1.0, %v1509_v51  ;;  %v786_v14 = vsub.f32 0.0, %v2047_v6  ;;  %v919_v19 = vmul.f32 1.442695, %v815_v10 }
  0xf8   :  { %v1513_v7 = vpop.eup %1512  ;;  %v1005_v8 = vadd.f32 1.0, %v1511_v0  ;;  %1532 = vpow2.f32 %v1988_v54  ;;  %v818_v29 = vsub.f32 0.0, %v2052_v62  ;;  %v2060_v37 = vadd.f32 %v1914_v36, %v649_v58 }
  0xf9   :  { %v1515_v4 = vpop.eup %1514  ;;  %1534 = vrcp.f32 %v973_v3  ;;  %v971_v11 = vadd.f32 1.0, %v1513_v7  ;;  %v2055_v24 = vpop.f32.mrb[16].mxu0  ;;  %v861_v46 = vmul.f32 1.442695, %v786_v14  ;;  %v681_v51 = vmul.f32 %v1909_v34, %v1998_v5 }
  0xfa   :  { %v1517_v15 = vpop.eup %1516  ;;  %1536 = vrcp.f32 %v1005_v8  ;;  %v1003_v17 = vadd.f32 1.0, %v1515_v4  ;;  %v2062_v38 = vpop.f32.mrb[16].mxu1  ;;  %v654_v3 = vmul.f32 %v2015_v23, %v1909_v34 }
  0xfb   :  { %v1519_v27 = vpop.eup %1518  ;;  %v1161_v54 = vmul.f32 %v1517_v15, %v1920_v44  ;;  %1538 = vrcp.f32 %v971_v11  ;;  %v2064_v28 = vpop.f32.mrb[17].mxu0 }
  0xfc   :  { %v1521_v40 = vpop.eup %1520  ;;  %v1193_v43 = vmul.f32 %v1519_v27, %v1925_v49  ;;  %1540 = vrcp.f32 %v1003_v17  ;;  %v2069_v52 = vpop.f32.mrb[17].mxu1  ;;  %v784_v49 = vsub.f32 0.0, %v2060_v37 }
  0xfd   :  { %v2071_v44 = vpop.f32.mrb[18].mxu0  ;;  %v1523_v0 = vpop.eup %1522  ;;  %1225 = vst [vmem:[%s2662_s4 + $0x10] sm:$0xff] %v1161_v54  ;;  %v1159_v58 = vmul.f32 %v1521_v40, %v1928_v50  ;;  %1542 = vpow2.f32 %v2008_v16  ;;  %v2091_v50 = vadd.f32 %v1914_v36, %v681_v51  ;;  %v686_v16 = vmul.f32 %v2019_v32, %v1909_v34 }
  0xfe   :  { %v2081_v59 = vpop.f32.mrb[18].mxu1  ;;  %v2083_v5 = vpop.f32.mrb[19].mxu0  ;;  %1257 = vst [vmem:[%s2662_s4 + $0x110] sm:$0xff] %v1193_v43  ;;  %v1191_v8 = vmul.f32 %v1523_v0, %v1934_v55  ;;  %1544 = vpow2.f32 %v2011_v21  ;;  %v925_v55 = vmul.f32 1.442695, %v818_v29  ;;  %v2103_v21 = vadd.f32 %v1914_v36, %v654_v3 }
  0xff   :  { %v1525_v7 = vpop.eup %1524  ;;  %v2095_v23 = vpop.f32.mrb[19].mxu1  ;;  %1223 = vst [vmem:[%s2662_s4] sm:$0xff] %v1159_v58  ;;  %1546 = vpow2.f32 %v2013_v22  ;;  %v816_v14 = vsub.f32 0.0, %v2091_v50  ;;  %v2112_v15 = vadd.f32 %v1914_v36, %v686_v16  ;;  %v857_v54 = vmul.f32 1.442695, %v784_v49 }
 0x100   :  { %v1527_v10 = vpop.eup %1526  ;;  %v1162_v4 = vmul.f32 %v1525_v7, %v1937_v56  ;;  %1255 = vst [vmem:[%s2662_s4 + $0x100] sm:$0xff] %v1191_v8  ;;  %1548 = vpow2.f32 %v2023_v39  ;;  %v789_v17 = vsub.f32 0.0, %v2103_v21 }
 0x101   :  { %v1529_v11 = vpop.eup %1528  ;;  %v1194_v32 = vmul.f32 %v1527_v10, %v1943_v60  ;;  %1550 = vpow2.f32 %v923_v12  ;;  %v652_v60 = vmul.f32 %v1909_v34, %v2021_v33  ;;  %v921_v29 = vmul.f32 1.442695, %v816_v14  ;;  %v2125_v40 = vpop.f32.mrb[20].mxu0 }
 0x102   :  { %v1531_v56 = vpop.eup %1530  ;;  %1226 = vst [vmem:[%s2662_s4 + $0x18] sm:$0xff] %v1162_v4  ;;  %v1160_v22 = vmul.f32 %v1529_v11, %v1946_v61  ;;  %1552 = vpow2.f32 %v855_v18  ;;  %v821_v33 = vsub.f32 0.0, %v2112_v15  ;;  %v2134_v51 = vpop.f32.mrb[20].mxu1  ;;  %v867_v58 = vmul.f32 1.442695, %v789_v17 }
 0x103   :  { %v1533_v27 = vpop.eup %1532  ;;  %1258 = vst [vmem:[%s2662_s4 + $0x118] sm:$0xff] %v1194_v32  ;;  %v1192_v39 = vmul.f32 %v1531_v56, %v1951_v1  ;;  %1554 = vpow2.f32 %v919_v19  ;;  %v2132_v12 = vadd.f32 %v1914_v36, %v652_v60  ;;  %v2136_v1 = vpop.f32.mrb[21].mxu0  ;;  %v684_v19 = vmul.f32 %v1909_v34, %v2026_v41 }
 0x104   :  { %v1535_v43 = vpop.eup %1534  ;;  %1224 = vst [vmem:[%s2662_s4 + $0x8] sm:$0xff] %v1160_v22  ;;  %v974_v61 = vadd.f32 1.0, %v1533_v27  ;;  %1556 = vpow2.f32 %v861_v46  ;;  %v2144_v49 = vpop.f32.mrb[21].mxu1  ;;  %v655_v10 = vmul.f32 %v2028_v42, %v1909_v34  ;;  %v687_v11 = vmul.f32 %v2034_v47, %v1909_v34 }
 0x105   :  { %v1537_v18 = vpop.eup %1536  ;;  %1256 = vst [vmem:[%s2662_s4 + $0x108] sm:$0xff] %v1192_v39  ;;  %v1165_v0 = vmul.f32 %v1535_v43, %v1960_v20  ;;  %v2146_v3 = vpop.f32.mrb[22].mxu0  ;;  %v787_v16 = vsub.f32 0.0, %v2132_v12  ;;  %v2171_v56 = vmul.f32 1.442695, %v821_v33  ;;  %v653_v39 = vmul.f32 %v1909_v34, %v2036_v48 }
 0x106   :  { %v1539_v7 = vpop.eup %1538  ;;  %v1197_v8 = vmul.f32 %v1537_v18, %v1965_v25  ;;  %1558 = vrcp.f32 %v974_v61  ;;  %v2152_v4 = vpop.f32.mrb[22].mxu1  ;;  %v2161_v25 = vadd.f32 %v1914_v36, %v684_v19  ;;  %v2181_v17 = vadd.f32 %v1914_v36, %v687_v11 }
 0x107   :  { %v2154_v20 = vpop.f32.mrb[23].mxu0  ;;  %v1541_v46 = vpop.eup %1540  ;;  %1229 = vst [vmem:[%s2662_s4 + $0x30] sm:$0xff] %v1165_v0  ;;  %v1163_v41 = vmul.f32 %v1539_v7, %v1968_v26  ;;  %1560 = vpow2.f32 %v925_v55  ;;  %v2174_v26 = vadd.f32 %v1914_v36, %v655_v10  ;;  %v2189_v43 = vmul.f32 1.442695, %v787_v16 }
 0x108   :  { %v2165_v32 = vpop.f32.mrb[23].mxu1  ;;  %v1543_v42 = vpop.eup %1542  ;;  %1261 = vst [vmem:[%s2662_s4 + $0x130] sm:$0xff] %v1197_v8  ;;  %v1195_v14 = vmul.f32 %v1541_v46, %v1973_v30  ;;  %1562 = vpow2.f32 %v857_v54  ;;  %v819_v22 = vsub.f32 0.0, %v2161_v25  ;;  %v822_v19 = vsub.f32 0.0, %v2181_v17 }
 0x109   :  { %v1545_v55 = vpop.eup %1544  ;;  %1227 = vst [vmem:[%s2662_s4 + $0x20] sm:$0xff] %v1163_v41  ;;  %v1006_v47 = vadd.f32 1.0, %v1543_v42  ;;  %1564 = vpow2.f32 %v921_v29  ;;  %v790_v27 = vsub.f32 0.0, %v2174_v26  ;;  %v2193_v33 = vpop.f32.mrb[24].mxu0  ;;  %v685_v46 = vmul.f32 %v1909_v34, %v2043_v63 }
 0x10a   :  { %v1547_v60 = vpop.eup %1546  ;;  %1259 = vst [vmem:[%s2662_s4 + $0x120] sm:$0xff] %v1195_v14  ;;  %v972_v30 = vadd.f32 1.0, %v1545_v55  ;;  %1566 = vpow2.f32 %v867_v58  ;;  %v2191_v61 = vmul.f32 1.442695, %v819_v22  ;;  %v2197_v58 = vadd.f32 %v1914_v36, %v653_v39  ;;  %v2199_v7 = vpop.f32.mrb[24].mxu1 }
 0x10b   :  { %v1549_v54 = vpop.eup %1548  ;;  %1568 = vrcp.f32 %v1006_v47  ;;  %v1004_v29 = vadd.f32 1.0, %v1547_v60  ;;  %v2201_v48 = vpop.f32.mrb[25].mxu0  ;;  %v2203_v10 = vmul.f32 1.442695, %v790_v27  ;;  %v658_v47 = vmul.f32 %v2055_v24, %v1909_v34 }
 0x10c   :  { %v1551_v18 = vpop.eup %1550  ;;  %1570 = vrcp.f32 %v972_v30  ;;  %v977_v0 = vadd.f32 1.0, %v1549_v54  ;;  %v2207_v41 = vpop.f32.mrb[25].mxu1  ;;  %v788_v55 = vsub.f32 0.0, %v2197_v58  ;;  %v2219_v63 = vadd.f32 %v1914_v36, %v685_v46 }
 0x10d   :  { %v1553_v8 = vpop.eup %1552  ;;  %1572 = vrcp.f32 %v1004_v29  ;;  %v1009_v16 = vadd.f32 1.0, %v1551_v18  ;;  %v2209_v11 = vpop.f32.mrb[26].mxu0  ;;  %v690_v39 = vmul.f32 %v2062_v38, %v1909_v34  ;;  %v2228_v24 = vadd.f32 %v1914_v36, %v658_v47 }
 0x10e   :  { %v1555_v42 = vpop.eup %1554  ;;  %1574 = vrcp.f32 %v977_v0  ;;  %v975_v14 = vadd.f32 1.0, %v1553_v8  ;;  %v2214_v22 = vpop.f32.mrb[26].mxu1  ;;  %v2225_v0 = vmul.f32 1.442695, %v822_v19  ;;  %v820_v46 = vsub.f32 0.0, %v2219_v63 }
 0x10f   :  { %2663 = vst [vmem:[#allocation2_spill] sm:$0xff] %v2214_v22  ;;  %v2216_v60 = vpop.f32.mrb[27].mxu0  ;;  %v1557_v30 = vpop.eup %1556  ;;  %1576 = vrcp.f32 %v1009_v16  ;;  %v1007_v27 = vadd.f32 1.0, %v1555_v42  ;;  %v2233_v42 = vadd.f32 %v1914_v36, %v690_v39  ;;  %v656_v19 = vmul.f32 %v1909_v34, %v2064_v28 }
 0x110   :  { %2664 = vst [vmem:[#allocation3_spill] sm:$0xff] %v2216_v60  ;;  %v2223_v54 = vpop.f32.mrb[27].mxu1  ;;  %v1559_v29 = vpop.eup %1558  ;;  %1578 = vrcp.f32 %v975_v14  ;;  %v978_v18 = vadd.f32 1.0, %v1557_v30  ;;  %v793_v14 = vsub.f32 0.0, %v2228_v24  ;;  %v865_v47 = vmul.f32 1.442695, %v788_v55 }
 0x111   :  { %2665 = vst [vmem:[#allocation4_spill] sm:$0xff] %v2223_v54  ;;  %v1561_v8 = vpop.eup %1560  ;;  %v1166_v16 = vmul.f32 %v1559_v29, %v1976_v31  ;;  %1580 = vrcp.f32 %v1007_v27  ;;  %v929_v27 = vmul.f32 1.442695, %v820_v46  ;;  %v2242_v39 = vpop.f32.mrb[28].mxu0  ;;  %v2246_v60 = vadd.f32 %v1914_v36, %v656_v19 }
 0x112   :  { %v1563_v38 = vpop.eup %1562  ;;  %1582 = vrcp.f32 %v978_v18  ;;  %v1010_v54 = vadd.f32 1.0, %v1561_v8  ;;  %2666 = vst [vmem:[#allocation5_spill] sm:$0xff] %v2242_v39  ;;  %v825_v8 = vsub.f32 0.0, %v2233_v42  ;;  %v2248_v28 = vpop.f32.mrb[28].mxu1  ;;  %v688_v55 = vmul.f32 %v1909_v34, %v2069_v52 }
 0x113   :  { %v1565_v30 = vpop.eup %1564  ;;  %1230 = vst [vmem:[%s2662_s4 + $0x38] sm:$0xff] %v1166_v16  ;;  %v976_v31 = vadd.f32 1.0, %v1563_v38  ;;  %1584 = vpow2.f32 %v2171_v56  ;;  %2667 = vst [vmem:[#allocation6_spill] sm:$0xff] %v2248_v28  ;;  %v2250_v22 = vpop.f32.mrb[29].mxu0  ;;  %v875_v56 = vmul.f32 1.442695, %v793_v14 }
 0x114   :  { %v1567_v29 = vpop.eup %1566  ;;  %1586 = vrcp.f32 %v1010_v54  ;;  %v1008_v18 = vadd.f32 1.0, %v1565_v30  ;;  %2668 = vst [vmem:[#allocation7_spill] sm:$0xff] %v2250_v22  ;;  %v2254_v46 = vpop.f32.mrb[29].mxu1  ;;  %v791_v19 = vsub.f32 0.0, %v2246_v60  ;;  %v659_v22 = vmul.f32 %v2071_v44, %v1909_v34 }
 0x115   :  { %v1569_v16 = vpop.eup %1568  ;;  %1588 = vrcp.f32 %v976_v31  ;;  %v981_v38 = vadd.f32 1.0, %v1567_v29  ;;  %v2256_v54 = vpop.f32.mrb[30].mxu0  ;;  %v2268_v29 = vadd.f32 %v1914_v36, %v688_v55 }
 0x116   :  { %v1571_v30 = vpop.eup %1570  ;;  %v1198_v39 = vmul.f32 %v1569_v16, %v1981_v35  ;;  %1590 = vrcp.f32 %v1008_v18  ;;  %v2262_v28 = vpop.f32.mrb[30].mxu1  ;;  %v691_v35 = vmul.f32 %v2081_v59, %v1909_v34 }
 0x117   :  { %v2264_v31 = vpop.f32.mrb[31].mxu0  ;;  %v1573_v14 = vpop.eup %1572  ;;  %v1164_v52 = vmul.f32 %v1571_v30, %v1991_v57  ;;  %1592 = vrcp.f32 %v981_v38  ;;  %v2280_v57 = vadd.f32 %v1914_v36, %v659_v22  ;;  %v823_v55 = vsub.f32 0.0, %v2268_v29 }
 0x118   :  { %2669 = vst [vmem:[#allocation8_spill] sm:$0xff] %v2264_v31  ;;  %v2272_v18 = vpop.f32.mrb[31].mxu1  ;;  %v1575_v16 = vpop.eup %1574  ;;  %1262 = vst [vmem:[%s2662_s4 + $0x138] sm:$0xff] %v1198_v39  ;;  %v1196_v44 = vmul.f32 %v1573_v14, %v1995_v2  ;;  %1594 = vpow2.f32 %v2189_v43  ;;  %v939_v31 = vmul.f32 1.442695, %v825_v8  ;;  %v2289_v39 = vadd.f32 %v1914_v36, %v691_v35 }
 0x119   :  { %v1577_v38 = vpop.eup %1576  ;;  %1228 = vst [vmem:[%s2662_s4 + $0x28] sm:$0xff] %v1164_v52  ;;  %v1169_v59 = vmul.f32 %v1575_v16, %v2002_v9  ;;  %1596 = vpow2.f32 %v2191_v61  ;;  %v794_v22 = vsub.f32 0.0, %v2280_v57  ;;  %v657_v9 = vmul.f32 %v1909_v34, %v2083_v5 }
 0x11a   :  { %v1579_v2 = vpop.eup %1578  ;;  %1260 = vst [vmem:[%s2662_s4 + $0x128] sm:$0xff] %v1196_v44  ;;  %v1201_v43 = vmul.f32 %v1577_v38, %v2006_v13  ;;  %1598 = vpow2.f32 %v2203_v10  ;;  %v871_v30 = vmul.f32 1.442695, %v791_v19  ;;  %v935_v14 = vmul.f32 1.442695, %v823_v55 }
 0x11b   :  { %v1581_v61 = vpop.eup %1580  ;;  %1233 = vst [vmem:[%s2662_s4 + $0x50] sm:$0xff] %v1169_v59  ;;  %v1167_v8 = vmul.f32 %v1579_v2, %v2031_v45  ;;  %1600 = vpow2.f32 %v2225_v0  ;;  %v826_v5 = vsub.f32 0.0, %v2289_v39  ;;  %v2310_v10 = vadd.f32 %v1914_v36, %v657_v9 }
 0x11c   :  { %v1583_v52 = vpop.eup %1582  ;;  %1265 = vst [vmem:[%s2662_s4 + $0x150] sm:$0xff] %v1201_v43  ;;  %v1199_v13 = vmul.f32 %v1581_v61, %v2039_v53  ;;  %1602 = vpow2.f32 %v865_v47  ;;  %v877_v0 = vmul.f32 1.442695, %v794_v22  ;;  %v689_v19 = vmul.f32 %v1909_v34, %v2095_v23 }
 0x11d   :  { %v1585_v35 = vpop.eup %1584  ;;  %1231 = vst [vmem:[%s2662_s4 + $0x40] sm:$0xff] %v1167_v8  ;;  %v1170_v45 = vmul.f32 %v1583_v52, %v2047_v6  ;;  %1604 = vpow2.f32 %v929_v27  ;;  %v792_v47 = vsub.f32 0.0, %v2310_v10  ;;  %v662_v44 = vmul.f32 %v2125_v40, %v1909_v34 }
 0x11e   :  { %v1587_v16 = vpop.eup %1586  ;;  %1263 = vst [vmem:[%s2662_s4 + $0x140] sm:$0xff] %v1199_v13  ;;  %v1013_v53 = vadd.f32 1.0, %v1585_v35  ;;  %1606 = vpow2.f32 %v875_v56  ;;  %v2329_v23 = vadd.f32 %v1914_v36, %v689_v19  ;;  %v694_v27 = vmul.f32 %v2134_v51, %v1909_v34 }
 0x11f   :  { %v1589_v38 = vpop.eup %1588  ;;  %1234 = vst [vmem:[%s2662_s4 + $0x58] sm:$0xff] %v1170_v45  ;;  %v1202_v6 = vmul.f32 %v1587_v16, %v2052_v62  ;;  %1608 = vpow2.f32 %v939_v31  ;;  %v941_v55 = vmul.f32 1.442695, %v826_v5  ;;  %v2335_v40 = vadd.f32 %v1914_v36, %v662_v44 }
 0x120   :  { %v1591_v56 = vpop.eup %1590  ;;  %v1168_v59 = vmul.f32 %v1589_v38, %v2060_v37  ;;  %1610 = vrcp.f32 %v1013_v53  ;;  %v824_v31 = vsub.f32 0.0, %v2329_v23  ;;  %v2343_v51 = vadd.f32 %v1914_v36, %v694_v27 }
 0x121   :  { %v1593_v2 = vpop.eup %1592  ;;  %1266 = vst [vmem:[%s2662_s4 + $0x158] sm:$0xff] %v1202_v6  ;;  %v1200_v62 = vmul.f32 %v1591_v56, %v2091_v50  ;;  %1612 = vpow2.f32 %v871_v30  ;;  %v660_v22 = vmul.f32 %v1909_v34, %v2136_v1  ;;  %v873_v61 = vmul.f32 1.442695, %v792_v47 }
 0x122   :  { %v1595_v43 = vpop.eup %1594  ;;  %1232 = vst [vmem:[%s2662_s4 + $0x48] sm:$0xff] %v1168_v59  ;;  %v1173_v37 = vmul.f32 %v1593_v2, %v2103_v21  ;;  %1614 = vpow2.f32 %v935_v14  ;;  %v797_v8 = vsub.f32 0.0, %v2335_v40  ;;  %v2358_v14 = vmul.f32 1.442695, %v824_v31 }
 0x123   :  { %v1597_v9 = vpop.eup %1596  ;;  %1264 = vst [vmem:[%s2662_s4 + $0x148] sm:$0xff] %v1200_v62  ;;  %v979_v50 = vadd.f32 1.0, %v1595_v43  ;;  %1616 = vpow2.f32 %v877_v0  ;;  %v2361_v1 = vadd.f32 %v1914_v36, %v660_v22  ;;  %v829_v5 = vsub.f32 0.0, %v2343_v51 }
 0x124   :  { %v1599_v30 = vpop.eup %1598  ;;  %1237 = vst [vmem:[%s2662_s4 + $0x70] sm:$0xff] %v1173_v37  ;;  %v1011_v21 = vadd.f32 1.0, %v1597_v9  ;;  %1618 = vpow2.f32 %v941_v55  ;;  %v692_v35 = vmul.f32 %v1909_v34, %v2144_v49  ;;  %v663_v16 = vmul.f32 %v2146_v3, %v1909_v34 }
 0x125   :  { %v1601_v52 = vpop.eup %1600  ;;  %1620 = vrcp.f32 %v979_v50  ;;  %v982_v13 = vadd.f32 1.0, %v1599_v30  ;;  %v795_v19 = vsub.f32 0.0, %v2361_v1  ;;  %v695_v38 = vmul.f32 %v2152_v4, %v1909_v34 }
 0x126   :  { %v1603_v45 = vpop.eup %1602  ;;  %1622 = vrcp.f32 %v1011_v21  ;;  %v1014_v0 = vadd.f32 1.0, %v1601_v52  ;;  %v2370_v44 = vadd.f32 %v1914_v36, %v692_v35  ;;  %v883_v27 = vmul.f32 1.442695, %v797_v8 }
 0x127   :  { %v1605_v53 = vpop.eup %1604  ;;  %1624 = vrcp.f32 %v982_v13  ;;  %v980_v47 = vadd.f32 1.0, %v1603_v45  ;;  %v2375_v56 = vadd.f32 %v1914_v36, %v663_v16  ;;  %v2379_v2 = vadd.f32 %v1914_v36, %v695_v38 }
 0x128   :  { %v1607_v6 = vpop.eup %1606  ;;  %1626 = vrcp.f32 %v1014_v0  ;;  %v1012_v49 = vadd.f32 1.0, %v1605_v53  ;;  %v827_v3 = vsub.f32 0.0, %v2370_v44  ;;  %v947_v43 = vmul.f32 1.442695, %v829_v5 }
 0x129   :  { %v1609_v59 = vpop.eup %1608  ;;  %1628 = vrcp.f32 %v980_v47  ;;  %v985_v55 = vadd.f32 1.0, %v1607_v6  ;;  %v661_v4 = vmul.f32 %v1909_v34, %v2154_v20  ;;  %v879_v9 = vmul.f32 1.442695, %v795_v19 }
 0x12a   :  { %v1611_v62 = vpop.eup %1610  ;;  %1630 = vrcp.f32 %v1012_v49  ;;  %v1017_v31 = vadd.f32 1.0, %v1609_v59  ;;  %v798_v50 = vsub.f32 0.0, %v2375_v56  ;;  %v943_v21 = vmul.f32 1.442695, %v827_v3 }
 0x12b   :  { %v1613_v37 = vpop.eup %1612  ;;  %v1205_v22 = vmul.f32 %v1611_v62, %v2112_v15  ;;  %1632 = vrcp.f32 %v985_v55  ;;  %v2386_v52 = vadd.f32 %v1914_v36, %v661_v4  ;;  %v830_v15 = vsub.f32 0.0, %v2379_v2 }
 0x12c   :  { %v1615_v8 = vpop.eup %1614  ;;  %1634 = vrcp.f32 %v1017_v31  ;;  %v983_v30 = vadd.f32 1.0, %v1613_v37  ;;  %v693_v5 = vmul.f32 %v1909_v34, %v2165_v32  ;;  %v666_v19 = vmul.f32 %v2193_v33, %v1909_v34 }
 0x12d   :  { %v1617_v13 = vpop.eup %1616  ;;  %1269 = vst [vmem:[%s2662_s4 + $0x170] sm:$0xff] %v1205_v22  ;;  %v1015_v20 = vadd.f32 1.0, %v1615_v8  ;;  %1636 = vpow2.f32 %v873_v61  ;;  %v796_v0 = vsub.f32 0.0, %v2386_v52  ;;  %v698_v61 = vmul.f32 %v2199_v7, %v1909_v34  ;;  %v2438_v8 = vld [vmem:[%s2660_s2] ss:$0 sm:$0xff] }
 0x12e   :  { %v1619_v35 = vpop.eup %1618  ;;  %1638 = vrcp.f32 %v983_v30  ;;  %v986_v45 = vadd.f32 1.0, %v1617_v13  ;;  %v2398_v47 = vadd.f32 %v1914_v36, %v693_v5  ;;  %v885_v6 = vmul.f32 1.442695, %v798_v50 }
 0x12f   :  { %v1621_v16 = vpop.eup %1620  ;;  %1640 = vrcp.f32 %v1015_v20  ;;  %v1018_v53 = vadd.f32 1.0, %v1619_v35  ;;  %v2404_v49 = vadd.f32 %v1914_v36, %v666_v19  ;;  %v2409_v3 = vadd.f32 %v1914_v36, %v698_v61  ;;  %v2670_v20 = vld [vmem:[#allocation2_spill] sm:$0xff] }
 0x130   :  { %v1623_v38 = vpop.eup %1622  ;;  %v1171_v32 = vmul.f32 %v1621_v16, %v2132_v12  ;;  %1642 = vrcp.f32 %v986_v45  ;;  %v828_v55 = vsub.f32 0.0, %v2398_v47  ;;  %v949_v7 = vmul.f32 1.442695, %v830_v15 }
 0x131   :  { %v1625_v59 = vpop.eup %1624  ;;  %v1203_v33 = vmul.f32 %v1623_v38, %v2161_v25  ;;  %1644 = vrcp.f32 %v1018_v53  ;;  %v664_v31 = vmul.f32 %v1909_v34, %v2201_v48  ;;  %v881_v37 = vmul.f32 1.442695, %v796_v0  ;;  %v2671_v38 = vld [vmem:[#allocation3_spill] sm:$0xff] }
 0x132   :  { %v1627_v62 = vpop.eup %1626  ;;  %1235 = vst [vmem:[%s2662_s4 + $0x60] sm:$0xff] %v1171_v32  ;;  %v1174_v12 = vmul.f32 %v1625_v59, %v2174_v26  ;;  %1646 = vpow2.f32 %v2358_v14  ;;  %v801_v22 = vsub.f32 0.0, %v2404_v49  ;;  %v833_v34 = vsub.f32 0.0, %v2409_v3 }
 0x133   :  { %v1629_v25 = vpop.eup %1628  ;;  %1267 = vst [vmem:[%s2662_s4 + $0x160] sm:$0xff] %v1203_v33  ;;  %v1206_v4 = vmul.f32 %v1627_v62, %v2181_v17  ;;  %1648 = vpow2.f32 %v883_v27  ;;  %v2429_v48 = vadd.f32 %v1914_v36, %v664_v31  ;;  %v945_v27 = vmul.f32 1.442695, %v828_v55 }
 0x134   :  { %v1631_v50 = vpop.eup %1630  ;;  %1238 = vst [vmem:[%s2662_s4 + $0x78] sm:$0xff] %v1174_v12  ;;  %v1172_v26 = vmul.f32 %v1629_v25, %v2197_v58  ;;  %1650 = vpow2.f32 %v947_v43  ;;  %v696_v58 = vmul.f32 %v2438_v8, %v2207_v41  ;;  %v891_v13 = vmul.f32 1.442695, %v801_v22 }
 0x135   :  { %v1633_v14 = vpop.eup %1632  ;;  %1270 = vst [vmem:[%s2662_s4 + $0x178] sm:$0xff] %v1206_v4  ;;  %v1204_v17 = vmul.f32 %v1631_v50, %v2219_v63  ;;  %1652 = vpow2.f32 %v879_v9  ;;  %v799_v63 = vsub.f32 0.0, %v2429_v48  ;;  %v667_v9 = vmul.f32 %v2438_v8, %v2209_v11 }
 0x136   :  { %v1635_v43 = vpop.eup %1634  ;;  %1236 = vst [vmem:[%s2662_s4 + $0x68] sm:$0xff] %v1172_v26  ;;  %v1177_v36 = vmul.f32 %v1633_v14, %v2228_v24  ;;  %1654 = vpow2.f32 %v943_v21  ;;  %v699_v15 = vmul.f32 %v2438_v8, %v2670_v20  ;;  %v955_v11 = vmul.f32 1.442695, %v833_v34  ;;  %v2461_v21 = vld [vmem:[%s2661_s3] ss:$0 sm:$0xff] }
 0x137   :  { %v1637_v30 = vpop.eup %1636  ;;  %1268 = vst [vmem:[%s2662_s4 + $0x168] sm:$0xff] %v1204_v17  ;;  %v1209_v41 = vmul.f32 %v1635_v43, %v2233_v42  ;;  %1656 = vpow2.f32 %v885_v6  ;;  %v2464_v42 = vadd.f32 %v2461_v21, %v696_v58  ;;  %v887_v0 = vmul.f32 1.442695, %v799_v63  ;;  %v2674_v14 = vld [vmem:[#allocation6_spill] sm:$0xff] }
 0x138   :  { %v1639_v5 = vpop.eup %1638  ;;  %1241 = vst [vmem:[%s2662_s4 + $0x90] sm:$0xff] %v1177_v36  ;;  %v984_v24 = vadd.f32 1.0, %v1637_v30  ;;  %1658 = vpow2.f32 %v949_v7  ;;  %v2471_v19 = vadd.f32 %v2461_v21, %v667_v9  ;;  %v2475_v61 = vadd.f32 %v2461_v21, %v699_v15  ;;  %v2672_v7 = vld [vmem:[#allocation4_spill] sm:$0xff] }
 0x139   :  { %v1641_v35 = vpop.eup %1640  ;;  %1273 = vst [vmem:[%s2662_s4 + $0x190] sm:$0xff] %v1209_v41  ;;  %v1175_v45 = vmul.f32 %v1639_v5, %v2246_v60  ;;  %1660 = vpow2.f32 %v881_v37  ;;  %v665_v32 = vmul.f32 %v2438_v8, %v2671_v38  ;;  %v831_v33 = vsub.f32 0.0, %v2464_v42  ;;  %v2673_v37 = vld [vmem:[#allocation5_spill] sm:$0xff]  ;;  %v2675_v5 = vld [vmem:[#allocation7_spill] sm:$0xff] }
 0x13a   :  { %v1643_v16 = vpop.eup %1642  ;;  %v1207_v53 = vmul.f32 %v1641_v35, %v2268_v29  ;;  %1662 = vrcp.f32 %v984_v24  ;;  %v802_v12 = vsub.f32 0.0, %v2471_v19  ;;  %v697_v31 = vmul.f32 %v2438_v8, %v2672_v7 }
 0x13b   :  { %v1645_v6 = vpop.eup %1644  ;;  %1239 = vst [vmem:[%s2662_s4 + $0x80] sm:$0xff] %v1175_v45  ;;  %v1178_v60 = vmul.f32 %v1643_v16, %v2280_v57  ;;  %1664 = vpow2.f32 %v945_v27  ;;  %v2489_v55 = vadd.f32 %v2461_v21, %v665_v32  ;;  %v834_v4 = vsub.f32 0.0, %v2475_v61 }
 0x13c   :  { %v1647_v59 = vpop.eup %1646  ;;  %1271 = vst [vmem:[%s2662_s4 + $0x180] sm:$0xff] %v1207_v53  ;;  %v1210_v29 = vmul.f32 %v1645_v6, %v2289_v39  ;;  %1666 = vpow2.f32 %v891_v13  ;;  %v670_v22 = vmul.f32 %v2438_v8, %v2673_v37  ;;  %v702_v17 = vmul.f32 %v2438_v8, %v2674_v14 }
 0x13d   :  { %v1649_v62 = vpop.eup %1648  ;;  %1242 = vst [vmem:[%s2662_s4 + $0x98] sm:$0xff] %v1178_v60  ;;  %v1016_v57 = vadd.f32 1.0, %v1647_v59  ;;  %1668 = vpow2.f32 %v955_v11  ;;  %v800_v34 = vsub.f32 0.0, %v2489_v55  ;;  %v951_v43 = vmul.f32 1.442695, %v831_v33 }
 0x13e   :  { %v1651_v25 = vpop.eup %1650  ;;  %1274 = vst [vmem:[%s2662_s4 + $0x198] sm:$0xff] %v1210_v29  ;;  %v989_v39 = vadd.f32 1.0, %v1649_v62  ;;  %1670 = vpow2.f32 %v887_v0  ;;  %v2507_v36 = vadd.f32 %v2461_v21, %v697_v31  ;;  %v893_v30 = vmul.f32 1.442695, %v802_v12 }
 0x13f   :  { %v1653_v50 = vpop.eup %1652  ;;  %1672 = vrcp.f32 %v1016_v57  ;;  %v1021_v26 = vadd.f32 1.0, %v1651_v25  ;;  %v2510_v41 = vadd.f32 %v2461_v21, %v670_v22  ;;  %v2513_v15 = vadd.f32 %v2461_v21, %v702_v17  ;;  %v2676_v17 = vld [vmem:[#allocation8_spill] sm:$0xff] }
 0x140   :  { %v1655_v27 = vpop.eup %1654  ;;  %1674 = vrcp.f32 %v989_v39  ;;  %v987_v58 = vadd.f32 1.0, %v1653_v50  ;;  %v668_v24 = vmul.f32 %v2438_v8, %v2675_v5  ;;  %v957_v45 = vmul.f32 1.442695, %v834_v4 }
 0x141   :  { %v1657_v63 = vpop.eup %1656  ;;  %1676 = vrcp.f32 %v1021_v26  ;;  %v1019_v9 = vadd.f32 1.0, %v1655_v27  ;;  %v889_v0 = vmul.f32 1.442695, %v800_v34  ;;  %v832_v38 = vsub.f32 0.0, %v2507_v36 }
 0x142   :  { %v1659_v13 = vpop.eup %1658  ;;  %1678 = vrcp.f32 %v987_v58  ;;  %v990_v20 = vadd.f32 1.0, %v1657_v63  ;;  %v2519_v32 = vadd.f32 %v2461_v21, %v668_v24  ;;  %v805_v59 = vsub.f32 0.0, %v2510_v41 }
 0x143   :  { %v1661_v11 = vpop.eup %1660  ;;  %1680 = vrcp.f32 %v1019_v9  ;;  %v1022_v35 = vadd.f32 1.0, %v1659_v13  ;;  %v700_v29 = vmul.f32 %v2438_v8, %v2254_v46  ;;  %v837_v57 = vsub.f32 0.0, %v2513_v15 }
 0x144   :  { %v1663_v16 = vpop.eup %1662  ;;  %1682 = vrcp.f32 %v990_v20  ;;  %v988_v53 = vadd.f32 1.0, %v1661_v11  ;;  %v671_v12 = vmul.f32 %v2438_v8, %v2256_v54  ;;  %v703_v46 = vmul.f32 %v2438_v8, %v2262_v28 }
 0x145   :  { %v1665_v6 = vpop.eup %1664  ;;  %v1176_v60 = vmul.f32 %v1663_v16, %v2310_v10  ;;  %1684 = vrcp.f32 %v1022_v35  ;;  %v2532_v31 = vadd.f32 %v2461_v21, %v700_v29  ;;  %v953_v4 = vmul.f32 1.442695, %v832_v38 }
 0x146   :  { %v1667_v33 = vpop.eup %1666  ;;  %1686 = vrcp.f32 %v988_v53  ;;  %v1020_v62 = vadd.f32 1.0, %v1665_v6  ;;  %v803_v37 = vsub.f32 0.0, %v2519_v32  ;;  %v2539_v26 = vadd.f32 %v2461_v21, %v671_v12 }
 0x147   :  { %v1669_v7 = vpop.eup %1668  ;;  %1240 = vst [vmem:[%s2662_s4 + $0x88] sm:$0xff] %v1176_v60  ;;  %v993_v10 = vadd.f32 1.0, %v1667_v33  ;;  %1688 = vpow2.f32 %v951_v43  ;;  %v835_v50 = vsub.f32 0.0, %v2532_v31  ;;  %v2543_v28 = vadd.f32 %v2461_v21, %v703_v46 }
 0x148   :  { %v1671_v25 = vpop.eup %1670  ;;  %1690 = vrcp.f32 %v1020_v62  ;;  %v1025_v39 = vadd.f32 1.0, %v1669_v7  ;;  %v669_v27 = vmul.f32 %v2438_v8, %v2676_v17  ;;  %v899_v63 = vmul.f32 1.442695, %v805_v59 }
 0x149   :  { %v1673_v54 = vpop.eup %1672  ;;  %1692 = vrcp.f32 %v993_v10  ;;  %v991_v22 = vadd.f32 1.0, %v1671_v25  ;;  %v963_v9 = vmul.f32 1.442695, %v837_v57  ;;  %v895_v20 = vmul.f32 1.442695, %v803_v37 }
 0x14a   :  { %v1675_v34 = vpop.eup %1674  ;;  %v1208_v14 = vmul.f32 %v1673_v54, %v2329_v23  ;;  %1694 = vrcp.f32 %v1025_v39  ;;  %v2553_v5 = vadd.f32 %v2461_v21, %v669_v27  ;;  %v806_v11 = vsub.f32 0.0, %v2539_v26 }
 0x14b   :  { %v1677_v58 = vpop.eup %1676  ;;  %v1181_v43 = vmul.f32 %v1675_v34, %v2335_v40  ;;  %1696 = vrcp.f32 %v991_v22  ;;  %v701_v35 = vmul.f32 %v2438_v8, %v2272_v18  ;;  %v838_v53 = vsub.f32 0.0, %v2543_v28 }
 0x14c   :  { %v1679_v13 = vpop.eup %1678  ;;  %1272 = vst [vmem:[%s2662_s4 + $0x188] sm:$0xff] %v1208_v14  ;;  %v1213_v23 = vmul.f32 %v1677_v58, %v2343_v51  ;;  %1698 = vpow2.f32 %v893_v30  ;;  %v959_v30 = vmul.f32 1.442695, %v835_v50  ;;  %v804_v18 = vsub.f32 0.0, %v2553_v5 }
 0x14d   :  { %v1681_v24 = vpop.eup %1680  ;;  %1245 = vst [vmem:[%s2662_s4 + $0xb0] sm:$0xff] %v1181_v43  ;;  %v1179_v40 = vmul.f32 %v1679_v13, %v2361_v1  ;;  %1700 = vpow2.f32 %v957_v45  ;;  %v2573_v8 = vadd.f32 %v2461_v21, %v701_v35  ;;  %v901_v6 = vmul.f32 1.442695, %v806_v11 }
 0x14e   :  { %v1683_v16 = vpop.eup %1682  ;;  %1277 = vst [vmem:[%s2662_s4 + $0x1b0] sm:$0xff] %v1213_v23  ;;  %v1211_v51 = vmul.f32 %v1681_v24, %v2370_v44  ;;  %1702 = vpow2.f32 %v889_v0 }
 0x14f   :  { %v1685_v38 = vpop.eup %1684  ;;  %1243 = vst [vmem:[%s2662_s4 + $0xa0] sm:$0xff] %v1179_v40  ;;  %v1182_v1 = vmul.f32 %v1683_v16, %v2375_v56  ;;  %1704 = vpow2.f32 %v953_v4  ;;  %v836_v21 = vsub.f32 0.0, %v2573_v8 }
 0x150   :  { %v1687_v45 = vpop.eup %1686  ;;  %1275 = vst [vmem:[%s2662_s4 + $0x1a0] sm:$0xff] %v1211_v51  ;;  %v1214_v44 = vmul.f32 %v1685_v38, %v2379_v2  ;;  %1706 = vpow2.f32 %v899_v63  ;;  %v965_v2 = vmul.f32 1.442695, %v838_v53 }
 0x151   :  { %v1689_v0 = vpop.eup %1688  ;;  %1246 = vst [vmem:[%s2662_s4 + $0xb8] sm:$0xff] %v1182_v1  ;;  %v1180_v56 = vmul.f32 %v1687_v45, %v2386_v52  ;;  %1708 = vpow2.f32 %v963_v9  ;;  %v897_v52 = vmul.f32 1.442695, %v804_v18  ;;  %v961_v12 = vmul.f32 1.442695, %v836_v21 }
 0x152   :  { %v1691_v60 = vpop.eup %1690  ;;  %1278 = vst [vmem:[%s2662_s4 + $0x1b8] sm:$0xff] %v1214_v44  ;;  %v1023_v59 = vadd.f32 1.0, %v1689_v0  ;;  %1710 = vpow2.f32 %v895_v20 }
 0x153   :  { %v1693_v29 = vpop.eup %1692  ;;  %1244 = vst [vmem:[%s2662_s4 + $0xa8] sm:$0xff] %v1180_v56  ;;  %v1212_v33 = vmul.f32 %v1691_v60, %v2398_v47  ;;  %1712 = vpow2.f32 %v959_v30 }
 0x154   :  { %v1695_v62 = vpop.eup %1694  ;;  %v1185_v57 = vmul.f32 %v1693_v29, %v2404_v49  ;;  %1714 = vrcp.f32 %v1023_v59 }
 0x155   :  { %v1697_v7 = vpop.eup %1696  ;;  %1276 = vst [vmem:[%s2662_s4 + $0x1a8] sm:$0xff] %v1212_v33  ;;  %v1217_v10 = vmul.f32 %v1695_v62, %v2409_v3  ;;  %1716 = vpow2.f32 %v901_v6 }
 0x156   :  { %v1699_v46 = vpop.eup %1698  ;;  %1249 = vst [vmem:[%s2662_s4 + $0xd0] sm:$0xff] %v1185_v57  ;;  %v1183_v47 = vmul.f32 %v1697_v7, %v2429_v48  ;;  %1718 = vpow2.f32 %v965_v2 }
 0x157   :  { %v1701_v25 = vpop.eup %1700  ;;  %1281 = vst [vmem:[%s2662_s4 + $0x1d0] sm:$0xff] %v1217_v10  ;;  %v994_v49 = vadd.f32 1.0, %v1699_v46  ;;  %1720 = vpow2.f32 %v897_v52 }
 0x158   :  { %v1703_v39 = vpop.eup %1702  ;;  %1247 = vst [vmem:[%s2662_s4 + $0xc0] sm:$0xff] %v1183_v47  ;;  %v1026_v3 = vadd.f32 1.0, %v1701_v25  ;;  %1722 = vpow2.f32 %v961_v12 }
 0x159   :  { %v1705_v4 = vpop.eup %1704  ;;  %1724 = vrcp.f32 %v994_v49  ;;  %v992_v37 = vadd.f32 1.0, %v1703_v39 }
 0x15a   :  { %v1707_v54 = vpop.eup %1706  ;;  %1726 = vrcp.f32 %v1026_v3  ;;  %v1024_v48 = vadd.f32 1.0, %v1705_v4 }
 0x15b   :  { %v1709_v22 = vpop.eup %1708  ;;  %1728 = vrcp.f32 %v992_v37  ;;  %v997_v50 = vadd.f32 1.0, %v1707_v54 }
 0x15c   :  { %v1711_v34 = vpop.eup %1710  ;;  %1730 = vrcp.f32 %v1024_v48  ;;  %v1029_v14 = vadd.f32 1.0, %v1709_v22 }
 0x15d   :  { %v1713_v17 = vpop.eup %1712  ;;  %1732 = vrcp.f32 %v997_v50  ;;  %v995_v27 = vadd.f32 1.0, %v1711_v34 }
 0x15e   :  { %v1715_v58 = vpop.eup %1714  ;;  %1734 = vrcp.f32 %v1029_v14  ;;  %v1027_v43 = vadd.f32 1.0, %v1713_v17 }
 0x15f   :  { %v1717_v63 = vpop.eup %1716  ;;  %v1215_v9 = vmul.f32 %v1715_v58, %v2464_v42  ;;  %1736 = vrcp.f32 %v995_v27 }
 0x160   :  { %v1719_v13 = vpop.eup %1718  ;;  %1738 = vrcp.f32 %v1027_v43  ;;  %v998_v23 = vadd.f32 1.0, %v1717_v63 }
 0x161   :  { %v1721_v20 = vpop.eup %1720  ;;  %1279 = vst [vmem:[%s2662_s4 + $0x1c0] sm:$0xff] %v1215_v9  ;;  %v1030_v24 = vadd.f32 1.0, %v1719_v13 }
 0x162   :  { %v1723_v40 = vpop.eup %1722  ;;  %1740 = vrcp.f32 %v998_v23  ;;  %v996_v11 = vadd.f32 1.0, %v1721_v20 }
 0x163   :  { %v1725_v35 = vpop.eup %1724  ;;  %1742 = vrcp.f32 %v1030_v24  ;;  %v1028_v16 = vadd.f32 1.0, %v1723_v40 }
 0x164   :  { %v1727_v51 = vpop.eup %1726  ;;  %v1186_v30 = vmul.f32 %v1725_v35, %v2471_v19  ;;  %1744 = vrcp.f32 %v996_v11 }
 0x165   :  { %v1729_v42 = vpop.eup %1728  ;;  %v1218_v53 = vmul.f32 %v1727_v51, %v2475_v61  ;;  %1746 = vrcp.f32 %v1028_v16 }
 0x166   :  { %v1731_v38 = vpop.eup %1730  ;;  %1250 = vst [vmem:[%s2662_s4 + $0xd8] sm:$0xff] %v1186_v30  ;;  %v1184_v1 = vmul.f32 %v1729_v42, %v2489_v55 }
 0x167   :  { %v1733_v18 = vpop.eup %1732  ;;  %1282 = vst [vmem:[%s2662_s4 + $0x1d8] sm:$0xff] %v1218_v53  ;;  %v1216_v45 = vmul.f32 %v1731_v38, %v2507_v36 }
 0x168   :  { %v1735_v19 = vpop.eup %1734  ;;  %1248 = vst [vmem:[%s2662_s4 + $0xc8] sm:$0xff] %v1184_v1  ;;  %v1189_v61 = vmul.f32 %v1733_v18, %v2510_v41 }
 0x169   :  { %v1737_v44 = vpop.eup %1736  ;;  %1280 = vst [vmem:[%s2662_s4 + $0x1c8] sm:$0xff] %v1216_v45  ;;  %v1221_v55 = vmul.f32 %v1735_v19, %v2513_v15 }
 0x16a   :  { %v1739_v0 = vpop.eup %1738  ;;  %1253 = vst [vmem:[%s2662_s4 + $0xf0] sm:$0xff] %v1189_v61  ;;  %v1187_v36 = vmul.f32 %v1737_v44, %v2519_v32 }
 0x16b   :  { %1285 = vst [vmem:[%s2662_s4 + $0x1f0] sm:$0xff] %v1221_v55  ;;  %v1219_v41 = vmul.f32 %v1739_v0, %v2532_v31 }
 0x16c   :  { %v1741_v56 = vpop.eup %1740  ;;  %1251 = vst [vmem:[%s2662_s4 + $0xe0] sm:$0xff] %v1187_v36 }
 0x16d   :  { %v1743_v6 = vpop.eup %1742  ;;  %1283 = vst [vmem:[%s2662_s4 + $0x1e0] sm:$0xff] %v1219_v41  ;;  %v1190_v15 = vmul.f32 %v1741_v56, %v2539_v26 }
 0x16e   :  { %v1745_v21 = vpop.eup %1744  ;;  %v1222_v32 = vmul.f32 %v1743_v6, %v2543_v28 }
 0x16f   :  { %v1747_v60 = vpop.eup %1746  ;;  %1254 = vst [vmem:[%s2662_s4 + $0xf8] sm:$0xff] %v1190_v15  ;;  %v1188_v31 = vmul.f32 %v1745_v21, %v2553_v5 }
 0x170   :  { %1286 = vst [vmem:[%s2662_s4 + $0x1f8] sm:$0xff] %v1222_v32  ;;  %v1220_v59 = vmul.f32 %v1747_v60, %v2573_v8 }
 0x171   :  { %1252 = vst [vmem:[%s2662_s4 + $0xe8] sm:$0xff] %v1188_v31 }
 0x172   :  { %1284 = vst [vmem:[%s2662_s4 + $0x1e8] sm:$0xff] %v1220_v59 }

// kernel: cspdarknet_fwd.46
= control target key start
LH: loop header
LB: loop body
LE: loop exit
PB: predicated region body
PF: predicated region fallthrough
CT: control target
= control target key end

     0   :  { %vm281_vm0 = vcmask 588800   ;;  %vm378_vm1 = vcmask 1043456   ;;  %s3066_s1 = inlined_call_operand.vmem [shape: bf16[72,128], index: 1, kind: input, shape index: {}]   ;;  %s3067_s0 = inlined_call_operand.vmem [shape: bf16[512,72], index: 0, kind: input, shape index: {}]   ;;  %s3068_s2 = inlined_call_operand.vmem [shape: f32[1,128], index: 2, kind: input, shape index: {}]   ;;  %s3069_s3 = inlined_call_operand.vmem [shape: f32[1,128], index: 3, kind: input, shape index: {}]   ;;  %s3070_s4 = inlined_call_operand.vmem [shape: f32[512,128], index: 4, kind: input, shape index: {}]   ;;  %s3071_s5 = inlined_call_operand.vmem [shape: f32[512,128], index: 5, kind: output, shape index: {}]  }
   0x1   :  { %v1651_v0 = vld [vmem:[%s3066_s1] sm:$0xff]   ;;  %v1652_v1 = vld [vmem:[%s3066_s1 + $0x8] sm:$0xff]   ;;  %v1653_v2 = vld [vmem:[%s3066_s1 + $0x10] sm:$0xff]  }
   0x2   :  { %1565 = vmatprep.subr.bf16.mxu0 %v1651_v0  ;;  %1639 = vmatprep.subr.bf16.mxu1 %v1651_v0  ;;  %v1656_v3 = vld [vmem:[%s3067_s0] sm:$0xff]   ;;  %v1654_v5 = vld [vmem:[%s3066_s1 + $0x18] sm:$0xff]   ;;  %v1658_v8 = vld [vmem:[%s3067_s0 + $0x8] sm:$0xff]  }
   0x3   :  { %1566 = vmatpush3.bf16.msra.mxu0 %v1651_v0  ;;  %1644 = vmatpush3.bf16.msra.mxu1 %v1651_v0  ;;  %v1657_v4 = vld [vmem:[%s3067_s0 + $0x80] sm:$0xff]   ;;  %v1659_v9 = vld [vmem:[%s3067_s0 + $0x88] sm:$0xff]   ;;  %v1660_v10 = vld [vmem:[%s3067_s0 + $0x10] sm:$0xff]  }
   0x4   :  { %1567 = vmatprep.subr.bf16.mxu0 %v1652_v1  ;;  %1640 = vmatprep.subr.bf16.mxu1 %v1652_v1  ;;  %v1655_v6 = vld [vmem:[%s3066_s1 + $0x20] ss:$0 sps:$4 sm:$0xff]   ;;  %v1661_v11 = vld [vmem:[%s3067_s0 + $0x90] sm:$0xff]   ;;  %v1662_v12 = vld [vmem:[%s3067_s0 + $0x18] sm:$0xff]  }
   0x5   :  { %1575 = vmatprep.mubr.msk.bf16.mxu0 %vm281_vm0, %v1656_v3  ;;  %1607 = vmatprep.mubr.msk.bf16.mxu1 %vm281_vm0, %v1657_v4  ;;  %v380_v7 = vsel %vm378_vm1, %v1655_v6, 0  ;;  %v1663_v13 = vld [vmem:[%s3067_s0 + $0x98] sm:$0xff]   ;;  %v1664_v14 = vld [vmem:[%s3067_s0 + $0x20] sm:$0xff]   ;;  %v1666_v16 = vld [vmem:[%s3067_s0 + $0x28] sm:$0xff]  }
   0x6   :  { %v1665_v15 = vld [vmem:[%s3067_s0 + $0xa0] sm:$0xff]   ;;  %v1667_v17 = vld [vmem:[%s3067_s0 + $0xa8] sm:$0xff]   ;;  %v1668_v18 = vld [vmem:[%s3067_s0 + $0x30] sm:$0xff]  }
   0x7   :  { %1568 = vmatpush3.bf16.msra.mxu0 %v1652_v1  ;;  %1645 = vmatpush3.bf16.msra.mxu1 %v1652_v1  ;;  %v1669_v19 = vld [vmem:[%s3067_s0 + $0xb0] sm:$0xff]   ;;  %v1670_v20 = vld [vmem:[%s3067_s0 + $0x38] sm:$0xff]   ;;  %v1672_v22 = vld [vmem:[%s3067_s0 + $0x40] sm:$0xff]  }
   0x8   :  { %1569 = vmatprep.subr.bf16.mxu0 %v1653_v2  ;;  %1641 = vmatprep.subr.bf16.mxu1 %v1653_v2  ;;  %v1671_v21 = vld [vmem:[%s3067_s0 + $0xb8] sm:$0xff]   ;;  %v1673_v23 = vld [vmem:[%s3067_s0 + $0xc0] sm:$0xff]   ;;  %v1674_v24 = vld [vmem:[%s3067_s0 + $0x48] sm:$0xff]  }
   0x9   :  { %v1675_v25 = vld [vmem:[%s3067_s0 + $0xc8] sm:$0xff]   ;;  %v1676_v26 = vld [vmem:[%s3067_s0 + $0x50] sm:$0xff]   ;;  %v1678_v28 = vld [vmem:[%s3067_s0 + $0x58] sm:$0xff]  }
   0xa   :  { %v1677_v27 = vld [vmem:[%s3067_s0 + $0xd0] sm:$0xff]   ;;  %v1679_v29 = vld [vmem:[%s3067_s0 + $0xd8] sm:$0xff]   ;;  %v1680_v30 = vld [vmem:[%s3067_s0 + $0x60] sm:$0xff]  }
   0xb   :  { %1570 = vmatpush3.bf16.msra.mxu0 %v1653_v2  ;;  %1646 = vmatpush3.bf16.msra.mxu1 %v1653_v2  ;;  %v1681_v31 = vld [vmem:[%s3067_s0 + $0xe0] sm:$0xff]   ;;  %v1682_v32 = vld [vmem:[%s3067_s0 + $0x68] sm:$0xff]   ;;  %v1684_v34 = vld [vmem:[%s3067_s0 + $0x70] sm:$0xff]  }
   0xc   :  { %1571 = vmatprep.subr.bf16.mxu0 %v1654_v5  ;;  %1642 = vmatprep.subr.bf16.mxu1 %v1654_v5  ;;  %v1683_v33 = vld [vmem:[%s3067_s0 + $0xe8] sm:$0xff]   ;;  %v1685_v35 = vld [vmem:[%s3067_s0 + $0xf0] sm:$0xff]   ;;  %v1686_v36 = vld [vmem:[%s3067_s0 + $0x78] sm:$0xff]  }
   0xd   :  { %v1687_v37 = vld [vmem:[%s3067_s0 + $0xf8] sm:$0xff]   ;;  %v2122_v38 = vld [vmem:[%s3068_s2] ss:$0 sm:$0xff] }
   0xe   :  { %v2127_v40 = vld [vmem:[%s3069_s3] ss:$0 sm:$0xff] }
   0xf   :  { %1572 = vmatpush3.bf16.msra.mxu0 %v1654_v5  ;;  %1647 = vmatpush3.bf16.msra.mxu1 %v1654_v5 }
  0x10   :  { %1649 = vmatprep.subr.msk.bf16.mxu0 %vm378_vm1, %v1655_v6  ;;  %1650 = vmatprep.subr.msk.bf16.mxu1 %vm378_vm1, %v1655_v6 }
  0x13   :  { %1574 = vmatpush3.bf16.msra.mxu0 %v380_v7  ;;  %1648 = vmatpush3.bf16.msra.mxu1 %v380_v7 }
  0x16   :  { %1576 = vmatmul.mubr.msk.bf16.vlgmr.msra.gmra.mrb[0].mxu0 %vm281_vm0, %v1658_v8  ;;  %1608 = vmatmul.mubr.msk.bf16.vlgmr.msra.gmra.mrb[0].mxu1 %vm281_vm0, %v1659_v9 }
  0x17   :  { %1579 = vmatprep.mubr.msk.bf16.mxu0 %vm281_vm0, %v1660_v10  ;;  %1611 = vmatprep.mubr.msk.bf16.mxu1 %vm281_vm0, %v1661_v11 }
  0x1e   :  { %1580 = vmatmul.mubr.msk.bf16.gmra.mrb[4].mxu0 %vm281_vm0, %v1662_v12  ;;  %1612 = vmatmul.mubr.msk.bf16.gmra.mrb[4].mxu1 %vm281_vm0, %v1663_v13 }
  0x1f   :  { %1583 = vmatprep.mubr.msk.bf16.mxu0 %vm281_vm0, %v1664_v14  ;;  %1615 = vmatprep.mubr.msk.bf16.mxu1 %vm281_vm0, %v1665_v15 }
  0x26   :  { %1584 = vmatmul.mubr.msk.bf16.gmra.mrb[8].mxu0 %vm281_vm0, %v1666_v16  ;;  %1616 = vmatmul.mubr.msk.bf16.gmra.mrb[8].mxu1 %vm281_vm0, %v1667_v17 }
  0x27   :  { %1587 = vmatprep.mubr.msk.bf16.mxu0 %vm281_vm0, %v1668_v18  ;;  %1619 = vmatprep.mubr.msk.bf16.mxu1 %vm281_vm0, %v1669_v19 }
  0x2e   :  { %1588 = vmatmul.mubr.msk.bf16.gmra.mrb[12].mxu0 %vm281_vm0, %v1670_v20  ;;  %1620 = vmatmul.mubr.msk.bf16.gmra.mrb[12].mxu1 %vm281_vm0, %v1671_v21 }
  0x2f   :  { %1591 = vmatprep.mubr.msk.bf16.mxu0 %vm281_vm0, %v1672_v22  ;;  %1623 = vmatprep.mubr.msk.bf16.mxu1 %vm281_vm0, %v1673_v23 }
  0x36   :  { %1592 = vmatmul.mubr.msk.bf16.gmra.mrb[16].mxu0 %vm281_vm0, %v1674_v24  ;;  %1624 = vmatmul.mubr.msk.bf16.gmra.mrb[16].mxu1 %vm281_vm0, %v1675_v25 }
  0x37   :  { %1595 = vmatprep.mubr.msk.bf16.mxu0 %vm281_vm0, %v1676_v26  ;;  %1627 = vmatprep.mubr.msk.bf16.mxu1 %vm281_vm0, %v1677_v27 }
  0x3e   :  { %1596 = vmatmul.mubr.msk.bf16.gmra.mrb[20].mxu0 %vm281_vm0, %v1678_v28  ;;  %1628 = vmatmul.mubr.msk.bf16.gmra.mrb[20].mxu1 %vm281_vm0, %v1679_v29 }
  0x3f   :  { %1599 = vmatprep.mubr.msk.bf16.mxu0 %vm281_vm0, %v1680_v30  ;;  %1631 = vmatprep.mubr.msk.bf16.mxu1 %vm281_vm0, %v1681_v31 }
  0x46   :  { %1600 = vmatmul.mubr.msk.bf16.gmra.mrb[24].mxu0 %vm281_vm0, %v1682_v32  ;;  %1632 = vmatmul.mubr.msk.bf16.gmra.mrb[24].mxu1 %vm281_vm0, %v1683_v33 }
  0x47   :  { %1603 = vmatprep.mubr.msk.bf16.mxu0 %vm281_vm0, %v1684_v34  ;;  %1635 = vmatprep.mubr.msk.bf16.mxu1 %vm281_vm0, %v1685_v35 }
  0x4e   :  { %1604 = vmatmul.mubr.msk.bf16.gmra.mrb[28].mxu0 %vm281_vm0, %v1686_v36  ;;  %1636 = vmatmul.mubr.msk.bf16.gmra.mrb[28].mxu1 %vm281_vm0, %v1687_v37 }
  0xe9   :  { %v1577_v39 = vpop.f32.mrb[0].mxu0  ;;  %v1609_v41 = vpop.f32.mrb[0].mxu1 }
  0xea   :  { %v680_v42 = vmul.f32 %v1577_v39, %v2122_v38  ;;  %v712_v43 = vmul.f32 %v1609_v41, %v2122_v38  ;;  %v416_v44 = vpop.f32.mrb[1].mxu0  ;;  %v544_v45 = vpop.f32.mrb[1].mxu1 }
  0xeb   :  { %v678_v46 = vmul.f32 %v2122_v38, %v416_v44  ;;  %v710_v47 = vmul.f32 %v2122_v38, %v544_v45  ;;  %v1578_v48 = vpop.f32.mrb[2].mxu0  ;;  %v1610_v49 = vpop.f32.mrb[2].mxu1 }
  0xec   :  { %v2134_v50 = vadd.f32 %v2127_v40, %v680_v42  ;;  %v2137_v51 = vadd.f32 %v2127_v40, %v712_v43  ;;  %v681_v52 = vmul.f32 %v1578_v48, %v2122_v38  ;;  %v713_v53 = vmul.f32 %v1610_v49, %v2122_v38  ;;  %v419_v54 = vpop.f32.mrb[3].mxu0  ;;  %v547_v55 = vpop.f32.mrb[3].mxu1 }
  0xed   :  { %v2142_v56 = vadd.f32 %v2127_v40, %v678_v46  ;;  %v2145_v57 = vadd.f32 %v2127_v40, %v710_v47  ;;  %v679_v58 = vmul.f32 %v2122_v38, %v419_v54  ;;  %v711_v59 = vmul.f32 %v2122_v38, %v547_v55 }
  0xee   :  { %v815_v60 = vsub.f32 0.0, %v2134_v50  ;;  %v847_v61 = vsub.f32 0.0, %v2137_v51  ;;  %v2152_v62 = vadd.f32 %v2127_v40, %v681_v52  ;;  %v2155_v63 = vadd.f32 %v2127_v40, %v713_v53 }
  0xef   :  { %v813_v0 = vsub.f32 0.0, %v2142_v56  ;;  %v845_v1 = vsub.f32 0.0, %v2145_v57  ;;  %v2160_v2 = vadd.f32 %v2127_v40, %v679_v58  ;;  %v2163_v3 = vadd.f32 %v2127_v40, %v711_v59 }
  0xf0   :  { %v881_v4 = vmul.f32 1.442695, %v815_v60  ;;  %v945_v5 = vmul.f32 1.442695, %v847_v61  ;;  %v816_v6 = vsub.f32 0.0, %v2152_v62  ;;  %v848_v7 = vsub.f32 0.0, %v2155_v63 }
  0xf1   :  { %v877_v8 = vmul.f32 1.442695, %v813_v0  ;;  %v941_v9 = vmul.f32 1.442695, %v845_v1  ;;  %v814_v10 = vsub.f32 0.0, %v2160_v2  ;;  %v846_v11 = vsub.f32 0.0, %v2163_v3 }
  0xf2   :  { %1688 = vpow2.f32 %v881_v4  ;;  %v883_v12 = vmul.f32 1.442695, %v816_v6  ;;  %v947_v13 = vmul.f32 1.442695, %v848_v7  ;;  %v1581_v14 = vpop.f32.mrb[4].mxu0  ;;  %v1613_v15 = vpop.f32.mrb[4].mxu1 }
  0xf3   :  { %1690 = vpow2.f32 %v945_v5  ;;  %v879_v16 = vmul.f32 1.442695, %v814_v10  ;;  %v943_v17 = vmul.f32 1.442695, %v846_v11  ;;  %v684_v18 = vmul.f32 %v1581_v14, %v2122_v38  ;;  %v432_v19 = vpop.f32.mrb[5].mxu0  ;;  %v560_v20 = vpop.f32.mrb[5].mxu1 }
  0xf4   :  { %1692 = vpow2.f32 %v877_v8  ;;  %v716_v21 = vmul.f32 %v1613_v15, %v2122_v38  ;;  %v682_v22 = vmul.f32 %v2122_v38, %v432_v19  ;;  %v714_v23 = vmul.f32 %v2122_v38, %v560_v20  ;;  %v1582_v24 = vpop.f32.mrb[6].mxu0  ;;  %v1614_v25 = vpop.f32.mrb[6].mxu1 }
  0xf5   :  { %1694 = vpow2.f32 %v941_v9  ;;  %v2174_v26 = vadd.f32 %v2127_v40, %v684_v18  ;;  %v685_v27 = vmul.f32 %v1582_v24, %v2122_v38  ;;  %v717_v28 = vmul.f32 %v1614_v25, %v2122_v38  ;;  %v435_v29 = vpop.f32.mrb[7].mxu0  ;;  %v563_v30 = vpop.f32.mrb[7].mxu1 }
  0xf6   :  { %1696 = vpow2.f32 %v883_v12  ;;  %v2179_v31 = vadd.f32 %v2127_v40, %v716_v21  ;;  %v2182_v32 = vadd.f32 %v2127_v40, %v682_v22  ;;  %v2185_v33 = vadd.f32 %v2127_v40, %v714_v23 }
  0xf7   :  { %1698 = vpow2.f32 %v947_v13  ;;  %v819_v34 = vsub.f32 0.0, %v2174_v26  ;;  %v2189_v35 = vadd.f32 %v2127_v40, %v685_v27  ;;  %v2192_v36 = vadd.f32 %v2127_v40, %v717_v28 }
  0xf8   :  { %1700 = vpow2.f32 %v879_v16  ;;  %v851_v37 = vsub.f32 0.0, %v2179_v31  ;;  %v817_v39 = vsub.f32 0.0, %v2182_v32  ;;  %v849_v41 = vsub.f32 0.0, %v2185_v33 }
  0xf9   :  { %1702 = vpow2.f32 %v943_v17  ;;  %v889_v42 = vmul.f32 1.442695, %v819_v34  ;;  %v820_v43 = vsub.f32 0.0, %v2189_v35  ;;  %v852_v44 = vsub.f32 0.0, %v2192_v36  ;;  %v1585_v45 = vpop.f32.mrb[8].mxu0  ;;  %v1617_v46 = vpop.f32.mrb[8].mxu1 }
  0xfa   :  { %v953_v47 = vmul.f32 1.442695, %v851_v37  ;;  %v885_v48 = vmul.f32 1.442695, %v817_v39  ;;  %v949_v49 = vmul.f32 1.442695, %v849_v41  ;;  %v683_v52 = vmul.f32 %v2122_v38, %v435_v29 }
  0xfb   :  { %1704 = vpow2.f32 %v889_v42  ;;  %v2200_v53 = vmul.f32 1.442695, %v820_v43  ;;  %v2202_v54 = vmul.f32 1.442695, %v852_v44  ;;  %v715_v55 = vmul.f32 %v2122_v38, %v563_v30  ;;  %v448_v58 = vpop.f32.mrb[9].mxu0  ;;  %v576_v59 = vpop.f32.mrb[9].mxu1 }
  0xfc   :  { %v1689_v60 = vpop.eup %1688  ;;  %1706 = vpow2.f32 %v953_v47  ;;  %v2206_v61 = vadd.f32 %v2127_v40, %v683_v52  ;;  %v688_v0 = vmul.f32 %v1585_v45, %v2122_v38  ;;  %v720_v1 = vmul.f32 %v1617_v46, %v2122_v38  ;;  %v1586_v4 = vpop.f32.mrb[10].mxu0 }
  0xfd   :  { %v1618_v5 = vpop.f32.mrb[10].mxu1  ;;  %v1691_v6 = vpop.eup %1690  ;;  %v1007_v7 = vadd.f32 1.0, %v1689_v60  ;;  %1708 = vpow2.f32 %v885_v48  ;;  %v2211_v8 = vadd.f32 %v2127_v40, %v715_v55  ;;  %v686_v9 = vmul.f32 %v2122_v38, %v448_v58 }
  0xfe   :  { %v451_v10 = vpop.f32.mrb[11].mxu0  ;;  %v2214_v11 = vpop.f32.mrb[11].mxu1  ;;  %v1039_v13 = vadd.f32 1.0, %v1691_v6  ;;  %1710 = vpow2.f32 %v949_v49  ;;  %v818_v14 = vsub.f32 0.0, %v2206_v61  ;;  %v2218_v15 = vadd.f32 %v2127_v40, %v688_v0 }
  0xff   :  { %v1693_v12 = vpop.eup %1692  ;;  %1712 = vrcp.f32 %v1007_v7  ;;  %v850_v18 = vsub.f32 0.0, %v2211_v8  ;;  %v2222_v19 = vadd.f32 %v2127_v40, %v720_v1  ;;  %v2237_v41 = vadd.f32 %v2127_v40, %v686_v9 }
 0x100   :  { %v1695_v16 = vpop.eup %1694  ;;  %v1005_v17 = vadd.f32 1.0, %v1693_v12  ;;  %1714 = vrcp.f32 %v1039_v13  ;;  %v2224_v22 = vmul.f32 1.442695, %v818_v14  ;;  %v823_v23 = vsub.f32 0.0, %v2218_v15 }
 0x101   :  { %v1697_v20 = vpop.eup %1696  ;;  %v1037_v21 = vadd.f32 1.0, %v1695_v16  ;;  %v2227_v27 = vmul.f32 1.442695, %v850_v18  ;;  %v855_v28 = vsub.f32 0.0, %v2222_v19  ;;  %v2230_v29 = vpop.f32.mrb[12].mxu0  ;;  %v718_v47 = vmul.f32 %v2122_v38, %v576_v59 }
 0x102   :  { %v1699_v24 = vpop.eup %1698  ;;  %1716 = vrcp.f32 %v1005_v17  ;;  %v1008_v25 = vadd.f32 1.0, %v1697_v20  ;;  %v2232_v30 = vpop.f32.mrb[12].mxu1  ;;  %v2234_v39 = vmul.f32 1.442695, %v823_v23  ;;  %v821_v55 = vsub.f32 0.0, %v2237_v41 }
 0x103   :  { %v1701_v34 = vpop.eup %1700  ;;  %1718 = vrcp.f32 %v1037_v21  ;;  %v1040_v37 = vadd.f32 1.0, %v1699_v24  ;;  %v2239_v42 = vpop.f32.mrb[13].mxu0  ;;  %v2243_v46 = vmul.f32 1.442695, %v855_v28  ;;  %v689_v58 = vmul.f32 %v1586_v4, %v2122_v38 }
 0x104   :  { %v2241_v43 = vpop.f32.mrb[13].mxu1  ;;  %v1703_v44 = vpop.eup %1702  ;;  %1720 = vrcp.f32 %v1008_v25  ;;  %v1006_v45 = vadd.f32 1.0, %v1701_v34  ;;  %v2257_v6 = vadd.f32 %v2127_v40, %v718_v47  ;;  %v721_v59 = vmul.f32 %v1618_v5, %v2122_v38  ;;  %v1295_v47 = vld [vmem:[%s3070_s4 + $0x110] sm:$0xff] }
 0x105   :  { %v2246_v48 = vpop.f32.mrb[14].mxu0  ;;  %v2248_v49 = vpop.f32.mrb[14].mxu1  ;;  %1722 = vrcp.f32 %v1040_v37  ;;  %v1038_v52 = vadd.f32 1.0, %v1703_v44  ;;  %v687_v7 = vmul.f32 %v2122_v38, %v451_v10  ;;  %v2261_v13 = vmul.f32 1.442695, %v821_v55  ;;  %v1263_v10 = vld [vmem:[%s3070_s4 + $0x10] sm:$0xff] }
 0x106   :  { %v2252_v60 = vpop.f32.mrb[15].mxu0  ;;  %v2254_v0 = vpop.f32.mrb[15].mxu1  ;;  %1724 = vrcp.f32 %v1006_v45  ;;  %v2264_v4 = vadd.f32 %v2127_v40, %v689_v58  ;;  %v853_v17 = vsub.f32 0.0, %v2257_v6  ;;  %v2269_v18 = vadd.f32 %v2127_v40, %v721_v59 }
 0x107   :  { %v1705_v1 = vpop.eup %1704  ;;  %1726 = vrcp.f32 %v1038_v52  ;;  %v2276_v23 = vadd.f32 %v2127_v40, %v687_v7 }
 0x108   :  { %v1707_v9 = vpop.eup %1706  ;;  %v1011_v12 = vadd.f32 1.0, %v1705_v1  ;;  %1728 = vpow2.f32 %v2200_v53  ;;  %v824_v21 = vsub.f32 0.0, %v2264_v4  ;;  %v2278_v25 = vmul.f32 1.442695, %v853_v17 }
 0x109   :  { %v1709_v14 = vpop.eup %1708  ;;  %v1043_v16 = vadd.f32 1.0, %v1707_v9  ;;  %v856_v28 = vsub.f32 0.0, %v2269_v18  ;;  %v2281_v34 = vpop.f32.mrb[16].mxu0  ;;  %v822_v55 = vsub.f32 0.0, %v2276_v23 }
 0x10a   :  { %v1711_v5 = vpop.eup %1710  ;;  %1730 = vrcp.f32 %v1011_v12  ;;  %v1009_v20 = vadd.f32 1.0, %v1709_v14  ;;  %v2283_v37 = vpop.f32.mrb[16].mxu1  ;;  %v2289_v52 = vmul.f32 1.442695, %v824_v21  ;;  %v719_v12 = vmul.f32 %v2122_v38, %v2214_v11 }
 0x10b   :  { %v1713_v24 = vpop.eup %1712  ;;  %1732 = vrcp.f32 %v1043_v16  ;;  %v1041_v53 = vadd.f32 1.0, %v1711_v5  ;;  %v2292_v58 = vpop.f32.mrb[17].mxu0  ;;  %v2300_v9 = vmul.f32 1.442695, %v856_v28  ;;  %v2313_v21 = vmul.f32 1.442695, %v822_v55 }
 0x10c   :  { %v1715_v44 = vpop.eup %1714  ;;  %v1199_v45 = vmul.f32 %v1713_v24, %v2134_v50  ;;  %1734 = vrcp.f32 %v1009_v20  ;;  %v2294_v1 = vpop.f32.mrb[17].mxu1  ;;  %v1261_v50 = vld [vmem:[%s3070_s4] sm:$0xff] }
 0x10d   :  { %v1717_v59 = vpop.eup %1716  ;;  %v1231_v7 = vmul.f32 %v1715_v44, %v2137_v51  ;;  %1736 = vrcp.f32 %v1041_v53  ;;  %v2304_v14 = vpop.f32.mrb[18].mxu0  ;;  %v1293_v51 = vld [vmem:[%s3070_s4 + $0x100] sm:$0xff] }
 0x10e   :  { %v2306_v16 = vpop.f32.mrb[18].mxu1  ;;  %v1719_v17 = vpop.eup %1718  ;;  %v1327_v5 = vadd.f32 %v1263_v10, %v1199_v45  ;;  %v1197_v20 = vmul.f32 %v1717_v59, %v2142_v56  ;;  %1738 = vpow2.f32 %v2202_v54  ;;  %v1264_v56 = vld [vmem:[%s3070_s4 + $0x18] sm:$0xff]  ;;  %v2325_v10 = vadd.f32 %v2127_v40, %v719_v12 }
 0x10f   :  { %v2315_v24 = vpop.f32.mrb[19].mxu0  ;;  %v2317_v53 = vpop.f32.mrb[19].mxu1  ;;  %v1359_v28 = vadd.f32 %v1295_v47, %v1231_v7  ;;  %v1229_v44 = vmul.f32 %v1719_v17, %v2145_v57  ;;  %1740 = vpow2.f32 %v2224_v22  ;;  %v1296_v57 = vld [vmem:[%s3070_s4 + $0x118] sm:$0xff]  ;;  %v692_v22 = vmul.f32 %v2230_v29, %v2122_v38 }
 0x110   :  { %v1721_v11 = vpop.eup %1720  ;;  %1391 = vst [vmem:[%s3071_s5 + $0x10] sm:$0xff] %v1327_v5  ;;  %v1325_v45 = vadd.f32 %v1261_v50, %v1197_v20  ;;  %1742 = vpow2.f32 %v2227_v27  ;;  %v854_v50 = vsub.f32 0.0, %v2325_v10 }
 0x111   :  { %v1723_v54 = vpop.eup %1722  ;;  %v1200_v55 = vmul.f32 %v1721_v11, %v2152_v62  ;;  %1423 = vst [vmem:[%s3071_s5 + $0x110] sm:$0xff] %v1359_v28  ;;  %v1357_v59 = vadd.f32 %v1293_v51, %v1229_v44  ;;  %v1262_v62 = vld [vmem:[%s3070_s4 + $0x8] sm:$0xff]  ;;  %1744 = vpow2.f32 %v2234_v39  ;;  %v2355_v17 = vadd.f32 %v2127_v40, %v692_v22  ;;  %v2362_v51 = vpop.f32.mrb[20].mxu0  ;;  %v1267_v44 = vld [vmem:[%s3070_s4 + $0x30] sm:$0xff] }
 0x112   :  { %v1725_v47 = vpop.eup %1724  ;;  %v1232_v7 = vmul.f32 %v1723_v54, %v2155_v63  ;;  %1389 = vst [vmem:[%s3071_s5] sm:$0xff] %v1325_v45  ;;  %v1294_v63 = vld [vmem:[%s3070_s4 + $0x108] sm:$0xff]  ;;  %1746 = vpow2.f32 %v2243_v46  ;;  %v2364_v11 = vpop.f32.mrb[20].mxu1  ;;  %v1299_v22 = vld [vmem:[%s3070_s4 + $0x130] sm:$0xff] }
 0x113   :  { %v1727_v27 = vpop.eup %1726  ;;  %v1328_v29 = vadd.f32 %v1264_v56, %v1200_v55  ;;  %v1198_v12 = vmul.f32 %v1725_v47, %v2160_v2  ;;  %1421 = vst [vmem:[%s3071_s5 + $0x100] sm:$0xff] %v1357_v59  ;;  %1748 = vpow2.f32 %v2261_v13  ;;  %v959_v2 = vmul.f32 1.442695, %v854_v50  ;;  %v2374_v13 = vpop.f32.mrb[21].mxu0 }
 0x114   :  { %v1729_v39 = vpop.eup %1728  ;;  %v1360_v5 = vadd.f32 %v1296_v57, %v1232_v7  ;;  %v1230_v20 = vmul.f32 %v1727_v27, %v2163_v3  ;;  %1750 = vpow2.f32 %v2278_v25  ;;  %v827_v3 = vsub.f32 0.0, %v2355_v17  ;;  %v2376_v54 = vpop.f32.mrb[21].mxu1 }
 0x115   :  { %v1731_v28 = vpop.eup %1730  ;;  %1392 = vst [vmem:[%s3071_s5 + $0x18] sm:$0xff] %v1328_v29  ;;  %v1326_v46 = vadd.f32 %v1262_v62, %v1198_v12  ;;  %v1012_v56 = vadd.f32 1.0, %v1729_v39  ;;  %1752 = vpow2.f32 %v2289_v52  ;;  %v724_v25 = vmul.f32 %v2232_v30, %v2122_v38  ;;  %v2388_v47 = vpop.f32.mrb[22].mxu0  ;;  %v1265_v62 = vld [vmem:[%s3070_s4 + $0x20] sm:$0xff] }
 0x116   :  { %v1733_v45 = vpop.eup %1732  ;;  %1424 = vst [vmem:[%s3071_s5 + $0x118] sm:$0xff] %v1360_v5  ;;  %v1358_v55 = vadd.f32 %v1294_v63, %v1230_v20  ;;  %v1203_v57 = vmul.f32 %v1731_v28, %v2174_v26  ;;  %v2390_v59 = vpop.f32.mrb[22].mxu1  ;;  %v905_v52 = vmul.f32 1.442695, %v827_v3  ;;  %v690_v30 = vmul.f32 %v2122_v38, %v2239_v42  ;;  %v1297_v63 = vld [vmem:[%s3070_s4 + $0x120] sm:$0xff] }
 0x117   :  { %v1735_v7 = vpop.eup %1734  ;;  %1390 = vst [vmem:[%s3071_s5 + $0x8] sm:$0xff] %v1326_v46  ;;  %v1235_v26 = vmul.f32 %v1733_v45, %v2179_v31  ;;  %1754 = vrcp.f32 %v1012_v56  ;;  %v2401_v50 = vpop.f32.mrb[23].mxu0  ;;  %v2414_v42 = vadd.f32 %v2127_v40, %v724_v25 }
 0x118   :  { %v2403_v27 = vpop.f32.mrb[23].mxu1  ;;  %v1737_v29 = vpop.eup %1736  ;;  %1422 = vst [vmem:[%s3071_s5 + $0x108] sm:$0xff] %v1358_v55  ;;  %v1331_v12 = vadd.f32 %v1267_v44, %v1203_v57  ;;  %v1201_v31 = vmul.f32 %v1735_v7, %v2182_v32  ;;  %1756 = vpow2.f32 %v2300_v9  ;;  %v2419_v28 = vadd.f32 %v2127_v40, %v690_v30 }
 0x119   :  { %v1739_v39 = vpop.eup %1738  ;;  %v1363_v5 = vadd.f32 %v1299_v22, %v1235_v26  ;;  %v1233_v20 = vmul.f32 %v1737_v29, %v2185_v33  ;;  %1758 = vpow2.f32 %v2313_v21  ;;  %v859_v9 = vsub.f32 0.0, %v2414_v42  ;;  %v2434_v22 = vpop.f32.mrb[24].mxu0 }
 0x11a   :  { %v1741_v46 = vpop.eup %1740  ;;  %1395 = vst [vmem:[%s3071_s5 + $0x30] sm:$0xff] %v1331_v12  ;;  %v1329_v32 = vadd.f32 %v1265_v62, %v1201_v31  ;;  %v1044_v44 = vadd.f32 1.0, %v1739_v39  ;;  %1760 = vpow2.f32 %v959_v2  ;;  %v825_v3 = vsub.f32 0.0, %v2419_v28  ;;  %v2436_v25 = vpop.f32.mrb[24].mxu1 }
 0x11b   :  { %v1743_v56 = vpop.eup %1742  ;;  %1427 = vst [vmem:[%s3071_s5 + $0x130] sm:$0xff] %v1363_v5  ;;  %v1361_v33 = vadd.f32 %v1297_v63, %v1233_v20  ;;  %v1010_v21 = vadd.f32 1.0, %v1741_v46  ;;  %1762 = vpow2.f32 %v905_v52  ;;  %v969_v2 = vmul.f32 1.442695, %v859_v9  ;;  %v2445_v30 = vpop.f32.mrb[25].mxu0 }
 0x11c   :  { %v1745_v45 = vpop.eup %1744  ;;  %1393 = vst [vmem:[%s3071_s5 + $0x20] sm:$0xff] %v1329_v32  ;;  %1764 = vrcp.f32 %v1044_v44  ;;  %v1042_v55 = vadd.f32 1.0, %v1743_v56  ;;  %v722_v57 = vmul.f32 %v2122_v38, %v2241_v43  ;;  %v2441_v62 = vmul.f32 1.442695, %v825_v3  ;;  %v2447_v29 = vpop.f32.mrb[25].mxu1 }
 0x11d   :  { %v1747_v7 = vpop.eup %1746  ;;  %1425 = vst [vmem:[%s3071_s5 + $0x120] sm:$0xff] %v1361_v33  ;;  %1766 = vrcp.f32 %v1010_v21  ;;  %v1015_v26 = vadd.f32 1.0, %v1745_v45  ;;  %v693_v52 = vmul.f32 %v2246_v48, %v2122_v38  ;;  %v725_v63 = vmul.f32 %v2248_v49, %v2122_v38  ;;  %v2454_v39 = vpop.f32.mrb[26].mxu0  ;;  %v1268_v45 = vld [vmem:[%s3070_s4 + $0x38] sm:$0xff] }
 0x11e   :  { %v1749_v43 = vpop.eup %1748  ;;  %1768 = vrcp.f32 %v1042_v55  ;;  %v1047_v12 = vadd.f32 1.0, %v1747_v7  ;;  %v2450_v31 = vadd.f32 %v2127_v40, %v722_v57  ;;  %3072 = vst [vmem:[#allocation2_spill] sm:$0xff] %v2454_v39  ;;  %v2456_v5 = vpop.f32.mrb[26].mxu1  ;;  %v691_v32 = vmul.f32 %v2122_v38, %v2252_v60 }
 0x11f   :  { %3073 = vst [vmem:[#allocation3_spill] sm:$0xff] %v2456_v5  ;;  %v1751_v20 = vpop.eup %1750  ;;  %1770 = vrcp.f32 %v1015_v26  ;;  %v1013_v48 = vadd.f32 1.0, %v1749_v43  ;;  %v2459_v46 = vadd.f32 %v2127_v40, %v693_v52  ;;  %v2463_v44 = vpop.f32.mrb[27].mxu0  ;;  %v2469_v21 = vadd.f32 %v2127_v40, %v725_v63 }
 0x120   :  { %3074 = vst [vmem:[#allocation4_spill] sm:$0xff] %v2463_v44  ;;  %v2465_v9 = vpop.f32.mrb[27].mxu1  ;;  %v1753_v56 = vpop.eup %1752  ;;  %1772 = vrcp.f32 %v1047_v12  ;;  %v1045_v49 = vadd.f32 1.0, %v1751_v20  ;;  %v857_v33 = vsub.f32 0.0, %v2450_v31  ;;  %v2476_v57 = vadd.f32 %v2127_v40, %v691_v32 }
 0x121   :  { %3075 = vst [vmem:[#allocation5_spill] sm:$0xff] %v2465_v9  ;;  %v1755_v3 = vpop.eup %1754  ;;  %1774 = vrcp.f32 %v1013_v48  ;;  %v1016_v55 = vadd.f32 1.0, %v1753_v56  ;;  %v828_v60 = vsub.f32 0.0, %v2459_v46  ;;  %v860_v43 = vsub.f32 0.0, %v2469_v21  ;;  %v2481_v32 = vpop.f32.mrb[28].mxu0 }
 0x122   :  { %v1757_v7 = vpop.eup %1756  ;;  %v1204_v26 = vmul.f32 %v1755_v3, %v2189_v35  ;;  %1776 = vrcp.f32 %v1045_v49  ;;  %v965_v52 = vmul.f32 1.442695, %v857_v33  ;;  %v826_v9 = vsub.f32 0.0, %v2476_v57  ;;  %v2483_v39 = vpop.f32.mrb[28].mxu1 }
 0x123   :  { %v1759_v12 = vpop.eup %1758  ;;  %1778 = vrcp.f32 %v1016_v55  ;;  %v1048_v63 = vadd.f32 1.0, %v1757_v7  ;;  %v907_v20 = vmul.f32 1.442695, %v828_v60  ;;  %v971_v5 = vmul.f32 1.442695, %v860_v43  ;;  %v2487_v55 = vpop.f32.mrb[29].mxu0 }
 0x124   :  { %v1761_v48 = vpop.eup %1760  ;;  %v1332_v56 = vadd.f32 %v1268_v45, %v1204_v26  ;;  %v1014_v44 = vadd.f32 1.0, %v1759_v12  ;;  %1780 = vpow2.f32 %v969_v2  ;;  %v903_v33 = vmul.f32 1.442695, %v826_v9  ;;  %v2489_v60 = vpop.f32.mrb[29].mxu1  ;;  %v1300_v2 = vld [vmem:[%s3070_s4 + $0x138] sm:$0xff] }
 0x125   :  { %v1763_v35 = vpop.eup %1762  ;;  %1782 = vrcp.f32 %v1048_v63  ;;  %v1046_v49 = vadd.f32 1.0, %v1761_v48  ;;  %v723_v3 = vmul.f32 %v2122_v38, %v2254_v0  ;;  %v696_v9 = vmul.f32 %v2281_v34, %v2122_v38  ;;  %v2501_v26 = vpop.f32.mrb[30].mxu0  ;;  %v1266_v48 = vld [vmem:[%s3070_s4 + $0x28] sm:$0xff] }
 0x126   :  { %v1765_v7 = vpop.eup %1764  ;;  %1396 = vst [vmem:[%s3071_s5 + $0x38] sm:$0xff] %v1332_v56  ;;  %1784 = vrcp.f32 %v1014_v44  ;;  %v1019_v45 = vadd.f32 1.0, %v1763_v35  ;;  %v728_v0 = vmul.f32 %v2283_v37, %v2122_v38  ;;  %v2503_v43 = vpop.f32.mrb[30].mxu1  ;;  %v694_v34 = vmul.f32 %v2122_v38, %v2292_v58 }
 0x127   :  { %3076 = vst [vmem:[#allocation6_spill] sm:$0xff] %v2503_v43  ;;  %v1767_v12 = vpop.eup %1766  ;;  %v1236_v63 = vmul.f32 %v1765_v7, %v2192_v36  ;;  %1786 = vrcp.f32 %v1046_v49  ;;  %v2510_v44 = vadd.f32 %v2127_v40, %v723_v3  ;;  %v2514_v56 = vpop.f32.mrb[31].mxu0  ;;  %v1298_v36 = vld [vmem:[%s3070_s4 + $0x128] sm:$0xff]  ;;  %v2523_v49 = vadd.f32 %v2127_v40, %v696_v9 }
 0x128   :  { %3077 = vst [vmem:[#allocation7_spill] sm:$0xff] %v2514_v56  ;;  %v2516_v37 = vpop.f32.mrb[31].mxu1  ;;  %v1769_v35 = vpop.eup %1768  ;;  %v1202_v43 = vmul.f32 %v1767_v12, %v2206_v61  ;;  %1788 = vrcp.f32 %v1019_v45  ;;  %v2526_v3 = vadd.f32 %v2127_v40, %v728_v0  ;;  %v1303_v0 = vld [vmem:[%s3070_s4 + $0x150] sm:$0xff] }
 0x129   :  { %3078 = vst [vmem:[#allocation8_spill] sm:$0xff] %v2516_v37  ;;  %v1771_v7 = vpop.eup %1770  ;;  %v1364_v58 = vadd.f32 %v1300_v2, %v1236_v63  ;;  %v1234_v56 = vmul.f32 %v1769_v35, %v2211_v8  ;;  %v1271_v37 = vld [vmem:[%s3070_s4 + $0x50] sm:$0xff]  ;;  %1790 = vpow2.f32 %v2441_v62  ;;  %v858_v61 = vsub.f32 0.0, %v2510_v44 }
 0x12a   :  { %v1773_v12 = vpop.eup %1772  ;;  %v1330_v45 = vadd.f32 %v1266_v48, %v1202_v43  ;;  %v1207_v9 = vmul.f32 %v1771_v7, %v2218_v15  ;;  %1792 = vpow2.f32 %v965_v52  ;;  %v831_v2 = vsub.f32 0.0, %v2523_v49  ;;  %v1269_v43 = vld [vmem:[%s3070_s4 + $0x40] sm:$0xff] }
 0x12b   :  { %v1775_v8 = vpop.eup %1774  ;;  %1428 = vst [vmem:[%s3071_s5 + $0x138] sm:$0xff] %v1364_v58  ;;  %v1362_v63 = vadd.f32 %v1298_v36, %v1234_v56  ;;  %v1239_v62 = vmul.f32 %v1773_v12, %v2222_v19  ;;  %1794 = vpow2.f32 %v907_v20  ;;  %v967_v15 = vmul.f32 1.442695, %v858_v61  ;;  %v1301_v56 = vld [vmem:[%s3070_s4 + $0x140] sm:$0xff] }
 0x12c   :  { %v1777_v48 = vpop.eup %1776  ;;  %1394 = vst [vmem:[%s3071_s5 + $0x28] sm:$0xff] %v1330_v45  ;;  %v1335_v52 = vadd.f32 %v1271_v37, %v1207_v9  ;;  %v1205_v35 = vmul.f32 %v1775_v8, %v2237_v41  ;;  %1796 = vpow2.f32 %v971_v5  ;;  %v913_v19 = vmul.f32 1.442695, %v831_v2  ;;  %v1272_v37 = vld [vmem:[%s3070_s4 + $0x58] sm:$0xff]  ;;  %v1270_v8 = vld [vmem:[%s3070_s4 + $0x48] sm:$0xff] }
 0x12d   :  { %v1779_v36 = vpop.eup %1778  ;;  %1426 = vst [vmem:[%s3071_s5 + $0x128] sm:$0xff] %v1362_v63  ;;  %v1367_v20 = vadd.f32 %v1303_v0, %v1239_v62  ;;  %v1237_v7 = vmul.f32 %v1777_v48, %v2257_v6  ;;  %1798 = vpow2.f32 %v903_v33  ;;  %v863_v41 = vsub.f32 0.0, %v2526_v3  ;;  %v1304_v45 = vld [vmem:[%s3070_s4 + $0x158] sm:$0xff] }
 0x12e   :  { %v1781_v58 = vpop.eup %1780  ;;  %1399 = vst [vmem:[%s3071_s5 + $0x50] sm:$0xff] %v1335_v52  ;;  %v1333_v5 = vadd.f32 %v1269_v43, %v1205_v35  ;;  %v1208_v61 = vmul.f32 %v1779_v36, %v2264_v4  ;;  %1800 = vpow2.f32 %v967_v15  ;;  %v2566_v12 = vadd.f32 %v2127_v40, %v694_v34 }
 0x12f   :  { %v1783_v6 = vpop.eup %1782  ;;  %1431 = vst [vmem:[%s3071_s5 + $0x150] sm:$0xff] %v1367_v20  ;;  %v1365_v33 = vadd.f32 %v1301_v56, %v1237_v7  ;;  %v1051_v9 = vadd.f32 1.0, %v1781_v58  ;;  %1802 = vpow2.f32 %v913_v19  ;;  %v977_v0 = vmul.f32 1.442695, %v863_v41 }
 0x130   :  { %v1785_v2 = vpop.eup %1784  ;;  %1397 = vst [vmem:[%s3071_s5 + $0x40] sm:$0xff] %v1333_v5  ;;  %v1336_v4 = vadd.f32 %v1272_v37, %v1208_v61  ;;  %v1240_v34 = vmul.f32 %v1783_v6, %v2269_v18  ;;  %v829_v63 = vsub.f32 0.0, %v2566_v12  ;;  %v726_v62 = vmul.f32 %v2122_v38, %v2294_v1  ;;  %v1302_v18 = vld [vmem:[%s3070_s4 + $0x148] sm:$0xff] }
 0x131   :  { %v1787_v43 = vpop.eup %1786  ;;  %1429 = vst [vmem:[%s3071_s5 + $0x140] sm:$0xff] %v1365_v33  ;;  %v1206_v15 = vmul.f32 %v1785_v2, %v2276_v23  ;;  %1804 = vrcp.f32 %v1051_v9  ;;  %v697_v48 = vmul.f32 %v2304_v14, %v2122_v38  ;;  %v729_v52 = vmul.f32 %v2306_v16, %v2122_v38  ;;  %v1275_v23 = vld [vmem:[%s3070_s4 + $0x70] sm:$0xff] }
 0x132   :  { %v1789_v35 = vpop.eup %1788  ;;  %1400 = vst [vmem:[%s3071_s5 + $0x58] sm:$0xff] %v1336_v4  ;;  %v1368_v1 = vadd.f32 %v1304_v45, %v1240_v34  ;;  %v1238_v56 = vmul.f32 %v1787_v43, %v2325_v10  ;;  %1806 = vpow2.f32 %v977_v0  ;;  %v909_v19 = vmul.f32 1.442695, %v829_v63 }
 0x133   :  { %v1791_v36 = vpop.eup %1790  ;;  %v1334_v20 = vadd.f32 %v1270_v8, %v1206_v15  ;;  %v1211_v14 = vmul.f32 %v1789_v35, %v2355_v17  ;;  %v2604_v16 = vadd.f32 %v2127_v40, %v726_v62  ;;  %v2607_v7 = vadd.f32 %v2127_v40, %v697_v48 }
 0x134   :  { %v1793_v37 = vpop.eup %1792  ;;  %1432 = vst [vmem:[%s3071_s5 + $0x158] sm:$0xff] %v1368_v1  ;;  %v1366_v10 = vadd.f32 %v1302_v18, %v1238_v56  ;;  %v1017_v41 = vadd.f32 1.0, %v1791_v36  ;;  %1808 = vpow2.f32 %v909_v19  ;;  %v2613_v58 = vadd.f32 %v2127_v40, %v729_v52  ;;  %v1307_v36 = vld [vmem:[%s3070_s4 + $0x170] sm:$0xff] }
 0x135   :  { %v1795_v5 = vpop.eup %1794  ;;  %1398 = vst [vmem:[%s3071_s5 + $0x48] sm:$0xff] %v1334_v20  ;;  %v1339_v17 = vadd.f32 %v1275_v23, %v1211_v14  ;;  %v1049_v61 = vadd.f32 1.0, %v1793_v37  ;;  %v861_v6 = vsub.f32 0.0, %v2604_v16  ;;  %v832_v33 = vsub.f32 0.0, %v2607_v7 }
 0x136   :  { %v1797_v45 = vpop.eup %1796  ;;  %1430 = vst [vmem:[%s3071_s5 + $0x148] sm:$0xff] %v1366_v10  ;;  %1810 = vrcp.f32 %v1017_v41  ;;  %v1020_v9 = vadd.f32 1.0, %v1795_v5  ;;  %v864_v0 = vsub.f32 0.0, %v2613_v58  ;;  %v695_v2 = vmul.f32 %v2122_v38, %v2315_v24 }
 0x137   :  { %v1799_v4 = vpop.eup %1798  ;;  %1403 = vst [vmem:[%s3071_s5 + $0x70] sm:$0xff] %v1339_v17  ;;  %1812 = vrcp.f32 %v1049_v61  ;;  %v1052_v34 = vadd.f32 1.0, %v1797_v45  ;;  %v973_v8 = vmul.f32 1.442695, %v861_v6  ;;  %v915_v63 = vmul.f32 1.442695, %v832_v33 }
 0x138   :  { %v1801_v62 = vpop.eup %1800  ;;  %1814 = vrcp.f32 %v1020_v9  ;;  %v1018_v43 = vadd.f32 1.0, %v1799_v4  ;;  %v979_v15 = vmul.f32 1.442695, %v864_v0  ;;  %v2630_v18 = vadd.f32 %v2127_v40, %v695_v2  ;;  %v1273_v0 = vld [vmem:[%s3070_s4 + $0x60] sm:$0xff] }
 0x139   :  { %v1803_v48 = vpop.eup %1802  ;;  %1816 = vrcp.f32 %v1052_v34  ;;  %v1050_v52 = vadd.f32 1.0, %v1801_v62  ;;  %v727_v24 = vmul.f32 %v2122_v38, %v2317_v53  ;;  %v700_v35 = vmul.f32 %v2362_v51, %v2122_v38  ;;  %v1305_v62 = vld [vmem:[%s3070_s4 + $0x160] sm:$0xff] }
 0x13a   :  { %1818 = vrcp.f32 %v1018_v43  ;;  %v1023_v1 = vadd.f32 1.0, %v1803_v48  ;;  %v830_v56 = vsub.f32 0.0, %v2630_v18  ;;  %v732_v23 = vmul.f32 %v2364_v11, %v2122_v38 }
 0x13b   :  { %v1805_v19 = vpop.eup %1804  ;;  %1820 = vrcp.f32 %v1050_v52  ;;  %v2643_v20 = vadd.f32 %v2127_v40, %v727_v24  ;;  %v2646_v53 = vadd.f32 %v2127_v40, %v700_v35  ;;  %v698_v51 = vmul.f32 %v2122_v38, %v2374_v13  ;;  %v2689_v24 = vld [vmem:[%s3069_s3] ss:$0 sm:$0xff] }
 0x13c   :  { %v1807_v14 = vpop.eup %1806  ;;  %v1243_v37 = vmul.f32 %v1805_v19, %v2414_v42  ;;  %1822 = vrcp.f32 %v1023_v1  ;;  %v911_v11 = vmul.f32 1.442695, %v830_v56  ;;  %v2652_v10 = vadd.f32 %v2127_v40, %v732_v23 }
 0x13d   :  { %v1055_v41 = vadd.f32 1.0, %v1807_v14  ;;  %1824 = vpow2.f32 %v973_v8  ;;  %v862_v5 = vsub.f32 0.0, %v2643_v20  ;;  %v835_v17 = vsub.f32 0.0, %v2646_v53 }
 0x13e   :  { %v1809_v61 = vpop.eup %1808  ;;  %v1371_v6 = vadd.f32 %v1307_v36, %v1243_v37  ;;  %1826 = vpow2.f32 %v915_v63  ;;  %v867_v33 = vsub.f32 0.0, %v2652_v10  ;;  %v2658_v38 = vadd.f32 %v2127_v40, %v698_v51  ;;  %v2670_v40 = vld [vmem:[%s3068_s2] ss:$0 sm:$0xff]  ;;  %v1274_v51 = vld [vmem:[%s3070_s4 + $0x68] sm:$0xff] }
 0x13f   :  { %1828 = vrcp.f32 %v1055_v41  ;;  %v1021_v13 = vadd.f32 1.0, %v1809_v61  ;;  %v975_v42 = vmul.f32 1.442695, %v862_v5  ;;  %v921_v45 = vmul.f32 1.442695, %v835_v17  ;;  %v1306_v41 = vld [vmem:[%s3070_s4 + $0x168] sm:$0xff] }
 0x140   :  { %v1811_v9 = vpop.eup %1810  ;;  %1435 = vst [vmem:[%s3071_s5 + $0x170] sm:$0xff] %v1371_v6  ;;  %1830 = vpow2.f32 %v979_v15  ;;  %v985_v2 = vmul.f32 1.442695, %v867_v33  ;;  %v833_v4 = vsub.f32 0.0, %v2658_v38  ;;  %v730_v34 = vmul.f32 %v2670_v40, %v2376_v54  ;;  %v1276_v54 = vld [vmem:[%s3070_s4 + $0x78] sm:$0xff]  ;;  %v1279_v6 = vld [vmem:[%s3070_s4 + $0x90] sm:$0xff] }
 0x141   :  { %v1813_v8 = vpop.eup %1812  ;;  %v1209_v63 = vmul.f32 %v1811_v9, %v2419_v28  ;;  %1832 = vrcp.f32 %v1021_v13  ;;  %v701_v43 = vmul.f32 %v2670_v40, %v2388_v47  ;;  %v733_v15 = vmul.f32 %v2670_v40, %v2390_v59 }
 0x142   :  { %v1815_v48 = vpop.eup %1814  ;;  %v1241_v52 = vmul.f32 %v1813_v8, %v2450_v31  ;;  %1834 = vpow2.f32 %v911_v11  ;;  %v917_v28 = vmul.f32 1.442695, %v833_v4  ;;  %v2692_v35 = vadd.f32 %v2689_v24, %v730_v34  ;;  %v1308_v31 = vld [vmem:[%s3070_s4 + $0x178] sm:$0xff]  ;;  %v1311_v8 = vld [vmem:[%s3070_s4 + $0x190] sm:$0xff] }
 0x143   :  { %v1817_v47 = vpop.eup %1816  ;;  %v1337_v1 = vadd.f32 %v1273_v0, %v1209_v63  ;;  %v1212_v59 = vmul.f32 %v1815_v48, %v2459_v46  ;;  %1836 = vpow2.f32 %v975_v42  ;;  %v2699_v56 = vadd.f32 %v2689_v24, %v701_v43 }
 0x144   :  { %v1819_v23 = vpop.eup %1818  ;;  %v1369_v19 = vadd.f32 %v1305_v62, %v1241_v52  ;;  %v1244_v36 = vmul.f32 %v1817_v47, %v2469_v21  ;;  %1838 = vpow2.f32 %v921_v45  ;;  %v865_v14 = vsub.f32 0.0, %v2692_v35 }
 0x145   :  { %v1821_v46 = vpop.eup %1820  ;;  %1401 = vst [vmem:[%s3071_s5 + $0x60] sm:$0xff] %v1337_v1  ;;  %v1340_v37 = vadd.f32 %v1276_v54, %v1212_v59  ;;  %v1210_v11 = vmul.f32 %v1819_v23, %v2476_v57  ;;  %1840 = vpow2.f32 %v985_v2  ;;  %v836_v21 = vsub.f32 0.0, %v2699_v56  ;;  %v1277_v54 = vld [vmem:[%s3070_s4 + $0x80] sm:$0xff] }
 0x146   :  { %v1823_v5 = vpop.eup %1822  ;;  %1433 = vst [vmem:[%s3071_s5 + $0x160] sm:$0xff] %v1369_v19  ;;  %v1372_v17 = vadd.f32 %v1308_v31, %v1244_v36  ;;  %v1242_v61 = vmul.f32 %v1821_v46, %v2510_v44  ;;  %1842 = vpow2.f32 %v917_v28  ;;  %v981_v57 = vmul.f32 1.442695, %v865_v14 }
 0x147   :  { %v1825_v33 = vpop.eup %1824  ;;  %1404 = vst [vmem:[%s3071_s5 + $0x78] sm:$0xff] %v1340_v37  ;;  %v1338_v13 = vadd.f32 %v1274_v51, %v1210_v11  ;;  %v1215_v42 = vmul.f32 %v1823_v5, %v2523_v49  ;;  %v923_v45 = vmul.f32 1.442695, %v836_v21  ;;  %v2726_v9 = vadd.f32 %v2689_v24, %v733_v15 }
 0x148   :  { %v1827_v0 = vpop.eup %1826  ;;  %1436 = vst [vmem:[%s3071_s5 + $0x178] sm:$0xff] %v1372_v17  ;;  %v1370_v44 = vadd.f32 %v1306_v41, %v1242_v61  ;;  %v1053_v2 = vadd.f32 1.0, %v1825_v33  ;;  %1844 = vpow2.f32 %v981_v57  ;;  %v699_v4 = vmul.f32 %v2670_v40, %v2401_v50 }
 0x149   :  { %v1829_v34 = vpop.eup %1828  ;;  %1402 = vst [vmem:[%s3071_s5 + $0x68] sm:$0xff] %v1338_v13  ;;  %v1343_v49 = vadd.f32 %v1279_v6, %v1215_v42  ;;  %v1024_v63 = vadd.f32 1.0, %v1827_v0  ;;  %1846 = vpow2.f32 %v923_v45  ;;  %v868_v62 = vsub.f32 0.0, %v2726_v9 }
 0x14a   :  { %v1831_v43 = vpop.eup %1830  ;;  %1434 = vst [vmem:[%s3071_s5 + $0x168] sm:$0xff] %v1370_v44  ;;  %v1247_v50 = vmul.f32 %v1829_v34, %v2526_v3  ;;  %1848 = vrcp.f32 %v1053_v2  ;;  %v2745_v15 = vadd.f32 %v2689_v24, %v699_v4  ;;  %v731_v48 = vmul.f32 %v2670_v40, %v2403_v27  ;;  %v3079_v34 = vld [vmem:[#allocation2_spill] sm:$0xff] }
 0x14b   :  { %v1833_v52 = vpop.eup %1832  ;;  %1407 = vst [vmem:[%s3071_s5 + $0x90] sm:$0xff] %v1343_v49  ;;  %1850 = vrcp.f32 %v1024_v63  ;;  %v1056_v28 = vadd.f32 1.0, %v1831_v43  ;;  %v987_v47 = vmul.f32 1.442695, %v868_v62  ;;  %v704_v3 = vmul.f32 %v2670_v40, %v2434_v22  ;;  %v3080_v49 = vld [vmem:[#allocation3_spill] sm:$0xff]  ;;  %v1309_v62 = vld [vmem:[%s3070_s4 + $0x180] sm:$0xff] }
 0x14c   :  { %v1835_v1 = vpop.eup %1834  ;;  %v1375_v59 = vadd.f32 %v1311_v8, %v1247_v50  ;;  %v1213_v31 = vmul.f32 %v1833_v52, %v2566_v12  ;;  %v834_v27 = vsub.f32 0.0, %v2745_v15  ;;  %v2760_v23 = vadd.f32 %v2689_v24, %v731_v48 }
 0x14d   :  { %v1837_v19 = vpop.eup %1836  ;;  %1852 = vrcp.f32 %v1056_v28  ;;  %v1022_v36 = vadd.f32 1.0, %v1835_v1  ;;  %v2763_v51 = vadd.f32 %v2689_v24, %v704_v3  ;;  %v736_v14 = vmul.f32 %v2670_v40, %v2436_v25 }
 0x14e   :  { %v1839_v46 = vpop.eup %1838  ;;  %1439 = vst [vmem:[%s3071_s5 + $0x190] sm:$0xff] %v1375_v59  ;;  %v1341_v22 = vadd.f32 %v1277_v54, %v1213_v31  ;;  %v1054_v12 = vadd.f32 1.0, %v1837_v19  ;;  %1854 = vpow2.f32 %v987_v47  ;;  %v919_v37 = vmul.f32 1.442695, %v834_v27  ;;  %v1280_v54 = vld [vmem:[%s3070_s4 + $0x98] sm:$0xff] }
 0x14f   :  { %v1841_v11 = vpop.eup %1840  ;;  %1856 = vrcp.f32 %v1022_v36  ;;  %v1027_v41 = vadd.f32 1.0, %v1839_v46  ;;  %v866_v21 = vsub.f32 0.0, %v2760_v23  ;;  %v839_v5 = vsub.f32 0.0, %v2763_v51  ;;  %v1312_v27 = vld [vmem:[%s3070_s4 + $0x198] sm:$0xff] }
 0x150   :  { %v1843_v17 = vpop.eup %1842  ;;  %1405 = vst [vmem:[%s3071_s5 + $0x80] sm:$0xff] %v1341_v22  ;;  %1858 = vrcp.f32 %v1054_v12  ;;  %v1059_v25 = vadd.f32 1.0, %v1841_v11  ;;  %v2776_v61 = vadd.f32 %v2689_v24, %v736_v14  ;;  %v702_v6 = vmul.f32 %v2670_v40, %v2445_v30 }
 0x151   :  { %1860 = vrcp.f32 %v1027_v41  ;;  %v1025_v57 = vadd.f32 1.0, %v1843_v17  ;;  %v983_v33 = vmul.f32 1.442695, %v866_v21  ;;  %v929_v13 = vmul.f32 1.442695, %v839_v5 }
 0x152   :  { %v1845_v42 = vpop.eup %1844  ;;  %1862 = vrcp.f32 %v1059_v25  ;;  %v871_v45 = vsub.f32 0.0, %v2776_v61  ;;  %v2782_v0 = vadd.f32 %v2689_v24, %v702_v6  ;;  %v734_v44 = vmul.f32 %v2670_v40, %v2447_v29  ;;  %v1310_v25 = vld [vmem:[%s3070_s4 + $0x188] sm:$0xff] }
 0x153   :  { %v1847_v2 = vpop.eup %1846  ;;  %1864 = vrcp.f32 %v1025_v57  ;;  %v1057_v4 = vadd.f32 1.0, %v1845_v42  ;;  %v705_v30 = vmul.f32 %v2670_v40, %v3079_v34  ;;  %v737_v8 = vmul.f32 %v2670_v40, %v3080_v49  ;;  %v3081_v42 = vld [vmem:[#allocation4_spill] sm:$0xff] }
 0x154   :  { %v1849_v63 = vpop.eup %1848  ;;  %v1028_v43 = vadd.f32 1.0, %v1847_v2  ;;  %1866 = vpow2.f32 %v919_v37  ;;  %v993_v50 = vmul.f32 1.442695, %v871_v45  ;;  %v837_v48 = vsub.f32 0.0, %v2782_v0  ;;  %v1278_v37 = vld [vmem:[%s3070_s4 + $0x88] sm:$0xff] }
 0x155   :  { %v1851_v29 = vpop.eup %1850  ;;  %v1245_v52 = vmul.f32 %v1849_v63, %v2604_v16  ;;  %1868 = vrcp.f32 %v1057_v4  ;;  %v2799_v28 = vadd.f32 %v2689_v24, %v734_v44  ;;  %v2802_v47 = vadd.f32 %v2689_v24, %v705_v30  ;;  %v3082_v44 = vld [vmem:[#allocation5_spill] sm:$0xff] }
 0x156   :  { %v1216_v3 = vmul.f32 %v1851_v29, %v2607_v7  ;;  %1870 = vrcp.f32 %v1028_v43  ;;  %v925_v1 = vmul.f32 1.442695, %v837_v48  ;;  %v2806_v59 = vadd.f32 %v2689_v24, %v737_v8 }
 0x157   :  { %v1853_v31 = vpop.eup %1852  ;;  %v1373_v16 = vadd.f32 %v1309_v62, %v1245_v52  ;;  %1872 = vpow2.f32 %v983_v33  ;;  %v869_v19 = vsub.f32 0.0, %v2799_v28  ;;  %v840_v36 = vsub.f32 0.0, %v2802_v47  ;;  %v1281_v62 = vld [vmem:[%s3070_s4 + $0xa0] sm:$0xff] }
 0x158   :  { %v1855_v14 = vpop.eup %1854  ;;  %v1344_v46 = vadd.f32 %v1280_v54, %v1216_v3  ;;  %v1248_v7 = vmul.f32 %v1853_v31, %v2613_v58  ;;  %1874 = vpow2.f32 %v929_v13  ;;  %v872_v22 = vsub.f32 0.0, %v2806_v59  ;;  %v1283_v13 = vld [vmem:[%s3070_s4 + $0xb0] sm:$0xff]  ;;  %v1313_v52 = vld [vmem:[%s3070_s4 + $0x1a0] sm:$0xff] }
 0x159   :  { %v1857_v12 = vpop.eup %1856  ;;  %1437 = vst [vmem:[%s3071_s5 + $0x180] sm:$0xff] %v1373_v16  ;;  %v1060_v11 = vadd.f32 1.0, %v1855_v14  ;;  %1876 = vpow2.f32 %v993_v50  ;;  %v989_v41 = vmul.f32 1.442695, %v869_v19  ;;  %v931_v21 = vmul.f32 1.442695, %v840_v36 }
 0x15a   :  { %v1859_v5 = vpop.eup %1858  ;;  %1408 = vst [vmem:[%s3071_s5 + $0x98] sm:$0xff] %v1344_v46  ;;  %v1376_v58 = vadd.f32 %v1312_v27, %v1248_v7  ;;  %v1214_v17 = vmul.f32 %v1857_v12, %v2630_v18  ;;  %1878 = vpow2.f32 %v925_v1  ;;  %v995_v6 = vmul.f32 1.442695, %v872_v22  ;;  %v1284_v27 = vld [vmem:[%s3070_s4 + $0xb8] sm:$0xff] }
 0x15b   :  { %v1861_v57 = vpop.eup %1860  ;;  %v1246_v33 = vmul.f32 %v1859_v5, %v2643_v20  ;;  %1880 = vrcp.f32 %v1060_v11  ;;  %v703_v45 = vmul.f32 %v2670_v40, %v3081_v42  ;;  %v735_v18 = vmul.f32 %v2670_v40, %v3082_v44  ;;  %v1315_v20 = vld [vmem:[%s3070_s4 + $0x1b0] sm:$0xff] }
 0x15c   :  { %v1863_v2 = vpop.eup %1862  ;;  %1440 = vst [vmem:[%s3071_s5 + $0x198] sm:$0xff] %v1376_v58  ;;  %v1342_v4 = vadd.f32 %v1278_v37, %v1214_v17  ;;  %v1219_v34 = vmul.f32 %v1861_v57, %v2646_v53  ;;  %1882 = vpow2.f32 %v989_v41  ;;  %v708_v30 = vmul.f32 %v2670_v40, %v2481_v32 }
 0x15d   :  { %v1865_v49 = vpop.eup %1864  ;;  %v1374_v8 = vadd.f32 %v1310_v25, %v1246_v33  ;;  %v1251_v63 = vmul.f32 %v1863_v2, %v2652_v10  ;;  %1884 = vpow2.f32 %v931_v21  ;;  %v2850_v43 = vadd.f32 %v2689_v24, %v703_v45  ;;  %v1316_v33 = vld [vmem:[%s3070_s4 + $0x1b8] sm:$0xff] }
 0x15e   :  { %v1867_v53 = vpop.eup %1866  ;;  %1406 = vst [vmem:[%s3071_s5 + $0x88] sm:$0xff] %v1342_v4  ;;  %v1347_v50 = vadd.f32 %v1283_v13, %v1219_v34  ;;  %v1217_v32 = vmul.f32 %v1865_v49, %v2658_v38  ;;  %1886 = vpow2.f32 %v995_v6  ;;  %v2857_v48 = vadd.f32 %v2689_v24, %v735_v18 }
 0x15f   :  { %v1869_v10 = vpop.eup %1868  ;;  %1438 = vst [vmem:[%s3071_s5 + $0x188] sm:$0xff] %v1374_v8  ;;  %v1379_v29 = vadd.f32 %v1315_v20, %v1251_v63  ;;  %v1026_v54 = vadd.f32 1.0, %v1867_v53  ;;  %v838_v3 = vsub.f32 0.0, %v2850_v43  ;;  %v2867_v1 = vadd.f32 %v2689_v24, %v708_v30 }
 0x160   :  { %v1871_v38 = vpop.eup %1870  ;;  %1411 = vst [vmem:[%s3071_s5 + $0xb0] sm:$0xff] %v1347_v50  ;;  %v1345_v31 = vadd.f32 %v1281_v62, %v1217_v32  ;;  %v1249_v16 = vmul.f32 %v1869_v10, %v2692_v35  ;;  %v870_v19 = vsub.f32 0.0, %v2857_v48  ;;  %v740_v36 = vmul.f32 %v2670_v40, %v2483_v39  ;;  %v3083_v50 = vld [vmem:[#allocation6_spill] sm:$0xff]  ;;  %v3084_v10 = vld [vmem:[#allocation7_spill] sm:$0xff] }
 0x161   :  { %v1873_v14 = vpop.eup %1872  ;;  %1443 = vst [vmem:[%s3071_s5 + $0x1b0] sm:$0xff] %v1379_v29  ;;  %v1220_v46 = vmul.f32 %v1871_v38, %v2699_v56  ;;  %1888 = vrcp.f32 %v1026_v54  ;;  %v927_v7 = vmul.f32 1.442695, %v838_v3  ;;  %v843_v35 = vsub.f32 0.0, %v2867_v1  ;;  %v1282_v54 = vld [vmem:[%s3070_s4 + $0xa8] sm:$0xff]  ;;  %v3085_v38 = vld [vmem:[#allocation8_spill] sm:$0xff] }
 0x162   :  { %v1875_v22 = vpop.eup %1874  ;;  %1409 = vst [vmem:[%s3071_s5 + $0xa0] sm:$0xff] %v1345_v31  ;;  %v1377_v12 = vadd.f32 %v1313_v52, %v1249_v16  ;;  %v1058_v37 = vadd.f32 1.0, %v1873_v14  ;;  %v991_v11 = vmul.f32 1.442695, %v870_v19  ;;  %v2888_v39 = vadd.f32 %v2689_v24, %v740_v36 }
 0x163   :  { %v1877_v41 = vpop.eup %1876  ;;  %v1348_v21 = vadd.f32 %v1284_v27, %v1220_v46  ;;  %v1031_v5 = vadd.f32 1.0, %v1875_v22  ;;  %1890 = vpow2.f32 %v927_v7  ;;  %v937_v56 = vmul.f32 1.442695, %v843_v35 }
 0x164   :  { %v1879_v58 = vpop.eup %1878  ;;  %1441 = vst [vmem:[%s3071_s5 + $0x1a0] sm:$0xff] %v1377_v12  ;;  %1892 = vrcp.f32 %v1058_v37  ;;  %v1063_v17 = vadd.f32 1.0, %v1877_v41  ;;  %v875_v25 = vsub.f32 0.0, %v2888_v39  ;;  %v706_v6 = vmul.f32 %v2670_v40, %v2487_v55 }
 0x165   :  { %v1881_v57 = vpop.eup %1880  ;;  %1412 = vst [vmem:[%s3071_s5 + $0xb8] sm:$0xff] %v1348_v21  ;;  %1894 = vrcp.f32 %v1031_v5  ;;  %v1029_v13 = vadd.f32 1.0, %v1879_v58  ;;  %v738_v42 = vmul.f32 %v2670_v40, %v2489_v60  ;;  %v709_v45 = vmul.f32 %v2670_v40, %v2501_v26 }
 0x166   :  { %v1883_v44 = vpop.eup %1882  ;;  %v1252_v55 = vmul.f32 %v1881_v57, %v2726_v9  ;;  %1896 = vrcp.f32 %v1063_v17  ;;  %v1001_v18 = vmul.f32 1.442695, %v875_v25  ;;  %v2908_v2 = vadd.f32 %v2689_v24, %v706_v6  ;;  %v1285_v6 = vld [vmem:[%s3070_s4 + $0xc0] sm:$0xff] }
 0x167   :  { %v1885_v4 = vpop.eup %1884  ;;  %1898 = vrcp.f32 %v1029_v13  ;;  %v1061_v34 = vadd.f32 1.0, %v1883_v44  ;;  %v2911_v20 = vadd.f32 %v2689_v24, %v738_v42  ;;  %v2914_v30 = vadd.f32 %v2689_v24, %v709_v45 }
 0x168   :  { %v1887_v60 = vpop.eup %1886  ;;  %v1380_v49 = vadd.f32 %v1316_v33, %v1252_v55  ;;  %v1032_v26 = vadd.f32 1.0, %v1885_v4  ;;  %1900 = vpow2.f32 %v991_v11  ;;  %v841_v9 = vsub.f32 0.0, %v2908_v2  ;;  %v1287_v11 = vld [vmem:[%s3070_s4 + $0xd0] sm:$0xff] }
 0x169   :  { %1902 = vrcp.f32 %v1061_v34  ;;  %v1064_v8 = vadd.f32 1.0, %v1887_v60  ;;  %v873_v63 = vsub.f32 0.0, %v2911_v20  ;;  %v844_v62 = vsub.f32 0.0, %v2914_v30  ;;  %v1288_v34 = vld [vmem:[%s3070_s4 + $0xd8] sm:$0xff] }
 0x16a   :  { %1444 = vst [vmem:[%s3071_s5 + $0x1b8] sm:$0xff] %v1380_v49  ;;  %1904 = vrcp.f32 %v1032_v26  ;;  %v933_v53 = vmul.f32 1.442695, %v841_v9  ;;  %v741_v32 = vmul.f32 %v2670_v40, %v3083_v50  ;;  %v707_v29 = vmul.f32 %v2670_v40, %v3084_v10  ;;  %v1320_v26 = vld [vmem:[%s3070_s4 + $0x1d8] sm:$0xff] }
 0x16b   :  { %v1889_v52 = vpop.eup %1888  ;;  %1906 = vrcp.f32 %v1064_v8  ;;  %v997_v3 = vmul.f32 1.442695, %v873_v63  ;;  %v739_v31 = vmul.f32 %v2670_v40, %v3085_v38  ;;  %v939_v14 = vmul.f32 1.442695, %v844_v62  ;;  %v1314_v40 = vld [vmem:[%s3070_s4 + $0x1a8] sm:$0xff] }
 0x16c   :  { %v1218_v16 = vmul.f32 %v1889_v52, %v2745_v15  ;;  %1908 = vpow2.f32 %v937_v56  ;;  %v2933_v27 = vadd.f32 %v2689_v24, %v741_v32  ;;  %v2936_v19 = vadd.f32 %v2689_v24, %v707_v29 }
 0x16d   :  { %v1891_v36 = vpop.eup %1890  ;;  %1910 = vpow2.f32 %v1001_v18  ;;  %v2939_v46 = vadd.f32 %v2689_v24, %v739_v31 }
 0x16e   :  { %v1893_v7 = vpop.eup %1892  ;;  %v1346_v35 = vadd.f32 %v1282_v54, %v1218_v16  ;;  %v1030_v15 = vadd.f32 1.0, %v1891_v36  ;;  %1912 = vpow2.f32 %v933_v53  ;;  %v876_v22 = vsub.f32 0.0, %v2933_v27 }
 0x16f   :  { %v1895_v12 = vpop.eup %1894  ;;  %v1250_v37 = vmul.f32 %v1893_v7, %v2760_v23  ;;  %1914 = vpow2.f32 %v997_v3  ;;  %v842_v24 = vsub.f32 0.0, %v2936_v19  ;;  %v874_v41 = vsub.f32 0.0, %v2939_v46  ;;  %v1319_v23 = vld [vmem:[%s3070_s4 + $0x1d0] sm:$0xff] }
 0x170   :  { %v1897_v21 = vpop.eup %1896  ;;  %1410 = vst [vmem:[%s3071_s5 + $0xa8] sm:$0xff] %v1346_v35  ;;  %v1223_v5 = vmul.f32 %v1895_v12, %v2763_v51  ;;  %1916 = vrcp.f32 %v1030_v15  ;;  %v1003_v56 = vmul.f32 1.442695, %v876_v22  ;;  %v1318_v22 = vld [vmem:[%s3070_s4 + $0x1c8] sm:$0xff] }
 0x171   :  { %v1899_v58 = vpop.eup %1898  ;;  %v1378_v17 = vadd.f32 %v1314_v40, %v1250_v37  ;;  %v1255_v25 = vmul.f32 %v1897_v21, %v2776_v61  ;;  %1918 = vpow2.f32 %v939_v14  ;;  %v935_v57 = vmul.f32 1.442695, %v842_v24  ;;  %v1317_v61 = vld [vmem:[%s3070_s4 + $0x1c0] sm:$0xff]  ;;  %v1291_v24 = vld [vmem:[%s3070_s4 + $0xf0] sm:$0xff] }
 0x172   :  { %v1901_v33 = vpop.eup %1900  ;;  %v1351_v13 = vadd.f32 %v1287_v11, %v1223_v5  ;;  %v1221_v51 = vmul.f32 %v1899_v58, %v2782_v0  ;;  %1920 = vpow2.f32 %v1003_v56  ;;  %v999_v42 = vmul.f32 1.442695, %v874_v41  ;;  %v1323_v5 = vld [vmem:[%s3070_s4 + $0x1f0] sm:$0xff]  ;;  %v1289_v56 = vld [vmem:[%s3070_s4 + $0xe0] sm:$0xff] }
 0x173   :  { %v1903_v45 = vpop.eup %1902  ;;  %1442 = vst [vmem:[%s3071_s5 + $0x1a8] sm:$0xff] %v1378_v17  ;;  %v1383_v44 = vadd.f32 %v1319_v23, %v1255_v25  ;;  %v1062_v55 = vadd.f32 1.0, %v1901_v33  ;;  %1922 = vpow2.f32 %v935_v57 }
 0x174   :  { %v1905_v18 = vpop.eup %1904  ;;  %1415 = vst [vmem:[%s3071_s5 + $0xd0] sm:$0xff] %v1351_v13  ;;  %v1349_v0 = vadd.f32 %v1285_v6, %v1221_v51  ;;  %v1253_v4 = vmul.f32 %v1903_v45, %v2799_v28  ;;  %1924 = vpow2.f32 %v999_v42  ;;  %v1321_v6 = vld [vmem:[%s3070_s4 + $0x1e0] sm:$0xff]  ;;  %v1292_v13 = vld [vmem:[%s3070_s4 + $0xf8] sm:$0xff] }
 0x175   :  { %v1907_v60 = vpop.eup %1906  ;;  %1447 = vst [vmem:[%s3071_s5 + $0x1d0] sm:$0xff] %v1383_v44  ;;  %v1224_v49 = vmul.f32 %v1905_v18, %v2802_v47  ;;  %1926 = vrcp.f32 %v1062_v55 }
 0x176   :  { %v1909_v9 = vpop.eup %1908  ;;  %1413 = vst [vmem:[%s3071_s5 + $0xc0] sm:$0xff] %v1349_v0  ;;  %v1381_v28 = vadd.f32 %v1317_v61, %v1253_v4  ;;  %v1256_v8 = vmul.f32 %v1907_v60, %v2806_v59  ;;  %v1286_v59 = vld [vmem:[%s3070_s4 + $0xc8] sm:$0xff] }
 0x177   :  { %v1911_v63 = vpop.eup %1910  ;;  %v1352_v62 = vadd.f32 %v1288_v34, %v1224_v49  ;;  %v1035_v53 = vadd.f32 1.0, %v1909_v9  ;;  %v1290_v61 = vld [vmem:[%s3070_s4 + $0xe8] sm:$0xff] }
 0x178   :  { %v1913_v50 = vpop.eup %1912  ;;  %1445 = vst [vmem:[%s3071_s5 + $0x1c0] sm:$0xff] %v1381_v28  ;;  %v1384_v47 = vadd.f32 %v1320_v26, %v1256_v8  ;;  %v1067_v32 = vadd.f32 1.0, %v1911_v63  ;;  %v1322_v0 = vld [vmem:[%s3070_s4 + $0x1e8] sm:$0xff] }
 0x179   :  { %v1915_v10 = vpop.eup %1914  ;;  %1416 = vst [vmem:[%s3071_s5 + $0xd8] sm:$0xff] %v1352_v62  ;;  %1928 = vrcp.f32 %v1035_v53  ;;  %v1033_v29 = vadd.f32 1.0, %v1913_v50 }
 0x17a   :  { %v1917_v52 = vpop.eup %1916  ;;  %1448 = vst [vmem:[%s3071_s5 + $0x1d8] sm:$0xff] %v1384_v47  ;;  %1930 = vrcp.f32 %v1067_v32  ;;  %v1065_v54 = vadd.f32 1.0, %v1915_v10 }
 0x17b   :  { %v1919_v3 = vpop.eup %1918  ;;  %v1222_v38 = vmul.f32 %v1917_v52, %v2850_v43  ;;  %1932 = vrcp.f32 %v1033_v29 }
 0x17c   :  { %v1921_v31 = vpop.eup %1920  ;;  %1934 = vrcp.f32 %v1065_v54  ;;  %v1036_v16 = vadd.f32 1.0, %v1919_v3 }
 0x17d   :  { %v1923_v36 = vpop.eup %1922  ;;  %v1350_v14 = vadd.f32 %v1286_v59, %v1222_v38  ;;  %v1068_v7 = vadd.f32 1.0, %v1921_v31 }
 0x17e   :  { %v1925_v35 = vpop.eup %1924  ;;  %1936 = vrcp.f32 %v1036_v16  ;;  %v1034_v40 = vadd.f32 1.0, %v1923_v36 }
 0x17f   :  { %v1927_v15 = vpop.eup %1926  ;;  %1414 = vst [vmem:[%s3071_s5 + $0xc8] sm:$0xff] %v1350_v14  ;;  %1938 = vrcp.f32 %v1068_v7  ;;  %v1066_v43 = vadd.f32 1.0, %v1925_v35 }
 0x180   :  { %v1254_v12 = vmul.f32 %v1927_v15, %v2857_v48  ;;  %1940 = vrcp.f32 %v1034_v40 }
 0x181   :  { %1942 = vrcp.f32 %v1066_v43 }
 0x182   :  { %v1382_v37 = vadd.f32 %v1318_v22, %v1254_v12 }
 0x183   :  { %v1929_v11 = vpop.eup %1928 }
 0x184   :  { %v1931_v41 = vpop.eup %1930  ;;  %1446 = vst [vmem:[%s3071_s5 + $0x1c8] sm:$0xff] %v1382_v37  ;;  %v1227_v21 = vmul.f32 %v1929_v11, %v2867_v1 }
 0x185   :  { %v1933_v48 = vpop.eup %1932  ;;  %v1259_v23 = vmul.f32 %v1931_v41, %v2888_v39 }
 0x186   :  { %v1935_v58 = vpop.eup %1934  ;;  %v1355_v17 = vadd.f32 %v1291_v24, %v1227_v21  ;;  %v1225_v25 = vmul.f32 %v1933_v48, %v2908_v2 }
 0x187   :  { %v1387_v1 = vadd.f32 %v1323_v5, %v1259_v23  ;;  %v1257_v57 = vmul.f32 %v1935_v58, %v2911_v20  ;;  %v1324_v20 = vld [vmem:[%s3070_s4 + $0x1f8] sm:$0xff] }
 0x188   :  { %v1937_v33 = vpop.eup %1936  ;;  %1419 = vst [vmem:[%s3071_s5 + $0xf0] sm:$0xff] %v1355_v17  ;;  %v1353_v39 = vadd.f32 %v1289_v56, %v1225_v25 }
 0x189   :  { %v1939_v51 = vpop.eup %1938  ;;  %1451 = vst [vmem:[%s3071_s5 + $0x1f0] sm:$0xff] %v1387_v1  ;;  %v1385_v2 = vadd.f32 %v1321_v6, %v1257_v57  ;;  %v1228_v42 = vmul.f32 %v1937_v33, %v2914_v30 }
 0x18a   :  { %v1941_v45 = vpop.eup %1940  ;;  %1417 = vst [vmem:[%s3071_s5 + $0xe0] sm:$0xff] %v1353_v39  ;;  %v1260_v44 = vmul.f32 %v1939_v51, %v2933_v27 }
 0x18b   :  { %v1943_v55 = vpop.eup %1942  ;;  %1449 = vst [vmem:[%s3071_s5 + $0x1e0] sm:$0xff] %v1385_v2  ;;  %v1356_v30 = vadd.f32 %v1292_v13, %v1228_v42  ;;  %v1226_v18 = vmul.f32 %v1941_v45, %v2936_v19 }
 0x18c   :  { %v1388_v4 = vadd.f32 %v1324_v20, %v1260_v44  ;;  %v1258_v34 = vmul.f32 %v1943_v55, %v2939_v46 }
 0x18d   :  { %1420 = vst [vmem:[%s3071_s5 + $0xf8] sm:$0xff] %v1356_v30  ;;  %v1354_v27 = vadd.f32 %v1290_v61, %v1226_v18 }
 0x18e   :  { %1452 = vst [vmem:[%s3071_s5 + $0x1f8] sm:$0xff] %v1388_v4  ;;  %v1386_v60 = vadd.f32 %v1322_v0, %v1258_v34 }
 0x18f   :  { %1418 = vst [vmem:[%s3071_s5 + $0xe8] sm:$0xff] %v1354_v27 }
 0x190   :  { %1450 = vst [vmem:[%s3071_s5 + $0x1e8] sm:$0xff] %v1386_v60 }

// kernel: cspdarknet_fwd.48
= control target key start
LH: loop header
LB: loop body
LE: loop exit
PB: predicated region body
PF: predicated region fallthrough
CT: control target
= control target key end

     0   :  { %v629_v0 = vmov 0   ;;  %vm178_vm0 = vcmask 130048   ;;  %s892_s1 = inlined_call_operand.vmem [shape: bf16[144,128], index: 1, kind: input, shape index: {}]   ;;  %s893_s0 = inlined_call_operand.vmem [shape: bf16[128,144], index: 0, kind: input, shape index: {}]   ;;  %s894_s2 = inlined_call_operand.vmem [shape: f32[1,128], index: 2, kind: input, shape index: {}]   ;;  %s895_s3 = inlined_call_operand.vmem [shape: f32[1,128], index: 3, kind: input, shape index: {}]   ;;  %s896_s4 = inlined_call_operand.vmem [shape: f32[128,128], index: 4, kind: output, shape index: {}]  }
   0x1   :  { %203 = vmatprep.subr.bf16.mxu0 %v629_v0  ;;  %513 = vmatprep.subr.bf16.mxu1 %v629_v0  ;;  %v532_v1 = vld [vmem:[%s892_s1] sm:$0xff]   ;;  %v533_v2 = vld [vmem:[%s892_s1 + $0x8] sm:$0xff]   ;;  %v534_v3 = vld [vmem:[%s892_s1 + $0x10] sm:$0xff]  }
   0x2   :  { %204 = vmatpush1.bf16.msra.mxu0 %v532_v1  ;;  %522 = vmatpush1.bf16.msra.mxu1 %v532_v1  ;;  %v535_v4 = vld [vmem:[%s892_s1 + $0x18] sm:$0xff]   ;;  %v543_v5 = vld [vmem:[%s893_s0 + $0x4] ss:$8 sps:$4 sm:$0xff]   ;;  %v538_v9 = vld [vmem:[%s892_s1 + $0x30] sm:$0xff]  }
   0x3   :  { %205 = vmatprep.subr.bf16.mxu0 %v629_v0  ;;  %514 = vmatprep.subr.bf16.mxu1 %v629_v0  ;;  %v546_v6 = vld [vmem:[%s893_s0 + $0x44] ss:$8 sps:$4 sm:$0xff]   ;;  %v539_v10 = vld [vmem:[%s892_s1 + $0x38] sm:$0xff]   ;;  %v541_v12 = vld [vmem:[%s893_s0] ss:$8 sps:$4 sm:$0xff]  }
   0x4   :  { %503 = vmatprep.mubr.msk.bf16.mxu0 %vm178_vm0, %v543_v5  ;;  %507 = vmatprep.mubr.msk.bf16.mxu1 %vm178_vm0, %v546_v6  ;;  %v536_v7 = vld [vmem:[%s892_s1 + $0x20] sm:$0xff]   ;;  %v537_v8 = vld [vmem:[%s892_s1 + $0x28] sm:$0xff]   ;;  %v547_v14 = vld [vmem:[%s893_s0 + $0x14] ss:$8 sps:$4 sm:$0xff]  }
   0x5   :  { %v540_v11 = vld [vmem:[%s892_s1 + $0x40] sm:$0xff]   ;;  %v549_v15 = vld [vmem:[%s893_s0 + $0x54] ss:$8 sps:$4 sm:$0xff]   ;;  %v551_v16 = vld [vmem:[%s893_s0 + $0x10] ss:$8 sps:$4 sm:$0xff]  }
   0x6   :  { %206 = vmatpush1.bf16.msra.mxu0 %v533_v2  ;;  %523 = vmatpush1.bf16.msra.mxu1 %v533_v2  ;;  %v544_v13 = vld [vmem:[%s893_s0 + $0x40] ss:$8 sps:$4 sm:$0xff]   ;;  %v552_v17 = vld [vmem:[%s893_s0 + $0x50] ss:$8 sps:$4 sm:$0xff]   ;;  %v553_v18 = vld [vmem:[%s893_s0 + $0x24] ss:$8 sps:$4 sm:$0xff]  }
   0x7   :  { %207 = vmatprep.subr.bf16.mxu0 %v629_v0  ;;  %515 = vmatprep.subr.bf16.mxu1 %v629_v0  ;;  %v555_v19 = vld [vmem:[%s893_s0 + $0x64] ss:$8 sps:$4 sm:$0xff]   ;;  %v557_v20 = vld [vmem:[%s893_s0 + $0x20] ss:$8 sps:$4 sm:$0xff]   ;;  %v559_v22 = vld [vmem:[%s893_s0 + $0x34] ss:$8 sps:$4 sm:$0xff]  }
   0x8   :  { %v558_v21 = vld [vmem:[%s893_s0 + $0x60] ss:$8 sps:$4 sm:$0xff]   ;;  %v561_v23 = vld [vmem:[%s893_s0 + $0x74] ss:$8 sps:$4 sm:$0xff]   ;;  %v563_v24 = vld [vmem:[%s893_s0 + $0x30] ss:$8 sps:$4 sm:$0xff]  }
   0x9   :  { %v564_v25 = vld [vmem:[%s893_s0 + $0x70] ss:$8 sps:$4 sm:$0xff]   ;;  %v741_v26 = vld [vmem:[%s894_s2] ss:$0 sm:$0xff] }
   0xa   :  { %208 = vmatpush1.bf16.msra.mxu0 %v534_v3  ;;  %524 = vmatpush1.bf16.msra.mxu1 %v534_v3  ;;  %v746_v28 = vld [vmem:[%s895_s3] ss:$0 sm:$0xff] }
   0xb   :  { %209 = vmatprep.subr.bf16.mxu0 %v629_v0  ;;  %516 = vmatprep.subr.bf16.mxu1 %v629_v0 }
   0xe   :  { %210 = vmatpush1.bf16.msra.mxu0 %v535_v4  ;;  %525 = vmatpush1.bf16.msra.mxu1 %v535_v4 }
   0xf   :  { %211 = vmatprep.subr.bf16.mxu0 %v629_v0  ;;  %517 = vmatprep.subr.bf16.mxu1 %v629_v0 }
  0x12   :  { %212 = vmatpush1.bf16.msra.mxu0 %v536_v7  ;;  %526 = vmatpush1.bf16.msra.mxu1 %v536_v7 }
  0x13   :  { %213 = vmatprep.subr.bf16.mxu0 %v629_v0  ;;  %518 = vmatprep.subr.bf16.mxu1 %v629_v0 }
  0x16   :  { %214 = vmatpush1.bf16.msra.mxu0 %v537_v8  ;;  %527 = vmatpush1.bf16.msra.mxu1 %v537_v8 }
  0x17   :  { %215 = vmatprep.subr.bf16.mxu0 %v629_v0  ;;  %519 = vmatprep.subr.bf16.mxu1 %v629_v0 }
  0x1a   :  { %216 = vmatpush1.bf16.msra.mxu0 %v538_v9  ;;  %528 = vmatpush1.bf16.msra.mxu1 %v538_v9 }
  0x1b   :  { %217 = vmatprep.subr.bf16.mxu0 %v629_v0  ;;  %520 = vmatprep.subr.bf16.mxu1 %v629_v0 }
  0x1e   :  { %218 = vmatpush1.bf16.msra.mxu0 %v539_v10  ;;  %529 = vmatpush1.bf16.msra.mxu1 %v539_v10 }
  0x1f   :  { %219 = vmatprep.subr.bf16.mxu0 %v629_v0  ;;  %521 = vmatprep.subr.bf16.mxu1 %v629_v0 }
  0x22   :  { %220 = vmatpush1.bf16.msra.mxu0 %v540_v11  ;;  %530 = vmatpush1.bf16.msra.mxu1 %v540_v11 }
  0x25   :  { %236 = vmatmul.mubr.bf16.vlgmr.msra.gmra.mrb[0].mxu0 %v541_v12  ;;  %268 = vmatmul.mubr.bf16.vlgmr.msra.gmra.mrb[0].mxu1 %v544_v13 }
  0x26   :  { %504 = vmatprep.mubr.msk.bf16.mxu0 %vm178_vm0, %v547_v14  ;;  %508 = vmatprep.mubr.msk.bf16.mxu1 %vm178_vm0, %v549_v15 }
  0x2d   :  { %244 = vmatmul.mubr.bf16.gmra.mrb[4].mxu0 %v551_v16  ;;  %276 = vmatmul.mubr.bf16.gmra.mrb[4].mxu1 %v552_v17 }
  0x2e   :  { %505 = vmatprep.mubr.msk.bf16.mxu0 %vm178_vm0, %v553_v18  ;;  %509 = vmatprep.mubr.msk.bf16.mxu1 %vm178_vm0, %v555_v19 }
  0x35   :  { %252 = vmatmul.mubr.bf16.gmra.mrb[8].mxu0 %v557_v20  ;;  %284 = vmatmul.mubr.bf16.gmra.mrb[8].mxu1 %v558_v21 }
  0x36   :  { %506 = vmatprep.mubr.msk.bf16.mxu0 %vm178_vm0, %v559_v22  ;;  %510 = vmatprep.mubr.msk.bf16.mxu1 %vm178_vm0, %v561_v23 }
  0x3d   :  { %260 = vmatmul.mubr.bf16.gmra.mrb[12].mxu0 %v563_v24  ;;  %292 = vmatmul.mubr.bf16.gmra.mrb[12].mxu1 %v564_v25 }
  0xf8   :  { %v237_v27 = vpop.f32.mrb[0].mxu0  ;;  %v269_v29 = vpop.f32.mrb[0].mxu1 }
  0xf9   :  { %v307_v30 = vmul.f32 %v741_v26, %v237_v27  ;;  %v315_v31 = vmul.f32 %v741_v26, %v269_v29  ;;  %v239_v32 = vpop.f32.mrb[1].mxu0  ;;  %v271_v33 = vpop.f32.mrb[1].mxu1 }
  0xfa   :  { %v240_v34 = vpop.f32.mrb[2].mxu0  ;;  %v272_v35 = vpop.f32.mrb[2].mxu1 }
  0xfb   :  { %v751_v36 = vadd.f32 %v746_v28, %v307_v30  ;;  %v754_v37 = vadd.f32 %v746_v28, %v315_v31  ;;  %v308_v38 = vmul.f32 %v741_v26, %v240_v34  ;;  %v316_v39 = vmul.f32 %v741_v26, %v272_v35  ;;  %v242_v40 = vpop.f32.mrb[3].mxu0  ;;  %v274_v41 = vpop.f32.mrb[3].mxu1 }
  0xfd   :  { %v346_v42 = vsub.f32 0.0, %v751_v36  ;;  %v354_v43 = vsub.f32 0.0, %v754_v37  ;;  %v761_v44 = vadd.f32 %v746_v28, %v308_v38  ;;  %v764_v45 = vadd.f32 %v746_v28, %v316_v39 }
  0xff   :  { %v362_v46 = vmul.f32 1.442695, %v346_v42  ;;  %v378_v47 = vmul.f32 1.442695, %v354_v43  ;;  %v347_v48 = vsub.f32 0.0, %v761_v44  ;;  %v355_v49 = vsub.f32 0.0, %v764_v45 }
 0x100   :  { %v245_v50 = vpop.f32.mrb[4].mxu0  ;;  %v277_v51 = vpop.f32.mrb[4].mxu1 }
 0x101   :  { %565 = vpow2.f32 %v362_v46  ;;  %v364_v52 = vmul.f32 1.442695, %v347_v48  ;;  %v380_v53 = vmul.f32 1.442695, %v355_v49  ;;  %v309_v54 = vmul.f32 %v741_v26, %v245_v50  ;;  %v247_v55 = vpop.f32.mrb[5].mxu0  ;;  %v279_v56 = vpop.f32.mrb[5].mxu1 }
 0x102   :  { %567 = vpow2.f32 %v378_v47  ;;  %v317_v57 = vmul.f32 %v741_v26, %v277_v51  ;;  %v248_v58 = vpop.f32.mrb[6].mxu0  ;;  %v280_v59 = vpop.f32.mrb[6].mxu1 }
 0x103   :  { %569 = vpow2.f32 %v364_v52  ;;  %v771_v60 = vadd.f32 %v746_v28, %v309_v54  ;;  %v310_v61 = vmul.f32 %v741_v26, %v248_v58  ;;  %v318_v62 = vmul.f32 %v741_v26, %v280_v59  ;;  %v250_v63 = vpop.f32.mrb[7].mxu0  ;;  %v282_v0 = vpop.f32.mrb[7].mxu1 }
 0x104   :  { %571 = vpow2.f32 %v380_v53  ;;  %v776_v1 = vadd.f32 %v746_v28, %v317_v57 }
 0x105   :  { %v348_v2 = vsub.f32 0.0, %v771_v60  ;;  %v780_v3 = vadd.f32 %v746_v28, %v310_v61  ;;  %v783_v4 = vadd.f32 %v746_v28, %v318_v62 }
 0x106   :  { %v356_v5 = vsub.f32 0.0, %v776_v1 }
 0x107   :  { %v366_v6 = vmul.f32 1.442695, %v348_v2  ;;  %v349_v7 = vsub.f32 0.0, %v780_v3  ;;  %v357_v8 = vsub.f32 0.0, %v783_v4 }
 0x108   :  { %v382_v9 = vmul.f32 1.442695, %v356_v5  ;;  %v253_v10 = vpop.f32.mrb[8].mxu0  ;;  %v285_v11 = vpop.f32.mrb[8].mxu1 }
 0x109   :  { %573 = vpow2.f32 %v366_v6  ;;  %v368_v12 = vmul.f32 1.442695, %v349_v7  ;;  %v384_v13 = vmul.f32 1.442695, %v357_v8  ;;  %v311_v14 = vmul.f32 %v741_v26, %v253_v10  ;;  %v255_v15 = vpop.f32.mrb[9].mxu0  ;;  %v287_v16 = vpop.f32.mrb[9].mxu1 }
 0x10a   :  { %575 = vpow2.f32 %v382_v9  ;;  %v319_v17 = vmul.f32 %v741_v26, %v285_v11  ;;  %v256_v18 = vpop.f32.mrb[10].mxu0  ;;  %v288_v19 = vpop.f32.mrb[10].mxu1 }
 0x10b   :  { %v566_v20 = vpop.eup %565  ;;  %577 = vpow2.f32 %v368_v12  ;;  %v791_v21 = vadd.f32 %v746_v28, %v311_v14  ;;  %v312_v22 = vmul.f32 %v741_v26, %v256_v18  ;;  %v320_v23 = vmul.f32 %v741_v26, %v288_v19  ;;  %v258_v24 = vpop.f32.mrb[11].mxu0 }
 0x10c   :  { %v290_v25 = vpop.f32.mrb[11].mxu1  ;;  %v568_v27 = vpop.eup %567  ;;  %v394_v29 = vadd.f32 1.0, %v566_v20  ;;  %579 = vpow2.f32 %v384_v13  ;;  %v796_v30 = vadd.f32 %v746_v28, %v319_v17 }
 0x10d   :  { %v570_v31 = vpop.eup %569  ;;  %v402_v32 = vadd.f32 1.0, %v568_v27  ;;  %v350_v33 = vsub.f32 0.0, %v791_v21  ;;  %v800_v34 = vadd.f32 %v746_v28, %v312_v22  ;;  %v803_v35 = vadd.f32 %v746_v28, %v320_v23 }
 0x10e   :  { %v572_v38 = vpop.eup %571  ;;  %581 = vrcp.f32 %v394_v29  ;;  %v395_v39 = vadd.f32 1.0, %v570_v31  ;;  %v358_v40 = vsub.f32 0.0, %v796_v30 }
 0x10f   :  { %583 = vrcp.f32 %v402_v32  ;;  %v403_v41 = vadd.f32 1.0, %v572_v38  ;;  %v370_v42 = vmul.f32 1.442695, %v350_v33  ;;  %v351_v43 = vsub.f32 0.0, %v800_v34 }
 0x110   :  { %585 = vrcp.f32 %v395_v39  ;;  %v386_v46 = vmul.f32 1.442695, %v358_v40  ;;  %v359_v47 = vsub.f32 0.0, %v803_v35  ;;  %v261_v48 = vpop.f32.mrb[12].mxu0  ;;  %v293_v49 = vpop.f32.mrb[12].mxu1 }
 0x111   :  { %587 = vrcp.f32 %v403_v41  ;;  %v372_v50 = vmul.f32 1.442695, %v351_v43  ;;  %v313_v51 = vmul.f32 %v741_v26, %v261_v48  ;;  %v321_v52 = vmul.f32 %v741_v26, %v293_v49  ;;  %v263_v53 = vpop.f32.mrb[13].mxu0  ;;  %v295_v54 = vpop.f32.mrb[13].mxu1 }
 0x112   :  { %589 = vpow2.f32 %v370_v42  ;;  %v388_v55 = vmul.f32 1.442695, %v359_v47  ;;  %v264_v56 = vpop.f32.mrb[14].mxu0  ;;  %v296_v57 = vpop.f32.mrb[14].mxu1 }
 0x113   :  { %v574_v58 = vpop.eup %573  ;;  %591 = vpow2.f32 %v386_v46  ;;  %v811_v59 = vadd.f32 %v746_v28, %v313_v51  ;;  %v814_v61 = vadd.f32 %v746_v28, %v321_v52  ;;  %v314_v62 = vmul.f32 %v741_v26, %v264_v56  ;;  %v266_v63 = vpop.f32.mrb[15].mxu0 }
 0x114   :  { %v298_v0 = vpop.f32.mrb[15].mxu1  ;;  %v576_v2 = vpop.eup %575  ;;  %v396_v5 = vadd.f32 1.0, %v574_v58  ;;  %593 = vpow2.f32 %v372_v50  ;;  %v322_v6 = vmul.f32 %v741_v26, %v296_v57 }
 0x115   :  { %v578_v7 = vpop.eup %577  ;;  %v404_v8 = vadd.f32 1.0, %v576_v2  ;;  %595 = vpow2.f32 %v388_v55  ;;  %v352_v9 = vsub.f32 0.0, %v811_v59  ;;  %v360_v10 = vsub.f32 0.0, %v814_v61 }
 0x116   :  { %v580_v11 = vpop.eup %579  ;;  %597 = vrcp.f32 %v396_v5  ;;  %v397_v12 = vadd.f32 1.0, %v578_v7  ;;  %v821_v13 = vadd.f32 %v746_v28, %v314_v62  ;;  %v824_v14 = vadd.f32 %v746_v28, %v322_v6 }
 0x117   :  { %599 = vrcp.f32 %v404_v8  ;;  %v405_v15 = vadd.f32 1.0, %v580_v11  ;;  %v374_v16 = vmul.f32 1.442695, %v352_v9  ;;  %v390_v26 = vmul.f32 1.442695, %v360_v10 }
 0x118   :  { %v582_v17 = vpop.eup %581  ;;  %601 = vrcp.f32 %v397_v12  ;;  %v353_v18 = vsub.f32 0.0, %v821_v13  ;;  %v361_v19 = vsub.f32 0.0, %v824_v14 }
 0x119   :  { %v584_v20 = vpop.eup %583  ;;  %v442_v22 = vmul.f32 %v582_v17, %v751_v36  ;;  %603 = vrcp.f32 %v405_v15 }
 0x11a   :  { %v586_v23 = vpop.eup %585  ;;  %v450_v24 = vmul.f32 %v584_v20, %v754_v37  ;;  %605 = vpow2.f32 %v374_v16  ;;  %v376_v28 = vmul.f32 1.442695, %v353_v18  ;;  %v392_v25 = vmul.f32 1.442695, %v361_v19 }
 0x11b   :  { %v588_v27 = vpop.eup %587  ;;  %458 = vst [vmem:[%s896_s4] sm:$0xff] %v442_v22  ;;  %v443_v29 = vmul.f32 %v586_v23, %v761_v44  ;;  %607 = vpow2.f32 %v390_v26 }
 0x11c   :  { %v590_v31 = vpop.eup %589  ;;  %466 = vst [vmem:[%s896_s4 + $0x40] sm:$0xff] %v450_v24  ;;  %v451_v36 = vmul.f32 %v588_v27, %v764_v45  ;;  %609 = vpow2.f32 %v376_v28 }
 0x11d   :  { %v592_v37 = vpop.eup %591  ;;  %459 = vst [vmem:[%s896_s4 + $0x8] sm:$0xff] %v443_v29  ;;  %v398_v32 = vadd.f32 1.0, %v590_v31  ;;  %611 = vpow2.f32 %v392_v25 }
 0x11e   :  { %v594_v33 = vpop.eup %593  ;;  %467 = vst [vmem:[%s896_s4 + $0x48] sm:$0xff] %v451_v36  ;;  %v406_v44 = vadd.f32 1.0, %v592_v37 }
 0x11f   :  { %v596_v38 = vpop.eup %595  ;;  %613 = vrcp.f32 %v398_v32  ;;  %v399_v39 = vadd.f32 1.0, %v594_v33 }
 0x120   :  { %v598_v40 = vpop.eup %597  ;;  %615 = vrcp.f32 %v406_v44  ;;  %v407_v45 = vadd.f32 1.0, %v596_v38 }
 0x121   :  { %v600_v41 = vpop.eup %599  ;;  %v444_v42 = vmul.f32 %v598_v40, %v771_v60  ;;  %617 = vrcp.f32 %v399_v39 }
 0x122   :  { %v602_v43 = vpop.eup %601  ;;  %v452_v46 = vmul.f32 %v600_v41, %v776_v1  ;;  %619 = vrcp.f32 %v407_v45 }
 0x123   :  { %v604_v47 = vpop.eup %603  ;;  %460 = vst [vmem:[%s896_s4 + $0x10] sm:$0xff] %v444_v42  ;;  %v445_v48 = vmul.f32 %v602_v43, %v780_v3 }
 0x124   :  { %v606_v49 = vpop.eup %605  ;;  %468 = vst [vmem:[%s896_s4 + $0x50] sm:$0xff] %v452_v46  ;;  %v453_v50 = vmul.f32 %v604_v47, %v783_v4 }
 0x125   :  { %v608_v60 = vpop.eup %607  ;;  %461 = vst [vmem:[%s896_s4 + $0x18] sm:$0xff] %v445_v48  ;;  %v400_v1 = vadd.f32 1.0, %v606_v49 }
 0x126   :  { %v610_v51 = vpop.eup %609  ;;  %469 = vst [vmem:[%s896_s4 + $0x58] sm:$0xff] %v453_v50  ;;  %v408_v52 = vadd.f32 1.0, %v608_v60 }
 0x127   :  { %v612_v3 = vpop.eup %611  ;;  %621 = vrcp.f32 %v400_v1  ;;  %v401_v53 = vadd.f32 1.0, %v610_v51 }
 0x128   :  { %623 = vrcp.f32 %v408_v52  ;;  %v409_v54 = vadd.f32 1.0, %v612_v3 }
 0x129   :  { %v614_v55 = vpop.eup %613  ;;  %625 = vrcp.f32 %v401_v53 }
 0x12a   :  { %v616_v4 = vpop.eup %615  ;;  %v446_v56 = vmul.f32 %v614_v55, %v791_v21  ;;  %627 = vrcp.f32 %v409_v54 }
 0x12b   :  { %v618_v57 = vpop.eup %617  ;;  %v454_v58 = vmul.f32 %v616_v4, %v796_v30 }
 0x12c   :  { %v620_v62 = vpop.eup %619  ;;  %462 = vst [vmem:[%s896_s4 + $0x20] sm:$0xff] %v446_v56  ;;  %v447_v63 = vmul.f32 %v618_v57, %v800_v34 }
 0x12d   :  { %470 = vst [vmem:[%s896_s4 + $0x60] sm:$0xff] %v454_v58  ;;  %v455_v0 = vmul.f32 %v620_v62, %v803_v35 }
 0x12e   :  { %463 = vst [vmem:[%s896_s4 + $0x28] sm:$0xff] %v447_v63 }
 0x12f   :  { %471 = vst [vmem:[%s896_s4 + $0x68] sm:$0xff] %v455_v0 }
 0x131   :  { %v622_v21 = vpop.eup %621 }
 0x132   :  { %v624_v30 = vpop.eup %623  ;;  %v448_v2 = vmul.f32 %v622_v21, %v811_v59 }
 0x133   :  { %v626_v5 = vpop.eup %625  ;;  %v456_v34 = vmul.f32 %v624_v30, %v814_v61 }
 0x134   :  { %v628_v6 = vpop.eup %627  ;;  %464 = vst [vmem:[%s896_s4 + $0x30] sm:$0xff] %v448_v2  ;;  %v449_v35 = vmul.f32 %v626_v5, %v821_v13 }
 0x135   :  { %472 = vst [vmem:[%s896_s4 + $0x70] sm:$0xff] %v456_v34  ;;  %v457_v7 = vmul.f32 %v628_v6, %v824_v14 }
 0x136   :  { %465 = vst [vmem:[%s896_s4 + $0x38] sm:$0xff] %v449_v35 }
 0x137   :  { %473 = vst [vmem:[%s896_s4 + $0x78] sm:$0xff] %v457_v7 }

// kernel: cspdarknet_fwd.49
= control target key start
LH: loop header
LB: loop body
LE: loop exit
PB: predicated region body
PF: predicated region fallthrough
CT: control target
= control target key end

     0   :  { %vm90_vm0 = vcmask 261120   ;;  %s735_s1 = inlined_call_operand.vmem [shape: bf16[32,128], index: 1, kind: input, shape index: {}]   ;;  %s736_s0 = inlined_call_operand.vmem [shape: bf16[128,32], index: 0, kind: input, shape index: {}]   ;;  %s737_s2 = inlined_call_operand.vmem [shape: f32[1,128], index: 2, kind: input, shape index: {}]   ;;  %s738_s3 = inlined_call_operand.vmem [shape: f32[1,128], index: 3, kind: input, shape index: {}]   ;;  %s739_s4 = inlined_call_operand.vmem [shape: f32[128,128], index: 4, kind: output, shape index: {}]  }
   0x1   :  { %v444_v0 = vld [vmem:[%s735_s1] sm:$0xff]   ;;  %v445_v1 = vld [vmem:[%s735_s1 + $0x8] sm:$0xff]   ;;  %v450_v6 = vld [vmem:[%s736_s0 + $0x10] sm:$0xff]  }
   0x2   :  { %420 = vmatprep.subr.bf16.mxu0 %v444_v0  ;;  %440 = vmatprep.subr.bf16.mxu1 %v444_v0  ;;  %v446_v2 = vld [vmem:[%s736_s0] sm:$0xff]   ;;  %v448_v4 = vld [vmem:[%s736_s0 + $0x8] sm:$0xff]   ;;  %v451_v7 = vld [vmem:[%s736_s0 + $0x30] sm:$0xff]  }
   0x3   :  { %421 = vmatpush3.bf16.msra.mxu0 %v444_v0  ;;  %442 = vmatpush3.bf16.msra.mxu1 %v444_v0  ;;  %v447_v3 = vld [vmem:[%s736_s0 + $0x20] sm:$0xff]   ;;  %v449_v5 = vld [vmem:[%s736_s0 + $0x28] sm:$0xff]   ;;  %v452_v8 = vld [vmem:[%s736_s0 + $0x18] sm:$0xff]  }
   0x4   :  { %422 = vmatprep.subr.bf16.mxu0 %v445_v1  ;;  %441 = vmatprep.subr.bf16.mxu1 %v445_v1  ;;  %v453_v9 = vld [vmem:[%s736_s0 + $0x38] sm:$0xff]   ;;  %v584_v10 = vld [vmem:[%s737_s2] ss:$0 sm:$0xff] }
   0x5   :  { %424 = vmatprep.mubr.msk.bf16.mxu0 %vm90_vm0, %v446_v2  ;;  %432 = vmatprep.mubr.msk.bf16.mxu1 %vm90_vm0, %v447_v3  ;;  %v589_v12 = vld [vmem:[%s738_s3] ss:$0 sm:$0xff] }
   0x7   :  { %423 = vmatpush3.bf16.msra.mxu0 %v445_v1  ;;  %443 = vmatpush3.bf16.msra.mxu1 %v445_v1 }
   0xa   :  { %425 = vmatmul.mubr.msk.bf16.vlgmr.msra.gmra.mrb[0].mxu0 %vm90_vm0, %v448_v4  ;;  %433 = vmatmul.mubr.msk.bf16.vlgmr.msra.gmra.mrb[0].mxu1 %vm90_vm0, %v449_v5 }
   0xb   :  { %428 = vmatprep.mubr.msk.bf16.mxu0 %vm90_vm0, %v450_v6  ;;  %436 = vmatprep.mubr.msk.bf16.mxu1 %vm90_vm0, %v451_v7 }
  0x12   :  { %429 = vmatmul.mubr.msk.bf16.gmra.mrb[4].mxu0 %vm90_vm0, %v452_v8  ;;  %437 = vmatmul.mubr.msk.bf16.gmra.mrb[4].mxu1 %vm90_vm0, %v453_v9 }
  0xdd   :  { %v426_v11 = vpop.f32.mrb[0].mxu0  ;;  %v434_v13 = vpop.f32.mrb[0].mxu1 }
  0xde   :  { %v221_v14 = vmul.f32 %v426_v11, %v584_v10  ;;  %v229_v15 = vmul.f32 %v434_v13, %v584_v10  ;;  %v149_v16 = vpop.f32.mrb[1].mxu0  ;;  %v181_v17 = vpop.f32.mrb[1].mxu1 }
  0xdf   :  { %v219_v18 = vmul.f32 %v584_v10, %v149_v16  ;;  %v227_v19 = vmul.f32 %v584_v10, %v181_v17  ;;  %v427_v20 = vpop.f32.mrb[2].mxu0  ;;  %v435_v21 = vpop.f32.mrb[2].mxu1 }
  0xe0   :  { %v596_v22 = vadd.f32 %v589_v12, %v221_v14  ;;  %v599_v23 = vadd.f32 %v589_v12, %v229_v15  ;;  %v222_v24 = vmul.f32 %v427_v20, %v584_v10  ;;  %v230_v25 = vmul.f32 %v435_v21, %v584_v10  ;;  %v152_v26 = vpop.f32.mrb[3].mxu0  ;;  %v184_v27 = vpop.f32.mrb[3].mxu1 }
  0xe1   :  { %v604_v28 = vadd.f32 %v589_v12, %v219_v18  ;;  %v607_v29 = vadd.f32 %v589_v12, %v227_v19  ;;  %v220_v30 = vmul.f32 %v584_v10, %v152_v26  ;;  %v228_v31 = vmul.f32 %v584_v10, %v184_v27 }
  0xe2   :  { %v260_v32 = vsub.f32 0.0, %v596_v22  ;;  %v268_v33 = vsub.f32 0.0, %v599_v23  ;;  %v614_v34 = vadd.f32 %v589_v12, %v222_v24  ;;  %v617_v35 = vadd.f32 %v589_v12, %v230_v25 }
  0xe3   :  { %v258_v36 = vsub.f32 0.0, %v604_v28  ;;  %v266_v37 = vsub.f32 0.0, %v607_v29  ;;  %v622_v38 = vadd.f32 %v589_v12, %v220_v30  ;;  %v625_v39 = vadd.f32 %v589_v12, %v228_v31 }
  0xe4   :  { %v278_v40 = vmul.f32 1.442695, %v260_v32  ;;  %v294_v41 = vmul.f32 1.442695, %v268_v33  ;;  %v261_v42 = vsub.f32 0.0, %v614_v34  ;;  %v269_v43 = vsub.f32 0.0, %v617_v35 }
  0xe5   :  { %v274_v44 = vmul.f32 1.442695, %v258_v36  ;;  %v290_v45 = vmul.f32 1.442695, %v266_v37  ;;  %v259_v46 = vsub.f32 0.0, %v622_v38  ;;  %v267_v47 = vsub.f32 0.0, %v625_v39 }
  0xe6   :  { %454 = vpow2.f32 %v278_v40  ;;  %v280_v48 = vmul.f32 1.442695, %v261_v42  ;;  %v430_v49 = vpop.f32.mrb[4].mxu0  ;;  %v438_v50 = vpop.f32.mrb[4].mxu1  ;;  %v296_v51 = vmul.f32 1.442695, %v269_v43 }
  0xe7   :  { %456 = vpow2.f32 %v294_v41  ;;  %v276_v52 = vmul.f32 1.442695, %v259_v46  ;;  %v225_v53 = vmul.f32 %v430_v49, %v584_v10  ;;  %v165_v54 = vpop.f32.mrb[5].mxu0  ;;  %v197_v55 = vpop.f32.mrb[5].mxu1  ;;  %v233_v56 = vmul.f32 %v438_v50, %v584_v10 }
  0xe8   :  { %458 = vpow2.f32 %v274_v44  ;;  %v223_v57 = vmul.f32 %v584_v10, %v165_v54  ;;  %v231_v58 = vmul.f32 %v584_v10, %v197_v55  ;;  %v431_v59 = vpop.f32.mrb[6].mxu0  ;;  %v439_v60 = vpop.f32.mrb[6].mxu1  ;;  %v292_v61 = vmul.f32 1.442695, %v267_v47 }
  0xe9   :  { %460 = vpow2.f32 %v290_v45  ;;  %v636_v62 = vadd.f32 %v589_v12, %v225_v53  ;;  %v168_v63 = vpop.f32.mrb[7].mxu0  ;;  %v200_v0 = vpop.f32.mrb[7].mxu1  ;;  %v639_v1 = vadd.f32 %v589_v12, %v233_v56  ;;  %v226_v5 = vmul.f32 %v431_v59, %v584_v10 }
  0xea   :  { %462 = vpow2.f32 %v280_v48  ;;  %v642_v2 = vadd.f32 %v589_v12, %v223_v57  ;;  %v645_v3 = vadd.f32 %v589_v12, %v231_v58  ;;  %v234_v17 = vmul.f32 %v439_v60, %v584_v10 }
  0xeb   :  { %464 = vpow2.f32 %v296_v51  ;;  %v264_v4 = vsub.f32 0.0, %v636_v62  ;;  %v272_v6 = vsub.f32 0.0, %v639_v1  ;;  %v653_v15 = vadd.f32 %v589_v12, %v226_v5 }
  0xec   :  { %466 = vpow2.f32 %v276_v52  ;;  %v262_v7 = vsub.f32 0.0, %v642_v2  ;;  %v270_v8 = vsub.f32 0.0, %v645_v3  ;;  %v224_v20 = vmul.f32 %v584_v10, %v168_v63 }
  0xed   :  { %468 = vpow2.f32 %v292_v61  ;;  %v286_v9 = vmul.f32 1.442695, %v264_v4  ;;  %v302_v11 = vmul.f32 1.442695, %v272_v6  ;;  %v232_v25 = vmul.f32 %v584_v10, %v200_v0 }
  0xee   :  { %v282_v13 = vmul.f32 1.442695, %v262_v7  ;;  %v298_v14 = vmul.f32 1.442695, %v270_v8  ;;  %v265_v30 = vsub.f32 0.0, %v653_v15  ;;  %v660_v33 = vadd.f32 %v589_v12, %v234_v17 }
  0xef   :  { %470 = vpow2.f32 %v286_v9  ;;  %v663_v40 = vadd.f32 %v589_v12, %v224_v20  ;;  %v666_v42 = vadd.f32 %v589_v12, %v232_v25 }
  0xf0   :  { %v455_v16 = vpop.eup %454  ;;  %472 = vpow2.f32 %v302_v11  ;;  %v288_v45 = vmul.f32 1.442695, %v265_v30  ;;  %v273_v47 = vsub.f32 0.0, %v660_v33 }
  0xf1   :  { %v457_v18 = vpop.eup %456  ;;  %v308_v19 = vadd.f32 1.0, %v455_v16  ;;  %474 = vpow2.f32 %v282_v13  ;;  %v263_v49 = vsub.f32 0.0, %v663_v40  ;;  %v271_v52 = vsub.f32 0.0, %v666_v42 }
  0xf2   :  { %v459_v21 = vpop.eup %458  ;;  %v316_v24 = vadd.f32 1.0, %v457_v18  ;;  %476 = vpow2.f32 %v298_v14  ;;  %v304_v56 = vmul.f32 1.442695, %v273_v47 }
  0xf3   :  { %v461_v26 = vpop.eup %460  ;;  %478 = vrcp.f32 %v308_v19  ;;  %v306_v27 = vadd.f32 1.0, %v459_v21  ;;  %v284_v59 = vmul.f32 1.442695, %v263_v49  ;;  %v300_v63 = vmul.f32 1.442695, %v271_v52 }
  0xf4   :  { %v463_v31 = vpop.eup %462  ;;  %480 = vrcp.f32 %v316_v24  ;;  %v314_v32 = vadd.f32 1.0, %v461_v26 }
  0xf5   :  { %v465_v36 = vpop.eup %464  ;;  %482 = vrcp.f32 %v306_v27  ;;  %v309_v37 = vadd.f32 1.0, %v463_v31 }
  0xf6   :  { %v467_v41 = vpop.eup %466  ;;  %484 = vrcp.f32 %v314_v32  ;;  %v317_v10 = vadd.f32 1.0, %v465_v36 }
  0xf7   :  { %v469_v43 = vpop.eup %468  ;;  %486 = vrcp.f32 %v309_v37  ;;  %v307_v44 = vadd.f32 1.0, %v467_v41 }
  0xf8   :  { %488 = vrcp.f32 %v317_v10  ;;  %v315_v46 = vadd.f32 1.0, %v469_v43 }
  0xf9   :  { %v471_v48 = vpop.eup %470  ;;  %490 = vrcp.f32 %v307_v44 }
  0xfa   :  { %v473_v50 = vpop.eup %472  ;;  %492 = vrcp.f32 %v315_v46  ;;  %v312_v51 = vadd.f32 1.0, %v471_v48 }
  0xfb   :  { %v475_v53 = vpop.eup %474  ;;  %v320_v12 = vadd.f32 1.0, %v473_v50  ;;  %494 = vpow2.f32 %v288_v45 }
  0xfc   :  { %v477_v54 = vpop.eup %476  ;;  %496 = vrcp.f32 %v312_v51  ;;  %v310_v55 = vadd.f32 1.0, %v475_v53 }
  0xfd   :  { %v479_v57 = vpop.eup %478  ;;  %498 = vrcp.f32 %v320_v12  ;;  %v318_v58 = vadd.f32 1.0, %v477_v54 }
  0xfe   :  { %v481_v60 = vpop.eup %480  ;;  %v356_v61 = vmul.f32 %v479_v57, %v596_v22  ;;  %500 = vrcp.f32 %v310_v55 }
  0xff   :  { %v483_v0 = vpop.eup %482  ;;  %v364_v4 = vmul.f32 %v481_v60, %v599_v23  ;;  %502 = vrcp.f32 %v318_v58 }
 0x100   :  { %v485_v5 = vpop.eup %484  ;;  %372 = vst [vmem:[%s739_s4 + $0x10] sm:$0xff] %v356_v61  ;;  %v354_v6 = vmul.f32 %v483_v0, %v604_v28  ;;  %504 = vpow2.f32 %v304_v56 }
 0x101   :  { %v487_v7 = vpop.eup %486  ;;  %380 = vst [vmem:[%s739_s4 + $0x50] sm:$0xff] %v364_v4  ;;  %v362_v22 = vmul.f32 %v485_v5, %v607_v29  ;;  %506 = vpow2.f32 %v284_v59 }
 0x102   :  { %v489_v8 = vpop.eup %488  ;;  %370 = vst [vmem:[%s739_s4] sm:$0xff] %v354_v6  ;;  %v357_v23 = vmul.f32 %v487_v7, %v614_v34  ;;  %508 = vpow2.f32 %v300_v63 }
 0x103   :  { %v491_v9 = vpop.eup %490  ;;  %378 = vst [vmem:[%s739_s4 + $0x40] sm:$0xff] %v362_v22  ;;  %v365_v28 = vmul.f32 %v489_v8, %v617_v35 }
 0x104   :  { %v493_v11 = vpop.eup %492  ;;  %373 = vst [vmem:[%s739_s4 + $0x18] sm:$0xff] %v357_v23  ;;  %v355_v29 = vmul.f32 %v491_v9, %v622_v38 }
 0x105   :  { %v495_v13 = vpop.eup %494  ;;  %381 = vst [vmem:[%s739_s4 + $0x58] sm:$0xff] %v365_v28  ;;  %v363_v34 = vmul.f32 %v493_v11, %v625_v39 }
 0x106   :  { %v497_v14 = vpop.eup %496  ;;  %371 = vst [vmem:[%s739_s4 + $0x8] sm:$0xff] %v355_v29  ;;  %v313_v35 = vadd.f32 1.0, %v495_v13 }
 0x107   :  { %v499_v16 = vpop.eup %498  ;;  %379 = vst [vmem:[%s739_s4 + $0x48] sm:$0xff] %v363_v34  ;;  %v360_v38 = vmul.f32 %v497_v14, %v636_v62 }
 0x108   :  { %v501_v17 = vpop.eup %500  ;;  %v368_v18 = vmul.f32 %v499_v16, %v639_v1  ;;  %510 = vrcp.f32 %v313_v35 }
 0x109   :  { %v503_v19 = vpop.eup %502  ;;  %376 = vst [vmem:[%s739_s4 + $0x30] sm:$0xff] %v360_v38  ;;  %v358_v39 = vmul.f32 %v501_v17, %v642_v2 }
 0x10a   :  { %v505_v20 = vpop.eup %504  ;;  %384 = vst [vmem:[%s739_s4 + $0x70] sm:$0xff] %v368_v18  ;;  %v366_v21 = vmul.f32 %v503_v19, %v645_v3 }
 0x10b   :  { %v507_v24 = vpop.eup %506  ;;  %374 = vst [vmem:[%s739_s4 + $0x20] sm:$0xff] %v358_v39  ;;  %v321_v62 = vadd.f32 1.0, %v505_v20 }
 0x10c   :  { %v509_v1 = vpop.eup %508  ;;  %382 = vst [vmem:[%s739_s4 + $0x60] sm:$0xff] %v366_v21  ;;  %v311_v25 = vadd.f32 1.0, %v507_v24 }
 0x10d   :  { %512 = vrcp.f32 %v321_v62  ;;  %v319_v2 = vadd.f32 1.0, %v509_v1 }
 0x10e   :  { %514 = vrcp.f32 %v311_v25 }
 0x10f   :  { %516 = vrcp.f32 %v319_v2 }
 0x112   :  { %v511_v26 = vpop.eup %510 }
 0x113   :  { %v361_v27 = vmul.f32 %v511_v26, %v653_v15 }
 0x115   :  { %377 = vst [vmem:[%s739_s4 + $0x38] sm:$0xff] %v361_v27 }
 0x117   :  { %v513_v3 = vpop.eup %512 }
 0x118   :  { %v515_v30 = vpop.eup %514  ;;  %v369_v31 = vmul.f32 %v513_v3, %v660_v33 }
 0x119   :  { %v517_v32 = vpop.eup %516  ;;  %v359_v36 = vmul.f32 %v515_v30, %v663_v40 }
 0x11a   :  { %385 = vst [vmem:[%s739_s4 + $0x78] sm:$0xff] %v369_v31  ;;  %v367_v37 = vmul.f32 %v517_v32, %v666_v42 }
 0x11b   :  { %375 = vst [vmem:[%s739_s4 + $0x28] sm:$0xff] %v359_v36 }
 0x11c   :  { %383 = vst [vmem:[%s739_s4 + $0x68] sm:$0xff] %v367_v37 }

// kernel: cspdarknet_fwd.51
= control target key start
LH: loop header
LB: loop body
LE: loop exit
PB: predicated region body
PF: predicated region fallthrough
CT: control target
= control target key end

     0   :  { %vm82_vm0 = vcmask 130048   ;;  %s717_s1 = inlined_call_operand.vmem [shape: bf16[16,128], index: 1, kind: input, shape index: {}]   ;;  %s718_s0 = inlined_call_operand.vmem [shape: bf16[128,16], index: 0, kind: input, shape index: {}]   ;;  %s719_s2 = inlined_call_operand.vmem [shape: f32[1,128], index: 2, kind: input, shape index: {}]   ;;  %s720_s3 = inlined_call_operand.vmem [shape: f32[1,128], index: 3, kind: input, shape index: {}]   ;;  %s721_s4 = inlined_call_operand.vmem [shape: f32[128,128], index: 4, kind: output, shape index: {}]  }
   0x1   :  { %v430_v0 = vld [vmem:[%s717_s1] sm:$0xff]   ;;  %v433_v3 = vld [vmem:[%s718_s0 + $0x8] sm:$0xff]   ;;  %v435_v5 = vld [vmem:[%s718_s0 + $0x10] sm:$0xff]  }
   0x2   :  { %v431_v1 = vld [vmem:[%s718_s0] sm:$0xff]   ;;  %410 = vmatprep.subr.bf16.mxu0 %v430_v0  ;;  %428 = vmatprep.subr.bf16.mxu1 %v430_v0  ;;  %v434_v4 = vld [vmem:[%s718_s0 + $0x28] sm:$0xff]   ;;  %v436_v6 = vld [vmem:[%s718_s0 + $0x30] sm:$0xff]  }
   0x3   :  { %v432_v2 = vld [vmem:[%s718_s0 + $0x20] sm:$0xff]   ;;  %411 = vmatpush3.bf16.msra.mxu0 %v430_v0  ;;  %429 = vmatpush3.bf16.msra.mxu1 %v430_v0  ;;  %v437_v7 = vld [vmem:[%s718_s0 + $0x18] sm:$0xff]  }
   0x4   :  { %412 = vmatprep.mubr.msk.bf16.mxu0 %vm82_vm0, %v431_v1  ;;  %420 = vmatprep.mubr.msk.bf16.mxu1 %vm82_vm0, %v432_v2  ;;  %v438_v8 = vld [vmem:[%s718_s0 + $0x38] sm:$0xff]   ;;  %v566_v9 = vld [vmem:[%s719_s2] ss:$0 sm:$0xff] }
   0x5   :  { %v571_v11 = vld [vmem:[%s720_s3] ss:$0 sm:$0xff] }
   0x6   :  { %413 = vmatmul.mubr.msk.bf16.vlgmr.msra.gmra.mrb[0].mxu0 %vm82_vm0, %v433_v3  ;;  %421 = vmatmul.mubr.msk.bf16.vlgmr.msra.gmra.mrb[0].mxu1 %vm82_vm0, %v434_v4 }
   0x7   :  { %416 = vmatprep.mubr.msk.bf16.mxu0 %vm82_vm0, %v435_v5  ;;  %424 = vmatprep.mubr.msk.bf16.mxu1 %vm82_vm0, %v436_v6 }
   0xe   :  { %417 = vmatmul.mubr.msk.bf16.gmra.mrb[4].mxu0 %vm82_vm0, %v437_v7  ;;  %425 = vmatmul.mubr.msk.bf16.gmra.mrb[4].mxu1 %vm82_vm0, %v438_v8 }
  0xd9   :  { %v414_v10 = vpop.f32.mrb[0].mxu0  ;;  %v422_v12 = vpop.f32.mrb[0].mxu1 }
  0xda   :  { %v213_v13 = vmul.f32 %v414_v10, %v566_v9  ;;  %v221_v14 = vmul.f32 %v422_v12, %v566_v9  ;;  %v141_v15 = vpop.f32.mrb[1].mxu0  ;;  %v173_v16 = vpop.f32.mrb[1].mxu1 }
  0xdb   :  { %v211_v17 = vmul.f32 %v566_v9, %v141_v15  ;;  %v219_v18 = vmul.f32 %v566_v9, %v173_v16  ;;  %v415_v19 = vpop.f32.mrb[2].mxu0  ;;  %v423_v20 = vpop.f32.mrb[2].mxu1 }
  0xdc   :  { %v578_v21 = vadd.f32 %v571_v11, %v213_v13  ;;  %v581_v22 = vadd.f32 %v571_v11, %v221_v14  ;;  %v214_v23 = vmul.f32 %v415_v19, %v566_v9  ;;  %v222_v24 = vmul.f32 %v423_v20, %v566_v9  ;;  %v144_v25 = vpop.f32.mrb[3].mxu0  ;;  %v176_v26 = vpop.f32.mrb[3].mxu1 }
  0xdd   :  { %v586_v27 = vadd.f32 %v571_v11, %v211_v17  ;;  %v589_v28 = vadd.f32 %v571_v11, %v219_v18  ;;  %v212_v29 = vmul.f32 %v566_v9, %v144_v25  ;;  %v220_v30 = vmul.f32 %v566_v9, %v176_v26 }
  0xde   :  { %v252_v31 = vsub.f32 0.0, %v578_v21  ;;  %v260_v32 = vsub.f32 0.0, %v581_v22  ;;  %v596_v33 = vadd.f32 %v571_v11, %v214_v23  ;;  %v599_v34 = vadd.f32 %v571_v11, %v222_v24 }
  0xdf   :  { %v250_v35 = vsub.f32 0.0, %v586_v27  ;;  %v258_v36 = vsub.f32 0.0, %v589_v28  ;;  %v604_v37 = vadd.f32 %v571_v11, %v212_v29  ;;  %v607_v38 = vadd.f32 %v571_v11, %v220_v30 }
  0xe0   :  { %v270_v39 = vmul.f32 1.442695, %v252_v31  ;;  %v286_v40 = vmul.f32 1.442695, %v260_v32  ;;  %v253_v41 = vsub.f32 0.0, %v596_v33  ;;  %v261_v42 = vsub.f32 0.0, %v599_v34 }
  0xe1   :  { %v266_v43 = vmul.f32 1.442695, %v250_v35  ;;  %v282_v44 = vmul.f32 1.442695, %v258_v36  ;;  %v251_v45 = vsub.f32 0.0, %v604_v37  ;;  %v259_v46 = vsub.f32 0.0, %v607_v38 }
  0xe2   :  { %439 = vpow2.f32 %v270_v39  ;;  %v272_v47 = vmul.f32 1.442695, %v253_v41  ;;  %v418_v48 = vpop.f32.mrb[4].mxu0  ;;  %v426_v49 = vpop.f32.mrb[4].mxu1  ;;  %v288_v50 = vmul.f32 1.442695, %v261_v42 }
  0xe3   :  { %441 = vpow2.f32 %v286_v40  ;;  %v268_v51 = vmul.f32 1.442695, %v251_v45  ;;  %v217_v52 = vmul.f32 %v418_v48, %v566_v9  ;;  %v157_v53 = vpop.f32.mrb[5].mxu0  ;;  %v189_v54 = vpop.f32.mrb[5].mxu1  ;;  %v225_v55 = vmul.f32 %v426_v49, %v566_v9 }
  0xe4   :  { %443 = vpow2.f32 %v266_v43  ;;  %v215_v56 = vmul.f32 %v566_v9, %v157_v53  ;;  %v223_v57 = vmul.f32 %v566_v9, %v189_v54  ;;  %v419_v58 = vpop.f32.mrb[6].mxu0  ;;  %v427_v59 = vpop.f32.mrb[6].mxu1  ;;  %v284_v60 = vmul.f32 1.442695, %v259_v46 }
  0xe5   :  { %445 = vpow2.f32 %v282_v44  ;;  %v618_v61 = vadd.f32 %v571_v11, %v217_v52  ;;  %v160_v62 = vpop.f32.mrb[7].mxu0  ;;  %v192_v63 = vpop.f32.mrb[7].mxu1  ;;  %v621_v0 = vadd.f32 %v571_v11, %v225_v55  ;;  %v218_v4 = vmul.f32 %v419_v58, %v566_v9 }
  0xe6   :  { %447 = vpow2.f32 %v272_v47  ;;  %v624_v1 = vadd.f32 %v571_v11, %v215_v56  ;;  %v627_v2 = vadd.f32 %v571_v11, %v223_v57  ;;  %v226_v16 = vmul.f32 %v427_v59, %v566_v9 }
  0xe7   :  { %449 = vpow2.f32 %v288_v50  ;;  %v256_v3 = vsub.f32 0.0, %v618_v61  ;;  %v264_v5 = vsub.f32 0.0, %v621_v0  ;;  %v635_v14 = vadd.f32 %v571_v11, %v218_v4 }
  0xe8   :  { %451 = vpow2.f32 %v268_v51  ;;  %v254_v6 = vsub.f32 0.0, %v624_v1  ;;  %v262_v7 = vsub.f32 0.0, %v627_v2  ;;  %v216_v19 = vmul.f32 %v566_v9, %v160_v62 }
  0xe9   :  { %453 = vpow2.f32 %v284_v60  ;;  %v278_v8 = vmul.f32 1.442695, %v256_v3  ;;  %v294_v10 = vmul.f32 1.442695, %v264_v5  ;;  %v224_v24 = vmul.f32 %v566_v9, %v192_v63 }
  0xea   :  { %v274_v12 = vmul.f32 1.442695, %v254_v6  ;;  %v290_v13 = vmul.f32 1.442695, %v262_v7  ;;  %v257_v29 = vsub.f32 0.0, %v635_v14  ;;  %v642_v32 = vadd.f32 %v571_v11, %v226_v16 }
  0xeb   :  { %455 = vpow2.f32 %v278_v8  ;;  %v645_v39 = vadd.f32 %v571_v11, %v216_v19  ;;  %v648_v41 = vadd.f32 %v571_v11, %v224_v24 }
  0xec   :  { %v440_v15 = vpop.eup %439  ;;  %457 = vpow2.f32 %v294_v10  ;;  %v280_v44 = vmul.f32 1.442695, %v257_v29  ;;  %v265_v46 = vsub.f32 0.0, %v642_v32 }
  0xed   :  { %v442_v17 = vpop.eup %441  ;;  %v300_v18 = vadd.f32 1.0, %v440_v15  ;;  %459 = vpow2.f32 %v274_v12  ;;  %v255_v48 = vsub.f32 0.0, %v645_v39  ;;  %v263_v51 = vsub.f32 0.0, %v648_v41 }
  0xee   :  { %v444_v20 = vpop.eup %443  ;;  %v308_v23 = vadd.f32 1.0, %v442_v17  ;;  %461 = vpow2.f32 %v290_v13  ;;  %v296_v55 = vmul.f32 1.442695, %v265_v46 }
  0xef   :  { %v446_v25 = vpop.eup %445  ;;  %463 = vrcp.f32 %v300_v18  ;;  %v298_v26 = vadd.f32 1.0, %v444_v20  ;;  %v276_v58 = vmul.f32 1.442695, %v255_v48  ;;  %v292_v62 = vmul.f32 1.442695, %v263_v51 }
  0xf0   :  { %v448_v30 = vpop.eup %447  ;;  %465 = vrcp.f32 %v308_v23  ;;  %v306_v31 = vadd.f32 1.0, %v446_v25 }
  0xf1   :  { %v450_v35 = vpop.eup %449  ;;  %467 = vrcp.f32 %v298_v26  ;;  %v301_v36 = vadd.f32 1.0, %v448_v30 }
  0xf2   :  { %v452_v40 = vpop.eup %451  ;;  %469 = vrcp.f32 %v306_v31  ;;  %v309_v9 = vadd.f32 1.0, %v450_v35 }
  0xf3   :  { %v454_v42 = vpop.eup %453  ;;  %471 = vrcp.f32 %v301_v36  ;;  %v299_v43 = vadd.f32 1.0, %v452_v40 }
  0xf4   :  { %473 = vrcp.f32 %v309_v9  ;;  %v307_v45 = vadd.f32 1.0, %v454_v42 }
  0xf5   :  { %v456_v47 = vpop.eup %455  ;;  %475 = vrcp.f32 %v299_v43 }
  0xf6   :  { %v458_v49 = vpop.eup %457  ;;  %477 = vrcp.f32 %v307_v45  ;;  %v304_v50 = vadd.f32 1.0, %v456_v47 }
  0xf7   :  { %v460_v52 = vpop.eup %459  ;;  %v312_v11 = vadd.f32 1.0, %v458_v49  ;;  %479 = vpow2.f32 %v280_v44 }
  0xf8   :  { %v462_v53 = vpop.eup %461  ;;  %481 = vrcp.f32 %v304_v50  ;;  %v302_v54 = vadd.f32 1.0, %v460_v52 }
  0xf9   :  { %v464_v56 = vpop.eup %463  ;;  %483 = vrcp.f32 %v312_v11  ;;  %v310_v57 = vadd.f32 1.0, %v462_v53 }
  0xfa   :  { %v466_v59 = vpop.eup %465  ;;  %v348_v60 = vmul.f32 %v464_v56, %v578_v21  ;;  %485 = vrcp.f32 %v302_v54 }
  0xfb   :  { %v468_v63 = vpop.eup %467  ;;  %v356_v3 = vmul.f32 %v466_v59, %v581_v22  ;;  %487 = vrcp.f32 %v310_v57 }
  0xfc   :  { %v470_v4 = vpop.eup %469  ;;  %364 = vst [vmem:[%s721_s4 + $0x10] sm:$0xff] %v348_v60  ;;  %v346_v5 = vmul.f32 %v468_v63, %v586_v27  ;;  %489 = vpow2.f32 %v296_v55 }
  0xfd   :  { %v472_v6 = vpop.eup %471  ;;  %372 = vst [vmem:[%s721_s4 + $0x50] sm:$0xff] %v356_v3  ;;  %v354_v21 = vmul.f32 %v470_v4, %v589_v28  ;;  %491 = vpow2.f32 %v276_v58 }
  0xfe   :  { %v474_v7 = vpop.eup %473  ;;  %362 = vst [vmem:[%s721_s4] sm:$0xff] %v346_v5  ;;  %v349_v22 = vmul.f32 %v472_v6, %v596_v33  ;;  %493 = vpow2.f32 %v292_v62 }
  0xff   :  { %v476_v8 = vpop.eup %475  ;;  %370 = vst [vmem:[%s721_s4 + $0x40] sm:$0xff] %v354_v21  ;;  %v357_v27 = vmul.f32 %v474_v7, %v599_v34 }
 0x100   :  { %v478_v10 = vpop.eup %477  ;;  %365 = vst [vmem:[%s721_s4 + $0x18] sm:$0xff] %v349_v22  ;;  %v347_v28 = vmul.f32 %v476_v8, %v604_v37 }
 0x101   :  { %v480_v12 = vpop.eup %479  ;;  %373 = vst [vmem:[%s721_s4 + $0x58] sm:$0xff] %v357_v27  ;;  %v355_v33 = vmul.f32 %v478_v10, %v607_v38 }
 0x102   :  { %v482_v13 = vpop.eup %481  ;;  %363 = vst [vmem:[%s721_s4 + $0x8] sm:$0xff] %v347_v28  ;;  %v305_v34 = vadd.f32 1.0, %v480_v12 }
 0x103   :  { %v484_v15 = vpop.eup %483  ;;  %371 = vst [vmem:[%s721_s4 + $0x48] sm:$0xff] %v355_v33  ;;  %v352_v37 = vmul.f32 %v482_v13, %v618_v61 }
 0x104   :  { %v486_v16 = vpop.eup %485  ;;  %v360_v17 = vmul.f32 %v484_v15, %v621_v0  ;;  %495 = vrcp.f32 %v305_v34 }
 0x105   :  { %v488_v18 = vpop.eup %487  ;;  %368 = vst [vmem:[%s721_s4 + $0x30] sm:$0xff] %v352_v37  ;;  %v350_v38 = vmul.f32 %v486_v16, %v624_v1 }
 0x106   :  { %v490_v19 = vpop.eup %489  ;;  %376 = vst [vmem:[%s721_s4 + $0x70] sm:$0xff] %v360_v17  ;;  %v358_v20 = vmul.f32 %v488_v18, %v627_v2 }
 0x107   :  { %v492_v23 = vpop.eup %491  ;;  %366 = vst [vmem:[%s721_s4 + $0x20] sm:$0xff] %v350_v38  ;;  %v313_v61 = vadd.f32 1.0, %v490_v19 }
 0x108   :  { %v494_v0 = vpop.eup %493  ;;  %374 = vst [vmem:[%s721_s4 + $0x60] sm:$0xff] %v358_v20  ;;  %v303_v24 = vadd.f32 1.0, %v492_v23 }
 0x109   :  { %497 = vrcp.f32 %v313_v61  ;;  %v311_v1 = vadd.f32 1.0, %v494_v0 }
 0x10a   :  { %499 = vrcp.f32 %v303_v24 }
 0x10b   :  { %501 = vrcp.f32 %v311_v1 }
 0x10e   :  { %v496_v25 = vpop.eup %495 }
 0x10f   :  { %v353_v26 = vmul.f32 %v496_v25, %v635_v14 }
 0x111   :  { %369 = vst [vmem:[%s721_s4 + $0x38] sm:$0xff] %v353_v26 }
 0x113   :  { %v498_v2 = vpop.eup %497 }
 0x114   :  { %v500_v29 = vpop.eup %499  ;;  %v361_v30 = vmul.f32 %v498_v2, %v642_v32 }
 0x115   :  { %v502_v31 = vpop.eup %501  ;;  %v351_v35 = vmul.f32 %v500_v29, %v645_v39 }
 0x116   :  { %377 = vst [vmem:[%s721_s4 + $0x78] sm:$0xff] %v361_v30  ;;  %v359_v36 = vmul.f32 %v502_v31, %v648_v41 }
 0x117   :  { %367 = vst [vmem:[%s721_s4 + $0x28] sm:$0xff] %v351_v35 }
 0x118   :  { %375 = vst [vmem:[%s721_s4 + $0x68] sm:$0xff] %v359_v36 }

// kernel: cspdarknet_fwd.52
= control target key start
LH: loop header
LB: loop body
LE: loop exit
PB: predicated region body
PF: predicated region fallthrough
CT: control target
= control target key end

     0   :  { %v664_v0 = vmov 0   ;;  %vm181_vm0 = vcmask 130048   ;;  %s980_s1 = inlined_call_operand.vmem [shape: bf16[144,128], index: 1, kind: input, shape index: {}]   ;;  %s981_s0 = inlined_call_operand.vmem [shape: bf16[128,144], index: 0, kind: input, shape index: {}]   ;;  %s982_s2 = inlined_call_operand.vmem [shape: f32[1,128], index: 2, kind: input, shape index: {}]   ;;  %s983_s3 = inlined_call_operand.vmem [shape: f32[1,128], index: 3, kind: input, shape index: {}]   ;;  %s984_s4 = inlined_call_operand.vmem [shape: f32[128,128], index: 4, kind: input, shape index: {}]   ;;  %s985_s5 = inlined_call_operand.vmem [shape: f32[128,128], index: 5, kind: output, shape index: {}]  }
   0x1   :  { %206 = vmatprep.subr.bf16.mxu0 %v664_v0  ;;  %548 = vmatprep.subr.bf16.mxu1 %v664_v0  ;;  %v567_v1 = vld [vmem:[%s980_s1] sm:$0xff]   ;;  %v568_v2 = vld [vmem:[%s980_s1 + $0x8] sm:$0xff]   ;;  %v569_v3 = vld [vmem:[%s980_s1 + $0x10] sm:$0xff]  }
   0x2   :  { %207 = vmatpush1.bf16.msra.mxu0 %v567_v1  ;;  %557 = vmatpush1.bf16.msra.mxu1 %v567_v1  ;;  %v570_v4 = vld [vmem:[%s980_s1 + $0x18] sm:$0xff]   ;;  %v578_v5 = vld [vmem:[%s981_s0 + $0x4] ss:$8 sps:$4 sm:$0xff]   ;;  %v573_v9 = vld [vmem:[%s980_s1 + $0x30] sm:$0xff]  }
   0x3   :  { %208 = vmatprep.subr.bf16.mxu0 %v664_v0  ;;  %549 = vmatprep.subr.bf16.mxu1 %v664_v0  ;;  %v581_v6 = vld [vmem:[%s981_s0 + $0x44] ss:$8 sps:$4 sm:$0xff]   ;;  %v574_v10 = vld [vmem:[%s980_s1 + $0x38] sm:$0xff]   ;;  %v576_v12 = vld [vmem:[%s981_s0] ss:$8 sps:$4 sm:$0xff]  }
   0x4   :  { %538 = vmatprep.mubr.msk.bf16.mxu0 %vm181_vm0, %v578_v5  ;;  %542 = vmatprep.mubr.msk.bf16.mxu1 %vm181_vm0, %v581_v6  ;;  %v571_v7 = vld [vmem:[%s980_s1 + $0x20] sm:$0xff]   ;;  %v572_v8 = vld [vmem:[%s980_s1 + $0x28] sm:$0xff]   ;;  %v582_v14 = vld [vmem:[%s981_s0 + $0x14] ss:$8 sps:$4 sm:$0xff]  }
   0x5   :  { %v575_v11 = vld [vmem:[%s980_s1 + $0x40] sm:$0xff]   ;;  %v584_v15 = vld [vmem:[%s981_s0 + $0x54] ss:$8 sps:$4 sm:$0xff]   ;;  %v586_v16 = vld [vmem:[%s981_s0 + $0x10] ss:$8 sps:$4 sm:$0xff]  }
   0x6   :  { %209 = vmatpush1.bf16.msra.mxu0 %v568_v2  ;;  %558 = vmatpush1.bf16.msra.mxu1 %v568_v2  ;;  %v579_v13 = vld [vmem:[%s981_s0 + $0x40] ss:$8 sps:$4 sm:$0xff]   ;;  %v587_v17 = vld [vmem:[%s981_s0 + $0x50] ss:$8 sps:$4 sm:$0xff]   ;;  %v588_v18 = vld [vmem:[%s981_s0 + $0x24] ss:$8 sps:$4 sm:$0xff]  }
   0x7   :  { %210 = vmatprep.subr.bf16.mxu0 %v664_v0  ;;  %550 = vmatprep.subr.bf16.mxu1 %v664_v0  ;;  %v590_v19 = vld [vmem:[%s981_s0 + $0x64] ss:$8 sps:$4 sm:$0xff]   ;;  %v592_v20 = vld [vmem:[%s981_s0 + $0x20] ss:$8 sps:$4 sm:$0xff]   ;;  %v594_v22 = vld [vmem:[%s981_s0 + $0x34] ss:$8 sps:$4 sm:$0xff]  }
   0x8   :  { %v593_v21 = vld [vmem:[%s981_s0 + $0x60] ss:$8 sps:$4 sm:$0xff]   ;;  %v596_v23 = vld [vmem:[%s981_s0 + $0x74] ss:$8 sps:$4 sm:$0xff]   ;;  %v598_v24 = vld [vmem:[%s981_s0 + $0x30] ss:$8 sps:$4 sm:$0xff]  }
   0x9   :  { %v599_v25 = vld [vmem:[%s981_s0 + $0x70] ss:$8 sps:$4 sm:$0xff]   ;;  %v781_v26 = vld [vmem:[%s982_s2] ss:$0 sm:$0xff] }
   0xa   :  { %211 = vmatpush1.bf16.msra.mxu0 %v569_v3  ;;  %559 = vmatpush1.bf16.msra.mxu1 %v569_v3  ;;  %v786_v28 = vld [vmem:[%s983_s3] ss:$0 sm:$0xff] }
   0xb   :  { %212 = vmatprep.subr.bf16.mxu0 %v664_v0  ;;  %551 = vmatprep.subr.bf16.mxu1 %v664_v0 }
   0xe   :  { %213 = vmatpush1.bf16.msra.mxu0 %v570_v4  ;;  %560 = vmatpush1.bf16.msra.mxu1 %v570_v4 }
   0xf   :  { %214 = vmatprep.subr.bf16.mxu0 %v664_v0  ;;  %552 = vmatprep.subr.bf16.mxu1 %v664_v0 }
  0x12   :  { %215 = vmatpush1.bf16.msra.mxu0 %v571_v7  ;;  %561 = vmatpush1.bf16.msra.mxu1 %v571_v7 }
  0x13   :  { %216 = vmatprep.subr.bf16.mxu0 %v664_v0  ;;  %553 = vmatprep.subr.bf16.mxu1 %v664_v0 }
  0x16   :  { %217 = vmatpush1.bf16.msra.mxu0 %v572_v8  ;;  %562 = vmatpush1.bf16.msra.mxu1 %v572_v8 }
  0x17   :  { %218 = vmatprep.subr.bf16.mxu0 %v664_v0  ;;  %554 = vmatprep.subr.bf16.mxu1 %v664_v0 }
  0x1a   :  { %219 = vmatpush1.bf16.msra.mxu0 %v573_v9  ;;  %563 = vmatpush1.bf16.msra.mxu1 %v573_v9 }
  0x1b   :  { %220 = vmatprep.subr.bf16.mxu0 %v664_v0  ;;  %555 = vmatprep.subr.bf16.mxu1 %v664_v0 }
  0x1e   :  { %221 = vmatpush1.bf16.msra.mxu0 %v574_v10  ;;  %564 = vmatpush1.bf16.msra.mxu1 %v574_v10 }
  0x1f   :  { %222 = vmatprep.subr.bf16.mxu0 %v664_v0  ;;  %556 = vmatprep.subr.bf16.mxu1 %v664_v0 }
  0x22   :  { %223 = vmatpush1.bf16.msra.mxu0 %v575_v11  ;;  %565 = vmatpush1.bf16.msra.mxu1 %v575_v11 }
  0x25   :  { %239 = vmatmul.mubr.bf16.vlgmr.msra.gmra.mrb[0].mxu0 %v576_v12  ;;  %271 = vmatmul.mubr.bf16.vlgmr.msra.gmra.mrb[0].mxu1 %v579_v13 }
  0x26   :  { %539 = vmatprep.mubr.msk.bf16.mxu0 %vm181_vm0, %v582_v14  ;;  %543 = vmatprep.mubr.msk.bf16.mxu1 %vm181_vm0, %v584_v15 }
  0x2d   :  { %247 = vmatmul.mubr.bf16.gmra.mrb[4].mxu0 %v586_v16  ;;  %279 = vmatmul.mubr.bf16.gmra.mrb[4].mxu1 %v587_v17 }
  0x2e   :  { %540 = vmatprep.mubr.msk.bf16.mxu0 %vm181_vm0, %v588_v18  ;;  %544 = vmatprep.mubr.msk.bf16.mxu1 %vm181_vm0, %v590_v19 }
  0x35   :  { %255 = vmatmul.mubr.bf16.gmra.mrb[8].mxu0 %v592_v20  ;;  %287 = vmatmul.mubr.bf16.gmra.mrb[8].mxu1 %v593_v21 }
  0x36   :  { %541 = vmatprep.mubr.msk.bf16.mxu0 %vm181_vm0, %v594_v22  ;;  %545 = vmatprep.mubr.msk.bf16.mxu1 %vm181_vm0, %v596_v23 }
  0x3d   :  { %263 = vmatmul.mubr.bf16.gmra.mrb[12].mxu0 %v598_v24  ;;  %295 = vmatmul.mubr.bf16.gmra.mrb[12].mxu1 %v599_v25 }
  0xf8   :  { %v240_v27 = vpop.f32.mrb[0].mxu0  ;;  %v272_v29 = vpop.f32.mrb[0].mxu1 }
  0xf9   :  { %v310_v30 = vmul.f32 %v781_v26, %v240_v27  ;;  %v318_v31 = vmul.f32 %v781_v26, %v272_v29  ;;  %v242_v32 = vpop.f32.mrb[1].mxu0  ;;  %v274_v33 = vpop.f32.mrb[1].mxu1 }
  0xfa   :  { %v243_v34 = vpop.f32.mrb[2].mxu0  ;;  %v275_v35 = vpop.f32.mrb[2].mxu1 }
  0xfb   :  { %v791_v36 = vadd.f32 %v786_v28, %v310_v30  ;;  %v794_v37 = vadd.f32 %v786_v28, %v318_v31  ;;  %v311_v38 = vmul.f32 %v781_v26, %v243_v34  ;;  %v319_v39 = vmul.f32 %v781_v26, %v275_v35  ;;  %v245_v40 = vpop.f32.mrb[3].mxu0  ;;  %v277_v41 = vpop.f32.mrb[3].mxu1 }
  0xfd   :  { %v349_v42 = vsub.f32 0.0, %v791_v36  ;;  %v357_v43 = vsub.f32 0.0, %v794_v37  ;;  %v801_v44 = vadd.f32 %v786_v28, %v311_v38  ;;  %v804_v45 = vadd.f32 %v786_v28, %v319_v39 }
  0xff   :  { %v365_v46 = vmul.f32 1.442695, %v349_v42  ;;  %v381_v47 = vmul.f32 1.442695, %v357_v43  ;;  %v350_v48 = vsub.f32 0.0, %v801_v44  ;;  %v358_v49 = vsub.f32 0.0, %v804_v45 }
 0x100   :  { %v248_v50 = vpop.f32.mrb[4].mxu0  ;;  %v280_v51 = vpop.f32.mrb[4].mxu1 }
 0x101   :  { %600 = vpow2.f32 %v365_v46  ;;  %v367_v52 = vmul.f32 1.442695, %v350_v48  ;;  %v383_v53 = vmul.f32 1.442695, %v358_v49  ;;  %v312_v54 = vmul.f32 %v781_v26, %v248_v50  ;;  %v250_v55 = vpop.f32.mrb[5].mxu0  ;;  %v282_v56 = vpop.f32.mrb[5].mxu1 }
 0x102   :  { %602 = vpow2.f32 %v381_v47  ;;  %v320_v57 = vmul.f32 %v781_v26, %v280_v51  ;;  %v251_v58 = vpop.f32.mrb[6].mxu0  ;;  %v283_v59 = vpop.f32.mrb[6].mxu1 }
 0x103   :  { %604 = vpow2.f32 %v367_v52  ;;  %v811_v60 = vadd.f32 %v786_v28, %v312_v54  ;;  %v313_v61 = vmul.f32 %v781_v26, %v251_v58  ;;  %v321_v62 = vmul.f32 %v781_v26, %v283_v59  ;;  %v253_v63 = vpop.f32.mrb[7].mxu0  ;;  %v285_v0 = vpop.f32.mrb[7].mxu1 }
 0x104   :  { %606 = vpow2.f32 %v383_v53  ;;  %v816_v1 = vadd.f32 %v786_v28, %v320_v57 }
 0x105   :  { %v351_v2 = vsub.f32 0.0, %v811_v60  ;;  %v820_v3 = vadd.f32 %v786_v28, %v313_v61  ;;  %v823_v4 = vadd.f32 %v786_v28, %v321_v62 }
 0x106   :  { %v359_v5 = vsub.f32 0.0, %v816_v1 }
 0x107   :  { %v369_v6 = vmul.f32 1.442695, %v351_v2  ;;  %v352_v7 = vsub.f32 0.0, %v820_v3  ;;  %v360_v8 = vsub.f32 0.0, %v823_v4 }
 0x108   :  { %v385_v9 = vmul.f32 1.442695, %v359_v5  ;;  %v256_v10 = vpop.f32.mrb[8].mxu0  ;;  %v288_v11 = vpop.f32.mrb[8].mxu1 }
 0x109   :  { %608 = vpow2.f32 %v369_v6  ;;  %v371_v12 = vmul.f32 1.442695, %v352_v7  ;;  %v387_v13 = vmul.f32 1.442695, %v360_v8  ;;  %v314_v14 = vmul.f32 %v781_v26, %v256_v10  ;;  %v258_v15 = vpop.f32.mrb[9].mxu0  ;;  %v290_v16 = vpop.f32.mrb[9].mxu1 }
 0x10a   :  { %610 = vpow2.f32 %v385_v9  ;;  %v322_v17 = vmul.f32 %v781_v26, %v288_v11  ;;  %v259_v18 = vpop.f32.mrb[10].mxu0  ;;  %v291_v19 = vpop.f32.mrb[10].mxu1 }
 0x10b   :  { %v601_v20 = vpop.eup %600  ;;  %612 = vpow2.f32 %v371_v12  ;;  %v831_v21 = vadd.f32 %v786_v28, %v314_v14  ;;  %v315_v22 = vmul.f32 %v781_v26, %v259_v18  ;;  %v323_v23 = vmul.f32 %v781_v26, %v291_v19  ;;  %v261_v24 = vpop.f32.mrb[11].mxu0  ;;  %v461_v18 = vld [vmem:[%s984_s4] sm:$0xff] }
 0x10c   :  { %v293_v25 = vpop.f32.mrb[11].mxu1  ;;  %v603_v27 = vpop.eup %602  ;;  %v397_v29 = vadd.f32 1.0, %v601_v20  ;;  %614 = vpow2.f32 %v387_v13  ;;  %v836_v30 = vadd.f32 %v786_v28, %v322_v17 }
 0x10d   :  { %v605_v31 = vpop.eup %604  ;;  %v405_v32 = vadd.f32 1.0, %v603_v27  ;;  %v353_v33 = vsub.f32 0.0, %v831_v21  ;;  %v840_v34 = vadd.f32 %v786_v28, %v315_v22  ;;  %v843_v35 = vadd.f32 %v786_v28, %v323_v23  ;;  %v462_v27 = vld [vmem:[%s984_s4 + $0x8] sm:$0xff] }
 0x10e   :  { %v607_v38 = vpop.eup %606  ;;  %616 = vrcp.f32 %v397_v29  ;;  %v398_v39 = vadd.f32 1.0, %v605_v31  ;;  %v361_v40 = vsub.f32 0.0, %v836_v30 }
 0x10f   :  { %618 = vrcp.f32 %v405_v32  ;;  %v406_v41 = vadd.f32 1.0, %v607_v38  ;;  %v373_v42 = vmul.f32 1.442695, %v353_v33  ;;  %v354_v43 = vsub.f32 0.0, %v840_v34 }
 0x110   :  { %620 = vrcp.f32 %v398_v39  ;;  %v389_v46 = vmul.f32 1.442695, %v361_v40  ;;  %v362_v47 = vsub.f32 0.0, %v843_v35  ;;  %v264_v48 = vpop.f32.mrb[12].mxu0  ;;  %v296_v49 = vpop.f32.mrb[12].mxu1 }
 0x111   :  { %622 = vrcp.f32 %v406_v41  ;;  %v375_v50 = vmul.f32 1.442695, %v354_v43  ;;  %v316_v51 = vmul.f32 %v781_v26, %v264_v48  ;;  %v324_v52 = vmul.f32 %v781_v26, %v296_v49  ;;  %v266_v53 = vpop.f32.mrb[13].mxu0  ;;  %v298_v54 = vpop.f32.mrb[13].mxu1 }
 0x112   :  { %624 = vpow2.f32 %v373_v42  ;;  %v391_v55 = vmul.f32 1.442695, %v362_v47  ;;  %v267_v56 = vpop.f32.mrb[14].mxu0  ;;  %v299_v57 = vpop.f32.mrb[14].mxu1  ;;  %v471_v54 = vld [vmem:[%s984_s4 + $0x50] sm:$0xff] }
 0x113   :  { %v609_v58 = vpop.eup %608  ;;  %626 = vpow2.f32 %v389_v46  ;;  %v851_v59 = vadd.f32 %v786_v28, %v316_v51  ;;  %v854_v61 = vadd.f32 %v786_v28, %v324_v52  ;;  %v317_v62 = vmul.f32 %v781_v26, %v267_v56  ;;  %v269_v63 = vpop.f32.mrb[15].mxu0 }
 0x114   :  { %v301_v0 = vpop.f32.mrb[15].mxu1  ;;  %v611_v2 = vpop.eup %610  ;;  %v399_v5 = vadd.f32 1.0, %v609_v58  ;;  %628 = vpow2.f32 %v375_v50  ;;  %v325_v6 = vmul.f32 %v781_v26, %v299_v57  ;;  %v463_v50 = vld [vmem:[%s984_s4 + $0x10] sm:$0xff]  ;;  %v464_v57 = vld [vmem:[%s984_s4 + $0x18] sm:$0xff] }
 0x115   :  { %v613_v7 = vpop.eup %612  ;;  %v407_v8 = vadd.f32 1.0, %v611_v2  ;;  %630 = vpow2.f32 %v391_v55  ;;  %v355_v9 = vsub.f32 0.0, %v851_v59  ;;  %v363_v10 = vsub.f32 0.0, %v854_v61 }
 0x116   :  { %v615_v11 = vpop.eup %614  ;;  %632 = vrcp.f32 %v399_v5  ;;  %v400_v12 = vadd.f32 1.0, %v613_v7  ;;  %v861_v13 = vadd.f32 %v786_v28, %v317_v62  ;;  %v864_v14 = vadd.f32 %v786_v28, %v325_v6  ;;  %v469_v28 = vld [vmem:[%s984_s4 + $0x40] sm:$0xff] }
 0x117   :  { %634 = vrcp.f32 %v407_v8  ;;  %v408_v15 = vadd.f32 1.0, %v615_v11  ;;  %v377_v16 = vmul.f32 1.442695, %v355_v9  ;;  %v393_v26 = vmul.f32 1.442695, %v363_v10 }
 0x118   :  { %v617_v17 = vpop.eup %616  ;;  %636 = vrcp.f32 %v400_v12  ;;  %v356_v19 = vsub.f32 0.0, %v861_v13  ;;  %v364_v20 = vsub.f32 0.0, %v864_v14 }
 0x119   :  { %v619_v22 = vpop.eup %618  ;;  %v445_v23 = vmul.f32 %v617_v17, %v791_v36  ;;  %638 = vrcp.f32 %v408_v15  ;;  %v470_v36 = vld [vmem:[%s984_s4 + $0x48] sm:$0xff]  ;;  %v465_v15 = vld [vmem:[%s984_s4 + $0x20] sm:$0xff] }
 0x11a   :  { %v621_v24 = vpop.eup %620  ;;  %v453_v25 = vmul.f32 %v619_v22, %v794_v37  ;;  %640 = vpow2.f32 %v377_v16  ;;  %v379_v29 = vmul.f32 1.442695, %v356_v19  ;;  %v395_v31 = vmul.f32 1.442695, %v364_v20  ;;  %v473_v17 = vld [vmem:[%s984_s4 + $0x60] sm:$0xff]  ;;  %v466_v20 = vld [vmem:[%s984_s4 + $0x28] sm:$0xff] }
 0x11b   :  { %v623_v32 = vpop.eup %622  ;;  %v477_v33 = vadd.f32 %v461_v18, %v445_v23  ;;  %v446_v38 = vmul.f32 %v621_v24, %v801_v44  ;;  %642 = vpow2.f32 %v393_v26 }
 0x11c   :  { %v625_v39 = vpop.eup %624  ;;  %v485_v40 = vadd.f32 %v469_v28, %v453_v25  ;;  %v454_v37 = vmul.f32 %v623_v32, %v804_v45  ;;  %644 = vpow2.f32 %v379_v29  ;;  %v475_v32 = vld [vmem:[%s984_s4 + $0x70] sm:$0xff] }
 0x11d   :  { %v627_v41 = vpop.eup %626  ;;  %493 = vst [vmem:[%s985_s5] sm:$0xff] %v477_v33  ;;  %v478_v42 = vadd.f32 %v462_v27, %v446_v38  ;;  %v401_v43 = vadd.f32 1.0, %v625_v39  ;;  %646 = vpow2.f32 %v395_v31 }
 0x11e   :  { %v629_v46 = vpop.eup %628  ;;  %501 = vst [vmem:[%s985_s5 + $0x40] sm:$0xff] %v485_v40  ;;  %v486_v44 = vadd.f32 %v470_v36, %v454_v37  ;;  %v409_v47 = vadd.f32 1.0, %v627_v41  ;;  %v468_v36 = vld [vmem:[%s984_s4 + $0x38] sm:$0xff] }
 0x11f   :  { %v631_v48 = vpop.eup %630  ;;  %494 = vst [vmem:[%s985_s5 + $0x8] sm:$0xff] %v478_v42  ;;  %648 = vrcp.f32 %v401_v43  ;;  %v402_v45 = vadd.f32 1.0, %v629_v46  ;;  %v476_v41 = vld [vmem:[%s984_s4 + $0x78] sm:$0xff] }
 0x120   :  { %v633_v49 = vpop.eup %632  ;;  %502 = vst [vmem:[%s985_s5 + $0x48] sm:$0xff] %v486_v44  ;;  %650 = vrcp.f32 %v409_v47  ;;  %v410_v51 = vadd.f32 1.0, %v631_v48 }
 0x121   :  { %v635_v52 = vpop.eup %634  ;;  %v447_v53 = vmul.f32 %v633_v49, %v811_v60  ;;  %652 = vrcp.f32 %v402_v45  ;;  %v472_v60 = vld [vmem:[%s984_s4 + $0x58] sm:$0xff] }
 0x122   :  { %v637_v55 = vpop.eup %636  ;;  %v455_v56 = vmul.f32 %v635_v52, %v816_v1  ;;  %654 = vrcp.f32 %v410_v51 }
 0x123   :  { %v639_v58 = vpop.eup %638  ;;  %v479_v62 = vadd.f32 %v463_v50, %v447_v53  ;;  %v448_v63 = vmul.f32 %v637_v55, %v820_v3 }
 0x124   :  { %v641_v0 = vpop.eup %640  ;;  %v487_v2 = vadd.f32 %v471_v54, %v455_v56  ;;  %v456_v5 = vmul.f32 %v639_v58, %v823_v4 }
 0x125   :  { %v643_v6 = vpop.eup %642  ;;  %495 = vst [vmem:[%s985_s5 + $0x10] sm:$0xff] %v479_v62  ;;  %v480_v1 = vadd.f32 %v464_v57, %v448_v63  ;;  %v403_v7 = vadd.f32 1.0, %v641_v0 }
 0x126   :  { %v645_v8 = vpop.eup %644  ;;  %503 = vst [vmem:[%s985_s5 + $0x50] sm:$0xff] %v487_v2  ;;  %v488_v3 = vadd.f32 %v472_v60, %v456_v5  ;;  %v411_v9 = vadd.f32 1.0, %v643_v6 }
 0x127   :  { %v647_v10 = vpop.eup %646  ;;  %496 = vst [vmem:[%s985_s5 + $0x18] sm:$0xff] %v480_v1  ;;  %656 = vrcp.f32 %v403_v7  ;;  %v404_v4 = vadd.f32 1.0, %v645_v8 }
 0x128   :  { %504 = vst [vmem:[%s985_s5 + $0x58] sm:$0xff] %v488_v3  ;;  %658 = vrcp.f32 %v411_v9  ;;  %v412_v11 = vadd.f32 1.0, %v647_v10 }
 0x129   :  { %v649_v12 = vpop.eup %648  ;;  %660 = vrcp.f32 %v404_v4 }
 0x12a   :  { %v651_v16 = vpop.eup %650  ;;  %v449_v26 = vmul.f32 %v649_v12, %v831_v21  ;;  %662 = vrcp.f32 %v412_v11  ;;  %v474_v21 = vld [vmem:[%s984_s4 + $0x68] sm:$0xff] }
 0x12b   :  { %v653_v18 = vpop.eup %652  ;;  %v457_v19 = vmul.f32 %v651_v16, %v836_v30 }
 0x12c   :  { %v655_v22 = vpop.eup %654  ;;  %v481_v23 = vadd.f32 %v465_v15, %v449_v26  ;;  %v450_v28 = vmul.f32 %v653_v18, %v840_v34 }
 0x12d   :  { %v489_v24 = vadd.f32 %v473_v17, %v457_v19  ;;  %v458_v25 = vmul.f32 %v655_v22, %v843_v35  ;;  %v467_v35 = vld [vmem:[%s984_s4 + $0x30] sm:$0xff] }
 0x12e   :  { %497 = vst [vmem:[%s985_s5 + $0x20] sm:$0xff] %v481_v23  ;;  %v482_v30 = vadd.f32 %v466_v20, %v450_v28 }
 0x12f   :  { %505 = vst [vmem:[%s985_s5 + $0x60] sm:$0xff] %v489_v24  ;;  %v490_v27 = vadd.f32 %v474_v21, %v458_v25 }
 0x130   :  { %498 = vst [vmem:[%s985_s5 + $0x28] sm:$0xff] %v482_v30 }
 0x131   :  { %v657_v34 = vpop.eup %656  ;;  %506 = vst [vmem:[%s985_s5 + $0x68] sm:$0xff] %v490_v27 }
 0x132   :  { %v659_v29 = vpop.eup %658  ;;  %v451_v31 = vmul.f32 %v657_v34, %v851_v59 }
 0x133   :  { %v661_v33 = vpop.eup %660  ;;  %v459_v38 = vmul.f32 %v659_v29, %v854_v61 }
 0x134   :  { %v663_v39 = vpop.eup %662  ;;  %v483_v40 = vadd.f32 %v467_v35, %v451_v31  ;;  %v452_v37 = vmul.f32 %v661_v33, %v861_v13 }
 0x135   :  { %v491_v59 = vadd.f32 %v475_v32, %v459_v38  ;;  %v460_v42 = vmul.f32 %v663_v39, %v864_v14 }
 0x136   :  { %499 = vst [vmem:[%s985_s5 + $0x30] sm:$0xff] %v483_v40  ;;  %v484_v61 = vadd.f32 %v468_v36, %v452_v37 }
 0x137   :  { %507 = vst [vmem:[%s985_s5 + $0x70] sm:$0xff] %v491_v59  ;;  %v492_v43 = vadd.f32 %v476_v41, %v460_v42 }
 0x138   :  { %500 = vst [vmem:[%s985_s5 + $0x38] sm:$0xff] %v484_v61 }
 0x139   :  { %508 = vst [vmem:[%s985_s5 + $0x78] sm:$0xff] %v492_v43 }

// kernel: cspdarknet_fwd.58
= control target key start
LH: loop header
LB: loop body
LE: loop exit
PB: predicated region body
PF: predicated region fallthrough
CT: control target
= control target key end

     0   :  { %vm200_vm0 = vcmask 261120   ;;  %s588_s1 = inlined_call_operand.vmem [shape: bf16[288,128], index: 1, kind: input, shape index: {}]   ;;  %s589_s0 = inlined_call_operand.vmem [shape: bf16[32,288], index: 0, kind: input, shape index: {}]   ;;  %s590_s2 = inlined_call_operand.vmem [shape: f32[1,128], index: 2, kind: input, shape index: {}]   ;;  %s591_s3 = inlined_call_operand.vmem [shape: f32[1,128], index: 3, kind: input, shape index: {}]   ;;  %s592_s4 = inlined_call_operand.vmem [shape: f32[32,128], index: 4, kind: output, shape index: {}]  }
   0x1   :  { %v431_v0 = vld [vmem:[%s588_s1 + $0x40] sm:$0xff]   ;;  %v433_v2 = vld [vmem:[%s588_s1 + $0x48] sm:$0xff]   ;;  %v435_v4 = vld [vmem:[%s588_s1 + $0x50] sm:$0xff]  }
   0x2   :  { %v432_v1 = vld [vmem:[%s588_s1] sm:$0xff]   ;;  %391 = vmatprep.subr.bf16.mxu0 %v431_v0  ;;  %v434_v3 = vld [vmem:[%s588_s1 + $0x8] sm:$0xff]   ;;  %v436_v5 = vld [vmem:[%s588_s1 + $0x10] sm:$0xff]  }
   0x3   :  { %392 = vmatpush3.bf16.msra.mxu0 %v432_v1  ;;  %v437_v6 = vld [vmem:[%s588_s1 + $0x58] sm:$0xff]   ;;  %v439_v8 = vld [vmem:[%s588_s1 + $0x60] sm:$0xff]   ;;  %v441_v11 = vld [vmem:[%s588_s1 + $0x68] sm:$0xff]  }
   0x4   :  { %393 = vmatprep.subr.bf16.mxu0 %v433_v2  ;;  %v438_v7 = vld [vmem:[%s588_s1 + $0x18] sm:$0xff]   ;;  %v445_v9 = vld [vmem:[%s588_s1 + $0x80] sm:$0xff]   ;;  %v442_v12 = vld [vmem:[%s588_s1 + $0x28] sm:$0xff]  }
   0x5   :  { %v440_v10 = vld [vmem:[%s588_s1 + $0x20] sm:$0xff]   ;;  %423 = vmatprep.subr.bf16.mxu1 %v445_v9  ;;  %v448_v13 = vld [vmem:[%s588_s1 + $0x88] sm:$0xff]   ;;  %v443_v14 = vld [vmem:[%s588_s1 + $0x70] sm:$0xff]  }
   0x6   :  { %424 = vmatpush3.bf16.msra.mxu1 %v445_v9  ;;  %v451_v15 = vld [vmem:[%s589_s0 + $0x4] ss:$12 sps:$4 sm:$0xff]   ;;  %v452_v16 = vld [vmem:[%s589_s0 + $0x8] ss:$12 sps:$4 sm:$0xff]   ;;  %v453_v17 = vld [vmem:[%s589_s0 + $0x20] ss:$12 sps:$4 sm:$0xff]  }
   0x7   :  { %394 = vmatpush3.bf16.msra.mxu0 %v434_v3  ;;  %425 = vmatprep.subr.bf16.mxu1 %v448_v13  ;;  %v444_v18 = vld [vmem:[%s588_s1 + $0x30] sm:$0xff]   ;;  %v446_v19 = vld [vmem:[%s588_s1 + $0x78] sm:$0xff]   ;;  %v449_v21 = vld [vmem:[%s589_s0] ss:$12 sps:$4 sm:$0xff]  }
   0x8   :  { %395 = vmatprep.subr.bf16.mxu0 %v435_v4  ;;  %239 = vmatprep.mubr.bf16.mxu0 %v451_v15  ;;  %v447_v20 = vld [vmem:[%s588_s1 + $0x38] sm:$0xff]   ;;  %v389_v33 = vld [vmem:[%s590_s2] ss:$0 sm:$0xff] }
   0x9   :  { %427 = vmatprep.mubr.msk.bf16.mxu1 %vm200_vm0, %v452_v16  ;;  %v454_v22 = vld [vmem:[%s589_s0 + $0x1c] ss:$12 sps:$4 sm:$0xff]   ;;  %v456_v23 = vld [vmem:[%s589_s0 + $0x18] ss:$12 sps:$4 sm:$0xff]   ;;  %v390_v36 = vld [vmem:[%s591_s3] ss:$0 sm:$0xff] }
   0xa   :  { %426 = vmatpush3.bf16.msra.mxu1 %v448_v13 }
   0xb   :  { %396 = vmatpush3.bf16.msra.mxu0 %v436_v5 }
   0xc   :  { %397 = vmatprep.subr.bf16.mxu0 %v437_v6 }
   0xd   :  { %428 = vmatmul.mubr.msk.bf16.vlgmr.msra.gmra.mrb[0].mxu1 %vm200_vm0, %v453_v17 }
   0xf   :  { %398 = vmatpush3.bf16.msra.mxu0 %v438_v7 }
  0x10   :  { %399 = vmatprep.subr.bf16.mxu0 %v439_v8 }
  0x13   :  { %400 = vmatpush3.bf16.msra.mxu0 %v440_v10 }
  0x14   :  { %401 = vmatprep.subr.bf16.mxu0 %v441_v11 }
  0x17   :  { %402 = vmatpush3.bf16.msra.mxu0 %v442_v12 }
  0x18   :  { %403 = vmatprep.subr.bf16.mxu0 %v443_v14 }
  0x1b   :  { %404 = vmatpush3.bf16.msra.mxu0 %v444_v18 }
  0x1c   :  { %405 = vmatprep.subr.bf16.mxu0 %v446_v19 }
  0x1f   :  { %406 = vmatpush3.bf16.msra.mxu0 %v447_v20 }
  0x22   :  { %240 = vmatmul.mubr.bf16.vlgmr.msra.gmra.mrb[0].mxu0 %v449_v21 }
  0x23   :  { %247 = vmatprep.mubr.bf16.mxu0 %v454_v22 }
  0x2a   :  { %248 = vmatmul.mubr.bf16.gmra.mrb[4].mxu0 %v456_v23 }
  0xe0   :  { %v429_v24 = vpop.f32.mrb[0].mxu1 }
  0xe1   :  { %v290_v25 = vpop.f32.mrb[1].mxu1 }
  0xe2   :  { %v430_v26 = vpop.f32.mrb[2].mxu1 }
  0xe3   :  { %v293_v27 = vpop.f32.mrb[3].mxu1 }
  0xf5   :  { %v407_v28 = vpop.f32.mrb[0].mxu0 }
  0xf6   :  { %v408_v29 = vpop.f32.mrb[1].mxu0 }
  0xf7   :  { %v409_v30 = vadd.f32 %v408_v29, %v407_v28  ;;  %v410_v31 = vpop.f32.mrb[2].mxu0 }
  0xf8   :  { %v411_v32 = vpop.f32.mrb[3].mxu0 }
  0xf9   :  { %v412_v34 = vadd.f32 %v411_v32, %v410_v31  ;;  %v291_v35 = vadd.f32 %v409_v30, %v290_v25 }
  0xfb   :  { %v312_v37 = vmul.f32 %v389_v33, %v291_v35  ;;  %v294_v38 = vadd.f32 %v412_v34, %v293_v27 }
  0xfd   :  { %v323_v39 = vadd.f32 %v390_v36, %v312_v37  ;;  %v313_v40 = vmul.f32 %v389_v33, %v294_v38  ;;  %v413_v41 = vpop.f32.mrb[4].mxu0 }
  0xfe   :  { %v414_v42 = vpop.f32.mrb[5].mxu0 }
  0xff   :  { %v327_v43 = vsub.f32 0.0, %v323_v39  ;;  %v324_v44 = vadd.f32 %v390_v36, %v313_v40  ;;  %v415_v45 = vadd.f32 %v414_v42, %v413_v41  ;;  %v416_v46 = vpop.f32.mrb[6].mxu0 }
 0x100   :  { %v417_v47 = vpop.f32.mrb[7].mxu0 }
 0x101   :  { %v331_v48 = vmul.f32 1.442695, %v327_v43  ;;  %v328_v49 = vsub.f32 0.0, %v324_v44  ;;  %v299_v50 = vadd.f32 %v429_v24, %v415_v45  ;;  %v418_v51 = vadd.f32 %v417_v47, %v416_v46 }
 0x103   :  { %457 = vpow2.f32 %v331_v48  ;;  %v333_v52 = vmul.f32 1.442695, %v328_v49  ;;  %v314_v53 = vmul.f32 %v389_v33, %v299_v50  ;;  %v302_v54 = vadd.f32 %v430_v26, %v418_v51 }
 0x105   :  { %459 = vpow2.f32 %v333_v52  ;;  %v325_v55 = vadd.f32 %v390_v36, %v314_v53  ;;  %v315_v56 = vmul.f32 %v389_v33, %v302_v54 }
 0x107   :  { %v329_v57 = vsub.f32 0.0, %v325_v55  ;;  %v326_v58 = vadd.f32 %v390_v36, %v315_v56 }
 0x109   :  { %v335_v59 = vmul.f32 1.442695, %v329_v57  ;;  %v330_v60 = vsub.f32 0.0, %v326_v58 }
 0x10b   :  { %461 = vpow2.f32 %v335_v59  ;;  %v337_v61 = vmul.f32 1.442695, %v330_v60 }
 0x10d   :  { %v458_v62 = vpop.eup %457  ;;  %463 = vpow2.f32 %v337_v61 }
 0x10e   :  { %v339_v63 = vadd.f32 1.0, %v458_v62 }
 0x10f   :  { %v460_v0 = vpop.eup %459 }
 0x110   :  { %465 = vrcp.f32 %v339_v63  ;;  %v340_v1 = vadd.f32 1.0, %v460_v0 }
 0x112   :  { %467 = vrcp.f32 %v340_v1 }
 0x115   :  { %v462_v2 = vpop.eup %461 }
 0x116   :  { %v341_v3 = vadd.f32 1.0, %v462_v2 }
 0x117   :  { %v464_v4 = vpop.eup %463 }
 0x118   :  { %469 = vrcp.f32 %v341_v3  ;;  %v342_v5 = vadd.f32 1.0, %v464_v4 }
 0x11a   :  { %v466_v6 = vpop.eup %465  ;;  %471 = vrcp.f32 %v342_v5 }
 0x11b   :  { %v351_v7 = vmul.f32 %v466_v6, %v323_v39 }
 0x11c   :  { %v468_v8 = vpop.eup %467 }
 0x11d   :  { %355 = vst [vmem:[%s592_s4] sm:$0xff] %v351_v7  ;;  %v352_v9 = vmul.f32 %v468_v8, %v324_v44 }
 0x11f   :  { %356 = vst [vmem:[%s592_s4 + $0x8] sm:$0xff] %v352_v9 }
 0x122   :  { %v470_v10 = vpop.eup %469 }
 0x123   :  { %v353_v11 = vmul.f32 %v470_v10, %v325_v55 }
 0x124   :  { %v472_v12 = vpop.eup %471 }
 0x125   :  { %357 = vst [vmem:[%s592_s4 + $0x10] sm:$0xff] %v353_v11  ;;  %v354_v13 = vmul.f32 %v472_v12, %v326_v58 }
 0x127   :  { %358 = vst [vmem:[%s592_s4 + $0x18] sm:$0xff] %v354_v13 }

// kernel: cspdarknet_fwd.59
= control target key start
LH: loop header
LB: loop body
LE: loop exit
PB: predicated region body
PF: predicated region fallthrough
CT: control target
= control target key end

     0   :  { %vm64_vm0 = vcmask 523264   ;;  %s289_s1 = inlined_call_operand.vmem [shape: bf16[64,128], index: 1, kind: input, shape index: {}]   ;;  %s290_s0 = inlined_call_operand.vmem [shape: bf16[32,64], index: 0, kind: input, shape index: {}]   ;;  %s291_s2 = inlined_call_operand.vmem [shape: f32[1,128], index: 2, kind: input, shape index: {}]   ;;  %s292_s3 = inlined_call_operand.vmem [shape: f32[1,128], index: 3, kind: input, shape index: {}]   ;;  %s293_s4 = inlined_call_operand.vmem [shape: f32[32,128], index: 4, kind: output, shape index: {}]  }
   0x1   :  { %v206_v0 = vld [vmem:[%s289_s1] sm:$0xff]   ;;  %v207_v1 = vld [vmem:[%s289_s1 + $0x8] sm:$0xff]   ;;  %v208_v2 = vld [vmem:[%s289_s1 + $0x10] sm:$0xff]  }
   0x2   :  { %194 = vmatprep.subr.bf16.mxu0 %v206_v0  ;;  %v210_v3 = vld [vmem:[%s290_s0] sm:$0xff]   ;;  %v209_v4 = vld [vmem:[%s289_s1 + $0x18] sm:$0xff]   ;;  %v211_v5 = vld [vmem:[%s290_s0 + $0x8] sm:$0xff]  }
   0x3   :  { %195 = vmatpush3.bf16.msra.mxu0 %v206_v0  ;;  %202 = vmatprep.mubr.msk.bf16.mxu0 %vm64_vm0, %v210_v3  ;;  %v186_v6 = vld [vmem:[%s291_s2] ss:$0 sm:$0xff] }
   0x4   :  { %196 = vmatprep.subr.bf16.mxu0 %v207_v1  ;;  %v187_v8 = vld [vmem:[%s292_s3] ss:$0 sm:$0xff] }
   0x7   :  { %197 = vmatpush3.bf16.msra.mxu0 %v207_v1 }
   0x8   :  { %198 = vmatprep.subr.bf16.mxu0 %v208_v2 }
   0xb   :  { %199 = vmatpush3.bf16.msra.mxu0 %v208_v2 }
   0xc   :  { %200 = vmatprep.subr.bf16.mxu0 %v209_v4 }
   0xf   :  { %201 = vmatpush3.bf16.msra.mxu0 %v209_v4 }
  0x12   :  { %203 = vmatmul.mubr.msk.bf16.vlgmr.msra.gmra.mrb[0].mxu0 %vm64_vm0, %v211_v5 }
  0xe5   :  { %v204_v7 = vpop.f32.mrb[0].mxu0 }
  0xe6   :  { %v129_v9 = vmul.f32 %v204_v7, %v186_v6  ;;  %v105_v10 = vpop.f32.mrb[1].mxu0 }
  0xe7   :  { %v127_v11 = vmul.f32 %v186_v6, %v105_v10  ;;  %v205_v12 = vpop.f32.mrb[2].mxu0 }
  0xe8   :  { %v140_v13 = vadd.f32 %v187_v8, %v129_v9  ;;  %v130_v14 = vmul.f32 %v205_v12, %v186_v6  ;;  %v108_v15 = vpop.f32.mrb[3].mxu0 }
  0xe9   :  { %v138_v16 = vadd.f32 %v187_v8, %v127_v11  ;;  %v128_v17 = vmul.f32 %v186_v6, %v108_v15 }
  0xea   :  { %v144_v18 = vsub.f32 0.0, %v140_v13  ;;  %v141_v19 = vadd.f32 %v187_v8, %v130_v14 }
  0xeb   :  { %v142_v20 = vsub.f32 0.0, %v138_v16  ;;  %v139_v21 = vadd.f32 %v187_v8, %v128_v17 }
  0xec   :  { %v150_v22 = vmul.f32 1.442695, %v144_v18  ;;  %v145_v23 = vsub.f32 0.0, %v141_v19 }
  0xed   :  { %v146_v24 = vmul.f32 1.442695, %v142_v20  ;;  %v143_v25 = vsub.f32 0.0, %v139_v21 }
  0xee   :  { %212 = vpow2.f32 %v150_v22  ;;  %v152_v26 = vmul.f32 1.442695, %v145_v23 }
  0xef   :  { %214 = vpow2.f32 %v146_v24  ;;  %v148_v27 = vmul.f32 1.442695, %v143_v25 }
  0xf0   :  { %216 = vpow2.f32 %v152_v26 }
  0xf1   :  { %218 = vpow2.f32 %v148_v27 }
  0xf8   :  { %v213_v28 = vpop.eup %212 }
  0xf9   :  { %v215_v29 = vpop.eup %214  ;;  %v156_v30 = vadd.f32 1.0, %v213_v28 }
  0xfa   :  { %v217_v31 = vpop.eup %216  ;;  %v154_v32 = vadd.f32 1.0, %v215_v29 }
  0xfb   :  { %v219_v33 = vpop.eup %218  ;;  %220 = vrcp.f32 %v156_v30  ;;  %v157_v34 = vadd.f32 1.0, %v217_v31 }
  0xfc   :  { %222 = vrcp.f32 %v154_v32  ;;  %v155_v35 = vadd.f32 1.0, %v219_v33 }
  0xfd   :  { %224 = vrcp.f32 %v157_v34 }
  0xfe   :  { %226 = vrcp.f32 %v155_v35 }
 0x105   :  { %v221_v36 = vpop.eup %220 }
 0x106   :  { %v223_v37 = vpop.eup %222  ;;  %v168_v38 = vmul.f32 %v221_v36, %v140_v13 }
 0x107   :  { %v225_v39 = vpop.eup %224  ;;  %v166_v40 = vmul.f32 %v223_v37, %v138_v16 }
 0x108   :  { %v227_v41 = vpop.eup %226  ;;  %172 = vst [vmem:[%s293_s4 + $0x10] sm:$0xff] %v168_v38  ;;  %v169_v42 = vmul.f32 %v225_v39, %v141_v19 }
 0x109   :  { %170 = vst [vmem:[%s293_s4] sm:$0xff] %v166_v40  ;;  %v167_v43 = vmul.f32 %v227_v41, %v139_v21 }
 0x10a   :  { %173 = vst [vmem:[%s293_s4 + $0x18] sm:$0xff] %v169_v42 }
 0x10b   :  { %171 = vst [vmem:[%s293_s4 + $0x8] sm:$0xff] %v167_v43 }

// kernel: cspdarknet_fwd.61
= control target key start
LH: loop header
LB: loop body
LE: loop exit
PB: predicated region body
PF: predicated region fallthrough
CT: control target
= control target key end

     0   :  { %vm48_vm0 = vcmask 261120   ;;  %s257_s1 = inlined_call_operand.vmem [shape: bf16[32,128], index: 1, kind: input, shape index: {}]   ;;  %s258_s0 = inlined_call_operand.vmem [shape: bf16[32,32], index: 0, kind: input, shape index: {}]   ;;  %s259_s2 = inlined_call_operand.vmem [shape: f32[1,128], index: 2, kind: input, shape index: {}]   ;;  %s260_s3 = inlined_call_operand.vmem [shape: f32[1,128], index: 3, kind: input, shape index: {}]   ;;  %s261_s4 = inlined_call_operand.vmem [shape: f32[32,128], index: 4, kind: output, shape index: {}]  }
   0x1   :  { %v182_v0 = vld [vmem:[%s257_s1] sm:$0xff]   ;;  %v183_v1 = vld [vmem:[%s257_s1 + $0x8] sm:$0xff]  }
   0x2   :  { %174 = vmatprep.subr.bf16.mxu0 %v182_v0  ;;  %v184_v2 = vld [vmem:[%s258_s0] sm:$0xff]   ;;  %v185_v3 = vld [vmem:[%s258_s0 + $0x8] sm:$0xff]  }
   0x3   :  { %175 = vmatpush3.bf16.msra.mxu0 %v182_v0  ;;  %178 = vmatprep.mubr.msk.bf16.mxu0 %vm48_vm0, %v184_v2  ;;  %v168_v4 = vld [vmem:[%s259_s2] ss:$0 sm:$0xff] }
   0x4   :  { %176 = vmatprep.subr.bf16.mxu0 %v183_v1  ;;  %v169_v6 = vld [vmem:[%s260_s3] ss:$0 sm:$0xff] }
   0x7   :  { %177 = vmatpush3.bf16.msra.mxu0 %v183_v1 }
   0xa   :  { %179 = vmatmul.mubr.msk.bf16.vlgmr.msra.gmra.mrb[0].mxu0 %vm48_vm0, %v185_v3 }
  0xdd   :  { %v180_v5 = vpop.f32.mrb[0].mxu0 }
  0xde   :  { %v113_v7 = vmul.f32 %v180_v5, %v168_v4  ;;  %v89_v8 = vpop.f32.mrb[1].mxu0 }
  0xdf   :  { %v111_v9 = vmul.f32 %v168_v4, %v89_v8  ;;  %v181_v10 = vpop.f32.mrb[2].mxu0 }
  0xe0   :  { %v124_v11 = vadd.f32 %v169_v6, %v113_v7  ;;  %v114_v12 = vmul.f32 %v181_v10, %v168_v4  ;;  %v92_v13 = vpop.f32.mrb[3].mxu0 }
  0xe1   :  { %v122_v14 = vadd.f32 %v169_v6, %v111_v9  ;;  %v112_v15 = vmul.f32 %v168_v4, %v92_v13 }
  0xe2   :  { %v128_v16 = vsub.f32 0.0, %v124_v11  ;;  %v125_v17 = vadd.f32 %v169_v6, %v114_v12 }
  0xe3   :  { %v126_v18 = vsub.f32 0.0, %v122_v14  ;;  %v123_v19 = vadd.f32 %v169_v6, %v112_v15 }
  0xe4   :  { %v134_v20 = vmul.f32 1.442695, %v128_v16  ;;  %v129_v21 = vsub.f32 0.0, %v125_v17 }
  0xe5   :  { %v130_v22 = vmul.f32 1.442695, %v126_v18  ;;  %v127_v23 = vsub.f32 0.0, %v123_v19 }
  0xe6   :  { %186 = vpow2.f32 %v134_v20  ;;  %v136_v24 = vmul.f32 1.442695, %v129_v21 }
  0xe7   :  { %188 = vpow2.f32 %v130_v22  ;;  %v132_v25 = vmul.f32 1.442695, %v127_v23 }
  0xe8   :  { %190 = vpow2.f32 %v136_v24 }
  0xe9   :  { %192 = vpow2.f32 %v132_v25 }
  0xf0   :  { %v187_v26 = vpop.eup %186 }
  0xf1   :  { %v189_v27 = vpop.eup %188  ;;  %v140_v28 = vadd.f32 1.0, %v187_v26 }
  0xf2   :  { %v191_v29 = vpop.eup %190  ;;  %v138_v30 = vadd.f32 1.0, %v189_v27 }
  0xf3   :  { %v193_v31 = vpop.eup %192  ;;  %194 = vrcp.f32 %v140_v28  ;;  %v141_v32 = vadd.f32 1.0, %v191_v29 }
  0xf4   :  { %196 = vrcp.f32 %v138_v30  ;;  %v139_v33 = vadd.f32 1.0, %v193_v31 }
  0xf5   :  { %198 = vrcp.f32 %v141_v32 }
  0xf6   :  { %200 = vrcp.f32 %v139_v33 }
  0xfd   :  { %v195_v34 = vpop.eup %194 }
  0xfe   :  { %v197_v35 = vpop.eup %196  ;;  %v152_v36 = vmul.f32 %v195_v34, %v124_v11 }
  0xff   :  { %v199_v37 = vpop.eup %198  ;;  %v150_v38 = vmul.f32 %v197_v35, %v122_v14 }
 0x100   :  { %v201_v39 = vpop.eup %200  ;;  %156 = vst [vmem:[%s261_s4 + $0x10] sm:$0xff] %v152_v36  ;;  %v153_v40 = vmul.f32 %v199_v37, %v125_v17 }
 0x101   :  { %154 = vst [vmem:[%s261_s4] sm:$0xff] %v150_v38  ;;  %v151_v41 = vmul.f32 %v201_v39, %v123_v19 }
 0x102   :  { %157 = vst [vmem:[%s261_s4 + $0x18] sm:$0xff] %v153_v40 }
 0x103   :  { %155 = vst [vmem:[%s261_s4 + $0x8] sm:$0xff] %v151_v41 }

// kernel: cspdarknet_fwd.62
= control target key start
LH: loop header
LB: loop body
LE: loop exit
PB: predicated region body
PF: predicated region fallthrough
CT: control target
= control target key end

     0   :  { %vm203_vm0 = vcmask 261120   ;;  %s616_s1 = inlined_call_operand.vmem [shape: bf16[288,128], index: 1, kind: input, shape index: {}]   ;;  %s617_s0 = inlined_call_operand.vmem [shape: bf16[32,288], index: 0, kind: input, shape index: {}]   ;;  %s618_s2 = inlined_call_operand.vmem [shape: f32[1,128], index: 2, kind: input, shape index: {}]   ;;  %s619_s3 = inlined_call_operand.vmem [shape: f32[1,128], index: 3, kind: input, shape index: {}]   ;;  %s620_s4 = inlined_call_operand.vmem [shape: f32[32,128], index: 4, kind: input, shape index: {}]   ;;  %s621_s5 = inlined_call_operand.vmem [shape: f32[32,128], index: 5, kind: output, shape index: {}]  }
   0x1   :  { %v442_v0 = vld [vmem:[%s616_s1 + $0x40] sm:$0xff]   ;;  %v444_v2 = vld [vmem:[%s616_s1 + $0x48] sm:$0xff]   ;;  %v446_v4 = vld [vmem:[%s616_s1 + $0x50] sm:$0xff]  }
   0x2   :  { %v443_v1 = vld [vmem:[%s616_s1] sm:$0xff]   ;;  %402 = vmatprep.subr.bf16.mxu0 %v442_v0  ;;  %v445_v3 = vld [vmem:[%s616_s1 + $0x8] sm:$0xff]   ;;  %v447_v5 = vld [vmem:[%s616_s1 + $0x10] sm:$0xff]  }
   0x3   :  { %403 = vmatpush3.bf16.msra.mxu0 %v443_v1  ;;  %v448_v6 = vld [vmem:[%s616_s1 + $0x58] sm:$0xff]   ;;  %v450_v8 = vld [vmem:[%s616_s1 + $0x60] sm:$0xff]   ;;  %v452_v11 = vld [vmem:[%s616_s1 + $0x68] sm:$0xff]  }
   0x4   :  { %404 = vmatprep.subr.bf16.mxu0 %v444_v2  ;;  %v449_v7 = vld [vmem:[%s616_s1 + $0x18] sm:$0xff]   ;;  %v456_v9 = vld [vmem:[%s616_s1 + $0x80] sm:$0xff]   ;;  %v453_v12 = vld [vmem:[%s616_s1 + $0x28] sm:$0xff]  }
   0x5   :  { %v451_v10 = vld [vmem:[%s616_s1 + $0x20] sm:$0xff]   ;;  %434 = vmatprep.subr.bf16.mxu1 %v456_v9  ;;  %v459_v13 = vld [vmem:[%s616_s1 + $0x88] sm:$0xff]   ;;  %v454_v14 = vld [vmem:[%s616_s1 + $0x70] sm:$0xff]  }
   0x6   :  { %435 = vmatpush3.bf16.msra.mxu1 %v456_v9  ;;  %v462_v15 = vld [vmem:[%s617_s0 + $0x4] ss:$12 sps:$4 sm:$0xff]   ;;  %v463_v16 = vld [vmem:[%s617_s0 + $0x8] ss:$12 sps:$4 sm:$0xff]   ;;  %v464_v17 = vld [vmem:[%s617_s0 + $0x20] ss:$12 sps:$4 sm:$0xff]  }
   0x7   :  { %405 = vmatpush3.bf16.msra.mxu0 %v445_v3  ;;  %436 = vmatprep.subr.bf16.mxu1 %v459_v13  ;;  %v455_v18 = vld [vmem:[%s616_s1 + $0x30] sm:$0xff]   ;;  %v457_v19 = vld [vmem:[%s616_s1 + $0x78] sm:$0xff]   ;;  %v460_v21 = vld [vmem:[%s617_s0] ss:$12 sps:$4 sm:$0xff]  }
   0x8   :  { %406 = vmatprep.subr.bf16.mxu0 %v446_v4  ;;  %242 = vmatprep.mubr.bf16.mxu0 %v462_v15  ;;  %v458_v20 = vld [vmem:[%s616_s1 + $0x38] sm:$0xff]   ;;  %v400_v33 = vld [vmem:[%s618_s2] ss:$0 sm:$0xff]  ;;  %v360_v15 = vld [vmem:[%s620_s4 + $0x10] sm:$0xff] }
   0x9   :  { %438 = vmatprep.mubr.msk.bf16.mxu1 %vm203_vm0, %v463_v16  ;;  %v465_v22 = vld [vmem:[%s617_s0 + $0x1c] ss:$12 sps:$4 sm:$0xff]   ;;  %v467_v23 = vld [vmem:[%s617_s0 + $0x18] ss:$12 sps:$4 sm:$0xff]   ;;  %v401_v36 = vld [vmem:[%s619_s3] ss:$0 sm:$0xff] }
   0xa   :  { %437 = vmatpush3.bf16.msra.mxu1 %v459_v13 }
   0xb   :  { %407 = vmatpush3.bf16.msra.mxu0 %v447_v5 }
   0xc   :  { %408 = vmatprep.subr.bf16.mxu0 %v448_v6 }
   0xd   :  { %439 = vmatmul.mubr.msk.bf16.vlgmr.msra.gmra.mrb[0].mxu1 %vm203_vm0, %v464_v17 }
   0xf   :  { %409 = vmatpush3.bf16.msra.mxu0 %v449_v7  ;;  %v358_v7 = vld [vmem:[%s620_s4] sm:$0xff] }
  0x10   :  { %410 = vmatprep.subr.bf16.mxu0 %v450_v8 }
  0x13   :  { %411 = vmatpush3.bf16.msra.mxu0 %v451_v10  ;;  %v359_v10 = vld [vmem:[%s620_s4 + $0x8] sm:$0xff] }
  0x14   :  { %412 = vmatprep.subr.bf16.mxu0 %v452_v11 }
  0x17   :  { %413 = vmatpush3.bf16.msra.mxu0 %v453_v12 }
  0x18   :  { %414 = vmatprep.subr.bf16.mxu0 %v454_v14 }
  0x1b   :  { %415 = vmatpush3.bf16.msra.mxu0 %v455_v18  ;;  %v361_v18 = vld [vmem:[%s620_s4 + $0x18] sm:$0xff] }
  0x1c   :  { %416 = vmatprep.subr.bf16.mxu0 %v457_v19 }
  0x1f   :  { %417 = vmatpush3.bf16.msra.mxu0 %v458_v20 }
  0x22   :  { %243 = vmatmul.mubr.bf16.vlgmr.msra.gmra.mrb[0].mxu0 %v460_v21 }
  0x23   :  { %250 = vmatprep.mubr.bf16.mxu0 %v465_v22 }
  0x2a   :  { %251 = vmatmul.mubr.bf16.gmra.mrb[4].mxu0 %v467_v23 }
  0xe0   :  { %v440_v24 = vpop.f32.mrb[0].mxu1 }
  0xe1   :  { %v293_v25 = vpop.f32.mrb[1].mxu1 }
  0xe2   :  { %v441_v26 = vpop.f32.mrb[2].mxu1 }
  0xe3   :  { %v296_v27 = vpop.f32.mrb[3].mxu1 }
  0xf5   :  { %v418_v28 = vpop.f32.mrb[0].mxu0 }
  0xf6   :  { %v419_v29 = vpop.f32.mrb[1].mxu0 }
  0xf7   :  { %v420_v30 = vadd.f32 %v419_v29, %v418_v28  ;;  %v421_v31 = vpop.f32.mrb[2].mxu0 }
  0xf8   :  { %v422_v32 = vpop.f32.mrb[3].mxu0 }
  0xf9   :  { %v423_v34 = vadd.f32 %v422_v32, %v421_v31  ;;  %v294_v35 = vadd.f32 %v420_v30, %v293_v25 }
  0xfb   :  { %v315_v37 = vmul.f32 %v400_v33, %v294_v35  ;;  %v297_v38 = vadd.f32 %v423_v34, %v296_v27 }
  0xfd   :  { %v326_v39 = vadd.f32 %v401_v36, %v315_v37  ;;  %v316_v40 = vmul.f32 %v400_v33, %v297_v38  ;;  %v424_v41 = vpop.f32.mrb[4].mxu0 }
  0xfe   :  { %v425_v42 = vpop.f32.mrb[5].mxu0 }
  0xff   :  { %v330_v43 = vsub.f32 0.0, %v326_v39  ;;  %v327_v44 = vadd.f32 %v401_v36, %v316_v40  ;;  %v426_v45 = vadd.f32 %v425_v42, %v424_v41  ;;  %v427_v46 = vpop.f32.mrb[6].mxu0 }
 0x100   :  { %v428_v47 = vpop.f32.mrb[7].mxu0 }
 0x101   :  { %v334_v48 = vmul.f32 1.442695, %v330_v43  ;;  %v331_v49 = vsub.f32 0.0, %v327_v44  ;;  %v302_v50 = vadd.f32 %v440_v24, %v426_v45  ;;  %v429_v51 = vadd.f32 %v428_v47, %v427_v46 }
 0x103   :  { %468 = vpow2.f32 %v334_v48  ;;  %v336_v52 = vmul.f32 1.442695, %v331_v49  ;;  %v317_v53 = vmul.f32 %v400_v33, %v302_v50  ;;  %v305_v54 = vadd.f32 %v441_v26, %v429_v51 }
 0x105   :  { %470 = vpow2.f32 %v336_v52  ;;  %v328_v55 = vadd.f32 %v401_v36, %v317_v53  ;;  %v318_v56 = vmul.f32 %v400_v33, %v305_v54 }
 0x107   :  { %v332_v57 = vsub.f32 0.0, %v328_v55  ;;  %v329_v58 = vadd.f32 %v401_v36, %v318_v56 }
 0x109   :  { %v338_v59 = vmul.f32 1.442695, %v332_v57  ;;  %v333_v60 = vsub.f32 0.0, %v329_v58 }
 0x10b   :  { %472 = vpow2.f32 %v338_v59  ;;  %v340_v61 = vmul.f32 1.442695, %v333_v60 }
 0x10d   :  { %v469_v62 = vpop.eup %468  ;;  %474 = vpow2.f32 %v340_v61 }
 0x10e   :  { %v342_v63 = vadd.f32 1.0, %v469_v62 }
 0x10f   :  { %v471_v0 = vpop.eup %470 }
 0x110   :  { %476 = vrcp.f32 %v342_v63  ;;  %v343_v1 = vadd.f32 1.0, %v471_v0 }
 0x112   :  { %478 = vrcp.f32 %v343_v1 }
 0x115   :  { %v473_v2 = vpop.eup %472 }
 0x116   :  { %v344_v3 = vadd.f32 1.0, %v473_v2 }
 0x117   :  { %v475_v4 = vpop.eup %474 }
 0x118   :  { %480 = vrcp.f32 %v344_v3  ;;  %v345_v5 = vadd.f32 1.0, %v475_v4 }
 0x11a   :  { %v477_v6 = vpop.eup %476  ;;  %482 = vrcp.f32 %v345_v5 }
 0x11b   :  { %v354_v8 = vmul.f32 %v477_v6, %v326_v39 }
 0x11c   :  { %v479_v9 = vpop.eup %478 }
 0x11d   :  { %v362_v11 = vadd.f32 %v358_v7, %v354_v8  ;;  %v355_v12 = vmul.f32 %v479_v9, %v327_v44 }
 0x11f   :  { %366 = vst [vmem:[%s621_s5] sm:$0xff] %v362_v11  ;;  %v363_v13 = vadd.f32 %v359_v10, %v355_v12 }
 0x121   :  { %367 = vst [vmem:[%s621_s5 + $0x8] sm:$0xff] %v363_v13 }
 0x122   :  { %v481_v14 = vpop.eup %480 }
 0x123   :  { %v356_v16 = vmul.f32 %v481_v14, %v328_v55 }
 0x124   :  { %v483_v17 = vpop.eup %482 }
 0x125   :  { %v364_v19 = vadd.f32 %v360_v15, %v356_v16  ;;  %v357_v20 = vmul.f32 %v483_v17, %v329_v58 }
 0x127   :  { %368 = vst [vmem:[%s621_s5 + $0x10] sm:$0xff] %v364_v19  ;;  %v365_v21 = vadd.f32 %v361_v18, %v357_v20 }
 0x129   :  { %369 = vst [vmem:[%s621_s5 + $0x18] sm:$0xff] %v365_v21 }

// kernel: cspdarknet_fwd.68
= control target key start
LH: loop header
LB: loop body
LE: loop exit
PB: predicated region body
PF: predicated region fallthrough
CT: control target
= control target key end

     0   :  { %v630_v36 = vmov 0.0   ;;  %vm631_vm0 = vmmov 0   ;;  %vm326_vm1 = vcmask 523264   ;;  %s783_s1 = inlined_call_operand.vmem [shape: bf16[576,128], index: 1, kind: input, shape index: {}]   ;;  %s784_s0 = inlined_call_operand.vmem [shape: bf16[8,576], index: 0, kind: input, shape index: {}]   ;;  %s785_s2 = inlined_call_operand.vmem [shape: f32[1,128], index: 2, kind: input, shape index: {}]   ;;  %s786_s3 = inlined_call_operand.vmem [shape: f32[1,128], index: 3, kind: input, shape index: {}]   ;;  %s787_s4 = inlined_call_operand.vmem [shape: f32[8,128], index: 4, kind: output, shape index: {}]  }
   0x1   :  { %v585_v0 = vld [vmem:[%s783_s1 + $0x40] sm:$0xff]   ;;  %v589_v4 = vld [vmem:[%s783_s1 + $0x48] sm:$0xff]   ;;  %v593_v8 = vld [vmem:[%s783_s1 + $0x50] sm:$0xff]  }
   0x2   :  { %v586_v1 = vld [vmem:[%s783_s1 + $0xc0] sm:$0xff]   ;;  %522 = vmatprep.subr.bf16.mxu0 %v585_v0  ;;  %v590_v5 = vld [vmem:[%s783_s1 + $0xc8] sm:$0xff]   ;;  %v594_v9 = vld [vmem:[%s783_s1 + $0xd0] sm:$0xff]  }
   0x3   :  { %v587_v2 = vld [vmem:[%s783_s1] sm:$0xff]   ;;  %544 = vmatprep.subr.bf16.mxu1 %v586_v1  ;;  %v591_v6 = vld [vmem:[%s783_s1 + $0x8] sm:$0xff]   ;;  %v595_v10 = vld [vmem:[%s783_s1 + $0x10] sm:$0xff]  }
   0x4   :  { %v588_v3 = vld [vmem:[%s783_s1 + $0x80] sm:$0xff]   ;;  %523 = vmatpush3.bf16.msra.mxu0 %v587_v2  ;;  %v592_v7 = vld [vmem:[%s783_s1 + $0x88] sm:$0xff]   ;;  %v596_v11 = vld [vmem:[%s783_s1 + $0x90] sm:$0xff]  }
   0x5   :  { %545 = vmatpush3.bf16.msra.mxu1 %v588_v3  ;;  %524 = vmatprep.subr.bf16.mxu0 %v589_v4  ;;  %v597_v12 = vld [vmem:[%s783_s1 + $0x58] sm:$0xff]   ;;  %v601_v16 = vld [vmem:[%s783_s1 + $0x60] sm:$0xff]   ;;  %v605_v20 = vld [vmem:[%s783_s1 + $0x68] sm:$0xff]  }
   0x6   :  { %546 = vmatprep.subr.bf16.mxu1 %v590_v5  ;;  %v598_v13 = vld [vmem:[%s783_s1 + $0xd8] sm:$0xff]   ;;  %v602_v17 = vld [vmem:[%s783_s1 + $0xe0] sm:$0xff]   ;;  %v606_v21 = vld [vmem:[%s783_s1 + $0xe8] sm:$0xff]  }
   0x7   :  { %v599_v14 = vld [vmem:[%s783_s1 + $0x18] sm:$0xff]   ;;  %v603_v18 = vld [vmem:[%s783_s1 + $0x20] sm:$0xff]   ;;  %v607_v22 = vld [vmem:[%s783_s1 + $0x28] sm:$0xff]  }
   0x8   :  { %525 = vmatpush3.bf16.msra.mxu0 %v591_v6  ;;  %v600_v15 = vld [vmem:[%s783_s1 + $0x98] sm:$0xff]   ;;  %v604_v19 = vld [vmem:[%s783_s1 + $0xa0] sm:$0xff]   ;;  %v608_v23 = vld [vmem:[%s783_s1 + $0xa8] sm:$0xff]  }
   0x9   :  { %547 = vmatpush3.bf16.msra.mxu1 %v592_v7  ;;  %526 = vmatprep.subr.bf16.mxu0 %v593_v8  ;;  %v609_v24 = vld [vmem:[%s783_s1 + $0x70] sm:$0xff]   ;;  %v613_v28 = vld [vmem:[%s783_s1 + $0x78] sm:$0xff]   ;;  %v18_v32 = vld [vmem:[%s784_s0] sm:$0xff] }
   0xa   :  { %548 = vmatprep.subr.bf16.mxu1 %v594_v9  ;;  %v610_v25 = vld [vmem:[%s783_s1 + $0xf0] sm:$0xff]   ;;  %v614_v29 = vld [vmem:[%s783_s1 + $0xf8] sm:$0xff]   ;;  %v478_v33 = vcombine.low %v18_v32, %v18_v32  ;;  %v479_v34 = vcombine.high %v18_v32, %v18_v32  ;;  %v19_v35 = vld [vmem:[%s784_s0 + $0x8] sm:$0xff] }
   0xb   :  { %v611_v26 = vld [vmem:[%s783_s1 + $0x30] sm:$0xff]   ;;  %v615_v30 = vld [vmem:[%s783_s1 + $0x38] sm:$0xff]   ;;  %v480_v37 = vcombine.low %v19_v35, %v19_v35  ;;  %v481_v38 = vcombine.high %v19_v35, %v19_v35  ;;  %v622_v39 = vld [vmem:[%s783_s1 + $0x100] sm:$0xff]  }
   0xc   :  { %527 = vmatpush3.bf16.msra.mxu0 %v595_v10  ;;  %v612_v27 = vld [vmem:[%s783_s1 + $0xb0] sm:$0xff]   ;;  %v616_v31 = vld [vmem:[%s783_s1 + $0xb8] sm:$0xff]   ;;  %362 = vmatprep.mubr.bf16.mxu0 %v479_v34  ;;  %v623_v40 = vld [vmem:[%s783_s1 + $0x108] sm:$0xff]  }
   0xd   :  { %549 = vmatpush3.bf16.msra.mxu1 %v596_v11  ;;  %528 = vmatprep.subr.bf16.mxu0 %v597_v12  ;;  %v624_v41 = vld [vmem:[%s783_s1 + $0x110] sm:$0xff]   ;;  %v625_v42 = vld [vmem:[%s783_s1 + $0x118] sm:$0xff]   ;;  %v520_v56 = vld [vmem:[%s785_s2] ss:$0 sm:$0xff] }
   0xe   :  { %550 = vmatprep.subr.bf16.mxu1 %v598_v13  ;;  %402 = vmatprep.mubr.bf16.mxu1 %v481_v38  ;;  %v619_v43 = vld [vmem:[%s784_s0 + $0x10] ss:$0 sps:$4 sm:$0xff]   ;;  %v521_v59 = vld [vmem:[%s786_s3] ss:$0 sm:$0xff] }
  0x10   :  { %529 = vmatpush3.bf16.msra.mxu0 %v599_v14 }
  0x11   :  { %551 = vmatpush3.bf16.msra.mxu1 %v600_v15  ;;  %530 = vmatprep.subr.bf16.mxu0 %v601_v16 }
  0x12   :  { %552 = vmatprep.subr.bf16.mxu1 %v602_v17 }
  0x14   :  { %531 = vmatpush3.bf16.msra.mxu0 %v603_v18 }
  0x15   :  { %553 = vmatpush3.bf16.msra.mxu1 %v604_v19  ;;  %532 = vmatprep.subr.bf16.mxu0 %v605_v20 }
  0x16   :  { %554 = vmatprep.subr.bf16.mxu1 %v606_v21 }
  0x18   :  { %533 = vmatpush3.bf16.msra.mxu0 %v607_v22 }
  0x19   :  { %555 = vmatpush3.bf16.msra.mxu1 %v608_v23  ;;  %534 = vmatprep.subr.bf16.mxu0 %v609_v24 }
  0x1a   :  { %556 = vmatprep.subr.bf16.mxu1 %v610_v25 }
  0x1c   :  { %535 = vmatpush3.bf16.msra.mxu0 %v611_v26 }
  0x1d   :  { %557 = vmatpush3.bf16.msra.mxu1 %v612_v27  ;;  %536 = vmatprep.subr.bf16.mxu0 %v613_v28 }
  0x1e   :  { %558 = vmatprep.subr.bf16.mxu1 %v614_v29 }
  0x20   :  { %537 = vmatpush3.bf16.msra.mxu0 %v615_v30 }
  0x21   :  { %559 = vmatpush3.bf16.msra.mxu1 %v616_v31  ;;  %571 = vmatprep.subr.bf16.mxu0 %v630_v36 }
  0x23   :  { %363 = vmatmul.mubr.bf16.vlgmr.msra.gmra.mrb[0].mxu0 %v478_v33 }
  0x24   :  { %403 = vmatmul.mubr.bf16.vlgmr.msra.gmra.mrb[0].mxu1 %v480_v37  ;;  %572 = vmatpush3.bf16.msra.mxu0 %v622_v39 }
  0x25   :  { %573 = vmatprep.subr.bf16.mxu0 %v630_v36  ;;  %579 = vmatprep.mubr.msk.bf16.mxu0 %vm631_vm0, %v630_v36 }
  0x28   :  { %574 = vmatpush3.bf16.msra.mxu0 %v623_v40 }
  0x29   :  { %575 = vmatprep.subr.bf16.mxu0 %v630_v36 }
  0x2c   :  { %576 = vmatpush3.bf16.msra.mxu0 %v624_v41 }
  0x2d   :  { %577 = vmatprep.subr.bf16.mxu0 %v630_v36 }
  0x30   :  { %578 = vmatpush3.bf16.msra.mxu0 %v625_v42 }
  0x33   :  { %580 = vmatmul.mubr.msk.bf16.vlgmr.msra.gmra.mrb[4].mxu0 %vm326_vm1, %v619_v43 }
  0xf6   :  { %v538_v44 = vpop.f32.mrb[0].mxu0 }
  0xf7   :  { %v560_v45 = vpop.f32.mrb[0].mxu1  ;;  %v539_v46 = vpop.f32.mrb[1].mxu0 }
  0xf8   :  { %v540_v47 = vadd.f32 %v539_v46, %v538_v44  ;;  %v561_v48 = vpop.f32.mrb[1].mxu1  ;;  %v541_v49 = vpop.f32.mrb[2].mxu0 }
  0xf9   :  { %v562_v50 = vadd.f32 %v561_v48, %v560_v45  ;;  %v542_v51 = vpop.f32.mrb[3].mxu0  ;;  %v563_v52 = vpop.f32.mrb[2].mxu1 }
  0xfa   :  { %v564_v53 = vpop.f32.mrb[3].mxu1 }
  0xfb   :  { %v405_v54 = vadd.f32 %v562_v50, %v540_v47 }
 0x106   :  { %v444_v55 = vpop.f32.mrb[4].mxu0 }
 0x107   :  { %v445_v57 = vadd.f32 %v444_v55, %v405_v54  ;;  %v581_v58 = vpop.f32.mrb[5].mxu0 }
 0x108   :  { %v447_v60 = vpop.f32.mrb[6].mxu0 }
 0x109   :  { %v457_v61 = vmul.f32 %v520_v56, %v445_v57  ;;  %v582_v62 = vpop.f32.mrb[7].mxu0 }
 0x10b   :  { %v465_v63 = vadd.f32 %v521_v59, %v457_v61 }
 0x10d   :  { %v466_v0 = vsub.f32 0.0, %v465_v63 }
 0x10f   :  { %v467_v1 = vmul.f32 1.442695, %v466_v0 }
 0x111   :  { %626 = vpow2.f32 %v467_v1 }
 0x11b   :  { %v627_v2 = vpop.eup %626 }
 0x11c   :  { %v469_v3 = vadd.f32 1.0, %v627_v2 }
 0x11e   :  { %628 = vrcp.f32 %v469_v3 }
 0x128   :  { %v629_v4 = vpop.eup %628 }
 0x129   :  { %v472_v5 = vmul.f32 %v629_v4, %v465_v63 }
 0x12b   :  { %473 = vst [vmem:[%s787_s4] sm:$0xff] %v472_v5 }

// kernel: squeeze.6
= control target key start
LH: loop header
LB: loop body
LE: loop exit
PB: predicated region body
PF: predicated region fallthrough
CT: control target
= control target key end

     0   :  { %vm7_vm0 = vcmask 523264   ;;  %s70_s0 = inlined_call_operand.vmem [shape: f32[512], index: 0, kind: input, shape index: {}]   ;;  %s71_s1 = inlined_call_operand.vmem [shape: f32[2,2,2,64], index: 1, kind: output, shape index: {}]  }
   0x1   :  { %v4_v0 = vld [vmem:[%s70_s0] sm:$0xf]  ;;  %s44_s0 = smov 64  }
   0x2   :  { %5 = vst [vmem:[#allocation1] sm:$0xf] %v4_v0 }
   0x9   :  { %v9_v1 = vld [vmem:[#allocation1] sm:$0xf]  }
   0xa   :  { %v6_v2 = vld [vmem:[#allocation1] sm:$0xf]   ;;  %10 = vrot.lane.b32.xlu0 %v9_v1, %s44_s0 }
   0xb   :  { %8 = vst.msk [vmem:[#allocation0] ss:$8 sm:$0xf] %vm7_vm0, %v6_v2  }
  0x7c   :  { %v11_v3 = vpop.permute.xlu0 %10  }
  0x7d   :  { %14 = vst.msk [vmem:[#allocation0 + $0x1] ss:$8 sm:$0xf] %vm7_vm0, %v11_v3  }
  0x84   :  { %v18_v4 = vld [vmem:[#allocation0] sm:$0x3]  ;;  %v22_v5 = vld [vmem:[#allocation0 + $0x8] sm:$0x3]  ;;  %v27_v6 = vld [vmem:[#allocation0 + $0x10] sm:$0x3] }
  0x85   :  { %20 = vst [vmem:[%s71_s1] sm:$0x3] %v18_v4  ;;  %40 = vst [vmem:[%s71_s1 + $0x2] sm:$0x3] %v22_v5  ;;  %v33_v7 = vld [vmem:[#allocation0 + $0x18] sm:$0x3] }
  0x86   :  { %41 = vst [vmem:[%s71_s1 + $0x4] sm:$0x3] %v27_v6  ;;  %42 = vst [vmem:[%s71_s1 + $0x6] sm:$0x3] %v33_v7 }

// kernel: cspdarknet_fwd.69
= control target key start
LH: loop header
LB: loop body
LE: loop exit
PB: predicated region body
PF: predicated region fallthrough
CT: control target
= control target key end

     0   :  { %v204_v0 = vmov 0.0   ;;  %vm205_vm0 = vmmov 0   ;;  %s267_s1 = inlined_call_operand.vmem [shape: bf16[128,128], index: 1, kind: input, shape index: {}]   ;;  %s268_s0 = inlined_call_operand.vmem [shape: bf16[8,128], index: 0, kind: input, shape index: {}]   ;;  %s269_s2 = inlined_call_operand.vmem [shape: f32[1,128], index: 2, kind: input, shape index: {}]   ;;  %s270_s3 = inlined_call_operand.vmem [shape: f32[1,128], index: 3, kind: input, shape index: {}]   ;;  %s271_s4 = inlined_call_operand.vmem [shape: f32[8,128], index: 4, kind: output, shape index: {}]  }
   0x1   :  { %170 = vmatprep.subr.bf16.mxu0 %v204_v0  ;;  %v192_v1 = vld [vmem:[%s267_s1] sm:$0xff]   ;;  %186 = vmatprep.mubr.msk.bf16.mxu0 %vm205_vm0, %v204_v0  ;;  %v193_v2 = vld [vmem:[%s267_s1 + $0x8] sm:$0xff]   ;;  %v194_v3 = vld [vmem:[%s267_s1 + $0x10] sm:$0xff]  }
   0x2   :  { %171 = vmatpush3.bf16.msra.mxu0 %v192_v1  ;;  %v195_v4 = vld [vmem:[%s267_s1 + $0x18] sm:$0xff]   ;;  %v196_v5 = vld [vmem:[%s267_s1 + $0x20] sm:$0xff]   ;;  %v197_v6 = vld [vmem:[%s267_s1 + $0x28] sm:$0xff]  }
   0x3   :  { %172 = vmatprep.subr.bf16.mxu0 %v204_v0  ;;  %v198_v7 = vld [vmem:[%s267_s1 + $0x30] sm:$0xff]   ;;  %v199_v8 = vld [vmem:[%s267_s1 + $0x38] sm:$0xff]   ;;  %v18_v9 = vld [vmem:[%s268_s0] sm:$0xf] }
   0x4   :  { %v159_v10 = vld [vmem:[%s269_s2] ss:$0 sm:$0xff] }
   0x5   :  { %v160_v12 = vld [vmem:[%s270_s3] ss:$0 sm:$0xff] }
   0x6   :  { %173 = vmatpush3.bf16.msra.mxu0 %v193_v2 }
   0x7   :  { %174 = vmatprep.subr.bf16.mxu0 %v204_v0 }
   0xa   :  { %175 = vmatpush3.bf16.msra.mxu0 %v194_v3 }
   0xb   :  { %176 = vmatprep.subr.bf16.mxu0 %v204_v0 }
   0xe   :  { %177 = vmatpush3.bf16.msra.mxu0 %v195_v4 }
   0xf   :  { %178 = vmatprep.subr.bf16.mxu0 %v204_v0 }
  0x12   :  { %179 = vmatpush3.bf16.msra.mxu0 %v196_v5 }
  0x13   :  { %180 = vmatprep.subr.bf16.mxu0 %v204_v0 }
  0x16   :  { %181 = vmatpush3.bf16.msra.mxu0 %v197_v6 }
  0x17   :  { %182 = vmatprep.subr.bf16.mxu0 %v204_v0 }
  0x1a   :  { %183 = vmatpush3.bf16.msra.mxu0 %v198_v7 }
  0x1b   :  { %184 = vmatprep.subr.bf16.mxu0 %v204_v0 }
  0x1e   :  { %185 = vmatpush3.bf16.msra.mxu0 %v199_v8 }
  0x21   :  { %187 = vmatmul.mubr.bf16.vlgmr.msra.gmra.mrb[0].mxu0 %v18_v9 }
  0xf4   :  { %v117_v11 = vpop.f32.mrb[0].mxu0 }
  0xf5   :  { %v130_v13 = vmul.f32 %v159_v10, %v117_v11  ;;  %v188_v14 = vpop.f32.mrb[1].mxu0 }
  0xf6   :  { %v120_v15 = vpop.f32.mrb[2].mxu0 }
  0xf7   :  { %v138_v16 = vadd.f32 %v160_v12, %v130_v13  ;;  %v189_v17 = vpop.f32.mrb[3].mxu0 }
  0xf9   :  { %v139_v18 = vsub.f32 0.0, %v138_v16 }
  0xfb   :  { %v140_v19 = vmul.f32 1.442695, %v139_v18 }
  0xfd   :  { %200 = vpow2.f32 %v140_v19 }
 0x107   :  { %v201_v20 = vpop.eup %200 }
 0x108   :  { %v142_v21 = vadd.f32 1.0, %v201_v20 }
 0x10a   :  { %202 = vrcp.f32 %v142_v21 }
 0x114   :  { %v203_v22 = vpop.eup %202 }
 0x115   :  { %v145_v23 = vmul.f32 %v203_v22, %v138_v16 }
 0x117   :  { %146 = vst [vmem:[%s271_s4] sm:$0xff] %v145_v23 }

// kernel: cspdarknet_fwd.70
= control target key start
LH: loop header
LB: loop body
LE: loop exit
PB: predicated region body
PF: predicated region fallthrough
CT: control target
= control target key end

     0   :  { %vm12_vm0 = vcmask 1044480   ;;  %v50_v12 = vlaneseq  ;;  %v80_v16 = vmov 1966171168   ;;  %s106_s0 = inlined_call_operand.vmem [shape: f32[5,512], index: 0, kind: input, shape index: {}]   ;;  %s107_s1 = inlined_call_operand.vmem [shape: f32[1,512], index: 1, kind: output, shape index: {}]  }
   0x1   :  { %v8_v0 = vld [vmem:[%s106_s0] sm:$0x1f]  ;;  %v9_v1 = vld [vmem:[%s106_s0 + $0x8] sm:$0x1f]  ;;  %v10_v2 = vld [vmem:[%s106_s0 + $0x10] sm:$0x1f]  ;;  %v48_v17 = vunpack.c.l.s4 %v80_v16 }
   0x2   :  { %v11_v3 = vld [vmem:[%s106_s0 + $0x18] sm:$0x1f]  ;;  %v13_v4 = vsel %vm12_vm0, %v8_v0, -inf  ;;  %v20_v5 = vsel %vm12_vm0, %v9_v1, -inf  ;;  %v27_v6 = vsel %vm12_vm0, %v10_v2, -inf  ;;  %v51_v23 = vshrl.u32 %v50_v12, 7 }
   0x3   :  { %v14_v7 = vrot.slane %v13_v4, 4  ;;  %v21_v8 = vrot.slane %v20_v5, 4  ;;  %v28_v9 = vrot.slane %v27_v6, 4  ;;  %v34_v10 = vsel %vm12_vm0, %v11_v3, -inf }
   0x4   :  { %v35_v11 = vrot.slane %v34_v10, 4  ;;  %v49_v27 = vunpack.c.0.s8 %v48_v17  ;;  %vm72_vm1 = vcmp.lt.s32.totalorder %v50_v12, 512 }
   0x5   :  { %v15_v13 = vmax.f32 %v13_v4, %v14_v7  ;;  %v22_v14 = vmax.f32 %v20_v5, %v21_v8  ;;  %v29_v15 = vmax.f32 %v27_v6, %v28_v9 }
   0x6   :  { %v36_v18 = vmax.f32 %v34_v10, %v35_v11  ;;  %v52_v36 = vsub.s32 %v49_v27, %v51_v23 }
   0x7   :  { %v16_v19 = vrot.slane %v15_v13, 2  ;;  %v23_v20 = vrot.slane %v22_v14, 2  ;;  %v30_v21 = vrot.slane %v29_v15, 2 }
   0x8   :  { %v37_v22 = vrot.slane %v36_v18, 2 }
   0x9   :  { %v17_v24 = vmax.f32 %v15_v13, %v16_v19  ;;  %v24_v25 = vmax.f32 %v22_v14, %v23_v20  ;;  %v31_v26 = vmax.f32 %v29_v15, %v30_v21 }
   0xa   :  { %v38_v28 = vmax.f32 %v36_v18, %v37_v22 }
   0xb   :  { %v18_v29 = vrot.slane %v17_v24, 1  ;;  %v25_v30 = vrot.slane %v24_v25, 1  ;;  %v32_v31 = vrot.slane %v31_v26, 1 }
   0xc   :  { %v39_v32 = vrot.slane %v38_v28, 1 }
   0xd   :  { %v19_v33 = vmax.f32 %v17_v24, %v18_v29  ;;  %v26_v34 = vmax.f32 %v24_v25, %v25_v30  ;;  %v33_v35 = vmax.f32 %v31_v26, %v32_v31 }
   0xe   :  { %v40_v37 = vmax.f32 %v38_v28, %v39_v32 }
   0xf   :  { %v45_v38 = vcombine.low %v19_v33, %v26_v34 }
  0x10   :  { %v46_v39 = vcombine.low %v33_v35, %v40_v37 }
  0x11   :  { %v53_v40 = vrot.slane %v45_v38, %v52_v36 }
  0x12   :  { %v60_v41 = vrot.slane %v46_v39, %v52_v36 }
  0x14   :  { %v61_v42 = vcombine.low %v53_v40, %v60_v41 }
  0x16   :  { %v68_v43 = vrot.slane %v61_v42, %v52_v36 }
  0x18   :  { %74 = vst.msk [vmem:[%s107_s1] sm:$0xf] %vm72_vm1, %v68_v43 }

// kernel: cspdarknet_fwd.72
= control target key start
LH: loop header
LB: loop body
LE: loop exit
PB: predicated region body
PF: predicated region fallthrough
CT: control target
= control target key end

     0   :  { %vm16_vm0 = vcmask 1040384   ;;  %v88_v22 = vmov 1966171168   ;;  %v58_v24 = vlaneseq  ;;  %s126_s0 = inlined_call_operand.vmem [shape: f32[9,512], index: 0, kind: input, shape index: {}]   ;;  %s127_s1 = inlined_call_operand.vmem [shape: f32[1,512], index: 1, kind: output, shape index: {}]  }
   0x1   :  { %v8_v0 = vld [vmem:[%s126_s0] sm:$0xff]  ;;  %v9_v1 = vld [vmem:[%s126_s0 + $0x8] sm:$0xff]  ;;  %v10_v2 = vld [vmem:[%s126_s0 + $0x10] sm:$0xff]  ;;  %v56_v23 = vunpack.c.l.s4 %v88_v22 }
   0x2   :  { %v11_v3 = vld [vmem:[%s126_s0 + $0x18] sm:$0xff]  ;;  %v12_v4 = vld [vmem:[%s126_s0 + $0x20] sm:$0x1]  ;;  %v13_v5 = vld [vmem:[%s126_s0 + $0x28] sm:$0x1]  ;;  %v59_v34 = vshrl.u32 %v58_v24, 7 }
   0x3   :  { %v14_v6 = vld [vmem:[%s126_s0 + $0x30] sm:$0x1]  ;;  %v15_v7 = vld [vmem:[%s126_s0 + $0x38] sm:$0x1]  ;;  %v17_v8 = vsel %vm16_vm0, %v12_v4, -inf  ;;  %v25_v9 = vsel %vm16_vm0, %v13_v5, -inf  ;;  %v57_v33 = vunpack.c.0.s8 %v56_v23 }
   0x4   :  { %v18_v10 = vmax.f32 %v8_v0, %v17_v8  ;;  %v26_v11 = vmax.f32 %v9_v1, %v25_v9  ;;  %v33_v12 = vsel %vm16_vm0, %v14_v6, -inf  ;;  %v41_v13 = vsel %vm16_vm0, %v15_v7, -inf }
   0x5   :  { %v34_v14 = vmax.f32 %v10_v2, %v33_v12  ;;  %v42_v15 = vmax.f32 %v11_v3, %v41_v13  ;;  %v60_v43 = vsub.s32 %v57_v33, %v59_v34  ;;  %vm80_vm1 = vcmp.lt.s32.totalorder %v58_v24, 512 }
   0x6   :  { %v19_v16 = vrot.slane %v18_v10, 4  ;;  %v27_v17 = vrot.slane %v26_v11, 4 }
   0x7   :  { %v35_v18 = vrot.slane %v34_v14, 4  ;;  %v43_v19 = vrot.slane %v42_v15, 4 }
   0x8   :  { %v20_v20 = vmax.f32 %v18_v10, %v19_v16  ;;  %v28_v21 = vmax.f32 %v26_v11, %v27_v17 }
   0x9   :  { %v36_v25 = vmax.f32 %v34_v14, %v35_v18  ;;  %v44_v26 = vmax.f32 %v42_v15, %v43_v19 }
   0xa   :  { %v21_v27 = vrot.slane %v20_v20, 2  ;;  %v29_v28 = vrot.slane %v28_v21, 2 }
   0xb   :  { %v37_v29 = vrot.slane %v36_v25, 2  ;;  %v45_v30 = vrot.slane %v44_v26, 2 }
   0xc   :  { %v22_v31 = vmax.f32 %v20_v20, %v21_v27  ;;  %v30_v32 = vmax.f32 %v28_v21, %v29_v28 }
   0xd   :  { %v38_v35 = vmax.f32 %v36_v25, %v37_v29  ;;  %v46_v36 = vmax.f32 %v44_v26, %v45_v30 }
   0xe   :  { %v23_v37 = vrot.slane %v22_v31, 1  ;;  %v31_v38 = vrot.slane %v30_v32, 1 }
   0xf   :  { %v39_v39 = vrot.slane %v38_v35, 1  ;;  %v47_v40 = vrot.slane %v46_v36, 1 }
  0x10   :  { %v24_v41 = vmax.f32 %v22_v31, %v23_v37  ;;  %v32_v42 = vmax.f32 %v30_v32, %v31_v38 }
  0x11   :  { %v40_v44 = vmax.f32 %v38_v35, %v39_v39  ;;  %v48_v45 = vmax.f32 %v46_v36, %v47_v40 }
  0x12   :  { %v53_v46 = vcombine.low %v24_v41, %v32_v42 }
  0x13   :  { %v54_v47 = vcombine.low %v40_v44, %v48_v45 }
  0x14   :  { %v61_v48 = vrot.slane %v53_v46, %v60_v43 }
  0x15   :  { %v68_v49 = vrot.slane %v54_v47, %v60_v43 }
  0x17   :  { %v69_v50 = vcombine.low %v61_v48, %v68_v49 }
  0x19   :  { %v76_v51 = vrot.slane %v69_v50, %v60_v43 }
  0x1b   :  { %82 = vst.msk [vmem:[%s127_s1] sm:$0xf] %vm80_vm1, %v76_v51 }

// kernel: cspdarknet_fwd.74
= control target key start
LH: loop header
LB: loop body
LE: loop exit
PB: predicated region body
PF: predicated region fallthrough
CT: control target
= control target key end

     0   :  { %vm16_vm0 = vcmask 1044480   ;;  %v88_v22 = vmov 1966171168   ;;  %v58_v24 = vlaneseq  ;;  %s126_s0 = inlined_call_operand.vmem [shape: f32[13,512], index: 0, kind: input, shape index: {}]   ;;  %s127_s1 = inlined_call_operand.vmem [shape: f32[1,512], index: 1, kind: output, shape index: {}]  }
   0x1   :  { %v8_v0 = vld [vmem:[%s126_s0] sm:$0xff]  ;;  %v9_v1 = vld [vmem:[%s126_s0 + $0x8] sm:$0xff]  ;;  %v10_v2 = vld [vmem:[%s126_s0 + $0x10] sm:$0xff]  ;;  %v56_v23 = vunpack.c.l.s4 %v88_v22 }
   0x2   :  { %v11_v3 = vld [vmem:[%s126_s0 + $0x18] sm:$0xff]  ;;  %v12_v4 = vld [vmem:[%s126_s0 + $0x20] sm:$0x1f]  ;;  %v13_v5 = vld [vmem:[%s126_s0 + $0x28] sm:$0x1f]  ;;  %v59_v34 = vshrl.u32 %v58_v24, 7 }
   0x3   :  { %v14_v6 = vld [vmem:[%s126_s0 + $0x30] sm:$0x1f]  ;;  %v15_v7 = vld [vmem:[%s126_s0 + $0x38] sm:$0x1f]  ;;  %v17_v8 = vsel %vm16_vm0, %v12_v4, -inf  ;;  %v25_v9 = vsel %vm16_vm0, %v13_v5, -inf  ;;  %v57_v33 = vunpack.c.0.s8 %v56_v23 }
   0x4   :  { %v18_v10 = vmax.f32 %v8_v0, %v17_v8  ;;  %v26_v11 = vmax.f32 %v9_v1, %v25_v9  ;;  %v33_v12 = vsel %vm16_vm0, %v14_v6, -inf  ;;  %v41_v13 = vsel %vm16_vm0, %v15_v7, -inf }
   0x5   :  { %v34_v14 = vmax.f32 %v10_v2, %v33_v12  ;;  %v42_v15 = vmax.f32 %v11_v3, %v41_v13  ;;  %v60_v43 = vsub.s32 %v57_v33, %v59_v34  ;;  %vm80_vm1 = vcmp.lt.s32.totalorder %v58_v24, 512 }
   0x6   :  { %v19_v16 = vrot.slane %v18_v10, 4  ;;  %v27_v17 = vrot.slane %v26_v11, 4 }
   0x7   :  { %v35_v18 = vrot.slane %v34_v14, 4  ;;  %v43_v19 = vrot.slane %v42_v15, 4 }
   0x8   :  { %v20_v20 = vmax.f32 %v18_v10, %v19_v16  ;;  %v28_v21 = vmax.f32 %v26_v11, %v27_v17 }
   0x9   :  { %v36_v25 = vmax.f32 %v34_v14, %v35_v18  ;;  %v44_v26 = vmax.f32 %v42_v15, %v43_v19 }
   0xa   :  { %v21_v27 = vrot.slane %v20_v20, 2  ;;  %v29_v28 = vrot.slane %v28_v21, 2 }
   0xb   :  { %v37_v29 = vrot.slane %v36_v25, 2  ;;  %v45_v30 = vrot.slane %v44_v26, 2 }
   0xc   :  { %v22_v31 = vmax.f32 %v20_v20, %v21_v27  ;;  %v30_v32 = vmax.f32 %v28_v21, %v29_v28 }
   0xd   :  { %v38_v35 = vmax.f32 %v36_v25, %v37_v29  ;;  %v46_v36 = vmax.f32 %v44_v26, %v45_v30 }
   0xe   :  { %v23_v37 = vrot.slane %v22_v31, 1  ;;  %v31_v38 = vrot.slane %v30_v32, 1 }
   0xf   :  { %v39_v39 = vrot.slane %v38_v35, 1  ;;  %v47_v40 = vrot.slane %v46_v36, 1 }
  0x10   :  { %v24_v41 = vmax.f32 %v22_v31, %v23_v37  ;;  %v32_v42 = vmax.f32 %v30_v32, %v31_v38 }
  0x11   :  { %v40_v44 = vmax.f32 %v38_v35, %v39_v39  ;;  %v48_v45 = vmax.f32 %v46_v36, %v47_v40 }
  0x12   :  { %v53_v46 = vcombine.low %v24_v41, %v32_v42 }
  0x13   :  { %v54_v47 = vcombine.low %v40_v44, %v48_v45 }
  0x14   :  { %v61_v48 = vrot.slane %v53_v46, %v60_v43 }
  0x15   :  { %v68_v49 = vrot.slane %v54_v47, %v60_v43 }
  0x17   :  { %v69_v50 = vcombine.low %v61_v48, %v68_v49 }
  0x19   :  { %v76_v51 = vrot.slane %v69_v50, %v60_v43 }
  0x1b   :  { %82 = vst.msk [vmem:[%s127_s1] sm:$0xf] %vm80_vm1, %v76_v51 }

// kernel: cspdarknet_fwd.76
= control target key start
LH: loop header
LB: loop body
LE: loop exit
PB: predicated region body
PF: predicated region fallthrough
CT: control target
= control target key end

     0   :  { %s371_s1 = inlined_call_operand.vmem [shape: bf16[256,128], index: 1, kind: input, shape index: {}]   ;;  %s372_s0 = inlined_call_operand.vmem [shape: bf16[8,256], index: 0, kind: input, shape index: {}]   ;;  %s373_s2 = inlined_call_operand.vmem [shape: f32[1,128], index: 2, kind: input, shape index: {}]   ;;  %s374_s3 = inlined_call_operand.vmem [shape: f32[1,128], index: 3, kind: input, shape index: {}]   ;;  %s375_s4 = inlined_call_operand.vmem [shape: f32[8,128], index: 4, kind: output, shape index: {}]  }
   0x1   :  { %v264_v0 = vld [vmem:[%s371_s1 + $0x40] sm:$0xff]   ;;  %v266_v2 = vld [vmem:[%s371_s1 + $0x48] sm:$0xff]   ;;  %v268_v4 = vld [vmem:[%s371_s1 + $0x50] sm:$0xff]  }
   0x2   :  { %v265_v1 = vld [vmem:[%s371_s1] sm:$0xff]   ;;  %242 = vmatprep.subr.bf16.mxu0 %v264_v0  ;;  %v267_v3 = vld [vmem:[%s371_s1 + $0x8] sm:$0xff]   ;;  %v269_v5 = vld [vmem:[%s371_s1 + $0x10] sm:$0xff]  }
   0x3   :  { %243 = vmatpush3.bf16.msra.mxu0 %v265_v1  ;;  %v270_v6 = vld [vmem:[%s371_s1 + $0x58] sm:$0xff]   ;;  %v272_v8 = vld [vmem:[%s371_s1 + $0x60] sm:$0xff]   ;;  %v274_v10 = vld [vmem:[%s371_s1 + $0x68] sm:$0xff]  }
   0x4   :  { %244 = vmatprep.subr.bf16.mxu0 %v266_v2  ;;  %v271_v7 = vld [vmem:[%s371_s1 + $0x18] sm:$0xff]   ;;  %v273_v9 = vld [vmem:[%s371_s1 + $0x20] sm:$0xff]   ;;  %v275_v13 = vld [vmem:[%s371_s1 + $0x28] sm:$0xff]  }
   0x5   :  { %v18_v11 = vld [vmem:[%s372_s0] sm:$0xff]  ;;  %v276_v14 = vld [vmem:[%s371_s1 + $0x70] sm:$0xff]   ;;  %v278_v16 = vld [vmem:[%s371_s1 + $0x78] sm:$0xff]  }
   0x6   :  { %v223_v12 = vcombine.high %v18_v11, %v18_v11  ;;  %v277_v15 = vld [vmem:[%s371_s1 + $0x30] sm:$0xff]   ;;  %v279_v17 = vld [vmem:[%s371_s1 + $0x38] sm:$0xff]   ;;  %v222_v18 = vcombine.low %v18_v11, %v18_v11  ;;  %v240_v21 = vld [vmem:[%s373_s2] ss:$0 sm:$0xff] }
   0x7   :  { %245 = vmatpush3.bf16.msra.mxu0 %v267_v3  ;;  %v241_v24 = vld [vmem:[%s374_s3] ss:$0 sm:$0xff] }
   0x8   :  { %246 = vmatprep.subr.bf16.mxu0 %v268_v4  ;;  %186 = vmatprep.mubr.bf16.mxu0 %v223_v12 }
   0xb   :  { %247 = vmatpush3.bf16.msra.mxu0 %v269_v5 }
   0xc   :  { %248 = vmatprep.subr.bf16.mxu0 %v270_v6 }
   0xf   :  { %249 = vmatpush3.bf16.msra.mxu0 %v271_v7 }
  0x10   :  { %250 = vmatprep.subr.bf16.mxu0 %v272_v8 }
  0x13   :  { %251 = vmatpush3.bf16.msra.mxu0 %v273_v9 }
  0x14   :  { %252 = vmatprep.subr.bf16.mxu0 %v274_v10 }
  0x17   :  { %253 = vmatpush3.bf16.msra.mxu0 %v275_v13 }
  0x18   :  { %254 = vmatprep.subr.bf16.mxu0 %v276_v14 }
  0x1b   :  { %255 = vmatpush3.bf16.msra.mxu0 %v277_v15 }
  0x1c   :  { %256 = vmatprep.subr.bf16.mxu0 %v278_v16 }
  0x1f   :  { %257 = vmatpush3.bf16.msra.mxu0 %v279_v17 }
  0x22   :  { %187 = vmatmul.mubr.bf16.vlgmr.msra.gmra.mrb[0].mxu0 %v222_v18 }
  0xf5   :  { %v258_v19 = vpop.f32.mrb[0].mxu0 }
  0xf6   :  { %v259_v20 = vpop.f32.mrb[1].mxu0 }
  0xf7   :  { %v260_v22 = vadd.f32 %v259_v20, %v258_v19  ;;  %v261_v23 = vpop.f32.mrb[2].mxu0 }
  0xf8   :  { %v262_v25 = vpop.f32.mrb[3].mxu0 }
  0xf9   :  { %v201_v26 = vmul.f32 %v260_v22, %v240_v21 }
  0xfb   :  { %v209_v27 = vadd.f32 %v241_v24, %v201_v26 }
  0xfd   :  { %v210_v28 = vsub.f32 0.0, %v209_v27 }
  0xff   :  { %v211_v29 = vmul.f32 1.442695, %v210_v28 }
 0x101   :  { %282 = vpow2.f32 %v211_v29 }
 0x10b   :  { %v283_v30 = vpop.eup %282 }
 0x10c   :  { %v213_v31 = vadd.f32 1.0, %v283_v30 }
 0x10e   :  { %284 = vrcp.f32 %v213_v31 }
 0x118   :  { %v285_v32 = vpop.eup %284 }
 0x119   :  { %v216_v33 = vmul.f32 %v285_v32, %v209_v27 }
 0x11b   :  { %217 = vst [vmem:[%s375_s4] sm:$0xff] %v216_v33 }

// kernel: cspdarknet_fwd.79
= control target key start
LH: loop header
LB: loop body
LE: loop exit
PB: predicated region body
PF: predicated region fallthrough
CT: control target
= control target key end

     0   :  { %v157_v0 = vmov 0.0   ;;  %vm158_vm0 = vmmov 0   ;;  %vm51_vm1 = vcmask 523264   ;;  %s208_s1 = inlined_call_operand.vmem [shape: bf16[64,128], index: 1, kind: input, shape index: {}]   ;;  %s209_s0 = inlined_call_operand.vmem [shape: bf16[8,64], index: 0, kind: input, shape index: {}]   ;;  %s210_s2 = inlined_call_operand.vmem [shape: f32[1,128], index: 2, kind: input, shape index: {}]   ;;  %s211_s3 = inlined_call_operand.vmem [shape: f32[1,128], index: 3, kind: input, shape index: {}]   ;;  %s212_s4 = inlined_call_operand.vmem [shape: f32[8,128], index: 4, kind: output, shape index: {}]  }
   0x1   :  { %135 = vmatprep.subr.bf16.mxu0 %v157_v0  ;;  %v149_v1 = vld [vmem:[%s208_s1] sm:$0xff]   ;;  %143 = vmatprep.mubr.msk.bf16.mxu0 %vm158_vm0, %v157_v0  ;;  %v150_v2 = vld [vmem:[%s208_s1 + $0x8] sm:$0xff]   ;;  %v151_v3 = vld [vmem:[%s208_s1 + $0x10] sm:$0xff]  }
   0x2   :  { %136 = vmatpush3.bf16.msra.mxu0 %v149_v1  ;;  %v152_v4 = vld [vmem:[%s208_s1 + $0x18] sm:$0xff]   ;;  %v18_v5 = vld [vmem:[%s209_s0] sm:$0xf] }
   0x3   :  { %137 = vmatprep.subr.bf16.mxu0 %v157_v0  ;;  %v128_v6 = vld [vmem:[%s210_s2] ss:$0 sm:$0xff] }
   0x4   :  { %v129_v8 = vld [vmem:[%s211_s3] ss:$0 sm:$0xff] }
   0x6   :  { %138 = vmatpush3.bf16.msra.mxu0 %v150_v2 }
   0x7   :  { %139 = vmatprep.subr.bf16.mxu0 %v157_v0 }
   0xa   :  { %140 = vmatpush3.bf16.msra.mxu0 %v151_v3 }
   0xb   :  { %141 = vmatprep.subr.bf16.mxu0 %v157_v0 }
   0xe   :  { %142 = vmatpush3.bf16.msra.mxu0 %v152_v4 }
  0x11   :  { %144 = vmatmul.mubr.msk.bf16.vlgmr.msra.gmra.mrb[0].mxu0 %vm51_vm1, %v18_v5 }
  0xe4   :  { %v89_v7 = vpop.f32.mrb[0].mxu0 }
  0xe5   :  { %v102_v9 = vmul.f32 %v128_v6, %v89_v7  ;;  %v145_v10 = vpop.f32.mrb[1].mxu0 }
  0xe6   :  { %v92_v11 = vpop.f32.mrb[2].mxu0 }
  0xe7   :  { %v110_v12 = vadd.f32 %v129_v8, %v102_v9  ;;  %v146_v13 = vpop.f32.mrb[3].mxu0 }
  0xe9   :  { %v111_v14 = vsub.f32 0.0, %v110_v12 }
  0xeb   :  { %v112_v15 = vmul.f32 1.442695, %v111_v14 }
  0xed   :  { %153 = vpow2.f32 %v112_v15 }
  0xf7   :  { %v154_v16 = vpop.eup %153 }
  0xf8   :  { %v114_v17 = vadd.f32 1.0, %v154_v16 }
  0xfa   :  { %155 = vrcp.f32 %v114_v17 }
 0x104   :  { %v156_v18 = vpop.eup %155 }
 0x105   :  { %v117_v19 = vmul.f32 %v156_v18, %v110_v12 }
 0x107   :  { %118 = vst [vmem:[%s212_s4] sm:$0xff] %v117_v19 }

// kernel: cspdarknet_fwd.81
= control target key start
LH: loop header
LB: loop body
LE: loop exit
PB: predicated region body
PF: predicated region fallthrough
CT: control target
= control target key end

     0   :  { %v240_v1 = vmov 0.0   ;;  %vm241_vm0 = vmmov 0   ;;  %s313_s0 = inlined_call_operand.vmem [shape: bf16[8,128], index: 0, kind: input, shape index: {}]   ;;  %s314_s1 = inlined_call_operand.vmem [shape: bf16[128,128], index: 1, kind: input, shape index: {}]   ;;  %s315_s2 = inlined_call_operand.vmem [shape: f32[1,128], index: 2, kind: input, shape index: {}]   ;;  %s316_s3 = inlined_call_operand.vmem [shape: f32[1,128], index: 3, kind: input, shape index: {}]   ;;  %s317_s4 = inlined_call_operand.hbm [shape: f32[8,128], index: 4, kind: output, shape index: {}]  }
   0x1   :  { %v204_v0 = vld [vmem:[%s314_s1] sm:$0xff]   ;;  %181 = vmatprep.subr.bf16.mxu0 %v240_v1  ;;  %v205_v2 = vld [vmem:[%s314_s1 + $0x8] sm:$0xff]   ;;  %197 = vmatprep.mubr.msk.bf16.mxu0 %vm241_vm0, %v240_v1  ;;  %v206_v3 = vld [vmem:[%s314_s1 + $0x10] sm:$0xff]  }
   0x2   :  { %182 = vmatpush3.bf16.msra.mxu0 %v204_v0 }
   0x3   :  { %183 = vmatprep.subr.bf16.mxu0 %v240_v1 }
   0x6   :  { %184 = vmatpush3.bf16.msra.mxu0 %v205_v2 }
   0x7   :  { %185 = vmatprep.subr.bf16.mxu0 %v240_v1 }
   0x8   :  { %9 = vsyncpa [#allocation3], 0  ;;  %v207_v4 = vld [vmem:[%s314_s1 + $0x18] sm:$0xff]   ;;  %v208_v5 = vld [vmem:[%s314_s1 + $0x20] sm:$0xff]  }
   0x9   :  { %v209_v6 = vld [vmem:[%s314_s1 + $0x28] sm:$0xff]   ;;  %v210_v7 = vld [vmem:[%s314_s1 + $0x30] sm:$0xff]   ;;  %v211_v8 = vld [vmem:[%s314_s1 + $0x38] sm:$0xff]  }
   0xa   :  { %186 = vmatpush3.bf16.msra.mxu0 %v206_v3  ;;  %v19_v9 = vld [vmem:[%s313_s0] sm:$0xf]  ;;  %s242_s0 = smov [#allocation2]  }
   0xb   :  { %187 = vmatprep.subr.bf16.mxu0 %v240_v1  ;;  %v170_v10 = vld [vmem:[%s315_s2] ss:$0 sm:$0xff]  ;;  %s154_s1 = sshll.u32 %s242_s0, 4  ;;  %s155_s1 = int_to_ptr.vmem [resolvable:$true] %s154_s1 }
   0xc   :  { %v171_v12 = vld [vmem:[%s316_s3] ss:$0 sm:$0xff]  ;;  %s216_s2 = scalar_lea.vmem %s155_s1, 128  ;;  %p221_p1 = scmp.lt.s32.totalorder %s155_s1, %s155_s1 }
   0xd   :  { %p217_p0 = scmp.ne.s32.totalorder %s155_s1, %s216_s2  ;;  %p222_p2 = scmp.lt.s32.totalorder %s216_s2, %s216_s2 }
   0xe   :  { %188 = vmatpush3.bf16.msra.mxu0 %v207_v4 }
   0xf   :  { %189 = vmatprep.subr.bf16.mxu0 %v240_v1  ;;  %p223_p3 = por %p222_p2, %p221_p1 }
  0x11   :  { %p224_p4 = pnand %p223_p3, %p217_p0 }
  0x12   :  { %190 = vmatpush3.bf16.msra.mxu0 %v208_v5 }
  0x13   :  { %191 = vmatprep.subr.bf16.mxu0 %v240_v1 }
  0x16   :  { %192 = vmatpush3.bf16.msra.mxu0 %v209_v6 }
  0x17   :  { %193 = vmatprep.subr.bf16.mxu0 %v240_v1 }
  0x1a   :  { %194 = vmatpush3.bf16.msra.mxu0 %v210_v7 }
  0x1b   :  { %195 = vmatprep.subr.bf16.mxu0 %v240_v1 }
  0x1e   :  { %196 = vmatpush3.bf16.msra.mxu0 %v211_v8 }
  0x21   :  { %198 = vmatmul.mubr.bf16.vlgmr.msra.gmra.mrb[0].mxu0 %v19_v9 }
  0xf4   :  { %v118_v11 = vpop.f32.mrb[0].mxu0 }
  0xf5   :  { %v131_v13 = vmul.f32 %v170_v10, %v118_v11  ;;  %v199_v14 = vpop.f32.mrb[1].mxu0 }
  0xf6   :  { %v121_v15 = vpop.f32.mrb[2].mxu0 }
  0xf7   :  { %v139_v16 = vadd.f32 %v171_v12, %v131_v13  ;;  %v200_v17 = vpop.f32.mrb[3].mxu0 }
  0xf9   :  { %v140_v18 = vsub.f32 0.0, %v139_v16 }
  0xfb   :  { %v141_v19 = vmul.f32 1.442695, %v140_v18 }
  0xfd   :  { %212 = vpow2.f32 %v141_v19 }
 0x107   :  { %v213_v20 = vpop.eup %212 }
 0x108   :  { %v143_v21 = vadd.f32 1.0, %v213_v20 }
 0x10a   :  { %214 = vrcp.f32 %v143_v21 }
 0x114   :  { %v215_v22 = vpop.eup %214 }
 0x115   :  { %v146_v23 = vmul.f32 %v215_v22, %v139_v16 }
 0x117   :  { %147 = vst [vmem:[#allocation2] sm:$0xff] %v146_v23 }
 0x118   :  { %227 = shalt.err (!%p224_p4)
}
 0x119   :  { %s228_s12 = scalar_lea.hbm %s317_s4, 128 }
 0x11a   :  { %p229_p5 = scmp.ne.s32.totalorder %s317_s4, %s228_s12  ;;  %p232_p6 = scmp.lt.u32.totalorder %s228_s12, %s317_s4 }
 0x11c   :  { %p234_p7 = pnand %p232_p6, %p229_p5 }
 0x11e   :  { %237 = shalt.err (!%p234_p7)
}
 0x11f   :  { %157 = dma.vmem_to_hbm [thread:$0]  %s155_s1, 128, %s317_s4, [#allocation3]  }
 0x120   :  { %238 = dma.done.wait [#allocation3], 128  }
 0x121   :  { %239 = vsyncadd [#allocation3], 4294967168 }
 0x122   :  { %161 = vsyncpa [#allocation3], 1 }

</bundles_post_ra>
